<compile_context>
chip_gen: v5e
topology: v5e:2x2
jax: 0.10.0
libtpu: 0.0.40
codegen_flags: <defaults>
</compile_context>

<pallas_src>
import functools

import numpy as np
import jax
import jax.numpy as jnp
from jax.experimental import pallas as pl
from jax.experimental.pallas import tpu as pltpu


# ----------------------------------------------------------------------------
# conv1: 3x3 conv (stride 1, pad 1) + bias + ReLU + vertical 2x max-pool.
# Channel-planar layout: W stays in the lane dim (dense), channels (padded to
# 8) and the 9 taps form the K=72 contraction.  Horizontal pooling + NHWC
# transpose are done in the wrapper (tiny XLA data movement).
# ----------------------------------------------------------------------------
def conv1_kernel(x_ref, w_ref, b_ref, o_ref, *, R):
    # x_ref: (H+2, 8, W+2)  planar padded image (channels zero-padded 3 -> 8)
    # w_ref: (Cout, 72)     taps ordered (dy, dx, ci-padded)
    # b_ref: (Cout, 1)
    # o_ref: (H//2, Cout, W) vertically pooled conv rows (planar, lane-dense)
    Hp2, _, Wp2 = x_ref.shape
    H, W = Hp2 - 2, Wp2 - 2
    w = w_ref[...]                     # (Cout, 72), loaded once per image
    bias = b_ref[...]                  # (Cout, 1), hoisted out of the loop

    def body(rb, carry):
        h0 = rb * R
        # dx-shifted copies of the R+2 padded rows this block touches.
        shifted = []
        for t in range(R + 2):
            row = x_ref[h0 + t]                               # (8, W+2)
            shifted.append([row[:, dx:dx + W] for dx in range(3)])
        # RHS (72, R*W): sublane axis = (dy, dx, ci), lane axis = (row, w).
        cols = []
        for i in range(R):
            parts = [shifted[i + dy][dx] for dy in range(3) for dx in range(3)]
            cols.append(jnp.concatenate(parts, axis=0))       # (72, W)
        rhs = jnp.concatenate(cols, axis=1)                   # (72, R*W)
        out = jnp.dot(w, rhs, preferred_element_type=jnp.float32)  # (Cout, R*W)
        out = jnp.maximum(out + bias, 0.0)
        for j in range(R // 2):                               # vertical 2x pool
            vp = jnp.maximum(out[:, (2 * j) * W:(2 * j + 1) * W],
                             out[:, (2 * j + 1) * W:(2 * j + 2) * W])
            o_ref[rb * (R // 2) + j] = vp.astype(o_ref.dtype)
        return carry

    jax.lax.fori_loop(0, H // R, body, 0)


def conv1_relu_vpool(xp, w, b, *, rows_per_block):
    # xp: (B, H+2, 8, W+2) planar padded, w: (Cout, 72), b: (Cout, 1)
    B, Hp2, Cp, Wp2 = xp.shape
    H, W = Hp2 - 2, Wp2 - 2
    Cout = w.shape[0]
    R = rows_per_block
    assert H % R == 0 and R % 2 == 0 and W % 2 == 0 and Cp == 8
    return pl.pallas_call(
        functools.partial(conv1_kernel, R=R),
        out_shape=jax.ShapeDtypeStruct((B, H // 2, Cout, W), jnp.float32),
        grid=(B,),
        in_specs=[
            pl.BlockSpec((None, Hp2, Cp, Wp2), lambda bi: (bi, 0, 0, 0)),
            pl.BlockSpec((Cout, 9 * Cp), lambda bi: (0, 0)),
            pl.BlockSpec((Cout, 1), lambda bi: (0, 0)),
        ],
        out_specs=pl.BlockSpec((None, H // 2, Cout, W), lambda bi: (bi, 0, 0, 0)),
        compiler_params=pltpu.CompilerParams(
            dimension_semantics=("parallel",)),
    )(xp, w, b)


# ----------------------------------------------------------------------------
# conv2 / conv3: 3x3 conv + bias + ReLU + 2x2 max-pool, channel-last.
# Per tap, R conv rows are stacked into the matmul M dimension (M = R*W = 256)
# via a free collapse-reshape of a contiguous (R, W, Cin) slab.
# ----------------------------------------------------------------------------
def conv3x3_relu_pool_kernel(x_ref, w_ref, b_ref, o_ref, mrow_ref, *, R):
    # x_ref : (H+2, W+2, Cin)   zero-padded input image
    # w_ref : (9, Cin, Cout)    3x3 taps
    # b_ref : (1, Cout)
    # o_ref : (H//2, W//2, Cout)
    # mrow  : (W, Cout) f32 scratch (one vertically pooled conv row)
    Hp2, Wp2, Cin = x_ref.shape
    H, W = Hp2 - 2, Wp2 - 2
    bias = b_ref[...].astype(jnp.float32)                     # (1, Cout), hoisted

    def body(rb, carry):
        h0 = rb * R
        acc = None
        for dy in range(3):
            for dx in range(3):
                tap = x_ref[pl.ds(h0 + dy, R), pl.ds(dx, W), :]   # (R, W, Cin)
                tap = tap.reshape(R * W, Cin)                     # layout no-op
                d = jnp.dot(tap, w_ref[dy * 3 + dx],
                            preferred_element_type=jnp.float32)
                acc = d if acc is None else acc + d
        acc = jnp.maximum(acc + bias, 0.0)                        # (R*W, Cout)
        for j in range(R // 2):
            r0 = acc[(2 * j) * W:(2 * j + 1) * W]
            r1 = acc[(2 * j + 1) * W:(2 * j + 2) * W]
            mrow_ref[...] = jnp.maximum(r0, r1)                   # vertical max
            even = mrow_ref[pl.ds(0, W // 2, stride=2), :]
            odd = mrow_ref[pl.ds(1, W // 2, stride=2), :]
            o_ref[rb * (R // 2) + j] = jnp.maximum(even, odd).astype(o_ref.dtype)
        return carry

    jax.lax.fori_loop(0, H // R, body, 0)


def conv_relu_pool(x, w, b, *, rows_per_block):
    # x: (B, H, W, Cin), w: (3, 3, Cin, Cout), b: (Cout,)
    B, H, W, Cin = x.shape
    Cout = w.shape[-1]
    R = rows_per_block
    assert H % R == 0 and R % 2 == 0 and W % 2 == 0
    xp = jnp.pad(x, ((0, 0), (1, 1), (1, 1), (0, 0)))
    w9 = w.reshape(9, Cin, Cout)
    Ho, Wo = H // 2, W // 2
    return pl.pallas_call(
        functools.partial(conv3x3_relu_pool_kernel, R=R),
        out_shape=jax.ShapeDtypeStruct((B, Ho, Wo, Cout), jnp.float32),
        grid=(B,),
        in_specs=[
            pl.BlockSpec((None, H + 2, W + 2, Cin), lambda bi: (bi, 0, 0, 0)),
            pl.BlockSpec((9, Cin, Cout), lambda bi: (0, 0, 0)),
            pl.BlockSpec((1, Cout), lambda bi: (0, 0)),
        ],
        out_specs=pl.BlockSpec((None, Ho, Wo, Cout), lambda bi: (bi, 0, 0, 0)),
        scratch_shapes=[pltpu.VMEM((W, Cout), jnp.float32)],
        compiler_params=pltpu.CompilerParams(
            dimension_semantics=("parallel",)),
    )(xp, w9, b.reshape(1, Cout))


# ----------------------------------------------------------------------------
# fc_image: K- and N-tiled linear with f32 VMEM accumulator.  Weights may be
# bf16 (activations are cast to the weight dtype before the dot).  The N grid
# axis is "parallel" so v7x can split it across both TensorCores.
# ----------------------------------------------------------------------------
def linear_kernel(x_ref, w_ref, b_ref, o_ref, acc_ref, *, apply_relu):
    k = pl.program_id(1)

    @pl.when(k == 0)
    def _():
        acc_ref[...] = jnp.zeros_like(acc_ref)

    acc_ref[...] += jnp.dot(x_ref[...].astype(w_ref.dtype), w_ref[...],
                            preferred_element_type=jnp.float32)

    @pl.when(k == pl.num_programs(1) - 1)
    def _():
        r = acc_ref[...] + b_ref[...].astype(jnp.float32)
        if apply_relu:
            r = jnp.maximum(r, 0.0)
        o_ref[...] = r.astype(o_ref.dtype)


def linear(x, w, b, *, relu=False, tk=None, tn=None):
    M, K = x.shape
    N = w.shape[1]
    if tk is None or K % tk != 0:
        tk = K
    if tn is None or N % tn != 0:
        tn = N
    nk, nn = K // tk, N // tn
    return pl.pallas_call(
        functools.partial(linear_kernel, apply_relu=relu),
        out_shape=jax.ShapeDtypeStruct((M, N), jnp.float32),
        grid=(nn, nk),
        in_specs=[
            pl.BlockSpec((M, tk), lambda n, k: (0, k)),
            pl.BlockSpec((tk, tn), lambda n, k: (k, n)),
            pl.BlockSpec((1, tn), lambda n, k: (0, n)),
        ],
        out_specs=pl.BlockSpec((M, tn), lambda n, k: (0, n)),
        scratch_shapes=[pltpu.VMEM((M, tn), jnp.float32)],
        compiler_params=pltpu.CompilerParams(
            dimension_semantics=("parallel", "arbitrary")),
    )(x, w, b.reshape(1, N))


# ----------------------------------------------------------------------------
# Fused head: fc_bio_1 + fc_bio_2 + (concat) + fc_combined_1/2 + fc_out in a
# single pallas_call.  The concat is folded into fc_combined_1 by splitting
# its weight into the x1 part and the x2 part.
# ----------------------------------------------------------------------------
def head_kernel(x1_ref, xb_ref, w1_ref, b1_ref, w2_ref, b2_ref,
                w3a_ref, w3b_ref, b3_ref, w4_ref, b4_ref, w5_ref, b5_ref,
                o_ref):
    f32 = jnp.float32
    h = jnp.maximum(jnp.dot(xb_ref[...], w1_ref[...],
                            preferred_element_type=f32) + b1_ref[...], 0.0)
    h = jnp.maximum(jnp.dot(h, w2_ref[...],
                            preferred_element_type=f32) + b2_ref[...], 0.0)
    c = (jnp.dot(x1_ref[...], w3a_ref[...], preferred_element_type=f32)
         + jnp.dot(h, w3b_ref[...], preferred_element_type=f32)
         + b3_ref[...])
    c = jnp.maximum(c, 0.0)
    c = jnp.maximum(jnp.dot(c, w4_ref[...],
                            preferred_element_type=f32) + b4_ref[...], 0.0)
    o_ref[...] = (jnp.dot(c, w5_ref[...], preferred_element_type=f32)
                  + b5_ref[...]).astype(o_ref.dtype)


def fused_head(x1, xb, p):
    M = x1.shape[0]
    split = x1.shape[1]
    w3 = p["fc_combined_1_w"]
    args = (
        x1, xb,
        p["fc_bio_1_w"], p["fc_bio_1_b"].reshape(1, -1),
        p["fc_bio_2_w"], p["fc_bio_2_b"].reshape(1, -1),
        w3[:split], w3[split:], p["fc_combined_1_b"].reshape(1, -1),
        p["fc_combined_2_w"], p["fc_combined_2_b"].reshape(1, -1),
        p["fc_out_w"], p["fc_out_b"].reshape(1, -1),
    )
    n_out = p["fc_out_w"].shape[1]
    in_specs = [pl.BlockSpec(a.shape, lambda i: (0, 0)) for a in args]
    return pl.pallas_call(
        head_kernel,
        out_shape=jax.ShapeDtypeStruct((M, n_out), jnp.float32),
        grid=(1,),
        in_specs=in_specs,
        out_specs=pl.BlockSpec((M, n_out), lambda i: (0, 0)),
        compiler_params=pltpu.CompilerParams(
            dimension_semantics=("arbitrary",)),
    )(*args)


# ----------------------------------------------------------------------------
# Full forward pass (glue in plain JAX: pads, transposes, flatten).
# ----------------------------------------------------------------------------
def combined_nn_forward(params, X_images, X_bio):
    # X_images: NCHW (B, 3, 128, 128) like PyTorch; X_bio: (B, 163)
    B, C, H, W = X_images.shape
    assert (C, H, W) == (3, 128, 128)  # forced by the module's view(-1, 128*16*16)

    # conv1: planar layout, channels zero-padded 3 -> 8, W in the lane dim.
    xp = jnp.pad(X_images, ((0, 0), (0, 5), (1, 1), (1, 1)))   # (B, 8, 130, 130)
    xp = jnp.transpose(xp, (0, 2, 1, 3))                        # (B, 130, 8, 130)
    w1 = jnp.pad(params["conv1_w"], ((0, 0), (0, 0), (0, 5), (0, 0)))
    w1 = jnp.transpose(w1.reshape(72, 32), (1, 0))              # (32, 72)
    y = conv1_relu_vpool(xp, w1, params["conv1_b"].reshape(32, 1),
                         rows_per_block=8)                      # (B, 64, 32, 128)
    # horizontal 2x pool + planar -> NHWC (cheap XLA data movement)
    y = jnp.max(y.reshape(B, H // 2, 32, W // 2, 2), axis=-1)   # (B, 64, 32, 64)
    x = jnp.transpose(y, (0, 1, 3, 2))                          # (B, 64, 64, 32)

    x = conv_relu_pool(x, params["conv2_w"], params["conv2_b"],
                       rows_per_block=4)                        # (B, 32, 32, 64)
    x = conv_relu_pool(x, params["conv3_w"], params["conv3_b"],
                       rows_per_block=8)                        # (B, 16, 16, 128)

    # flatten in NCHW order to match torch's view(-1, 128*16*16)
    x1 = jnp.transpose(x, (0, 3, 1, 2)).reshape(B, -1)          # (B, 32768)
    x1 = linear(x1, params["fc_image_w"], params["fc_image_b"],
                relu=True, tk=4096, tn=128)                     # (B, 256)
    return fused_head(x1, X_bio, params)                        # (B, 6)


# Pure-JAX reference (same precision policy: bf16 fc_image weights).
def reference_forward(params, X_images, X_bio):
    hi = jax.lax.Precision.HIGHEST
    x = jnp.transpose(X_images, (0, 2, 3, 1))

    def block(x, w, b):
        y = jax.lax.conv_general_dilated(
            x, w, window_strides=(1, 1), padding="SAME",
            dimension_numbers=("NHWC", "HWIO", "NHWC"), precision=hi)
        y = jnp.maximum(y + b, 0.0)
        return jax.lax.reduce_window(y, -jnp.inf, jax.lax.max,
                                     (1, 2, 2, 1), (1, 2, 2, 1), "VALID")

    x = block(x, params["conv1_w"], params["conv1_b"])
    x = block(x, params["conv2_w"], params["conv2_b"])
    x = block(x, params["conv3_w"], params["conv3_b"])
    x1 = jnp.transpose(x, (0, 3, 1, 2)).reshape(x.shape[0], -1)
    wi = params["fc_image_w"]
    x1 = jnp.maximum(jnp.dot(x1.astype(wi.dtype), wi,
                             preferred_element_type=jnp.float32)
                     + params["fc_image_b"], 0.0)
    x2 = jnp.maximum(jnp.dot(X_bio, params["fc_bio_1_w"], precision=hi)
                     + params["fc_bio_1_b"], 0.0)
    x2 = jnp.maximum(jnp.dot(x2, params["fc_bio_2_w"], precision=hi)
                     + params["fc_bio_2_b"], 0.0)
    xc = jnp.concatenate([x1, x2], axis=1)
    xc = jnp.maximum(jnp.dot(xc, params["fc_combined_1_w"], precision=hi)
                     + params["fc_combined_1_b"], 0.0)
    xc = jnp.maximum(jnp.dot(xc, params["fc_combined_2_w"], precision=hi)
                     + params["fc_combined_2_b"], 0.0)
    return jnp.dot(xc, params["fc_out_w"], precision=hi) + params["fc_out_b"]


def init_params(key):
    keys = jax.random.split(key, 18)

    def conv_w(k, cin, cout):
        return jax.random.normal(k, (3, 3, cin, cout), jnp.float32) / np.sqrt(9.0 * cin)

    def lin_w(k, fin, fout):
        return jax.random.normal(k, (fin, fout), jnp.float32) / np.sqrt(float(fin))

    def bias(k, n):
        return 0.1 * jax.random.normal(k, (n,), jnp.float32)

    return {
        "conv1_w": conv_w(keys[0], 3, 32),   "conv1_b": bias(keys[1], 32),
        "conv2_w": conv_w(keys[2], 32, 64),  "conv2_b": bias(keys[3], 64),
        "conv3_w": conv_w(keys[4], 64, 128), "conv3_b": bias(keys[5], 128),
        "fc_image_w": lin_w(keys[6], 128 * 16 * 16, 256), "fc_image_b": bias(keys[7], 256),
        "fc_bio_1_w": lin_w(keys[8], 163, 256),           "fc_bio_1_b": bias(keys[9], 256),
        "fc_bio_2_w": lin_w(keys[10], 256, 128),          "fc_bio_2_b": bias(keys[11], 128),
        "fc_combined_1_w": lin_w(keys[12], 384, 128),     "fc_combined_1_b": bias(keys[13], 128),
        "fc_combined_2_w": lin_w(keys[14], 128, 64),      "fc_combined_2_b": bias(keys[15], 64),
        "fc_out_w": lin_w(keys[16], 64, 6),               "fc_out_b": bias(keys[17], 6),
    }


if __name__ == "__main__":
    params = init_params(jax.random.PRNGKey(42))
    # Inference precision policy: the 32 MB fc_image weight (the single biggest
    # HBM stream) is stored in bf16; everything else stays f32.
    params = dict(params, fc_image_w=params["fc_image_w"].astype(jnp.bfloat16))

    key = jax.random.PRNGKey(0)
    k1, k2 = jax.random.split(key)
    # batch=2; spatial 128x128 is forced by the module's view(-1, 128*16*16)
    X_images = jax.random.normal(k1, (2, 3, 128, 128), jnp.float32)
    X_bio = jax.random.normal(k2, (2, 163), jnp.float32)

    out = jax.jit(combined_nn_forward)(params, X_images, X_bio)
    jax.block_until_ready(out)

    ref = jax.jit(reference_forward)(params, X_images, X_bio)
    jax.block_until_ready(ref)

    assert out.shape == (2, 6)
    assert bool(jnp.all(jnp.isfinite(out)))
    # Reference mimics the bf16 fc_image policy; 2e-2 leaves headroom for
    # f32-matmul pass differences between Mosaic and XLA convolutions.
    assert bool(jnp.allclose(out, ref, rtol=2e-2, atol=2e-2))
    print("KERNEL_OK")
</pallas_src>

<mosaic_0001>
module attributes {stable_mosaic.version = 11 : i64} {
  func.func @conv1_kernel(%arg0: i32, %arg1: memref<1x130x8x130xf32, #tpu.memory_space<vmem>>, %arg2: memref<32x72xf32, #tpu.memory_space<vmem>>, %arg3: memref<32x1xf32, #tpu.memory_space<vmem>>, %arg4: memref<1x64x32x128xf32, #tpu.memory_space<vmem>>) attributes {dimension_semantics = [#tpu.dimension_semantics<parallel>], iteration_bounds = array<i64: 2>, scalar_prefetch = 0 : i64, scratch_operands = 0 : i64, tpu.core_type = #tpu.core_type<tc>, window_params = [{transform_indices = @transform_0, window_bounds = array<i64: 1, 130, 8, 130>}, {pipeline_mode = #tpu.pipeline_mode<synchronous>, transform_indices = @transform_1, window_bounds = array<i64: 32, 72>}, {pipeline_mode = #tpu.pipeline_mode<synchronous>, transform_indices = @transform_2, window_bounds = array<i64: 32, 1>}, {transform_indices = @transform_3, window_bounds = array<i64: 1, 64, 32, 128>}]} {
    %c0 = arith.constant 0 : index
    %c0_0 = arith.constant 0 : index
    %0 = vector.load %arg2[%c0, %c0_0] : memref<32x72xf32, #tpu.memory_space<vmem>>, vector<32x72xf32>
    %c0_1 = arith.constant 0 : index
    %c0_2 = arith.constant 0 : index
    %1 = vector.load %arg3[%c0_1, %c0_2] : memref<32x1xf32, #tpu.memory_space<vmem>>, vector<32x1xf32>
    %c0_i32 = arith.constant 0 : i32
    %c16_i32 = arith.constant 16 : i32
    %2 = arith.addi %c0_i32, %c16_i32 : i32
    %c1_i32 = arith.constant 1 : i32
    scf.for %arg5 = %c0_i32 to %2 step %c1_i32  : i32 {
      %c8_i32 = arith.constant 8 : i32
      %3 = arith.muli %arg5, %c8_i32 : i32
      %c0_i32_4 = arith.constant 0 : i32
      %4 = arith.addi %3, %c0_i32_4 : i32
      %c0_5 = arith.constant 0 : index
      %5 = arith.index_cast %4 : i32 to index
      %c0_6 = arith.constant 0 : index
      %c0_7 = arith.constant 0 : index
      %6 = vector.load %arg1[%c0_5, %5, %c0_6, %c0_7] : memref<1x130x8x130xf32, #tpu.memory_space<vmem>>, vector<1x1x8x130xf32>
      %7 = vector.shape_cast %6 : vector<1x1x8x130xf32> to vector<8x130xf32>
      %8 = vector.extract_strided_slice %7 {offsets = [0, 0], sizes = [8, 128], strides = [1, 1]} : vector<8x130xf32> to vector<8x128xf32>
      %9 = vector.extract_strided_slice %7 {offsets = [0, 1], sizes = [8, 128], strides = [1, 1]} : vector<8x130xf32> to vector<8x128xf32>
      %10 = vector.extract_strided_slice %7 {offsets = [0, 2], sizes = [8, 128], strides = [1, 1]} : vector<8x130xf32> to vector<8x128xf32>
      %c1_i32_8 = arith.constant 1 : i32
      %11 = arith.addi %3, %c1_i32_8 : i32
      %c0_9 = arith.constant 0 : index
      %12 = arith.index_cast %11 : i32 to index
      %c0_10 = arith.constant 0 : index
      %c0_11 = arith.constant 0 : index
      %13 = vector.load %arg1[%c0_9, %12, %c0_10, %c0_11] : memref<1x130x8x130xf32, #tpu.memory_space<vmem>>, vector<1x1x8x130xf32>
      %14 = vector.shape_cast %13 : vector<1x1x8x130xf32> to vector<8x130xf32>
      %15 = vector.extract_strided_slice %14 {offsets = [0, 0], sizes = [8, 128], strides = [1, 1]} : vector<8x130xf32> to vector<8x128xf32>
      %16 = vector.extract_strided_slice %14 {offsets = [0, 1], sizes = [8, 128], strides = [1, 1]} : vector<8x130xf32> to vector<8x128xf32>
      %17 = vector.extract_strided_slice %14 {offsets = [0, 2], sizes = [8, 128], strides = [1, 1]} : vector<8x130xf32> to vector<8x128xf32>
      %c2_i32 = arith.constant 2 : i32
      %18 = arith.addi %3, %c2_i32 : i32
      %c0_12 = arith.constant 0 : index
      %19 = arith.index_cast %18 : i32 to index
      %c0_13 = arith.constant 0 : index
      %c0_14 = arith.constant 0 : index
      %20 = vector.load %arg1[%c0_12, %19, %c0_13, %c0_14] : memref<1x130x8x130xf32, #tpu.memory_space<vmem>>, vector<1x1x8x130xf32>
      %21 = vector.shape_cast %20 : vector<1x1x8x130xf32> to vector<8x130xf32>
      %22 = vector.extract_strided_slice %21 {offsets = [0, 0], sizes = [8, 128], strides = [1, 1]} : vector<8x130xf32> to vector<8x128xf32>
      %23 = vector.extract_strided_slice %21 {offsets = [0, 1], sizes = [8, 128], strides = [1, 1]} : vector<8x130xf32> to vector<8x128xf32>
      %24 = vector.extract_strided_slice %21 {offsets = [0, 2], sizes = [8, 128], strides = [1, 1]} : vector<8x130xf32> to vector<8x128xf32>
      %c3_i32 = arith.constant 3 : i32
      %25 = arith.addi %3, %c3_i32 : i32
      %c0_15 = arith.constant 0 : index
      %26 = arith.index_cast %25 : i32 to index
      %c0_16 = arith.constant 0 : index
      %c0_17 = arith.constant 0 : index
      %27 = vector.load %arg1[%c0_15, %26, %c0_16, %c0_17] : memref<1x130x8x130xf32, #tpu.memory_space<vmem>>, vector<1x1x8x130xf32>
      %28 = vector.shape_cast %27 : vector<1x1x8x130xf32> to vector<8x130xf32>
      %29 = vector.extract_strided_slice %28 {offsets = [0, 0], sizes = [8, 128], strides = [1, 1]} : vector<8x130xf32> to vector<8x128xf32>
      %30 = vector.extract_strided_slice %28 {offsets = [0, 1], sizes = [8, 128], strides = [1, 1]} : vector<8x130xf32> to vector<8x128xf32>
      %31 = vector.extract_strided_slice %28 {offsets = [0, 2], sizes = [8, 128], strides = [1, 1]} : vector<8x130xf32> to vector<8x128xf32>
      %c4_i32 = arith.constant 4 : i32
      %32 = arith.addi %3, %c4_i32 : i32
      %c0_18 = arith.constant 0 : index
      %33 = arith.index_cast %32 : i32 to index
      %c0_19 = arith.constant 0 : index
      %c0_20 = arith.constant 0 : index
      %34 = vector.load %arg1[%c0_18, %33, %c0_19, %c0_20] : memref<1x130x8x130xf32, #tpu.memory_space<vmem>>, vector<1x1x8x130xf32>
      %35 = vector.shape_cast %34 : vector<1x1x8x130xf32> to vector<8x130xf32>
      %36 = vector.extract_strided_slice %35 {offsets = [0, 0], sizes = [8, 128], strides = [1, 1]} : vector<8x130xf32> to vector<8x128xf32>
      %37 = vector.extract_strided_slice %35 {offsets = [0, 1], sizes = [8, 128], strides = [1, 1]} : vector<8x130xf32> to vector<8x128xf32>
      %38 = vector.extract_strided_slice %35 {offsets = [0, 2], sizes = [8, 128], strides = [1, 1]} : vector<8x130xf32> to vector<8x128xf32>
      %c5_i32 = arith.constant 5 : i32
      %39 = arith.addi %3, %c5_i32 : i32
      %c0_21 = arith.constant 0 : index
      %40 = arith.index_cast %39 : i32 to index
      %c0_22 = arith.constant 0 : index
      %c0_23 = arith.constant 0 : index
      %41 = vector.load %arg1[%c0_21, %40, %c0_22, %c0_23] : memref<1x130x8x130xf32, #tpu.memory_space<vmem>>, vector<1x1x8x130xf32>
      %42 = vector.shape_cast %41 : vector<1x1x8x130xf32> to vector<8x130xf32>
      %43 = vector.extract_strided_slice %42 {offsets = [0, 0], sizes = [8, 128], strides = [1, 1]} : vector<8x130xf32> to vector<8x128xf32>
      %44 = vector.extract_strided_slice %42 {offsets = [0, 1], sizes = [8, 128], strides = [1, 1]} : vector<8x130xf32> to vector<8x128xf32>
      %45 = vector.extract_strided_slice %42 {offsets = [0, 2], sizes = [8, 128], strides = [1, 1]} : vector<8x130xf32> to vector<8x128xf32>
      %c6_i32 = arith.constant 6 : i32
      %46 = arith.addi %3, %c6_i32 : i32
      %c0_24 = arith.constant 0 : index
      %47 = arith.index_cast %46 : i32 to index
      %c0_25 = arith.constant 0 : index
      %c0_26 = arith.constant 0 : index
      %48 = vector.load %arg1[%c0_24, %47, %c0_25, %c0_26] : memref<1x130x8x130xf32, #tpu.memory_space<vmem>>, vector<1x1x8x130xf32>
      %49 = vector.shape_cast %48 : vector<1x1x8x130xf32> to vector<8x130xf32>
      %50 = vector.extract_strided_slice %49 {offsets = [0, 0], sizes = [8, 128], strides = [1, 1]} : vector<8x130xf32> to vector<8x128xf32>
      %51 = vector.extract_strided_slice %49 {offsets = [0, 1], sizes = [8, 128], strides = [1, 1]} : vector<8x130xf32> to vector<8x128xf32>
      %52 = vector.extract_strided_slice %49 {offsets = [0, 2], sizes = [8, 128], strides = [1, 1]} : vector<8x130xf32> to vector<8x128xf32>
      %c7_i32 = arith.constant 7 : i32
      %53 = arith.addi %3, %c7_i32 : i32
      %c0_27 = arith.constant 0 : index
      %54 = arith.index_cast %53 : i32 to index
      %c0_28 = arith.constant 0 : index
      %c0_29 = arith.constant 0 : index
      %55 = vector.load %arg1[%c0_27, %54, %c0_28, %c0_29] : memref<1x130x8x130xf32, #tpu.memory_space<vmem>>, vector<1x1x8x130xf32>
      %56 = vector.shape_cast %55 : vector<1x1x8x130xf32> to vector<8x130xf32>
      %57 = vector.extract_strided_slice %56 {offsets = [0, 0], sizes = [8, 128], strides = [1, 1]} : vector<8x130xf32> to vector<8x128xf32>
      %58 = vector.extract_strided_slice %56 {offsets = [0, 1], sizes = [8, 128], strides = [1, 1]} : vector<8x130xf32> to vector<8x128xf32>
      %59 = vector.extract_strided_slice %56 {offsets = [0, 2], sizes = [8, 128], strides = [1, 1]} : vector<8x130xf32> to vector<8x128xf32>
      %c8_i32_30 = arith.constant 8 : i32
      %60 = arith.addi %3, %c8_i32_30 : i32
      %c0_31 = arith.constant 0 : index
      %61 = arith.index_cast %60 : i32 to index
      %c0_32 = arith.constant 0 : index
      %c0_33 = arith.constant 0 : index
      %62 = vector.load %arg1[%c0_31, %61, %c0_32, %c0_33] : memref<1x130x8x130xf32, #tpu.memory_space<vmem>>, vector<1x1x8x130xf32>
      %63 = vector.shape_cast %62 : vector<1x1x8x130xf32> to vector<8x130xf32>
      %64 = vector.extract_strided_slice %63 {offsets = [0, 0], sizes = [8, 128], strides = [1, 1]} : vector<8x130xf32> to vector<8x128xf32>
      %65 = vector.extract_strided_slice %63 {offsets = [0, 1], sizes = [8, 128], strides = [1, 1]} : vector<8x130xf32> to vector<8x128xf32>
      %66 = vector.extract_strided_slice %63 {offsets = [0, 2], sizes = [8, 128], strides = [1, 1]} : vector<8x130xf32> to vector<8x128xf32>
      %c9_i32 = arith.constant 9 : i32
      %67 = arith.addi %3, %c9_i32 : i32
      %c0_34 = arith.constant 0 : index
      %68 = arith.index_cast %67 : i32 to index
      %c0_35 = arith.constant 0 : index
      %c0_36 = arith.constant 0 : index
      %69 = vector.load %arg1[%c0_34, %68, %c0_35, %c0_36] : memref<1x130x8x130xf32, #tpu.memory_space<vmem>>, vector<1x1x8x130xf32>
      %70 = vector.shape_cast %69 : vector<1x1x8x130xf32> to vector<8x130xf32>
      %71 = vector.extract_strided_slice %70 {offsets = [0, 0], sizes = [8, 128], strides = [1, 1]} : vector<8x130xf32> to vector<8x128xf32>
      %72 = vector.extract_strided_slice %70 {offsets = [0, 1], sizes = [8, 128], strides = [1, 1]} : vector<8x130xf32> to vector<8x128xf32>
      %73 = vector.extract_strided_slice %70 {offsets = [0, 2], sizes = [8, 128], strides = [1, 1]} : vector<8x130xf32> to vector<8x128xf32>
      %74 = tpu.concatenate %8, %9, %10, %15, %16, %17, %22, %23, %24 in 0 : vector<8x128xf32>, vector<8x128xf32>, vector<8x128xf32>, vector<8x128xf32>, vector<8x128xf32>, vector<8x128xf32>, vector<8x128xf32>, vector<8x128xf32>, vector<8x128xf32> -> vector<72x128xf32>
      %75 = tpu.concatenate %15, %16, %17, %22, %23, %24, %29, %30, %31 in 0 : vector<8x128xf32>, vector<8x128xf32>, vector<8x128xf32>, vector<8x128xf32>, vector<8x128xf32>, vector<8x128xf32>, vector<8x128xf32>, vector<8x128xf32>, vector<8x128xf32> -> vector<72x128xf32>
      %76 = tpu.concatenate %22, %23, %24, %29, %30, %31, %36, %37, %38 in 0 : vector<8x128xf32>, vector<8x128xf32>, vector<8x128xf32>, vector<8x128xf32>, vector<8x128xf32>, vector<8x128xf32>, vector<8x128xf32>, vector<8x128xf32>, vector<8x128xf32> -> vector<72x128xf32>
      %77 = tpu.concatenate %29, %30, %31, %36, %37, %38, %43, %44, %45 in 0 : vector<8x128xf32>, vector<8x128xf32>, vector<8x128xf32>, vector<8x128xf32>, vector<8x128xf32>, vector<8x128xf32>, vector<8x128xf32>, vector<8x128xf32>, vector<8x128xf32> -> vector<72x128xf32>
      %78 = tpu.concatenate %36, %37, %38, %43, %44, %45, %50, %51, %52 in 0 : vector<8x128xf32>, vector<8x128xf32>, vector<8x128xf32>, vector<8x128xf32>, vector<8x128xf32>, vector<8x128xf32>, vector<8x128xf32>, vector<8x128xf32>, vector<8x128xf32> -> vector<72x128xf32>
      %79 = tpu.concatenate %43, %44, %45, %50, %51, %52, %57, %58, %59 in 0 : vector<8x128xf32>, vector<8x128xf32>, vector<8x128xf32>, vector<8x128xf32>, vector<8x128xf32>, vector<8x128xf32>, vector<8x128xf32>, vector<8x128xf32>, vector<8x128xf32> -> vector<72x128xf32>
      %80 = tpu.concatenate %50, %51, %52, %57, %58, %59, %64, %65, %66 in 0 : vector<8x128xf32>, vector<8x128xf32>, vector<8x128xf32>, vector<8x128xf32>, vector<8x128xf32>, vector<8x128xf32>, vector<8x128xf32>, vector<8x128xf32>, vector<8x128xf32> -> vector<72x128xf32>
      %81 = tpu.concatenate %57, %58, %59, %64, %65, %66, %71, %72, %73 in 0 : vector<8x128xf32>, vector<8x128xf32>, vector<8x128xf32>, vector<8x128xf32>, vector<8x128xf32>, vector<8x128xf32>, vector<8x128xf32>, vector<8x128xf32>, vector<8x128xf32> -> vector<72x128xf32>
      %82 = tpu.concatenate %74, %75, %76, %77, %78, %79, %80, %81 in 1 : vector<72x128xf32>, vector<72x128xf32>, vector<72x128xf32>, vector<72x128xf32>, vector<72x128xf32>, vector<72x128xf32>, vector<72x128xf32>, vector<72x128xf32> -> vector<72x1024xf32>
      %cst = arith.constant dense<0.000000e+00> : vector<32x1024xf32>
      %83 = tpu.matmul %0, %82, %cst {dimension_numbers = #tpu.dot_dimension_numbers<[1], [0], [0], [1], [0, 0, 1, 1], [], []>} : vector<32x72xf32>, vector<72x1024xf32>, vector<32x1024xf32> -> vector<32x1024xf32>
      %84 = vector.broadcast %1 : vector<32x1xf32> to vector<32x1024xf32>
      %85 = arith.addf %83, %84 : vector<32x1024xf32>
      %cst_37 = arith.constant 0.000000e+00 : f32
      %86 = vector.broadcast %cst_37 : f32 to vector<32x1024xf32>
      %87 = arith.maximumf %85, %86 : vector<32x1024xf32>
      %88 = vector.extract_strided_slice %87 {offsets = [0, 0], sizes = [32, 128], strides = [1, 1]} : vector<32x1024xf32> to vector<32x128xf32>
      %89 = vector.extract_strided_slice %87 {offsets = [0, 128], sizes = [32, 128], strides = [1, 1]} : vector<32x1024xf32> to vector<32x128xf32>
      %90 = arith.maximumf %88, %89 : vector<32x128xf32>
      %c4_i32_38 = arith.constant 4 : i32
      %91 = arith.muli %arg5, %c4_i32_38 : i32
      %c0_i32_39 = arith.constant 0 : i32
      %92 = arith.addi %91, %c0_i32_39 : i32
      %c0_40 = arith.constant 0 : index
      %93 = arith.index_cast %92 : i32 to index
      %c0_41 = arith.constant 0 : index
      %c0_42 = arith.constant 0 : index
      %94 = vector.load %arg4[%c0_40, %93, %c0_41, %c0_42] : memref<1x64x32x128xf32, #tpu.memory_space<vmem>>, vector<1x1x32x128xf32>
      %95 = vector.shape_cast %94 : vector<1x1x32x128xf32> to vector<32x128xf32>
      %96 = vector.shape_cast %90 : vector<32x128xf32> to vector<1x1x32x128xf32>
      tpu.vector_store %arg4[%c0_40, %93, %c0_41, %c0_42], %96 {strides = array<i32>} : memref<1x64x32x128xf32, #tpu.memory_space<vmem>>, vector<1x1x32x128xf32>,
      %97 = vector.extract_strided_slice %87 {offsets = [0, 256], sizes = [32, 128], strides = [1, 1]} : vector<32x1024xf32> to vector<32x128xf32>
      %98 = vector.extract_strided_slice %87 {offsets = [0, 384], sizes = [32, 128], strides = [1, 1]} : vector<32x1024xf32> to vector<32x128xf32>
      %99 = arith.maximumf %97, %98 : vector<32x128xf32>
      %c4_i32_43 = arith.constant 4 : i32
      %100 = arith.muli %arg5, %c4_i32_43 : i32
      %c1_i32_44 = arith.constant 1 : i32
      %101 = arith.addi %100, %c1_i32_44 : i32
      %c0_45 = arith.constant 0 : index
      %102 = arith.index_cast %101 : i32 to index
      %c0_46 = arith.constant 0 : index
      %c0_47 = arith.constant 0 : index
      %103 = vector.load %arg4[%c0_45, %102, %c0_46, %c0_47] : memref<1x64x32x128xf32, #tpu.memory_space<vmem>>, vector<1x1x32x128xf32>
      %104 = vector.shape_cast %103 : vector<1x1x32x128xf32> to vector<32x128xf32>
      %105 = vector.shape_cast %99 : vector<32x128xf32> to vector<1x1x32x128xf32>
      tpu.vector_store %arg4[%c0_45, %102, %c0_46, %c0_47], %105 {strides = array<i32>} : memref<1x64x32x128xf32, #tpu.memory_space<vmem>>, vector<1x1x32x128xf32>,
      %106 = vector.extract_strided_slice %87 {offsets = [0, 512], sizes = [32, 128], strides = [1, 1]} : vector<32x1024xf32> to vector<32x128xf32>
      %107 = vector.extract_strided_slice %87 {offsets = [0, 640], sizes = [32, 128], strides = [1, 1]} : vector<32x1024xf32> to vector<32x128xf32>
      %108 = arith.maximumf %106, %107 : vector<32x128xf32>
      %c4_i32_48 = arith.constant 4 : i32
      %109 = arith.muli %arg5, %c4_i32_48 : i32
      %c2_i32_49 = arith.constant 2 : i32
      %110 = arith.addi %109, %c2_i32_49 : i32
      %c0_50 = arith.constant 0 : index
      %111 = arith.index_cast %110 : i32 to index
      %c0_51 = arith.constant 0 : index
      %c0_52 = arith.constant 0 : index
      %112 = vector.load %arg4[%c0_50, %111, %c0_51, %c0_52] : memref<1x64x32x128xf32, #tpu.memory_space<vmem>>, vector<1x1x32x128xf32>
      %113 = vector.shape_cast %112 : vector<1x1x32x128xf32> to vector<32x128xf32>
      %114 = vector.shape_cast %108 : vector<32x128xf32> to vector<1x1x32x128xf32>
      tpu.vector_store %arg4[%c0_50, %111, %c0_51, %c0_52], %114 {strides = array<i32>} : memref<1x64x32x128xf32, #tpu.memory_space<vmem>>, vector<1x1x32x128xf32>,
      %115 = vector.extract_strided_slice %87 {offsets = [0, 768], sizes = [32, 128], strides = [1, 1]} : vector<32x1024xf32> to vector<32x128xf32>
      %116 = vector.extract_strided_slice %87 {offsets = [0, 896], sizes = [32, 128], strides = [1, 1]} : vector<32x1024xf32> to vector<32x128xf32>
      %117 = arith.maximumf %115, %116 : vector<32x128xf32>
      %c4_i32_53 = arith.constant 4 : i32
      %118 = arith.muli %arg5, %c4_i32_53 : i32
      %c3_i32_54 = arith.constant 3 : i32
      %119 = arith.addi %118, %c3_i32_54 : i32
      %c0_55 = arith.constant 0 : index
      %120 = arith.index_cast %119 : i32 to index
      %c0_56 = arith.constant 0 : index
      %c0_57 = arith.constant 0 : index
      %121 = vector.load %arg4[%c0_55, %120, %c0_56, %c0_57] : memref<1x64x32x128xf32, #tpu.memory_space<vmem>>, vector<1x1x32x128xf32>
      %122 = vector.shape_cast %121 : vector<1x1x32x128xf32> to vector<32x128xf32>
      %123 = vector.shape_cast %117 : vector<32x128xf32> to vector<1x1x32x128xf32>
      tpu.vector_store %arg4[%c0_55, %120, %c0_56, %c0_57], %123 {strides = array<i32>} : memref<1x64x32x128xf32, #tpu.memory_space<vmem>>, vector<1x1x32x128xf32>,
    }
    %c16_i32_3 = arith.constant 16 : i32
    return
  }
  func.func @transform_0(%arg0: i32) -> (i32, i32, i32, i32) {
    %c0_i32 = arith.constant 0 : i32
    %c0_i32_0 = arith.constant 0 : i32
    %c0_i32_1 = arith.constant 0 : i32
    %c0_i32_2 = arith.constant 0 : i32
    return %arg0, %c0_i32, %c0_i32_0, %c0_i32_1 : i32, i32, i32, i32
  }
  func.func @transform_1(%arg0: i32) -> (i32, i32) {
    %c0_i32 = arith.constant 0 : i32
    %c0_i32_0 = arith.constant 0 : i32
    %c0_i32_1 = arith.constant 0 : i32
    return %c0_i32, %c0_i32_0 : i32, i32
  }
  func.func @transform_2(%arg0: i32) -> (i32, i32) {
    %c0_i32 = arith.constant 0 : i32
    %c0_i32_0 = arith.constant 0 : i32
    %c0_i32_1 = arith.constant 0 : i32
    return %c0_i32, %c0_i32_0 : i32, i32
  }
  func.func @transform_3(%arg0: i32) -> (i32, i32, i32, i32) {
    %c0_i32 = arith.constant 0 : i32
    %c0_i32_0 = arith.constant 0 : i32
    %c0_i32_1 = arith.constant 0 : i32
    %c0_i32_2 = arith.constant 0 : i32
    return %arg0, %c0_i32, %c0_i32_0, %c0_i32_1 : i32, i32, i32, i32
  }
}

module attributes {stable_mosaic.version = 11 : i64} {
  func.func @conv3x3_relu_pool_kernel(%arg0: i32, %arg1: memref<1x66x66x32xf32, #tpu.memory_space<vmem>>, %arg2: memref<9x32x64xf32, #tpu.memory_space<vmem>>, %arg3: memref<1x64xf32, #tpu.memory_space<vmem>>, %arg4: memref<1x32x32x64xf32, #tpu.memory_space<vmem>>, %arg5: memref<64x64xf32, #tpu.memory_space<vmem>>) attributes {dimension_semantics = [#tpu.dimension_semantics<parallel>], iteration_bounds = array<i64: 2>, scalar_prefetch = 0 : i64, scratch_operands = 1 : i64, tpu.core_type = #tpu.core_type<tc>, window_params = [{transform_indices = @transform_0, window_bounds = array<i64: 1, 66, 66, 32>}, {pipeline_mode = #tpu.pipeline_mode<synchronous>, transform_indices = @transform_1, window_bounds = array<i64: 9, 32, 64>}, {pipeline_mode = #tpu.pipeline_mode<synchronous>, transform_indices = @transform_2, window_bounds = array<i64: 1, 64>}, {transform_indices = @transform_3, window_bounds = array<i64: 1, 32, 32, 64>}]} {
    %c0 = arith.constant 0 : index
    %c0_0 = arith.constant 0 : index
    %0 = vector.load %arg3[%c0, %c0_0] : memref<1x64xf32, #tpu.memory_space<vmem>>, vector<1x64xf32>
    %c0_i32 = arith.constant 0 : i32
    %c16_i32 = arith.constant 16 : i32
    %1 = arith.addi %c0_i32, %c16_i32 : i32
    %c1_i32 = arith.constant 1 : i32
    scf.for %arg6 = %c0_i32 to %1 step %c1_i32  : i32 {
      %c4_i32 = arith.constant 4 : i32
      %2 = arith.muli %arg6, %c4_i32 : i32
      %c0_i32_2 = arith.constant 0 : i32
      %3 = arith.addi %2, %c0_i32_2 : i32
      %c0_3 = arith.constant 0 : index
      %4 = arith.index_cast %3 : i32 to index
      %c0_4 = arith.constant 0 : index
      %c0_5 = arith.constant 0 : index
      %5 = vector.load %arg1[%c0_3, %4, %c0_4, %c0_5] : memref<1x66x66x32xf32, #tpu.memory_space<vmem>>, vector<1x4x64x32xf32>
      %6 = vector.shape_cast %5 : vector<1x4x64x32xf32> to vector<4x64x32xf32>
      %7 = vector.shape_cast %6 : vector<4x64x32xf32> to vector<256x32xf32>
      %c0_6 = arith.constant 0 : index
      %c0_7 = arith.constant 0 : index
      %c0_8 = arith.constant 0 : index
      %8 = vector.load %arg2[%c0_6, %c0_7, %c0_8] : memref<9x32x64xf32, #tpu.memory_space<vmem>>, vector<1x32x64xf32>
      %9 = vector.shape_cast %8 : vector<1x32x64xf32> to vector<32x64xf32>
      %cst = arith.constant dense<0.000000e+00> : vector<256x64xf32>
      %10 = tpu.matmul %7, %9, %cst {dimension_numbers = #tpu.dot_dimension_numbers<[1], [0], [0], [1], [0, 0, 1, 1], [], []>} : vector<256x32xf32>, vector<32x64xf32>, vector<256x64xf32> -> vector<256x64xf32>
      %c0_i32_9 = arith.constant 0 : i32
      %11 = arith.addi %2, %c0_i32_9 : i32
      %c0_10 = arith.constant 0 : index
      %12 = arith.index_cast %11 : i32 to index
      %c1 = arith.constant 1 : index
      %c0_11 = arith.constant 0 : index
      %13 = vector.load %arg1[%c0_10, %12, %c1, %c0_11] : memref<1x66x66x32xf32, #tpu.memory_space<vmem>>, vector<1x4x64x32xf32>
      %14 = vector.shape_cast %13 : vector<1x4x64x32xf32> to vector<4x64x32xf32>
      %15 = vector.shape_cast %14 : vector<4x64x32xf32> to vector<256x32xf32>
      %c1_12 = arith.constant 1 : index
      %c0_13 = arith.constant 0 : index
      %c0_14 = arith.constant 0 : index
      %16 = vector.load %arg2[%c1_12, %c0_13, %c0_14] : memref<9x32x64xf32, #tpu.memory_space<vmem>>, vector<1x32x64xf32>
      %17 = vector.shape_cast %16 : vector<1x32x64xf32> to vector<32x64xf32>
      %cst_15 = arith.constant dense<0.000000e+00> : vector<256x64xf32>
      %18 = tpu.matmul %15, %17, %cst_15 {dimension_numbers = #tpu.dot_dimension_numbers<[1], [0], [0], [1], [0, 0, 1, 1], [], []>} : vector<256x32xf32>, vector<32x64xf32>, vector<256x64xf32> -> vector<256x64xf32>
      %19 = arith.addf %10, %18 : vector<256x64xf32>
      %c0_i32_16 = arith.constant 0 : i32
      %20 = arith.addi %2, %c0_i32_16 : i32
      %c0_17 = arith.constant 0 : index
      %21 = arith.index_cast %20 : i32 to index
      %c2 = arith.constant 2 : index
      %c0_18 = arith.constant 0 : index
      %22 = vector.load %arg1[%c0_17, %21, %c2, %c0_18] : memref<1x66x66x32xf32, #tpu.memory_space<vmem>>, vector<1x4x64x32xf32>
      %23 = vector.shape_cast %22 : vector<1x4x64x32xf32> to vector<4x64x32xf32>
      %24 = vector.shape_cast %23 : vector<4x64x32xf32> to vector<256x32xf32>
      %c2_19 = arith.constant 2 : index
      %c0_20 = arith.constant 0 : index
      %c0_21 = arith.constant 0 : index
      %25 = vector.load %arg2[%c2_19, %c0_20, %c0_21] : memref<9x32x64xf32, #tpu.memory_space<vmem>>, vector<1x32x64xf32>
      %26 = vector.shape_cast %25 : vector<1x32x64xf32> to vector<32x64xf32>
      %cst_22 = arith.constant dense<0.000000e+00> : vector<256x64xf32>
      %27 = tpu.matmul %24, %26, %cst_22 {dimension_numbers = #tpu.dot_dimension_numbers<[1], [0], [0], [1], [0, 0, 1, 1], [], []>} : vector<256x32xf32>, vector<32x64xf32>, vector<256x64xf32> -> vector<256x64xf32>
      %28 = arith.addf %19, %27 : vector<256x64xf32>
      %c1_i32_23 = arith.constant 1 : i32
      %29 = arith.addi %2, %c1_i32_23 : i32
      %c0_24 = arith.constant 0 : index
      %30 = arith.index_cast %29 : i32 to index
      %c0_25 = arith.constant 0 : index
      %c0_26 = arith.constant 0 : index
      %31 = vector.load %arg1[%c0_24, %30, %c0_25, %c0_26] : memref<1x66x66x32xf32, #tpu.memory_space<vmem>>, vector<1x4x64x32xf32>
      %32 = vector.shape_cast %31 : vector<1x4x64x32xf32> to vector<4x64x32xf32>
      %33 = vector.shape_cast %32 : vector<4x64x32xf32> to vector<256x32xf32>
      %c3 = arith.constant 3 : index
      %c0_27 = arith.constant 0 : index
      %c0_28 = arith.constant 0 : index
      %34 = vector.load %arg2[%c3, %c0_27, %c0_28] : memref<9x32x64xf32, #tpu.memory_space<vmem>>, vector<1x32x64xf32>
      %35 = vector.shape_cast %34 : vector<1x32x64xf32> to vector<32x64xf32>
      %cst_29 = arith.constant dense<0.000000e+00> : vector<256x64xf32>
      %36 = tpu.matmul %33, %35, %cst_29 {dimension_numbers = #tpu.dot_dimension_numbers<[1], [0], [0], [1], [0, 0, 1, 1], [], []>} : vector<256x32xf32>, vector<32x64xf32>, vector<256x64xf32> -> vector<256x64xf32>
      %37 = arith.addf %28, %36 : vector<256x64xf32>
      %c1_i32_30 = arith.constant 1 : i32
      %38 = arith.addi %2, %c1_i32_30 : i32
      %c0_31 = arith.constant 0 : index
      %39 = arith.index_cast %38 : i32 to index
      %c1_32 = arith.constant 1 : index
      %c0_33 = arith.constant 0 : index
      %40 = vector.load %arg1[%c0_31, %39, %c1_32, %c0_33] : memref<1x66x66x32xf32, #tpu.memory_space<vmem>>, vector<1x4x64x32xf32>
      %41 = vector.shape_cast %40 : vector<1x4x64x32xf32> to vector<4x64x32xf32>
      %42 = vector.shape_cast %41 : vector<4x64x32xf32> to vector<256x32xf32>
      %c4 = arith.constant 4 : index
      %c0_34 = arith.constant 0 : index
      %c0_35 = arith.constant 0 : index
      %43 = vector.load %arg2[%c4, %c0_34, %c0_35] : memref<9x32x64xf32, #tpu.memory_space<vmem>>, vector<1x32x64xf32>
      %44 = vector.shape_cast %43 : vector<1x32x64xf32> to vector<32x64xf32>
      %cst_36 = arith.constant dense<0.000000e+00> : vector<256x64xf32>
      %45 = tpu.matmul %42, %44, %cst_36 {dimension_numbers = #tpu.dot_dimension_numbers<[1], [0], [0], [1], [0, 0, 1, 1], [], []>} : vector<256x32xf32>, vector<32x64xf32>, vector<256x64xf32> -> vector<256x64xf32>
      %46 = arith.addf %37, %45 : vector<256x64xf32>
      %c1_i32_37 = arith.constant 1 : i32
      %47 = arith.addi %2, %c1_i32_37 : i32
      %c0_38 = arith.constant 0 : index
      %48 = arith.index_cast %47 : i32 to index
      %c2_39 = arith.constant 2 : index
      %c0_40 = arith.constant 0 : index
      %49 = vector.load %arg1[%c0_38, %48, %c2_39, %c0_40] : memref<1x66x66x32xf32, #tpu.memory_space<vmem>>, vector<1x4x64x32xf32>
      %50 = vector.shape_cast %49 : vector<1x4x64x32xf32> to vector<4x64x32xf32>
      %51 = vector.shape_cast %50 : vector<4x64x32xf32> to vector<256x32xf32>
      %c5 = arith.constant 5 : index
      %c0_41 = arith.constant 0 : index
      %c0_42 = arith.constant 0 : index
      %52 = vector.load %arg2[%c5, %c0_41, %c0_42] : memref<9x32x64xf32, #tpu.memory_space<vmem>>, vector<1x32x64xf32>
      %53 = vector.shape_cast %52 : vector<1x32x64xf32> to vector<32x64xf32>
      %cst_43 = arith.constant dense<0.000000e+00> : vector<256x64xf32>
      %54 = tpu.matmul %51, %53, %cst_43 {dimension_numbers = #tpu.dot_dimension_numbers<[1], [0], [0], [1], [0, 0, 1, 1], [], []>} : vector<256x32xf32>, vector<32x64xf32>, vector<256x64xf32> -> vector<256x64xf32>
      %55 = arith.addf %46, %54 : vector<256x64xf32>
      %c2_i32 = arith.constant 2 : i32
      %56 = arith.addi %2, %c2_i32 : i32
      %c0_44 = arith.constant 0 : index
      %57 = arith.index_cast %56 : i32 to index
      %c0_45 = arith.constant 0 : index
      %c0_46 = arith.constant 0 : index
      %58 = vector.load %arg1[%c0_44, %57, %c0_45, %c0_46] : memref<1x66x66x32xf32, #tpu.memory_space<vmem>>, vector<1x4x64x32xf32>
      %59 = vector.shape_cast %58 : vector<1x4x64x32xf32> to vector<4x64x32xf32>
      %60 = vector.shape_cast %59 : vector<4x64x32xf32> to vector<256x32xf32>
      %c6 = arith.constant 6 : index
      %c0_47 = arith.constant 0 : index
      %c0_48 = arith.constant 0 : index
      %61 = vector.load %arg2[%c6, %c0_47, %c0_48] : memref<9x32x64xf32, #tpu.memory_space<vmem>>, vector<1x32x64xf32>
      %62 = vector.shape_cast %61 : vector<1x32x64xf32> to vector<32x64xf32>
      %cst_49 = arith.constant dense<0.000000e+00> : vector<256x64xf32>
      %63 = tpu.matmul %60, %62, %cst_49 {dimension_numbers = #tpu.dot_dimension_numbers<[1], [0], [0], [1], [0, 0, 1, 1], [], []>} : vector<256x32xf32>, vector<32x64xf32>, vector<256x64xf32> -> vector<256x64xf32>
      %64 = arith.addf %55, %63 : vector<256x64xf32>
      %c2_i32_50 = arith.constant 2 : i32
      %65 = arith.addi %2, %c2_i32_50 : i32
      %c0_51 = arith.constant 0 : index
      %66 = arith.index_cast %65 : i32 to index
      %c1_52 = arith.constant 1 : index
      %c0_53 = arith.constant 0 : index
      %67 = vector.load %arg1[%c0_51, %66, %c1_52, %c0_53] : memref<1x66x66x32xf32, #tpu.memory_space<vmem>>, vector<1x4x64x32xf32>
      %68 = vector.shape_cast %67 : vector<1x4x64x32xf32> to vector<4x64x32xf32>
      %69 = vector.shape_cast %68 : vector<4x64x32xf32> to vector<256x32xf32>
      %c7 = arith.constant 7 : index
      %c0_54 = arith.constant 0 : index
      %c0_55 = arith.constant 0 : index
      %70 = vector.load %arg2[%c7, %c0_54, %c0_55] : memref<9x32x64xf32, #tpu.memory_space<vmem>>, vector<1x32x64xf32>
      %71 = vector.shape_cast %70 : vector<1x32x64xf32> to vector<32x64xf32>
      %cst_56 = arith.constant dense<0.000000e+00> : vector<256x64xf32>
      %72 = tpu.matmul %69, %71, %cst_56 {dimension_numbers = #tpu.dot_dimension_numbers<[1], [0], [0], [1], [0, 0, 1, 1], [], []>} : vector<256x32xf32>, vector<32x64xf32>, vector<256x64xf32> -> vector<256x64xf32>
      %73 = arith.addf %64, %72 : vector<256x64xf32>
      %c2_i32_57 = arith.constant 2 : i32
      %74 = arith.addi %2, %c2_i32_57 : i32
      %c0_58 = arith.constant 0 : index
      %75 = arith.index_cast %74 : i32 to index
      %c2_59 = arith.constant 2 : index
      %c0_60 = arith.constant 0 : index
      %76 = vector.load %arg1[%c0_58, %75, %c2_59, %c0_60] : memref<1x66x66x32xf32, #tpu.memory_space<vmem>>, vector<1x4x64x32xf32>
      %77 = vector.shape_cast %76 : vector<1x4x64x32xf32> to vector<4x64x32xf32>
      %78 = vector.shape_cast %77 : vector<4x64x32xf32> to vector<256x32xf32>
      %c8 = arith.constant 8 : index
      %c0_61 = arith.constant 0 : index
      %c0_62 = arith.constant 0 : index
      %79 = vector.load %arg2[%c8, %c0_61, %c0_62] : memref<9x32x64xf32, #tpu.memory_space<vmem>>, vector<1x32x64xf32>
      %80 = vector.shape_cast %79 : vector<1x32x64xf32> to vector<32x64xf32>
      %cst_63 = arith.constant dense<0.000000e+00> : vector<256x64xf32>
      %81 = tpu.matmul %78, %80, %cst_63 {dimension_numbers = #tpu.dot_dimension_numbers<[1], [0], [0], [1], [0, 0, 1, 1], [], []>} : vector<256x32xf32>, vector<32x64xf32>, vector<256x64xf32> -> vector<256x64xf32>
      %82 = arith.addf %73, %81 : vector<256x64xf32>
      %83 = vector.broadcast %0 : vector<1x64xf32> to vector<256x64xf32>
      %84 = arith.addf %82, %83 : vector<256x64xf32>
      %cst_64 = arith.constant 0.000000e+00 : f32
      %85 = vector.broadcast %cst_64 : f32 to vector<256x64xf32>
      %86 = arith.maximumf %84, %85 : vector<256x64xf32>
      %87 = vector.extract_strided_slice %86 {offsets = [0, 0], sizes = [64, 64], strides = [1, 1]} : vector<256x64xf32> to vector<64x64xf32>
      %88 = vector.extract_strided_slice %86 {offsets = [64, 0], sizes = [64, 64], strides = [1, 1]} : vector<256x64xf32> to vector<64x64xf32>
      %89 = arith.maximumf %87, %88 : vector<64x64xf32>
      %c0_65 = arith.constant 0 : index
      %c0_66 = arith.constant 0 : index
      %90 = vector.load %arg5[%c0_65, %c0_66] : memref<64x64xf32, #tpu.memory_space<vmem>>, vector<64x64xf32>
      tpu.vector_store %arg5[%c0_65, %c0_66], %89 {strides = array<i32>} : memref<64x64xf32, #tpu.memory_space<vmem>>, vector<64x64xf32>,
      %c0_67 = arith.constant 0 : index
      %c0_68 = arith.constant 0 : index
      %91 = tpu.strided_load %arg5[%c0_67, %c0_68] {strides = array<i32: 2, 1>} : memref<64x64xf32, #tpu.memory_space<vmem>>, vector<32x64xf32>
      %c1_69 = arith.constant 1 : index
      %c0_70 = arith.constant 0 : index
      %92 = tpu.strided_load %arg5[%c1_69, %c0_70] {strides = array<i32: 2, 1>} : memref<64x64xf32, #tpu.memory_space<vmem>>, vector<32x64xf32>
      %93 = arith.maximumf %91, %92 : vector<32x64xf32>
      %c2_i32_71 = arith.constant 2 : i32
      %94 = arith.muli %arg6, %c2_i32_71 : i32
      %c0_i32_72 = arith.constant 0 : i32
      %95 = arith.addi %94, %c0_i32_72 : i32
      %c0_73 = arith.constant 0 : index
      %96 = arith.index_cast %95 : i32 to index
      %c0_74 = arith.constant 0 : index
      %c0_75 = arith.constant 0 : index
      %97 = vector.load %arg4[%c0_73, %96, %c0_74, %c0_75] : memref<1x32x32x64xf32, #tpu.memory_space<vmem>>, vector<1x1x32x64xf32>
      %98 = vector.shape_cast %97 : vector<1x1x32x64xf32> to vector<32x64xf32>
      %99 = vector.shape_cast %93 : vector<32x64xf32> to vector<1x1x32x64xf32>
      tpu.vector_store %arg4[%c0_73, %96, %c0_74, %c0_75], %99 {strides = array<i32>} : memref<1x32x32x64xf32, #tpu.memory_space<vmem>>, vector<1x1x32x64xf32>,
      %100 = vector.extract_strided_slice %86 {offsets = [128, 0], sizes = [64, 64], strides = [1, 1]} : vector<256x64xf32> to vector<64x64xf32>
      %101 = vector.extract_strided_slice %86 {offsets = [192, 0], sizes = [64, 64], strides = [1, 1]} : vector<256x64xf32> to vector<64x64xf32>
      %102 = arith.maximumf %100, %101 : vector<64x64xf32>
      %c0_76 = arith.constant 0 : index
      %c0_77 = arith.constant 0 : index
      %103 = vector.load %arg5[%c0_76, %c0_77] : memref<64x64xf32, #tpu.memory_space<vmem>>, vector<64x64xf32>
      tpu.vector_store %arg5[%c0_76, %c0_77], %102 {strides = array<i32>} : memref<64x64xf32, #tpu.memory_space<vmem>>, vector<64x64xf32>,
      %c0_78 = arith.constant 0 : index
      %c0_79 = arith.constant 0 : index
      %104 = tpu.strided_load %arg5[%c0_78, %c0_79] {strides = array<i32: 2, 1>} : memref<64x64xf32, #tpu.memory_space<vmem>>, vector<32x64xf32>
      %c1_80 = arith.constant 1 : index
      %c0_81 = arith.constant 0 : index
      %105 = tpu.strided_load %arg5[%c1_80, %c0_81] {strides = array<i32: 2, 1>} : memref<64x64xf32, #tpu.memory_space<vmem>>, vector<32x64xf32>
      %106 = arith.maximumf %104, %105 : vector<32x64xf32>
      %c2_i32_82 = arith.constant 2 : i32
      %107 = arith.muli %arg6, %c2_i32_82 : i32
      %c1_i32_83 = arith.constant 1 : i32
      %108 = arith.addi %107, %c1_i32_83 : i32
      %c0_84 = arith.constant 0 : index
      %109 = arith.index_cast %108 : i32 to index
      %c0_85 = arith.constant 0 : index
      %c0_86 = arith.constant 0 : index
      %110 = vector.load %arg4[%c0_84, %109, %c0_85, %c0_86] : memref<1x32x32x64xf32, #tpu.memory_space<vmem>>, vector<1x1x32x64xf32>
      %111 = vector.shape_cast %110 : vector<1x1x32x64xf32> to vector<32x64xf32>
      %112 = vector.shape_cast %106 : vector<32x64xf32> to vector<1x1x32x64xf32>
      tpu.vector_store %arg4[%c0_84, %109, %c0_85, %c0_86], %112 {strides = array<i32>} : memref<1x32x32x64xf32, #tpu.memory_space<vmem>>, vector<1x1x32x64xf32>,
    }
    %c16_i32_1 = arith.constant 16 : i32
    return
  }
  func.func @transform_0(%arg0: i32) -> (i32, i32, i32, i32) {
    %c0_i32 = arith.constant 0 : i32
    %c0_i32_0 = arith.constant 0 : i32
    %c0_i32_1 = arith.constant 0 : i32
    %c0_i32_2 = arith.constant 0 : i32
    return %arg0, %c0_i32, %c0_i32_0, %c0_i32_1 : i32, i32, i32, i32
  }
  func.func @transform_1(%arg0: i32) -> (i32, i32, i32) {
    %c0_i32 = arith.constant 0 : i32
    %c0_i32_0 = arith.constant 0 : i32
    %c0_i32_1 = arith.constant 0 : i32
    %c0_i32_2 = arith.constant 0 : i32
    return %c0_i32, %c0_i32_0, %c0_i32_1 : i32, i32, i32
  }
  func.func @transform_2(%arg0: i32) -> (i32, i32) {
    %c0_i32 = arith.constant 0 : i32
    %c0_i32_0 = arith.constant 0 : i32
    %c0_i32_1 = arith.constant 0 : i32
    return %c0_i32, %c0_i32_0 : i32, i32
  }
  func.func @transform_3(%arg0: i32) -> (i32, i32, i32, i32) {
    %c0_i32 = arith.constant 0 : i32
    %c0_i32_0 = arith.constant 0 : i32
    %c0_i32_1 = arith.constant 0 : i32
    %c0_i32_2 = arith.constant 0 : i32
    return %arg0, %c0_i32, %c0_i32_0, %c0_i32_1 : i32, i32, i32, i32
  }
}

module attributes {stable_mosaic.version = 11 : i64} {
  func.func @conv3x3_relu_pool_kernel(%arg0: i32, %arg1: memref<1x34x34x64xf32, #tpu.memory_space<vmem>>, %arg2: memref<9x64x128xf32, #tpu.memory_space<vmem>>, %arg3: memref<1x128xf32, #tpu.memory_space<vmem>>, %arg4: memref<1x16x16x128xf32, #tpu.memory_space<vmem>>, %arg5: memref<32x128xf32, #tpu.memory_space<vmem>>) attributes {dimension_semantics = [#tpu.dimension_semantics<parallel>], iteration_bounds = array<i64: 2>, scalar_prefetch = 0 : i64, scratch_operands = 1 : i64, tpu.core_type = #tpu.core_type<tc>, window_params = [{transform_indices = @transform_0, window_bounds = array<i64: 1, 34, 34, 64>}, {pipeline_mode = #tpu.pipeline_mode<synchronous>, transform_indices = @transform_1, window_bounds = array<i64: 9, 64, 128>}, {pipeline_mode = #tpu.pipeline_mode<synchronous>, transform_indices = @transform_2, window_bounds = array<i64: 1, 128>}, {transform_indices = @transform_3, window_bounds = array<i64: 1, 16, 16, 128>}]} {
    %c0 = arith.constant 0 : index
    %c0_0 = arith.constant 0 : index
    %0 = vector.load %arg3[%c0, %c0_0] : memref<1x128xf32, #tpu.memory_space<vmem>>, vector<1x128xf32>
    %c0_i32 = arith.constant 0 : i32
    %c4_i32 = arith.constant 4 : i32
    %1 = arith.addi %c0_i32, %c4_i32 : i32
    %c1_i32 = arith.constant 1 : i32
    scf.for %arg6 = %c0_i32 to %1 step %c1_i32  : i32 {
      %c8_i32 = arith.constant 8 : i32
      %2 = arith.muli %arg6, %c8_i32 : i32
      %c0_i32_2 = arith.constant 0 : i32
      %3 = arith.addi %2, %c0_i32_2 : i32
      %c0_3 = arith.constant 0 : index
      %4 = arith.index_cast %3 : i32 to index
      %c0_4 = arith.constant 0 : index
      %c0_5 = arith.constant 0 : index
      %5 = vector.load %arg1[%c0_3, %4, %c0_4, %c0_5] : memref<1x34x34x64xf32, #tpu.memory_space<vmem>>, vector<1x8x32x64xf32>
      %6 = vector.shape_cast %5 : vector<1x8x32x64xf32> to vector<8x32x64xf32>
      %7 = vector.shape_cast %6 : vector<8x32x64xf32> to vector<256x64xf32>
      %c0_6 = arith.constant 0 : index
      %c0_7 = arith.constant 0 : index
      %c0_8 = arith.constant 0 : index
      %8 = vector.load %arg2[%c0_6, %c0_7, %c0_8] : memref<9x64x128xf32, #tpu.memory_space<vmem>>, vector<1x64x128xf32>
      %9 = vector.shape_cast %8 : vector<1x64x128xf32> to vector<64x128xf32>
      %cst = arith.constant dense<0.000000e+00> : vector<256x128xf32>
      %10 = tpu.matmul %7, %9, %cst {dimension_numbers = #tpu.dot_dimension_numbers<[1], [0], [0], [1], [0, 0, 1, 1], [], []>} : vector<256x64xf32>, vector<64x128xf32>, vector<256x128xf32> -> vector<256x128xf32>
      %c0_i32_9 = arith.constant 0 : i32
      %11 = arith.addi %2, %c0_i32_9 : i32
      %c0_10 = arith.constant 0 : index
      %12 = arith.index_cast %11 : i32 to index
      %c1 = arith.constant 1 : index
      %c0_11 = arith.constant 0 : index
      %13 = vector.load %arg1[%c0_10, %12, %c1, %c0_11] : memref<1x34x34x64xf32, #tpu.memory_space<vmem>>, vector<1x8x32x64xf32>
      %14 = vector.shape_cast %13 : vector<1x8x32x64xf32> to vector<8x32x64xf32>
      %15 = vector.shape_cast %14 : vector<8x32x64xf32> to vector<256x64xf32>
      %c1_12 = arith.constant 1 : index
      %c0_13 = arith.constant 0 : index
      %c0_14 = arith.constant 0 : index
      %16 = vector.load %arg2[%c1_12, %c0_13, %c0_14] : memref<9x64x128xf32, #tpu.memory_space<vmem>>, vector<1x64x128xf32>
      %17 = vector.shape_cast %16 : vector<1x64x128xf32> to vector<64x128xf32>
      %cst_15 = arith.constant dense<0.000000e+00> : vector<256x128xf32>
      %18 = tpu.matmul %15, %17, %cst_15 {dimension_numbers = #tpu.dot_dimension_numbers<[1], [0], [0], [1], [0, 0, 1, 1], [], []>} : vector<256x64xf32>, vector<64x128xf32>, vector<256x128xf32> -> vector<256x128xf32>
      %19 = arith.addf %10, %18 : vector<256x128xf32>
      %c0_i32_16 = arith.constant 0 : i32
      %20 = arith.addi %2, %c0_i32_16 : i32
      %c0_17 = arith.constant 0 : index
      %21 = arith.index_cast %20 : i32 to index
      %c2 = arith.constant 2 : index
      %c0_18 = arith.constant 0 : index
      %22 = vector.load %arg1[%c0_17, %21, %c2, %c0_18] : memref<1x34x34x64xf32, #tpu.memory_space<vmem>>, vector<1x8x32x64xf32>
      %23 = vector.shape_cast %22 : vector<1x8x32x64xf32> to vector<8x32x64xf32>
      %24 = vector.shape_cast %23 : vector<8x32x64xf32> to vector<256x64xf32>
      %c2_19 = arith.constant 2 : index
      %c0_20 = arith.constant 0 : index
      %c0_21 = arith.constant 0 : index
      %25 = vector.load %arg2[%c2_19, %c0_20, %c0_21] : memref<9x64x128xf32, #tpu.memory_space<vmem>>, vector<1x64x128xf32>
      %26 = vector.shape_cast %25 : vector<1x64x128xf32> to vector<64x128xf32>
      %cst_22 = arith.constant dense<0.000000e+00> : vector<256x128xf32>
      %27 = tpu.matmul %24, %26, %cst_22 {dimension_numbers = #tpu.dot_dimension_numbers<[1], [0], [0], [1], [0, 0, 1, 1], [], []>} : vector<256x64xf32>, vector<64x128xf32>, vector<256x128xf32> -> vector<256x128xf32>
      %28 = arith.addf %19, %27 : vector<256x128xf32>
      %c1_i32_23 = arith.constant 1 : i32
      %29 = arith.addi %2, %c1_i32_23 : i32
      %c0_24 = arith.constant 0 : index
      %30 = arith.index_cast %29 : i32 to index
      %c0_25 = arith.constant 0 : index
      %c0_26 = arith.constant 0 : index
      %31 = vector.load %arg1[%c0_24, %30, %c0_25, %c0_26] : memref<1x34x34x64xf32, #tpu.memory_space<vmem>>, vector<1x8x32x64xf32>
      %32 = vector.shape_cast %31 : vector<1x8x32x64xf32> to vector<8x32x64xf32>
      %33 = vector.shape_cast %32 : vector<8x32x64xf32> to vector<256x64xf32>
      %c3 = arith.constant 3 : index
      %c0_27 = arith.constant 0 : index
      %c0_28 = arith.constant 0 : index
      %34 = vector.load %arg2[%c3, %c0_27, %c0_28] : memref<9x64x128xf32, #tpu.memory_space<vmem>>, vector<1x64x128xf32>
      %35 = vector.shape_cast %34 : vector<1x64x128xf32> to vector<64x128xf32>
      %cst_29 = arith.constant dense<0.000000e+00> : vector<256x128xf32>
      %36 = tpu.matmul %33, %35, %cst_29 {dimension_numbers = #tpu.dot_dimension_numbers<[1], [0], [0], [1], [0, 0, 1, 1], [], []>} : vector<256x64xf32>, vector<64x128xf32>, vector<256x128xf32> -> vector<256x128xf32>
      %37 = arith.addf %28, %36 : vector<256x128xf32>
      %c1_i32_30 = arith.constant 1 : i32
      %38 = arith.addi %2, %c1_i32_30 : i32
      %c0_31 = arith.constant 0 : index
      %39 = arith.index_cast %38 : i32 to index
      %c1_32 = arith.constant 1 : index
      %c0_33 = arith.constant 0 : index
      %40 = vector.load %arg1[%c0_31, %39, %c1_32, %c0_33] : memref<1x34x34x64xf32, #tpu.memory_space<vmem>>, vector<1x8x32x64xf32>
      %41 = vector.shape_cast %40 : vector<1x8x32x64xf32> to vector<8x32x64xf32>
      %42 = vector.shape_cast %41 : vector<8x32x64xf32> to vector<256x64xf32>
      %c4 = arith.constant 4 : index
      %c0_34 = arith.constant 0 : index
      %c0_35 = arith.constant 0 : index
      %43 = vector.load %arg2[%c4, %c0_34, %c0_35] : memref<9x64x128xf32, #tpu.memory_space<vmem>>, vector<1x64x128xf32>
      %44 = vector.shape_cast %43 : vector<1x64x128xf32> to vector<64x128xf32>
      %cst_36 = arith.constant dense<0.000000e+00> : vector<256x128xf32>
      %45 = tpu.matmul %42, %44, %cst_36 {dimension_numbers = #tpu.dot_dimension_numbers<[1], [0], [0], [1], [0, 0, 1, 1], [], []>} : vector<256x64xf32>, vector<64x128xf32>, vector<256x128xf32> -> vector<256x128xf32>
      %46 = arith.addf %37, %45 : vector<256x128xf32>
      %c1_i32_37 = arith.constant 1 : i32
      %47 = arith.addi %2, %c1_i32_37 : i32
      %c0_38 = arith.constant 0 : index
      %48 = arith.index_cast %47 : i32 to index
      %c2_39 = arith.constant 2 : index
      %c0_40 = arith.constant 0 : index
      %49 = vector.load %arg1[%c0_38, %48, %c2_39, %c0_40] : memref<1x34x34x64xf32, #tpu.memory_space<vmem>>, vector<1x8x32x64xf32>
      %50 = vector.shape_cast %49 : vector<1x8x32x64xf32> to vector<8x32x64xf32>
      %51 = vector.shape_cast %50 : vector<8x32x64xf32> to vector<256x64xf32>
      %c5 = arith.constant 5 : index
      %c0_41 = arith.constant 0 : index
      %c0_42 = arith.constant 0 : index
      %52 = vector.load %arg2[%c5, %c0_41, %c0_42] : memref<9x64x128xf32, #tpu.memory_space<vmem>>, vector<1x64x128xf32>
      %53 = vector.shape_cast %52 : vector<1x64x128xf32> to vector<64x128xf32>
      %cst_43 = arith.constant dense<0.000000e+00> : vector<256x128xf32>
      %54 = tpu.matmul %51, %53, %cst_43 {dimension_numbers = #tpu.dot_dimension_numbers<[1], [0], [0], [1], [0, 0, 1, 1], [], []>} : vector<256x64xf32>, vector<64x128xf32>, vector<256x128xf32> -> vector<256x128xf32>
      %55 = arith.addf %46, %54 : vector<256x128xf32>
      %c2_i32 = arith.constant 2 : i32
      %56 = arith.addi %2, %c2_i32 : i32
      %c0_44 = arith.constant 0 : index
      %57 = arith.index_cast %56 : i32 to index
      %c0_45 = arith.constant 0 : index
      %c0_46 = arith.constant 0 : index
      %58 = vector.load %arg1[%c0_44, %57, %c0_45, %c0_46] : memref<1x34x34x64xf32, #tpu.memory_space<vmem>>, vector<1x8x32x64xf32>
      %59 = vector.shape_cast %58 : vector<1x8x32x64xf32> to vector<8x32x64xf32>
      %60 = vector.shape_cast %59 : vector<8x32x64xf32> to vector<256x64xf32>
      %c6 = arith.constant 6 : index
      %c0_47 = arith.constant 0 : index
      %c0_48 = arith.constant 0 : index
      %61 = vector.load %arg2[%c6, %c0_47, %c0_48] : memref<9x64x128xf32, #tpu.memory_space<vmem>>, vector<1x64x128xf32>
      %62 = vector.shape_cast %61 : vector<1x64x128xf32> to vector<64x128xf32>
      %cst_49 = arith.constant dense<0.000000e+00> : vector<256x128xf32>
      %63 = tpu.matmul %60, %62, %cst_49 {dimension_numbers = #tpu.dot_dimension_numbers<[1], [0], [0], [1], [0, 0, 1, 1], [], []>} : vector<256x64xf32>, vector<64x128xf32>, vector<256x128xf32> -> vector<256x128xf32>
      %64 = arith.addf %55, %63 : vector<256x128xf32>
      %c2_i32_50 = arith.constant 2 : i32
      %65 = arith.addi %2, %c2_i32_50 : i32
      %c0_51 = arith.constant 0 : index
      %66 = arith.index_cast %65 : i32 to index
      %c1_52 = arith.constant 1 : index
      %c0_53 = arith.constant 0 : index
      %67 = vector.load %arg1[%c0_51, %66, %c1_52, %c0_53] : memref<1x34x34x64xf32, #tpu.memory_space<vmem>>, vector<1x8x32x64xf32>
      %68 = vector.shape_cast %67 : vector<1x8x32x64xf32> to vector<8x32x64xf32>
      %69 = vector.shape_cast %68 : vector<8x32x64xf32> to vector<256x64xf32>
      %c7 = arith.constant 7 : index
      %c0_54 = arith.constant 0 : index
      %c0_55 = arith.constant 0 : index
      %70 = vector.load %arg2[%c7, %c0_54, %c0_55] : memref<9x64x128xf32, #tpu.memory_space<vmem>>, vector<1x64x128xf32>
      %71 = vector.shape_cast %70 : vector<1x64x128xf32> to vector<64x128xf32>
      %cst_56 = arith.constant dense<0.000000e+00> : vector<256x128xf32>
      %72 = tpu.matmul %69, %71, %cst_56 {dimension_numbers = #tpu.dot_dimension_numbers<[1], [0], [0], [1], [0, 0, 1, 1], [], []>} : vector<256x64xf32>, vector<64x128xf32>, vector<256x128xf32> -> vector<256x128xf32>
      %73 = arith.addf %64, %72 : vector<256x128xf32>
      %c2_i32_57 = arith.constant 2 : i32
      %74 = arith.addi %2, %c2_i32_57 : i32
      %c0_58 = arith.constant 0 : index
      %75 = arith.index_cast %74 : i32 to index
      %c2_59 = arith.constant 2 : index
      %c0_60 = arith.constant 0 : index
      %76 = vector.load %arg1[%c0_58, %75, %c2_59, %c0_60] : memref<1x34x34x64xf32, #tpu.memory_space<vmem>>, vector<1x8x32x64xf32>
      %77 = vector.shape_cast %76 : vector<1x8x32x64xf32> to vector<8x32x64xf32>
      %78 = vector.shape_cast %77 : vector<8x32x64xf32> to vector<256x64xf32>
      %c8 = arith.constant 8 : index
      %c0_61 = arith.constant 0 : index
      %c0_62 = arith.constant 0 : index
      %79 = vector.load %arg2[%c8, %c0_61, %c0_62] : memref<9x64x128xf32, #tpu.memory_space<vmem>>, vector<1x64x128xf32>
      %80 = vector.shape_cast %79 : vector<1x64x128xf32> to vector<64x128xf32>
      %cst_63 = arith.constant dense<0.000000e+00> : vector<256x128xf32>
      %81 = tpu.matmul %78, %80, %cst_63 {dimension_numbers = #tpu.dot_dimension_numbers<[1], [0], [0], [1], [0, 0, 1, 1], [], []>} : vector<256x64xf32>, vector<64x128xf32>, vector<256x128xf32> -> vector<256x128xf32>
      %82 = arith.addf %73, %81 : vector<256x128xf32>
      %83 = vector.broadcast %0 : vector<1x128xf32> to vector<256x128xf32>
      %84 = arith.addf %82, %83 : vector<256x128xf32>
      %cst_64 = arith.constant 0.000000e+00 : f32
      %85 = vector.broadcast %cst_64 : f32 to vector<256x128xf32>
      %86 = arith.maximumf %84, %85 : vector<256x128xf32>
      %87 = vector.extract_strided_slice %86 {offsets = [0, 0], sizes = [32, 128], strides = [1, 1]} : vector<256x128xf32> to vector<32x128xf32>
      %88 = vector.extract_strided_slice %86 {offsets = [32, 0], sizes = [32, 128], strides = [1, 1]} : vector<256x128xf32> to vector<32x128xf32>
      %89 = arith.maximumf %87, %88 : vector<32x128xf32>
      %c0_65 = arith.constant 0 : index
      %c0_66 = arith.constant 0 : index
      %90 = vector.load %arg5[%c0_65, %c0_66] : memref<32x128xf32, #tpu.memory_space<vmem>>, vector<32x128xf32>
      tpu.vector_store %arg5[%c0_65, %c0_66], %89 {strides = array<i32>} : memref<32x128xf32, #tpu.memory_space<vmem>>, vector<32x128xf32>,
      %c0_67 = arith.constant 0 : index
      %c0_68 = arith.constant 0 : index
      %91 = tpu.strided_load %arg5[%c0_67, %c0_68] {strides = array<i32: 2, 1>} : memref<32x128xf32, #tpu.memory_space<vmem>>, vector<16x128xf32>
      %c1_69 = arith.constant 1 : index
      %c0_70 = arith.constant 0 : index
      %92 = tpu.strided_load %arg5[%c1_69, %c0_70] {strides = array<i32: 2, 1>} : memref<32x128xf32, #tpu.memory_space<vmem>>, vector<16x128xf32>
      %93 = arith.maximumf %91, %92 : vector<16x128xf32>
      %c4_i32_71 = arith.constant 4 : i32
      %94 = arith.muli %arg6, %c4_i32_71 : i32
      %c0_i32_72 = arith.constant 0 : i32
      %95 = arith.addi %94, %c0_i32_72 : i32
      %c0_73 = arith.constant 0 : index
      %96 = arith.index_cast %95 : i32 to index
      %c0_74 = arith.constant 0 : index
      %c0_75 = arith.constant 0 : index
      %97 = vector.load %arg4[%c0_73, %96, %c0_74, %c0_75] : memref<1x16x16x128xf32, #tpu.memory_space<vmem>>, vector<1x1x16x128xf32>
      %98 = vector.shape_cast %97 : vector<1x1x16x128xf32> to vector<16x128xf32>
      %99 = vector.shape_cast %93 : vector<16x128xf32> to vector<1x1x16x128xf32>
      tpu.vector_store %arg4[%c0_73, %96, %c0_74, %c0_75], %99 {strides = array<i32>} : memref<1x16x16x128xf32, #tpu.memory_space<vmem>>, vector<1x1x16x128xf32>,
      %100 = vector.extract_strided_slice %86 {offsets = [64, 0], sizes = [32, 128], strides = [1, 1]} : vector<256x128xf32> to vector<32x128xf32>
      %101 = vector.extract_strided_slice %86 {offsets = [96, 0], sizes = [32, 128], strides = [1, 1]} : vector<256x128xf32> to vector<32x128xf32>
      %102 = arith.maximumf %100, %101 : vector<32x128xf32>
      %c0_76 = arith.constant 0 : index
      %c0_77 = arith.constant 0 : index
      %103 = vector.load %arg5[%c0_76, %c0_77] : memref<32x128xf32, #tpu.memory_space<vmem>>, vector<32x128xf32>
      tpu.vector_store %arg5[%c0_76, %c0_77], %102 {strides = array<i32>} : memref<32x128xf32, #tpu.memory_space<vmem>>, vector<32x128xf32>,
      %c0_78 = arith.constant 0 : index
      %c0_79 = arith.constant 0 : index
      %104 = tpu.strided_load %arg5[%c0_78, %c0_79] {strides = array<i32: 2, 1>} : memref<32x128xf32, #tpu.memory_space<vmem>>, vector<16x128xf32>
      %c1_80 = arith.constant 1 : index
      %c0_81 = arith.constant 0 : index
      %105 = tpu.strided_load %arg5[%c1_80, %c0_81] {strides = array<i32: 2, 1>} : memref<32x128xf32, #tpu.memory_space<vmem>>, vector<16x128xf32>
      %106 = arith.maximumf %104, %105 : vector<16x128xf32>
      %c4_i32_82 = arith.constant 4 : i32
      %107 = arith.muli %arg6, %c4_i32_82 : i32
      %c1_i32_83 = arith.constant 1 : i32
      %108 = arith.addi %107, %c1_i32_83 : i32
      %c0_84 = arith.constant 0 : index
      %109 = arith.index_cast %108 : i32 to index
      %c0_85 = arith.constant 0 : index
      %c0_86 = arith.constant 0 : index
      %110 = vector.load %arg4[%c0_84, %109, %c0_85, %c0_86] : memref<1x16x16x128xf32, #tpu.memory_space<vmem>>, vector<1x1x16x128xf32>
      %111 = vector.shape_cast %110 : vector<1x1x16x128xf32> to vector<16x128xf32>
      %112 = vector.shape_cast %106 : vector<16x128xf32> to vector<1x1x16x128xf32>
      tpu.vector_store %arg4[%c0_84, %109, %c0_85, %c0_86], %112 {strides = array<i32>} : memref<1x16x16x128xf32, #tpu.memory_space<vmem>>, vector<1x1x16x128xf32>,
      %113 = vector.extract_strided_slice %86 {offsets = [128, 0], sizes = [32, 128], strides = [1, 1]} : vector<256x128xf32> to vector<32x128xf32>
      %114 = vector.extract_strided_slice %86 {offsets = [160, 0], sizes = [32, 128], strides = [1, 1]} : vector<256x128xf32> to vector<32x128xf32>
      %115 = arith.maximumf %113, %114 : vector<32x128xf32>
      %c0_87 = arith.constant 0 : index
      %c0_88 = arith.constant 0 : index
      %116 = vector.load %arg5[%c0_87, %c0_88] : memref<32x128xf32, #tpu.memory_space<vmem>>, vector<32x128xf32>
      tpu.vector_store %arg5[%c0_87, %c0_88], %115 {strides = array<i32>} : memref<32x128xf32, #tpu.memory_space<vmem>>, vector<32x128xf32>,
      %c0_89 = arith.constant 0 : index
      %c0_90 = arith.constant 0 : index
      %117 = tpu.strided_load %arg5[%c0_89, %c0_90] {strides = array<i32: 2, 1>} : memref<32x128xf32, #tpu.memory_space<vmem>>, vector<16x128xf32>
      %c1_91 = arith.constant 1 : index
      %c0_92 = arith.constant 0 : index
      %118 = tpu.strided_load %arg5[%c1_91, %c0_92] {strides = array<i32: 2, 1>} : memref<32x128xf32, #tpu.memory_space<vmem>>, vector<16x128xf32>
      %119 = arith.maximumf %117, %118 : vector<16x128xf32>
      %c4_i32_93 = arith.constant 4 : i32
      %120 = arith.muli %arg6, %c4_i32_93 : i32
      %c2_i32_94 = arith.constant 2 : i32
      %121 = arith.addi %120, %c2_i32_94 : i32
      %c0_95 = arith.constant 0 : index
      %122 = arith.index_cast %121 : i32 to index
      %c0_96 = arith.constant 0 : index
      %c0_97 = arith.constant 0 : index
      %123 = vector.load %arg4[%c0_95, %122, %c0_96, %c0_97] : memref<1x16x16x128xf32, #tpu.memory_space<vmem>>, vector<1x1x16x128xf32>
      %124 = vector.shape_cast %123 : vector<1x1x16x128xf32> to vector<16x128xf32>
      %125 = vector.shape_cast %119 : vector<16x128xf32> to vector<1x1x16x128xf32>
      tpu.vector_store %arg4[%c0_95, %122, %c0_96, %c0_97], %125 {strides = array<i32>} : memref<1x16x16x128xf32, #tpu.memory_space<vmem>>, vector<1x1x16x128xf32>,
      %126 = vector.extract_strided_slice %86 {offsets = [192, 0], sizes = [32, 128], strides = [1, 1]} : vector<256x128xf32> to vector<32x128xf32>
      %127 = vector.extract_strided_slice %86 {offsets = [224, 0], sizes = [32, 128], strides = [1, 1]} : vector<256x128xf32> to vector<32x128xf32>
      %128 = arith.maximumf %126, %127 : vector<32x128xf32>
      %c0_98 = arith.constant 0 : index
      %c0_99 = arith.constant 0 : index
      %129 = vector.load %arg5[%c0_98, %c0_99] : memref<32x128xf32, #tpu.memory_space<vmem>>, vector<32x128xf32>
      tpu.vector_store %arg5[%c0_98, %c0_99], %128 {strides = array<i32>} : memref<32x128xf32, #tpu.memory_space<vmem>>, vector<32x128xf32>,
      %c0_100 = arith.constant 0 : index
      %c0_101 = arith.constant 0 : index
      %130 = tpu.strided_load %arg5[%c0_100, %c0_101] {strides = array<i32: 2, 1>} : memref<32x128xf32, #tpu.memory_space<vmem>>, vector<16x128xf32>
      %c1_102 = arith.constant 1 : index
      %c0_103 = arith.constant 0 : index
      %131 = tpu.strided_load %arg5[%c1_102, %c0_103] {strides = array<i32: 2, 1>} : memref<32x128xf32, #tpu.memory_space<vmem>>, vector<16x128xf32>
      %132 = arith.maximumf %130, %131 : vector<16x128xf32>
      %c4_i32_104 = arith.constant 4 : i32
      %133 = arith.muli %arg6, %c4_i32_104 : i32
      %c3_i32 = arith.constant 3 : i32
      %134 = arith.addi %133, %c3_i32 : i32
      %c0_105 = arith.constant 0 : index
      %135 = arith.index_cast %134 : i32 to index
      %c0_106 = arith.constant 0 : index
      %c0_107 = arith.constant 0 : index
      %136 = vector.load %arg4[%c0_105, %135, %c0_106, %c0_107] : memref<1x16x16x128xf32, #tpu.memory_space<vmem>>, vector<1x1x16x128xf32>
      %137 = vector.shape_cast %136 : vector<1x1x16x128xf32> to vector<16x128xf32>
      %138 = vector.shape_cast %132 : vector<16x128xf32> to vector<1x1x16x128xf32>
      tpu.vector_store %arg4[%c0_105, %135, %c0_106, %c0_107], %138 {strides = array<i32>} : memref<1x16x16x128xf32, #tpu.memory_space<vmem>>, vector<1x1x16x128xf32>,
    }
    %c4_i32_1 = arith.constant 4 : i32
    return
  }
  func.func @transform_0(%arg0: i32) -> (i32, i32, i32, i32) {
    %c0_i32 = arith.constant 0 : i32
    %c0_i32_0 = arith.constant 0 : i32
    %c0_i32_1 = arith.constant 0 : i32
    %c0_i32_2 = arith.constant 0 : i32
    return %arg0, %c0_i32, %c0_i32_0, %c0_i32_1 : i32, i32, i32, i32
  }
  func.func @transform_1(%arg0: i32) -> (i32, i32, i32) {
    %c0_i32 = arith.constant 0 : i32
    %c0_i32_0 = arith.constant 0 : i32
    %c0_i32_1 = arith.constant 0 : i32
    %c0_i32_2 = arith.constant 0 : i32
    return %c0_i32, %c0_i32_0, %c0_i32_1 : i32, i32, i32
  }
  func.func @transform_2(%arg0: i32) -> (i32, i32) {
    %c0_i32 = arith.constant 0 : i32
    %c0_i32_0 = arith.constant 0 : i32
    %c0_i32_1 = arith.constant 0 : i32
    return %c0_i32, %c0_i32_0 : i32, i32
  }
  func.func @transform_3(%arg0: i32) -> (i32, i32, i32, i32) {
    %c0_i32 = arith.constant 0 : i32
    %c0_i32_0 = arith.constant 0 : i32
    %c0_i32_1 = arith.constant 0 : i32
    %c0_i32_2 = arith.constant 0 : i32
    return %arg0, %c0_i32, %c0_i32_0, %c0_i32_1 : i32, i32, i32, i32
  }
}

module attributes {stable_mosaic.version = 11 : i64} {
  func.func @linear_kernel(%arg0: i32, %arg1: i32, %arg2: memref<2x4096xf32, #tpu.memory_space<vmem>>, %arg3: memref<4096x128xbf16, #tpu.memory_space<vmem>>, %arg4: memref<1x128xf32, #tpu.memory_space<vmem>>, %arg5: memref<2x128xf32, #tpu.memory_space<vmem>>, %arg6: memref<2x128xf32, #tpu.memory_space<vmem>>) attributes {dimension_semantics = [#tpu.dimension_semantics<parallel>, #tpu.dimension_semantics<arbitrary>], iteration_bounds = array<i64: 2, 8>, scalar_prefetch = 0 : i64, scratch_operands = 1 : i64, tpu.core_type = #tpu.core_type<tc>, window_params = [{transform_indices = @transform_0, window_bounds = array<i64: 2, 4096>}, {transform_indices = @transform_1, window_bounds = array<i64: 4096, 128>}, {transform_indices = @transform_2, window_bounds = array<i64: 1, 128>}, {transform_indices = @transform_3, window_bounds = array<i64: 2, 128>}]} {
    %c0_i32 = arith.constant 0 : i32
    %0 = arith.cmpi eq, %arg1, %c0_i32 : i32
    %1 = arith.extui %0 : i1 to i32
    %c0_i32_0 = arith.constant 0 : i32
    %2 = arith.cmpi ne, %1, %c0_i32_0 : i32
    scf.if %2 {
      %cst_9 = arith.constant 0.000000e+00 : f32
      %13 = vector.broadcast %cst_9 : f32 to vector<2x128xf32>
      %c0_10 = arith.constant 0 : index
      %c0_11 = arith.constant 0 : index
      %14 = vector.load %arg6[%c0_10, %c0_11] : memref<2x128xf32, #tpu.memory_space<vmem>>, vector<2x128xf32>
      tpu.vector_store %arg6[%c0_10, %c0_11], %13 {strides = array<i32>} : memref<2x128xf32, #tpu.memory_space<vmem>>, vector<2x128xf32>,
    } else {
    }
    %c0 = arith.constant 0 : index
    %c0_1 = arith.constant 0 : index
    %3 = vector.load %arg6[%c0, %c0_1] : memref<2x128xf32, #tpu.memory_space<vmem>>, vector<2x128xf32>
    %c0_2 = arith.constant 0 : index
    %c0_3 = arith.constant 0 : index
    %4 = vector.load %arg2[%c0_2, %c0_3] : memref<2x4096xf32, #tpu.memory_space<vmem>>, vector<2x4096xf32>
    %5 = arith.truncf %4 : vector<2x4096xf32> to vector<2x4096xbf16>
    %c0_4 = arith.constant 0 : index
    %c0_5 = arith.constant 0 : index
    %6 = vector.load %arg3[%c0_4, %c0_5] : memref<4096x128xbf16, #tpu.memory_space<vmem>>, vector<4096x128xbf16>
    %cst = arith.constant dense<0.000000e+00> : vector<2x128xf32>
    %7 = tpu.matmul %5, %6, %cst {dimension_numbers = #tpu.dot_dimension_numbers<[1], [0], [0], [1], [0, 0, 1, 1], [], []>} : vector<2x4096xbf16>, vector<4096x128xbf16>, vector<2x128xf32> -> vector<2x128xf32>
    %8 = arith.addf %3, %7 : vector<2x128xf32>
    %c0_6 = arith.constant 0 : index
    %c0_7 = arith.constant 0 : index
    %9 = vector.load %arg6[%c0_6, %c0_7] : memref<2x128xf32, #tpu.memory_space<vmem>>, vector<2x128xf32>
    tpu.vector_store %arg6[%c0_6, %c0_7], %8 {strides = array<i32>} : memref<2x128xf32, #tpu.memory_space<vmem>>, vector<2x128xf32>,
    %c7_i32 = arith.constant 7 : i32
    %10 = arith.cmpi eq, %arg1, %c7_i32 : i32
    %11 = arith.extui %10 : i1 to i32
    %c0_i32_8 = arith.constant 0 : i32
    %12 = arith.cmpi ne, %11, %c0_i32_8 : i32
    scf.if %12 {
      %c0_9 = arith.constant 0 : index
      %c0_10 = arith.constant 0 : index
      %13 = vector.load %arg6[%c0_9, %c0_10] : memref<2x128xf32, #tpu.memory_space<vmem>>, vector<2x128xf32>
      %c0_11 = arith.constant 0 : index
      %c0_12 = arith.constant 0 : index
      %14 = vector.load %arg4[%c0_11, %c0_12] : memref<1x128xf32, #tpu.memory_space<vmem>>, vector<1x128xf32>
      %15 = vector.broadcast %14 : vector<1x128xf32> to vector<2x128xf32>
      %16 = arith.addf %13, %15 : vector<2x128xf32>
      %cst_13 = arith.constant 0.000000e+00 : f32
      %17 = vector.broadcast %cst_13 : f32 to vector<2x128xf32>
      %18 = arith.maximumf %16, %17 : vector<2x128xf32>
      %c0_14 = arith.constant 0 : index
      %c0_15 = arith.constant 0 : index
      %19 = vector.load %arg5[%c0_14, %c0_15] : memref<2x128xf32, #tpu.memory_space<vmem>>, vector<2x128xf32>
      tpu.vector_store %arg5[%c0_14, %c0_15], %18 {strides = array<i32>} : memref<2x128xf32, #tpu.memory_space<vmem>>, vector<2x128xf32>,
    } else {
    }
    return
  }
  func.func @transform_0(%arg0: i32, %arg1: i32) -> (i32, i32) {
    %c0_i32 = arith.constant 0 : i32
    %c0_i32_0 = arith.constant 0 : i32
    return %c0_i32, %arg1 : i32, i32
  }
  func.func @transform_1(%arg0: i32, %arg1: i32) -> (i32, i32) {
    %c0_i32 = arith.constant 0 : i32
    return %arg1, %arg0 : i32, i32
  }
  func.func @transform_2(%arg0: i32, %arg1: i32) -> (i32, i32) {
    %c0_i32 = arith.constant 0 : i32
    %c0_i32_0 = arith.constant 0 : i32
    return %c0_i32, %arg0 : i32, i32
  }
  func.func @transform_3(%arg0: i32, %arg1: i32) -> (i32, i32) {
    %c0_i32 = arith.constant 0 : i32
    %c0_i32_0 = arith.constant 0 : i32
    return %c0_i32, %arg0 : i32, i32
  }
}

module attributes {stable_mosaic.version = 11 : i64} {
  func.func @head_kernel(%arg0: i32, %arg1: memref<2x256xf32, #tpu.memory_space<vmem>>, %arg2: memref<2x163xf32, #tpu.memory_space<vmem>>, %arg3: memref<163x256xf32, #tpu.memory_space<vmem>>, %arg4: memref<1x256xf32, #tpu.memory_space<vmem>>, %arg5: memref<256x128xf32, #tpu.memory_space<vmem>>, %arg6: memref<1x128xf32, #tpu.memory_space<vmem>>, %arg7: memref<256x128xf32, #tpu.memory_space<vmem>>, %arg8: memref<128x128xf32, #tpu.memory_space<vmem>>, %arg9: memref<1x128xf32, #tpu.memory_space<vmem>>, %arg10: memref<128x64xf32, #tpu.memory_space<vmem>>, %arg11: memref<1x64xf32, #tpu.memory_space<vmem>>, %arg12: memref<64x6xf32, #tpu.memory_space<vmem>>, %arg13: memref<1x6xf32, #tpu.memory_space<vmem>>, %arg14: memref<2x6xf32, #tpu.memory_space<vmem>>) attributes {dimension_semantics = [#tpu.dimension_semantics<arbitrary>], iteration_bounds = array<i64: 1>, scalar_prefetch = 0 : i64, scratch_operands = 0 : i64, tpu.core_type = #tpu.core_type<tc>, window_params = [{pipeline_mode = #tpu.pipeline_mode<synchronous>, transform_indices = @transform_0, window_bounds = array<i64: 2, 256>}, {pipeline_mode = #tpu.pipeline_mode<synchronous>, transform_indices = @transform_1, window_bounds = array<i64: 2, 163>}, {pipeline_mode = #tpu.pipeline_mode<synchronous>, transform_indices = @transform_2, window_bounds = array<i64: 163, 256>}, {pipeline_mode = #tpu.pipeline_mode<synchronous>, transform_indices = @transform_3, window_bounds = array<i64: 1, 256>}, {pipeline_mode = #tpu.pipeline_mode<synchronous>, transform_indices = @transform_4, window_bounds = array<i64: 256, 128>}, {pipeline_mode = #tpu.pipeline_mode<synchronous>, transform_indices = @transform_5, window_bounds = array<i64: 1, 128>}, {pipeline_mode = #tpu.pipeline_mode<synchronous>, transform_indices = @transform_6, window_bounds = array<i64: 256, 128>}, {pipeline_mode = #tpu.pipeline_mode<synchronous>, transform_indices = @transform_7, window_bounds = array<i64: 128, 128>}, {pipeline_mode = #tpu.pipeline_mode<synchronous>, transform_indices = @transform_8, window_bounds = array<i64: 1, 128>}, {pipeline_mode = #tpu.pipeline_mode<synchronous>, transform_indices = @transform_9, window_bounds = array<i64: 128, 64>}, {pipeline_mode = #tpu.pipeline_mode<synchronous>, transform_indices = @transform_10, window_bounds = array<i64: 1, 64>}, {pipeline_mode = #tpu.pipeline_mode<synchronous>, transform_indices = @transform_11, window_bounds = array<i64: 64, 6>}, {pipeline_mode = #tpu.pipeline_mode<synchronous>, transform_indices = @transform_12, window_bounds = array<i64: 1, 6>}, {pipeline_mode = #tpu.pipeline_mode<synchronous>, transform_indices = @transform_13, window_bounds = array<i64: 2, 6>}]} {
    %c0 = arith.constant 0 : index
    %c0_0 = arith.constant 0 : index
    %0 = vector.load %arg2[%c0, %c0_0] : memref<2x163xf32, #tpu.memory_space<vmem>>, vector<2x163xf32>
    %c0_1 = arith.constant 0 : index
    %c0_2 = arith.constant 0 : index
    %1 = vector.load %arg3[%c0_1, %c0_2] : memref<163x256xf32, #tpu.memory_space<vmem>>, vector<163x256xf32>
    %cst = arith.constant dense<0.000000e+00> : vector<2x256xf32>
    %2 = tpu.matmul %0, %1, %cst {dimension_numbers = #tpu.dot_dimension_numbers<[1], [0], [0], [1], [0, 0, 1, 1], [], []>} : vector<2x163xf32>, vector<163x256xf32>, vector<2x256xf32> -> vector<2x256xf32>
    %c0_3 = arith.constant 0 : index
    %c0_4 = arith.constant 0 : index
    %3 = vector.load %arg4[%c0_3, %c0_4] : memref<1x256xf32, #tpu.memory_space<vmem>>, vector<1x256xf32>
    %4 = vector.broadcast %3 : vector<1x256xf32> to vector<2x256xf32>
    %5 = arith.addf %2, %4 : vector<2x256xf32>
    %cst_5 = arith.constant 0.000000e+00 : f32
    %6 = vector.broadcast %cst_5 : f32 to vector<2x256xf32>
    %7 = arith.maximumf %5, %6 : vector<2x256xf32>
    %c0_6 = arith.constant 0 : index
    %c0_7 = arith.constant 0 : index
    %8 = vector.load %arg5[%c0_6, %c0_7] : memref<256x128xf32, #tpu.memory_space<vmem>>, vector<256x128xf32>
    %cst_8 = arith.constant dense<0.000000e+00> : vector<2x128xf32>
    %9 = tpu.matmul %7, %8, %cst_8 {dimension_numbers = #tpu.dot_dimension_numbers<[1], [0], [0], [1], [0, 0, 1, 1], [], []>} : vector<2x256xf32>, vector<256x128xf32>, vector<2x128xf32> -> vector<2x128xf32>
    %c0_9 = arith.constant 0 : index
    %c0_10 = arith.constant 0 : index
    %10 = vector.load %arg6[%c0_9, %c0_10] : memref<1x128xf32, #tpu.memory_space<vmem>>, vector<1x128xf32>
    %11 = vector.broadcast %10 : vector<1x128xf32> to vector<2x128xf32>
    %12 = arith.addf %9, %11 : vector<2x128xf32>
    %cst_11 = arith.constant 0.000000e+00 : f32
    %13 = vector.broadcast %cst_11 : f32 to vector<2x128xf32>
    %14 = arith.maximumf %12, %13 : vector<2x128xf32>
    %c0_12 = arith.constant 0 : index
    %c0_13 = arith.constant 0 : index
    %15 = vector.load %arg1[%c0_12, %c0_13] : memref<2x256xf32, #tpu.memory_space<vmem>>, vector<2x256xf32>
    %c0_14 = arith.constant 0 : index
    %c0_15 = arith.constant 0 : index
    %16 = vector.load %arg7[%c0_14, %c0_15] : memref<256x128xf32, #tpu.memory_space<vmem>>, vector<256x128xf32>
    %cst_16 = arith.constant dense<0.000000e+00> : vector<2x128xf32>
    %17 = tpu.matmul %15, %16, %cst_16 {dimension_numbers = #tpu.dot_dimension_numbers<[1], [0], [0], [1], [0, 0, 1, 1], [], []>} : vector<2x256xf32>, vector<256x128xf32>, vector<2x128xf32> -> vector<2x128xf32>
    %c0_17 = arith.constant 0 : index
    %c0_18 = arith.constant 0 : index
    %18 = vector.load %arg8[%c0_17, %c0_18] : memref<128x128xf32, #tpu.memory_space<vmem>>, vector<128x128xf32>
    %cst_19 = arith.constant dense<0.000000e+00> : vector<2x128xf32>
    %19 = tpu.matmul %14, %18, %cst_19 {dimension_numbers = #tpu.dot_dimension_numbers<[1], [0], [0], [1], [0, 0, 1, 1], [], []>} : vector<2x128xf32>, vector<128x128xf32>, vector<2x128xf32> -> vector<2x128xf32>
    %20 = arith.addf %17, %19 : vector<2x128xf32>
    %c0_20 = arith.constant 0 : index
    %c0_21 = arith.constant 0 : index
    %21 = vector.load %arg9[%c0_20, %c0_21] : memref<1x128xf32, #tpu.memory_space<vmem>>, vector<1x128xf32>
    %22 = vector.broadcast %21 : vector<1x128xf32> to vector<2x128xf32>
    %23 = arith.addf %20, %22 : vector<2x128xf32>
    %cst_22 = arith.constant 0.000000e+00 : f32
    %24 = vector.broadcast %cst_22 : f32 to vector<2x128xf32>
    %25 = arith.maximumf %23, %24 : vector<2x128xf32>
    %c0_23 = arith.constant 0 : index
    %c0_24 = arith.constant 0 : index
    %26 = vector.load %arg10[%c0_23, %c0_24] : memref<128x64xf32, #tpu.memory_space<vmem>>, vector<128x64xf32>
    %cst_25 = arith.constant dense<0.000000e+00> : vector<2x64xf32>
    %27 = tpu.matmul %25, %26, %cst_25 {dimension_numbers = #tpu.dot_dimension_numbers<[1], [0], [0], [1], [0, 0, 1, 1], [], []>} : vector<2x128xf32>, vector<128x64xf32>, vector<2x64xf32> -> vector<2x64xf32>
    %c0_26 = arith.constant 0 : index
    %c0_27 = arith.constant 0 : index
    %28 = vector.load %arg11[%c0_26, %c0_27] : memref<1x64xf32, #tpu.memory_space<vmem>>, vector<1x64xf32>
    %29 = vector.broadcast %28 : vector<1x64xf32> to vector<2x64xf32>
    %30 = arith.addf %27, %29 : vector<2x64xf32>
    %cst_28 = arith.constant 0.000000e+00 : f32
    %31 = vector.broadcast %cst_28 : f32 to vector<2x64xf32>
    %32 = arith.maximumf %30, %31 : vector<2x64xf32>
    %c0_29 = arith.constant 0 : index
    %c0_30 = arith.constant 0 : index
    %33 = vector.load %arg12[%c0_29, %c0_30] : memref<64x6xf32, #tpu.memory_space<vmem>>, vector<64x6xf32>
    %cst_31 = arith.constant dense<0.000000e+00> : vector<2x6xf32>
    %34 = tpu.matmul %32, %33, %cst_31 {dimension_numbers = #tpu.dot_dimension_numbers<[1], [0], [0], [1], [0, 0, 1, 1], [], []>} : vector<2x64xf32>, vector<64x6xf32>, vector<2x6xf32> -> vector<2x6xf32>
    %c0_32 = arith.constant 0 : index
    %c0_33 = arith.constant 0 : index
    %35 = vector.load %arg13[%c0_32, %c0_33] : memref<1x6xf32, #tpu.memory_space<vmem>>, vector<1x6xf32>
    %36 = vector.broadcast %35 : vector<1x6xf32> to vector<2x6xf32>
    %37 = arith.addf %34, %36 : vector<2x6xf32>
    %c0_34 = arith.constant 0 : index
    %c0_35 = arith.constant 0 : index
    %38 = vector.load %arg14[%c0_34, %c0_35] : memref<2x6xf32, #tpu.memory_space<vmem>>, vector<2x6xf32>
    tpu.vector_store %arg14[%c0_34, %c0_35], %37 {strides = array<i32>} : memref<2x6xf32, #tpu.memory_space<vmem>>, vector<2x6xf32>,
    return
  }
  func.func @transform_0(%arg0: i32) -> (i32, i32) {
    %c0_i32 = arith.constant 0 : i32
    %c0_i32_0 = arith.constant 0 : i32
    %c0_i32_1 = arith.constant 0 : i32
    return %c0_i32, %c0_i32_0 : i32, i32
  }
  func.func @transform_1(%arg0: i32) -> (i32, i32) {
    %c0_i32 = arith.constant 0 : i32
    %c0_i32_0 = arith.constant 0 : i32
    %c0_i32_1 = arith.constant 0 : i32
    return %c0_i32, %c0_i32_0 : i32, i32
  }
  func.func @transform_2(%arg0: i32) -> (i32, i32) {
    %c0_i32 = arith.constant 0 : i32
    %c0_i32_0 = arith.constant 0 : i32
    %c0_i32_1 = arith.constant 0 : i32
    return %c0_i32, %c0_i32_0 : i32, i32
  }
  func.func @transform_3(%arg0: i32) -> (i32, i32) {
    %c0_i32 = arith.constant 0 : i32
    %c0_i32_0 = arith.constant 0 : i32
    %c0_i32_1 = arith.constant 0 : i32
    return %c0_i32, %c0_i32_0 : i32, i32
  }
  func.func @transform_4(%arg0: i32) -> (i32, i32) {
    %c0_i32 = arith.constant 0 : i32
    %c0_i32_0 = arith.constant 0 : i32
    %c0_i32_1 = arith.constant 0 : i32
    return %c0_i32, %c0_i32_0 : i32, i32
  }
  func.func @transform_5(%arg0: i32) -> (i32, i32) {
    %c0_i32 = arith.constant 0 : i32
    %c0_i32_0 = arith.constant 0 : i32
    %c0_i32_1 = arith.constant 0 : i32
    return %c0_i32, %c0_i32_0 : i32, i32
  }
  func.func @transform_6(%arg0: i32) -> (i32, i32) {
    %c0_i32 = arith.constant 0 : i32
    %c0_i32_0 = arith.constant 0 : i32
    %c0_i32_1 = arith.constant 0 : i32
    return %c0_i32, %c0_i32_0 : i32, i32
  }
  func.func @transform_7(%arg0: i32) -> (i32, i32) {
    %c0_i32 = arith.constant 0 : i32
    %c0_i32_0 = arith.constant 0 : i32
    %c0_i32_1 = arith.constant 0 : i32
    return %c0_i32, %c0_i32_0 : i32, i32
  }
  func.func @transform_8(%arg0: i32) -> (i32, i32) {
    %c0_i32 = arith.constant 0 : i32
    %c0_i32_0 = arith.constant 0 : i32
    %c0_i32_1 = arith.constant 0 : i32
    return %c0_i32, %c0_i32_0 : i32, i32
  }
  func.func @transform_9(%arg0: i32) -> (i32, i32) {
    %c0_i32 = arith.constant 0 : i32
    %c0_i32_0 = arith.constant 0 : i32
    %c0_i32_1 = arith.constant 0 : i32
    return %c0_i32, %c0_i32_0 : i32, i32
  }
  func.func @transform_10(%arg0: i32) -> (i32, i32) {
    %c0_i32 = arith.constant 0 : i32
    %c0_i32_0 = arith.constant 0 : i32
    %c0_i32_1 = arith.constant 0 : i32
    return %c0_i32, %c0_i32_0 : i32, i32
  }
  func.func @transform_11(%arg0: i32) -> (i32, i32) {
    %c0_i32 = arith.constant 0 : i32
    %c0_i32_0 = arith.constant 0 : i32
    %c0_i32_1 = arith.constant 0 : i32
    return %c0_i32, %c0_i32_0 : i32, i32
  }
  func.func @transform_12(%arg0: i32) -> (i32, i32) {
    %c0_i32 = arith.constant 0 : i32
    %c0_i32_0 = arith.constant 0 : i32
    %c0_i32_1 = arith.constant 0 : i32
    return %c0_i32, %c0_i32_0 : i32, i32
  }
  func.func @transform_13(%arg0: i32) -> (i32, i32) {
    %c0_i32 = arith.constant 0 : i32
    %c0_i32_0 = arith.constant 0 : i32
    %c0_i32_1 = arith.constant 0 : i32
    return %c0_i32, %c0_i32_0 : i32, i32
  }
}

</mosaic_0001>

<bundles_post_ra>
// kernel: combined_nn_forward.5
= control target key start
LH: loop header
LB: loop body
LE: loop exit
PB: predicated region body
PF: predicated region fallthrough
CT: control target
= control target key end

     0   :  { %s1119_s12 = smov 0   ;;  %s1465_s0 = inlined_call_operand.vmem [shape: f32[2,130,8,130], index: 0, kind: input, shape index: {}]   ;;  %s1466_s1 = inlined_call_operand.vmem [shape: f32[32,72], index: 1, kind: input, shape index: {}]   ;;  %s1467_s2 = inlined_call_operand.vmem [shape: f32[32,1], index: 2, kind: input, shape index: {}]   ;;  %s1468_s3 = inlined_call_operand.vmem [shape: f32[2,64,32,128], index: 3, kind: output, shape index: {}]  }
   0x1 LB: > { %s840_s13 = sadd.s32 4294967295, %s1090_s12   ;;  %p844_p0 = scmp.ge.s32.totalorder %s1090_s12, 1  ;;  %s1090_s12 = sphi %s1119_s12, %s13_s12  }
   0x2   : > { %p137_p1 = scmp.lt.s32.totalorder %s1090_s12, 3 }
   0x4   : > { %p138_p2 = pnand %p844_p0, %p137_p1 }
   0x5   : > { %p161_p3 = scmp.lt.s32.totalorder (!%p138_p2), %s840_s13, 1  ;;  %s1177_s11 = smov (!%p138_p2), 0  }
   0x6   : > { %141 = sbr.rel (%p138_p2) target bundleno = 364 (0x16c), region = 32 }
   0xb   : > { %v1130_v0 = vld [vmem:[%s1466_s1] sm:$0xff]  ;;  %v1135_v1 = vld [vmem:[%s1466_s1 + $0x8] sm:$0xff]  ;;  %v1140_v2 = vld [vmem:[%s1466_s1 + $0x10] sm:$0xff]  ;;  %s1470_s13 = smov (!%p161_p3, %s840_s13), 1 }
   0xc   : > { %v1145_v3 = vld [vmem:[%s1466_s1 + $0x18] sm:$0xff]  ;;  %v1150_v4 = vld [vmem:[%s1467_s2] sm:$0xff]  ;;  %v1155_v5 = vld [vmem:[%s1467_s2 + $0x8] sm:$0xff]  ;;  %s957_s30 = smul.u32 2080, %s1470_s13  ;;  %s941_s4 = sshll.u32 %s1470_s13, 11 }
   0xd   : > { %v1160_v6 = vld [vmem:[%s1467_s2 + $0x10] sm:$0xff]  ;;  %v1165_v7 = vld [vmem:[%s1467_s2 + $0x18] sm:$0xff]  ;;  %s1170_s7 = scalar_lea.vmem %s1468_s3, %s941_s4 }
   0xe   : > { %s1175_s10 = scalar_lea.vmem %s1465_s0, %s957_s30 }
   0xf LB: >> { %s943_s13 = sshll.u32 %s1094_s11, 7  ;;  %s1096_s15 = smov 127   ;;  %vm258_vm0 = vcmask 1031168   ;;  %vm251_vm1 = vcmask 1039360   ;;  %vm407_vm2 = vcmask 588800   ;;  %s1094_s11 = sphi %s1177_s11, %s184_s11  }
  0x10   : >> { %s1186_s14 = scalar_lea.vmem %s1175_s10, %s943_s13  ;;  %s1097_s16 = smov 126  }
  0x11   : >> { %v1189_v8 = vld [vmem:[%s1186_s14 + $0x40] sm:$0xff]  ;;  %v866_v9 = vld [vmem:[%s1186_s14 + $0x48] sm:$0xff]  ;;  %v1201_v14 = vld [vmem:[%s1186_s14 + $0x50] sm:$0xff]  ;;  %s1407_s17 = scalar_lea.vmem %s1170_s7, %s943_s13  ;;  %s184_s11 = sadd.s32 1, %s1094_s11  }
  0x12   : >> { %v987_v10 = vpack.i.bf16 %v866_v9, %v1189_v8  ;;  %v1194_v11 = vld [vmem:[%s1186_s14 + $0x20] sm:$0xff]  ;;  %v858_v12 = vld [vmem:[%s1186_s14 + $0x28] sm:$0xff]  ;;  %v870_v15 = vld [vmem:[%s1186_s14 + $0x58] sm:$0xff]  ;;  %p181_p4 = scmp.ge.s32.totalorder %s184_s11, 16  }
  0x13   : >> { %v997_v13 = vpack.i.bf16 %v858_v12, %v1194_v11  ;;  %v992_v16 = vpack.i.bf16 %v870_v15, %v1201_v14  ;;  %v1207_v17 = vld [vmem:[%s1186_s14 + $0x30] sm:$0xff]  ;;  %v862_v18 = vld [vmem:[%s1186_s14 + $0x38] sm:$0xff]  ;;  %v1222_v23 = vld [vmem:[%s1186_s14] sm:$0xff] }
  0x14   : >> { %988 = vrot.lane.b32.xlu1 %v987_v10, %s1096_s15  ;;  %978 = vrot.lane.b32.xlu0 %v987_v10, %s1097_s16  ;;  %v1002_v19 = vpack.i.bf16 %v862_v18, %v1207_v17  ;;  %v1215_v20 = vld [vmem:[%s1186_s14 + $0x10] sm:$0xff]  ;;  %v854_v21 = vld [vmem:[%s1186_s14 + $0x18] sm:$0xff] }
  0x15   : >> { %998 = vrot.lane.b32.xlu2 %v997_v13, %s1097_s16  ;;  %v1017_v22 = vpack.i.bf16 %v854_v21, %v1215_v20  ;;  %v190_v24 = vld [vmem:[%s1186_s14 + $0x8] sm:$0xff]  ;;  %v1230_v26 = vld [vmem:[%s1186_s14 + $0x80] sm:$0xff]  ;;  %v1234_v28 = vld [vmem:[%s1186_s14 + $0x90] sm:$0xff] }
  0x16   : >> { %v1027_v25 = vpack.i.bf16 %v190_v24, %v1222_v23  ;;  %v882_v27 = vld [vmem:[%s1186_s14 + $0x88] sm:$0xff]  ;;  %v886_v29 = vld [vmem:[%s1186_s14 + $0x98] sm:$0xff]  ;;  %v1243_v32 = vld [vmem:[%s1186_s14 + $0x60] sm:$0xff] }
  0x17   : >> { %v1037_v30 = vpack.i.bf16 %v882_v27, %v1230_v26  ;;  %v1042_v31 = vpack.i.bf16 %v886_v29, %v1234_v28  ;;  %v874_v33 = vld [vmem:[%s1186_s14 + $0x68] sm:$0xff]  ;;  %v1249_v35 = vld [vmem:[%s1186_s14 + $0x70] sm:$0xff]  ;;  %v878_v36 = vld [vmem:[%s1186_s14 + $0x78] sm:$0xff] }
  0x18   : >> { %v1057_v34 = vpack.i.bf16 %v874_v33, %v1243_v32  ;;  %v1062_v37 = vpack.i.bf16 %v878_v36, %v1249_v35 }
  0x1c   : >> { %993 = vrot.lane.b32.xlu1 %v992_v16, %s1096_s15  ;;  %983 = vrot.lane.b32.xlu0 %v992_v16, %s1097_s16 }
  0x1d   : >> { %1003 = vrot.lane.b32.xlu2 %v1002_v19, %s1097_s16 }
  0x24   : >> { %1013 = vrot.lane.b32.xlu1 %v1002_v19, %s1096_s15  ;;  %1008 = vrot.lane.b32.xlu0 %v997_v13, %s1096_s15 }
  0x25   : >> { %1018 = vrot.lane.b32.xlu2 %v1017_v22, %s1097_s16 }
  0x2c   : >> { %1023 = vrot.lane.b32.xlu0 %v1017_v22, %s1096_s15  ;;  %1028 = vrot.lane.b32.xlu1 %v1027_v25, %s1097_s16 }
  0x2d   : >> { %1033 = vrot.lane.b32.xlu2 %v1027_v25, %s1096_s15 }
  0x34   : >> { %1038 = vrot.lane.b32.xlu0 %v1037_v30, %s1097_s16  ;;  %1043 = vrot.lane.b32.xlu1 %v1042_v31, %s1097_s16 }
  0x35   : >> { %1048 = vrot.lane.b32.xlu2 %v1037_v30, %s1096_s15 }
  0x3c   : >> { %1053 = vrot.lane.b32.xlu0 %v1042_v31, %s1096_s15  ;;  %1058 = vrot.lane.b32.xlu1 %v1057_v34, %s1097_s16 }
  0x3d   : >> { %1063 = vrot.lane.b32.xlu2 %v1062_v37, %s1097_s16 }
  0x44   : >> { %1068 = vrot.lane.b32.xlu0 %v1057_v34, %s1096_s15  ;;  %1073 = vrot.lane.b32.xlu1 %v1062_v37, %s1096_s15 }
  0x6f   : >> { %v999_v38 = vpop.permute.xlu2 %998 }
  0x70   : >> { %v1001_v39 = vunpack.i.h.bf16 %v999_v38  ;;  %v1000_v40 = vunpack.i.l.bf16 %v999_v38 }
  0x72   : >> { %v287_v41 = vsel %vm258_vm0, %v1000_v40, %v1001_v39 }
  0x73   : >> { %427 = vmatpush.msra.mxu0 %v287_v41 }
  0x77   : >> { %v1004_v42 = vpop.permute.xlu2 %1003 }
  0x78   : >> { %v1006_v43 = vunpack.i.h.bf16 %v1004_v42  ;;  %v1005_v44 = vunpack.i.l.bf16 %v1004_v42 }
  0x7a   : >> { %v301_v45 = vsel %vm258_vm0, %v1005_v44, %v1006_v43 }
  0x7b   : >> { %456 = vmatpush.msra.mxu1 %v301_v45 }
  0x7f   : >> { %v1019_v46 = vpop.permute.xlu2 %1018 }
  0x80   : >> { %v1021_v12 = vunpack.i.h.bf16 %v1019_v46  ;;  %v1020_v13 = vunpack.i.l.bf16 %v1019_v46 }
  0x82   : >> { %v273_v25 = vsel %vm258_vm0, %v1020_v13, %v1021_v12 }
  0x86   : >> { %v989_v47 = vpop.permute.xlu1 %988  ;;  %v979_v48 = vpop.permute.xlu0 %978 }
  0x87   : >> { %v991_v49 = vunpack.i.h.bf16 %v989_v47  ;;  %v990_v50 = vunpack.i.l.bf16 %v989_v47  ;;  %v981_v51 = vunpack.i.h.bf16 %v979_v48  ;;  %v980_v52 = vunpack.i.l.bf16 %v979_v48  ;;  %v1268_v55 = vpop.permute.xlu2 %1033 }
  0x88   : >> { %v1036_v33 = vunpack.i.h.bf16 %v1268_v55  ;;  %v1035_v38 = vunpack.i.l.bf16 %v1268_v55 }
  0x89   : >> { %v1261_v53 = vsel %vm258_vm0, %v980_v52, %v981_v51  ;;  %v1264_v54 = vsel %vm251_vm1, %v990_v50, %v991_v49  ;;  %v1098_v50 = vmov 0  }
  0x8a   : >> { %485 = vmatpush.msra.mxu2 %v1261_v53  ;;  %v252_v43 = vsel %vm251_vm1, %v1035_v38, %v1036_v33  ;;  %1078 = vset.pattern.permute.xlu0 %v1098_v50 }
  0x8b   : >> { %1079 = vset.pattern.permute.xlu1 %v1098_v50  ;;  %394 = vperm.xlu0 %1078, %v1155_v5  }
  0x8c   : >> { %486 = vmatpush.msra.mxu2 %v1264_v54  ;;  %399 = vperm.xlu1 %1079, %v1160_v6  }
  0x8d   : >> { %1077 = vset.pattern.permute.xlu2 %v1098_v50 }
  0x8e   : >> { %v994_v56 = vpop.permute.xlu1 %993  ;;  %v984_v57 = vpop.permute.xlu0 %983  ;;  %487 = vmatpush.msra.mxu2 %v1189_v8  ;;  %389 = vperm.xlu2 %1077, %v1150_v4  }
  0x8f   : >> { %v996_v58 = vunpack.i.h.bf16 %v994_v56  ;;  %v995_v59 = vunpack.i.l.bf16 %v994_v56  ;;  %v986_v60 = vunpack.i.h.bf16 %v984_v57  ;;  %v985_v61 = vunpack.i.l.bf16 %v984_v57  ;;  %v1280_v21 = vpop.permute.xlu2 %1048 }
  0x90   : >> { %488 = vmatpush.msra.mxu2 %v301_v45  ;;  %v1051_v44 = vunpack.i.h.bf16 %v1280_v21 }
  0x91   : >> { %v1272_v62 = vsel %vm258_vm0, %v985_v61, %v986_v60  ;;  %v1275_v63 = vsel %vm251_vm1, %v995_v59, %v996_v58 }
  0x92   : >> { %514 = vmatpush.msra.mxu3 %v1272_v62 }
  0x94   : >> { %515 = vmatpush.msra.mxu3 %v1275_v63 }
  0x96   : >> { %516 = vmatpush.msra.mxu3 %v1201_v14  ;;  %v1014_v9 = vpop.permute.xlu1 %1013  ;;  %v1009_v10 = vpop.permute.xlu0 %1008  ;;  %404 = vperm.xlu2 %1077, %v1165_v7  }
  0x97   : >> { %v1016_v15 = vunpack.i.h.bf16 %v1014_v9  ;;  %v1015_v16 = vunpack.i.l.bf16 %v1014_v9  ;;  %v1011_v18 = vunpack.i.h.bf16 %v1009_v10  ;;  %v1010_v19 = vunpack.i.l.bf16 %v1009_v10  ;;  %v1064_v39 = vpop.permute.xlu2 %1063 }
  0x98   : >> { %517 = vmatpush.msra.mxu3 %v1261_v53  ;;  %v1066_v40 = vunpack.i.h.bf16 %v1064_v39 }
  0x99   : >> { %v281_v22 = vsel %vm251_vm1, %v1010_v19, %v1011_v18  ;;  %v295_v24 = vsel %vm251_vm1, %v1015_v16, %v1016_v15 }
  0x9a   : >> { %428 = vmatpush.msra.mxu0 %v281_v22  ;;  %457 = vmatpush.msra.mxu1 %v295_v24 }
  0x9b   : >> { %489 = vmatpush.msra.mxu2 %v295_v24  ;;  %518 = vmatpush.msra.mxu3 %v1264_v54 }
  0x9c   : >> { %429 = vmatpush.msra.mxu0 %v1194_v11  ;;  %458 = vmatpush.msra.mxu1 %v1207_v17 }
  0x9d   : >> { %490 = vmatpush.msra.mxu2 %v1207_v17  ;;  %519 = vmatpush.msra.mxu3 %v1189_v8 }
  0x9e   : >> { %459 = vmatpush.msra.mxu1 %v287_v41  ;;  %v1024_v27 = vpop.permute.xlu0 %1023  ;;  %430 = vmatpush.msra.mxu0 %v273_v25  ;;  %v1029_v29 = vpop.permute.xlu1 %1028 }
  0x9f   : >> { %491 = vmatpush.msra.mxu2 %v287_v41  ;;  %520 = vmatpush.msra.mxu3 %v301_v45  ;;  %v1026_v30 = vunpack.i.h.bf16 %v1024_v27  ;;  %v1025_v31 = vunpack.i.l.bf16 %v1024_v27  ;;  %v1031_v34 = vunpack.i.h.bf16 %v1029_v29  ;;  %v1030_v36 = vunpack.i.l.bf16 %v1029_v29 }
  0xa0   : >> { %460 = vmatpush.msra.mxu1 %v281_v22  ;;  %v1065_v41 = vunpack.i.l.bf16 %v1064_v39 }
  0xa1   : >> { %492 = vmatpush.msra.mxu2 %v281_v22  ;;  %521 = vmatpush.msra.mxu3 %v295_v24  ;;  %v267_v37 = vsel %vm251_vm1, %v1025_v31, %v1026_v30  ;;  %v259_v42 = vsel %vm258_vm0, %v1030_v36, %v1031_v34 }
  0xa2   : >> { %431 = vmatpush.msra.mxu0 %v267_v37  ;;  %461 = vmatpush.msra.mxu1 %v1194_v11  ;;  %v357_v51 = vsel %vm258_vm0, %v1065_v41, %v1066_v40 }
  0xa3   : >> { %493 = vmatpush.msra.mxu2 %v1194_v11  ;;  %522 = vmatpush.msra.mxu3 %v1207_v17  ;;  %v1050_v11 = vunpack.i.l.bf16 %v1280_v21 }
  0xa4   : >> { %432 = vmatpush.msra.mxu0 %v1215_v20  ;;  %462 = vmatpush.msra.mxu1 %v273_v25 }
  0xa5   : >> { %895 = vmatmul.msk.f32.vlgmr.msra.gmra.mxu2 %vm407_vm2, %v1130_v0  ;;  %899 = vmatmul.msk.f32.vlgmr.msra.gmra.mxu3 %vm407_vm2, %v1130_v0  ;;  %v365_v56 = vsel %vm251_vm1, %v1050_v11, %v1051_v44 }
  0xa6   : >> { %v1039_v17 = vpop.permute.xlu0 %1038  ;;  %463 = vmatpush.msra.mxu1 %v267_v37  ;;  %v1044_v45 = vpop.permute.xlu1 %1043  ;;  %433 = vmatpush.msra.mxu0 %v259_v42 }
  0xa7   : >> { %v1041_v46 = vunpack.i.h.bf16 %v1039_v17  ;;  %v1040_v47 = vunpack.i.l.bf16 %v1039_v17  ;;  %v1046_v48 = vunpack.i.h.bf16 %v1044_v45  ;;  %v1045_v49 = vunpack.i.l.bf16 %v1044_v45 }
  0xa8   : >> { %434 = vmatpush.msra.mxu0 %v252_v43  ;;  %464 = vmatpush.msra.mxu1 %v1215_v20 }
  0xa9   : >> { %v371_v52 = vsel %vm258_vm0, %v1040_v47, %v1041_v46  ;;  %v385_v55 = vsel %vm258_vm0, %v1045_v49, %v1046_v48  ;;  %891 = vmatmul.msk.f32.vlgmr.msra.gmra.mxu1 %vm407_vm2, %v1130_v0 }
  0xaa   : >> { %601 = vmatpush.msrb.mxu2 %v371_v52  ;;  %630 = vmatpush.msrb.mxu3 %v385_v55 }
  0xab   : >> { %435 = vmatpush.msra.mxu0 %v1222_v23  ;;  %572 = vmatpush.msrb.mxu1 %v357_v51 }
  0xac   : >> { %602 = vmatpush.msrb.mxu2 %v365_v56  ;;  %887 = vmatmul.msk.f32.vlgmr.msra.gmra.mxu0 %vm407_vm2, %v1130_v0 }
  0xad   : >> { %896 = vmatmul.msk.f32.gmra.mxu2 %vm407_vm2, %v1135_v1  ;;  %900 = vmatmul.msk.f32.gmra.mxu3 %vm407_vm2, %v1135_v1 }
  0xae   : >> { %v1054_v20 = vpop.permute.xlu0 %1053  ;;  %v1059_v57 = vpop.permute.xlu1 %1058  ;;  %603 = vmatpush.msrb.mxu2 %v1230_v26 }
  0xaf   : >> { %v1056_v58 = vunpack.i.h.bf16 %v1054_v20  ;;  %v1055_v59 = vunpack.i.l.bf16 %v1054_v20  ;;  %v1061_v23 = vunpack.i.h.bf16 %v1059_v57  ;;  %v1060_v60 = vunpack.i.l.bf16 %v1059_v57 }
  0xb0   : >> { %604 = vmatpush.msrb.mxu2 %v357_v51 }
  0xb1   : >> { %v343_v61 = vsel %vm258_vm0, %v1060_v60, %v1061_v23  ;;  %v379_v9 = vsel %vm251_vm1, %v1055_v59, %v1056_v58  ;;  %892 = vmatmul.msk.f32.gmra.mxu1 %vm407_vm2, %v1135_v1 }
  0xb2   : >> { %543 = vmatpush.msrb.mxu0 %v343_v61  ;;  %631 = vmatpush.msrb.mxu3 %v379_v9 }
  0xb4   : >> { %632 = vmatpush.msrb.mxu3 %v1234_v28  ;;  %888 = vmatmul.msk.f32.gmra.mxu0 %vm407_vm2, %v1135_v1 }
  0xb5   : >> { %897 = vmatmul.msk.f32.gmra.mxu2 %vm407_vm2, %v1140_v2  ;;  %901 = vmatmul.msk.f32.gmra.mxu3 %vm407_vm2, %v1140_v2 }
  0xb6   : >> { %v1069_v10 = vpop.permute.xlu0 %1068  ;;  %v1074_v12 = vpop.permute.xlu1 %1073  ;;  %633 = vmatpush.msrb.mxu3 %v371_v52 }
  0xb7   : >> { %v1071_v13 = vunpack.i.h.bf16 %v1069_v10  ;;  %v1070_v15 = vunpack.i.l.bf16 %v1069_v10  ;;  %v1076_v16 = vunpack.i.h.bf16 %v1074_v12  ;;  %v1075_v18 = vunpack.i.l.bf16 %v1074_v12 }
  0xb8   : >> { %634 = vmatpush.msrb.mxu3 %v365_v56 }
  0xb9   : >> { %v337_v28 = vsel %vm251_vm1, %v1070_v15, %v1071_v13  ;;  %v351_v19 = vsel %vm251_vm1, %v1075_v18, %v1076_v16  ;;  %893 = vmatmul.msk.f32.gmra.mxu1 %vm407_vm2, %v1140_v2 }
  0xba   : >> { %544 = vmatpush.msrb.mxu0 %v337_v28  ;;  %573 = vmatpush.msrb.mxu1 %v351_v19 }
  0xbb   : >> { %605 = vmatpush.msrb.mxu2 %v351_v19  ;;  %635 = vmatpush.msrb.mxu3 %v1230_v26 }
  0xbc   : >> { %545 = vmatpush.msrb.mxu0 %v1243_v32  ;;  %574 = vmatpush.msrb.mxu1 %v1249_v35 }
  0xbd   : >> { %606 = vmatpush.msrb.mxu2 %v1249_v35  ;;  %636 = vmatpush.msrb.mxu3 %v357_v51 }
  0xbe   : >> { %889 = vmatmul.msk.f32.gmra.mxu0 %vm407_vm2, %v1140_v2  ;;  %575 = vmatpush.msrb.mxu1 %v343_v61 }
  0xbf   : >> { %546 = vmatpush.msrb.mxu0 %v1272_v62  ;;  %607 = vmatpush.msrb.mxu2 %v343_v61 }
  0xc0   : >> { %637 = vmatpush.msrb.mxu3 %v351_v19  ;;  %898 = vmatmul.msk.f32.gmra.mxu2 %vm407_vm2, %v1145_v3 }
  0xc1   : >> { %902 = vmatmul.msk.f32.gmra.mxu3 %vm407_vm2, %v1145_v3  ;;  %547 = vmatpush.msrb.mxu0 %v1275_v63 }
  0xc2   : >> { %576 = vmatpush.msrb.mxu1 %v337_v28  ;;  %608 = vmatpush.msrb.mxu2 %v337_v28 }
  0xc3   : >> { %548 = vmatpush.msrb.mxu0 %v1201_v14  ;;  %894 = vmatmul.msk.f32.gmra.mxu1 %vm407_vm2, %v1145_v3 }
  0xc4   : >> { %577 = vmatpush.msrb.mxu1 %v1243_v32  ;;  %609 = vmatpush.msrb.mxu2 %v1243_v32 }
  0xc5   : >> { %549 = vmatpush.msrb.mxu0 %v1261_v53  ;;  %638 = vmatpush.msrb.mxu3 %v1249_v35 }
  0xc6   : >> { %578 = vmatpush.msrb.mxu1 %v1272_v62  ;;  %890 = vmatmul.msk.f32.gmra.mxu0 %vm407_vm2, %v1145_v3 }
  0xc7   : >> { %550 = vmatpush.msrb.mxu0 %v1264_v54 }
  0xc8   : >> { %579 = vmatpush.msrb.mxu1 %v1275_v63  ;;  %911 = vmatmul.msk.f32.vlgmr.msrb.gmra.mxu2 %vm407_vm2, %v1130_v0 }
  0xc9   : >> { %915 = vmatmul.msk.f32.vlgmr.msrb.gmra.mxu3 %vm407_vm2, %v1130_v0  ;;  %551 = vmatpush.msrb.mxu0 %v1189_v8 }
  0xca   : >> { %580 = vmatpush.msrb.mxu1 %v1201_v14 }
  0xcb   : >> { %907 = vmatmul.msk.f32.vlgmr.msrb.gmra.mxu1 %vm407_vm2, %v1130_v0 }
  0xce   : >> { %903 = vmatmul.msk.f32.vlgmr.msrb.gmra.mxu0 %vm407_vm2, %v1130_v0 }
  0xd0   : >> { %912 = vmatmul.msk.f32.gmra.mxu2 %vm407_vm2, %v1135_v1 }
  0xd1   : >> { %916 = vmatmul.msk.f32.gmra.mxu3 %vm407_vm2, %v1135_v1 }
  0xd3   : >> { %908 = vmatmul.msk.f32.gmra.mxu1 %vm407_vm2, %v1135_v1 }
  0xd6   : >> { %904 = vmatmul.msk.f32.gmra.mxu0 %vm407_vm2, %v1135_v1 }
  0xd8   : >> { %913 = vmatmul.msk.f32.gmra.mxu2 %vm407_vm2, %v1140_v2 }
  0xd9   : >> { %917 = vmatmul.msk.f32.gmra.mxu3 %vm407_vm2, %v1140_v2 }
  0xdb   : >> { %909 = vmatmul.msk.f32.gmra.mxu1 %vm407_vm2, %v1140_v2 }
  0xde   : >> { %905 = vmatmul.msk.f32.gmra.mxu0 %vm407_vm2, %v1140_v2 }
  0xe0   : >> { %914 = vmatmul.msk.f32.gmra.mxu2 %vm407_vm2, %v1145_v3 }
  0xe1   : >> { %918 = vmatmul.msk.f32.gmra.mxu3 %vm407_vm2, %v1145_v3 }
  0xe3   : >> { %910 = vmatmul.msk.f32.gmra.mxu1 %vm407_vm2, %v1145_v3 }
  0xe6   : >> { %906 = vmatmul.msk.f32.gmra.mxu0 %vm407_vm2, %v1145_v3 }
  0xe8   : >> { %v1398_v8 = vpop.permute.xlu2 %389 }
  0xf0   : >> { %v1425_v23 = vpop.permute.xlu2 %404 }
  0xfd   : >> { %v1409_v27 = vpop.permute.xlu0 %394 }
  0xfe   : >> { %v1417_v17 = vpop.permute.xlu1 %399 }
 0x126   : >> { %v466_v14 = vpop.f32.mrf.mxu1 }
 0x127   : >> { %v467_v26 = vadd.f32 %v466_v14, %v1398_v8 }
 0x128   : >> { %v495_v32 = vpop.f32.mrf.mxu2  ;;  %v524_v35 = vpop.f32.mrf.mxu3 }
 0x129   : >> { %v437_v53 = vpop.f32.mrf.mxu0  ;;  %v496_v54 = vadd.f32 %v495_v32, %v1398_v8  ;;  %v525_v62 = vadd.f32 %v524_v35, %v1398_v8  ;;  %v653_v21 = vmax.f32 %v467_v26, 0.0 }
 0x12a   : >> { %v438_v63 = vadd.f32 %v437_v53, %v1398_v8 }
 0x12b   : >> { %v654_v22 = vmax.f32 %v496_v54, 0.0  ;;  %v655_v24 = vmax.f32 %v525_v62, 0.0 }
 0x12c   : >> { %v652_v25 = vmax.f32 %v438_v63, 0.0 }
 0x12d   : >> { %v695_v29 = vmax.f32 %v654_v22, %v655_v24 }
 0x12e   : >> { %v469_v30 = vpop.f32.mrf.mxu1  ;;  %v684_v31 = vmax.f32 %v652_v25, %v653_v21 }
 0x12f   : >> { %923 = vst [vmem:[%s1407_s17 + $0x20] sm:$0xff] %v695_v29  ;;  %v470_v33 = vadd.f32 %v469_v30, %v1409_v27 }
 0x130   : >> { %v498_v34 = vpop.f32.mrf.mxu2  ;;  %v527_v36 = vpop.f32.mrf.mxu3  ;;  %691 = vst [vmem:[%s1407_s17] sm:$0xff] %v684_v31 }
 0x131   : >> { %v440_v37 = vpop.f32.mrf.mxu0  ;;  %v499_v38 = vadd.f32 %v498_v34, %v1409_v27  ;;  %v528_v39 = vadd.f32 %v527_v36, %v1409_v27  ;;  %v661_v41 = vmax.f32 %v470_v33, 0.0 }
 0x132   : >> { %v441_v40 = vadd.f32 %v440_v37, %v1409_v27 }
 0x133   : >> { %v662_v42 = vmax.f32 %v499_v38, 0.0  ;;  %v663_v43 = vmax.f32 %v528_v39, 0.0 }
 0x134   : >> { %v660_v44 = vmax.f32 %v441_v40, 0.0 }
 0x135   : >> { %v696_v11 = vmax.f32 %v662_v42, %v663_v43 }
 0x136   : >> { %v685_v45 = vmax.f32 %v660_v44, %v661_v41  ;;  %v472_v46 = vpop.f32.mrf.mxu1 }
 0x137   : >> { %924 = vst [vmem:[%s1407_s17 + $0x28] sm:$0xff] %v696_v11  ;;  %v473_v49 = vadd.f32 %v472_v46, %v1417_v17 }
 0x138   : >> { %v501_v47 = vpop.f32.mrf.mxu2  ;;  %v530_v48 = vpop.f32.mrf.mxu3  ;;  %692 = vst [vmem:[%s1407_s17 + $0x8] sm:$0xff] %v685_v45 }
 0x139   : >> { %v502_v50 = vadd.f32 %v501_v47, %v1417_v17  ;;  %v531_v51 = vadd.f32 %v530_v48, %v1417_v17  ;;  %v669_v57 = vmax.f32 %v473_v49, 0.0 }
 0x13b   : >> { %v443_v52 = vpop.f32.mrf.mxu0  ;;  %v670_v55 = vmax.f32 %v502_v50, 0.0  ;;  %v671_v56 = vmax.f32 %v531_v51, 0.0 }
 0x13c   : >> { %v444_v20 = vadd.f32 %v443_v52, %v1417_v17 }
 0x13d   : >> { %v697_v58 = vmax.f32 %v670_v55, %v671_v56 }
 0x13e   : >> { %v668_v59 = vmax.f32 %v444_v20, 0.0 }
 0x13f   : >> { %925 = vst [vmem:[%s1407_s17 + $0x30] sm:$0xff] %v697_v58 }
 0x140   : >> { %v475_v60 = vpop.f32.mrf.mxu1  ;;  %v686_v61 = vmax.f32 %v668_v59, %v669_v57 }
 0x141   : >> { %v476_v9 = vadd.f32 %v475_v60, %v1425_v23 }
 0x142   : >> { %693 = vst [vmem:[%s1407_s17 + $0x10] sm:$0xff] %v686_v61 }
 0x143   : >> { %v504_v10 = vpop.f32.mrf.mxu2  ;;  %v446_v12 = vpop.f32.mrf.mxu0  ;;  %v677_v18 = vmax.f32 %v476_v9, 0.0 }
 0x144   : >> { %v533_v13 = vpop.f32.mrf.mxu3  ;;  %v447_v15 = vadd.f32 %v446_v12, %v1425_v23  ;;  %v505_v16 = vadd.f32 %v504_v10, %v1425_v23 }
 0x145   : >> { %v534_v28 = vadd.f32 %v533_v13, %v1425_v23 }
 0x146   : >> { %v676_v19 = vmax.f32 %v447_v15, 0.0  ;;  %v678_v14 = vmax.f32 %v505_v16, 0.0 }
 0x147   : >> { %v679_v26 = vmax.f32 %v534_v28, 0.0 }
 0x148   : >> { %v687_v32 = vmax.f32 %v676_v19, %v677_v18  ;;  %v582_v35 = vpop.f32.mrf.mxu1 }
 0x149   : >> { %v698_v53 = vmax.f32 %v678_v14, %v679_v26  ;;  %v583_v54 = vadd.f32 %v582_v35, %v1398_v8 }
 0x14a   : >> { %694 = vst [vmem:[%s1407_s17 + $0x18] sm:$0xff] %v687_v32 }
 0x14b   : >> { %926 = vst [vmem:[%s1407_s17 + $0x38] sm:$0xff] %v698_v53  ;;  %v553_v62 = vpop.f32.mrf.mxu0  ;;  %v611_v63 = vpop.f32.mrf.mxu2  ;;  %v657_v22 = vmax.f32 %v583_v54, 0.0 }
 0x14c   : >> { %v554_v21 = vadd.f32 %v553_v62, %v1398_v8  ;;  %v612_v24 = vadd.f32 %v611_v63, %v1398_v8  ;;  %v640_v25 = vpop.f32.mrf.mxu3 }
 0x14d   : >> { %v641_v29 = vadd.f32 %v640_v25, %v1398_v8 }
 0x14e   : >> { %v656_v30 = vmax.f32 %v554_v21, 0.0  ;;  %v658_v31 = vmax.f32 %v612_v24, 0.0 }
 0x14f   : >> { %v659_v33 = vmax.f32 %v641_v29, 0.0 }
 0x150   : >> { %v706_v34 = vmax.f32 %v656_v30, %v657_v22  ;;  %v585_v36 = vpop.f32.mrf.mxu1 }
 0x151   : >> { %v717_v37 = vmax.f32 %v658_v31, %v659_v33  ;;  %v586_v38 = vadd.f32 %v585_v36, %v1409_v27 }
 0x152   : >> { %929 = vst [vmem:[%s1407_s17 + $0x40] sm:$0xff] %v706_v34 }
 0x153   : >> { %935 = vst [vmem:[%s1407_s17 + $0x60] sm:$0xff] %v717_v37  ;;  %v556_v39 = vpop.f32.mrf.mxu0  ;;  %v614_v40 = vpop.f32.mrf.mxu2  ;;  %v665_v42 = vmax.f32 %v586_v38, 0.0 }
 0x154   : >> { %v557_v41 = vadd.f32 %v556_v39, %v1409_v27  ;;  %v615_v43 = vadd.f32 %v614_v40, %v1409_v27  ;;  %v643_v8 = vpop.f32.mrf.mxu3 }
 0x155   : >> { %v644_v44 = vadd.f32 %v643_v8, %v1409_v27 }
 0x156   : >> { %v664_v11 = vmax.f32 %v557_v41, 0.0  ;;  %v666_v45 = vmax.f32 %v615_v43, 0.0 }
 0x157   : >> { %v667_v46 = vmax.f32 %v644_v44, 0.0 }
 0x158   : >> { %v707_v47 = vmax.f32 %v664_v11, %v665_v42  ;;  %v588_v48 = vpop.f32.mrf.mxu1 }
 0x159   : >> { %v718_v49 = vmax.f32 %v666_v45, %v667_v46  ;;  %v589_v50 = vadd.f32 %v588_v48, %v1417_v17 }
 0x15a   : >> { %930 = vst [vmem:[%s1407_s17 + $0x48] sm:$0xff] %v707_v47 }
 0x15b   : >> { %936 = vst [vmem:[%s1407_s17 + $0x68] sm:$0xff] %v718_v49  ;;  %v559_v51 = vpop.f32.mrf.mxu0  ;;  %v617_v52 = vpop.f32.mrf.mxu2  ;;  %v673_v56 = vmax.f32 %v589_v50, 0.0 }
 0x15c   : >> { %v560_v55 = vadd.f32 %v559_v51, %v1417_v17  ;;  %v618_v20 = vadd.f32 %v617_v52, %v1417_v17  ;;  %v646_v27 = vpop.f32.mrf.mxu3 }
 0x15d   : >> { %v647_v57 = vadd.f32 %v646_v27, %v1417_v17 }
 0x15e   : >> { %v672_v58 = vmax.f32 %v560_v55, 0.0  ;;  %v674_v59 = vmax.f32 %v618_v20, 0.0 }
 0x15f   : >> { %v675_v60 = vmax.f32 %v647_v57, 0.0 }
 0x160   : >> { %v708_v61 = vmax.f32 %v672_v58, %v673_v56  ;;  %v591_v9 = vpop.f32.mrf.mxu1 }
 0x161   : >> { %v719_v10 = vmax.f32 %v674_v59, %v675_v60  ;;  %v592_v12 = vadd.f32 %v591_v9, %v1425_v23 }
 0x162   : >> { %931 = vst [vmem:[%s1407_s17 + $0x50] sm:$0xff] %v708_v61 }
 0x163   : >> { %937 = vst [vmem:[%s1407_s17 + $0x70] sm:$0xff] %v719_v10  ;;  %v562_v13 = vpop.f32.mrf.mxu0  ;;  %v620_v15 = vpop.f32.mrf.mxu2  ;;  %v681_v14 = vmax.f32 %v592_v12, 0.0 }
 0x164   : >> { %v563_v16 = vadd.f32 %v562_v13, %v1425_v23  ;;  %v621_v18 = vadd.f32 %v620_v15, %v1425_v23  ;;  %v649_v28 = vpop.f32.mrf.mxu3 }
 0x165   : >> { %v650_v17 = vadd.f32 %v649_v28, %v1425_v23 }
 0x166   : >> { %v680_v19 = vmax.f32 %v563_v16, 0.0  ;;  %v682_v26 = vmax.f32 %v621_v18, 0.0 }
 0x167   : >> { %v683_v32 = vmax.f32 %v650_v17, 0.0  ;;  %183 = sbr.rel (!%p181_p4) target bundleno = 15 (0xf), region = 83 }
 0x168   : >> { %v709_v35 = vmax.f32 %v680_v19, %v681_v14 }
 0x169   : >> { %v720_v53 = vmax.f32 %v682_v26, %v683_v32 }
 0x16a   : >> { %932 = vst [vmem:[%s1407_s17 + $0x58] sm:$0xff] %v709_v35 }
 0x16b   : >> { %938 = vst [vmem:[%s1407_s17 + $0x78] sm:$0xff] %v720_v53 }
 0x16c PF: > { %s13_s12 = sadd.s32 1, %s1090_s12  }
 0x16d   : > { %p10_p5 = scmp.ge.s32.totalorder %s13_s12, 4  }
 0x16f   :  { %12 = sbr.rel (!%p10_p5) target bundleno = 1 (0x1), region = 94 }

// kernel: combined_nn_forward.6
= control target key start
LH: loop header
LB: loop body
LE: loop exit
PB: predicated region body
PF: predicated region fallthrough
CT: control target
= control target key end

     0   :  { %s3450_s12 = smov 0   ;;  %s4771_s0 = inlined_call_operand.vmem [shape: f32[2,66,66,32], index: 0, kind: input, shape index: {}]   ;;  %s4772_s1 = inlined_call_operand.vmem [shape: f32[9,32,64], index: 1, kind: input, shape index: {}]   ;;  %s4773_s2 = inlined_call_operand.vmem [shape: f32[1,64], index: 2, kind: input, shape index: {}]   ;;  %s4774_s3 = inlined_call_operand.vmem [shape: f32[2,32,32,64], index: 3, kind: output, shape index: {}]  }
   0x1 LB: > { %s2846_s13 = sadd.s32 4294967295, %s3424_s12   ;;  %p2850_p0 = scmp.ge.s32.totalorder %s3424_s12, 1  ;;  %s3424_s12 = sphi %s3450_s12, %s13_s12  }
   0x2   : > { %p137_p1 = scmp.lt.s32.totalorder %s3424_s12, 3 }
   0x4   : > { %p138_p2 = pnand %p2850_p0, %p137_p1 }
   0x5   : > { %p161_p3 = scmp.lt.s32.totalorder (!%p138_p2), %s2846_s13, 1  ;;  %s3473_s24 = smov (!%p138_p2), 0  }
   0x6   : > { %141 = sbr.rel (%p138_p2) target bundleno = 746 (0x2ea), region = 32 }
   0xb   : > { %v3461_v0 = vld [vmem:[%s4773_s2] sm:$0x1]  ;;  %s4861_s13 = smov (!%p161_p3, %s2846_s13), 1 }
   0xc   : > { %4788 = vst [vmem:[#allocation3_spill] sm:$0xff] %v3461_v0  ;;  %s3397_s16 = smul.u32 4752, %s4861_s13  ;;  %s3382_s17 = sshll.u32 %s4861_s13, 10 }
   0xd   : > { %s3466_s20 = scalar_lea.vmem %s4774_s3, %s3382_s17 }
   0xe   : > { %s3471_s23 = scalar_lea.vmem %s4771_s0, %s3397_s16 }
   0xf LB: >> { %v2859_v1 = vld [vmem:[%s4772_s1 + $0x38] sm:$0xff]  ;;  %v2858_v2 = vld [vmem:[%s4772_s1 + $0x30] sm:$0xff]  ;;  %v2857_v3 = vld [vmem:[%s4772_s1 + $0x28] sm:$0xff]  ;;  %s2855_s4 = smul.u32 288, %s3428_s24  ;;  %vm254_vm0 = vcmask 261120   ;;  %vm2700_vm1 = vcmask 523264   ;;  %s3428_s24 = sphi %s3473_s24, %s177_s24  }
  0x10   : >> { %3385 = vmatpush.msra.mxu1 %v2859_v1  ;;  %3386 = vmatpush.msra.mxu2 %v2859_v1  ;;  %v2856_v4 = vld [vmem:[%s4772_s1 + $0x20] sm:$0xff]  ;;  %v2927_v7 = vld [vmem:[%s4772_s1 + $0x58] sm:$0xff]  ;;  %v2926_v12 = vld [vmem:[%s4772_s1 + $0x50] sm:$0xff]  ;;  %s3383_s5 = sshll.u32 %s3428_s24, 6  ;;  %s177_s24 = sadd.s32 1, %s3428_s24  }
  0x11   : >> { %3387 = vmatpush.msra.mxu3 %v2859_v1  ;;  %363 = vmatpush.msra.mxu0 %v2859_v1  ;;  %s3492_s7 = scalar_lea.vmem %s3471_s23, %s2855_s4  ;;  %v216_v9 = vld [vmem:[%s4772_s1 + $0x18] sm:$0xff]  ;;  %v2996_v14 = vld [vmem:[%s4772_s1 + $0x70] sm:$0xff]  ;;  %v2925_v16 = vld [vmem:[%s4772_s1 + $0x48] sm:$0xff]  ;;  %s4628_s6 = scalar_lea.vmem %s3466_s20, %s3383_s5 }
  0x12   : >> { %3388 = vmatpush.msra.mxu1 %v2858_v2  ;;  %3389 = vmatpush.msra.mxu2 %v2858_v2  ;;  %v3495_v5 = vld [vmem:[%s3492_s7 + $0x49] sm:$0xff]  ;;  %v3498_v6 = vld [vmem:[%s3492_s7 + $0x91] sm:$0xff]  ;;  %v3504_v8 = vld [vmem:[%s3492_s7 + $0xd9] sm:$0xff]  ;;  %p174_p4 = scmp.ge.s32.totalorder %s177_s24, 16  }
  0x13   : >> { %3390 = vmatpush.msra.mxu3 %v2858_v2  ;;  %364 = vmatpush.msra.mxu0 %v2858_v2  ;;  %v2997_v10 = vld [vmem:[%s4772_s1 + $0x78] sm:$0xff]  ;;  %v217_v11 = vld [vmem:[%s3492_s7 + $0x1] sm:$0xff]  ;;  %v215_v15 = vld [vmem:[%s4772_s1 + $0x10] sm:$0xff] }
  0x14   : >> { %3391 = vmatpush.msra.mxu1 %v2857_v3  ;;  %3392 = vmatpush.msra.mxu2 %v2857_v3  ;;  %v3065_v13 = vld [vmem:[%s4772_s1 + $0x98] sm:$0xff]  ;;  %v3064_v17 = vld [vmem:[%s4772_s1 + $0x90] sm:$0xff]  ;;  %v2995_v18 = vld [vmem:[%s4772_s1 + $0x68] sm:$0xff] }
  0x15   : >> { %3393 = vmatpush.msra.mxu3 %v2857_v3  ;;  %365 = vmatpush.msra.mxu0 %v2857_v3  ;;  %v3542_v19 = vld [vmem:[%s3492_s7 + $0x51] sm:$0xff]  ;;  %v3545_v20 = vld [vmem:[%s3492_s7 + $0x99] sm:$0xff]  ;;  %v214_v21 = vld [vmem:[%s4772_s1 + $0x8] sm:$0xff] }
  0x16   : >> { %3394 = vmatpush.msra.mxu1 %v2856_v4  ;;  %3395 = vmatpush.msra.mxu2 %v2856_v4  ;;  %v3551_v22 = vld [vmem:[%s3492_s7 + $0xe1] sm:$0xff]  ;;  %v218_v23 = vld [vmem:[%s3492_s7 + $0x9] sm:$0xff]  ;;  %v3565_v25 = vld [vmem:[%s3492_s7 + $0x59] sm:$0xff] }
  0x17   : >> { %2868 = vmatmul.msk.f32.vlgmr.msra.gmra.mxu1 %vm254_vm0, %v3495_v5  ;;  %2876 = vmatmul.msk.f32.vlgmr.msra.gmra.mxu2 %vm254_vm0, %v3498_v6  ;;  %v3063_v24 = vld [vmem:[%s4772_s1 + $0x88] sm:$0xff]  ;;  %v2924_v28 = vld [vmem:[%s4772_s1 + $0x40] sm:$0xff]  ;;  %v219_v29 = vld [vmem:[%s3492_s7 + $0x11] sm:$0xff] }
  0x18   : >> { %818 = vmatpush.msrb.mxu2 %v2927_v7  ;;  %3396 = vmatpush.msra.mxu3 %v2856_v4  ;;  %v3568_v26 = vld [vmem:[%s3492_s7 + $0xa1] sm:$0xff]  ;;  %v3571_v27 = vld [vmem:[%s3492_s7 + $0xe9] sm:$0xff]  ;;  %v3597_v34 = vld [vmem:[%s3492_s7 + $0xf1] sm:$0xff] }
  0x19   : >> { %2884 = vmatmul.msk.f32.vlgmr.msra.gmra.mxu3 %vm254_vm0, %v3504_v8  ;;  %572 = vmatpush.msrb.mxu1 %v216_v9  ;;  %v2994_v30 = vld [vmem:[%s4772_s1 + $0x60] sm:$0xff]  ;;  %v3594_v33 = vld [vmem:[%s3492_s7 + $0xa9] sm:$0xff]  ;;  %v3614_v38 = vld [vmem:[%s3492_s7 + $0xb1] sm:$0xff] }
  0x1a   : >> { %1099 = vmatpush.msrb.mxu3 %v2997_v10  ;;  %366 = vmatpush.msra.mxu0 %v2856_v4  ;;  %v213_v31 = vld [vmem:[%s4772_s1] sm:$0xff]  ;;  %v3611_v37 = vld [vmem:[%s3492_s7 + $0x69] sm:$0xff]  ;;  %v3203_v40 = vld [vmem:[%s4772_s1 + $0xd8] sm:$0xff] }
  0x1b   : >> { %2860 = vmatmul.msk.f32.vlgmr.msra.gmra.mxu0 %vm254_vm0, %v217_v11  ;;  %819 = vmatpush.msrb.mxu2 %v2926_v12  ;;  %v3591_v32 = vld [vmem:[%s3492_s7 + $0x61] sm:$0xff]  ;;  %v220_v35 = vld [vmem:[%s3492_s7 + $0x19] sm:$0xff]  ;;  %v3637_v44 = vld [vmem:[%s3492_s7 + $0x71] sm:$0xff] }
  0x1c   : >> { %1377 = vmatpush.msrb.mxu0 %v3065_v13  ;;  %1100 = vmatpush.msrb.mxu3 %v2996_v14  ;;  %v3062_v36 = vld [vmem:[%s4772_s1 + $0x80] sm:$0xff]  ;;  %v3271_v42 = vld [vmem:[%s4772_s1 + $0xf8] sm:$0xff]  ;;  %v222_v47 = vld [vmem:[%s3492_s7 + $0x29] sm:$0xff] }
  0x1d   : >> { %573 = vmatpush.msrb.mxu1 %v215_v15  ;;  %820 = vmatpush.msrb.mxu2 %v2925_v16  ;;  %v3617_v39 = vld [vmem:[%s3492_s7 + $0xf9] sm:$0xff]  ;;  %v221_v41 = vld [vmem:[%s3492_s7 + $0x21] sm:$0xff]  ;;  %v3663_v51 = vld [vmem:[%s3492_s7 + $0x109] sm:$0xff] }
  0x1e   : >> { %1378 = vmatpush.msrb.mxu0 %v3064_v17  ;;  %1101 = vmatpush.msrb.mxu3 %v2995_v18  ;;  %v3133_v43 = vld [vmem:[%s4772_s1 + $0xb8] sm:$0xff]  ;;  %v3643_v46 = vld [vmem:[%s3492_s7 + $0x101] sm:$0xff]  ;;  %v3677_v54 = vld [vmem:[%s3492_s7 + $0xc9] sm:$0xff] }
  0x1f   : >> { %2869 = vmatmul.msk.f32.gmra.mxu1 %vm254_vm0, %v3542_v19  ;;  %2877 = vmatmul.msk.f32.gmra.mxu2 %vm254_vm0, %v3545_v20  ;;  %v3640_v45 = vld [vmem:[%s3492_s7 + $0xb9] sm:$0xff]  ;;  %v3660_v50 = vld [vmem:[%s3492_s7 + $0xc1] sm:$0xff]  ;;  %v223_v52 = vld [vmem:[%s3492_s7 + $0x31] sm:$0xff] }
  0x20   : >> { %574 = vmatpush.msrb.mxu1 %v214_v21  ;;  %1379 = vmatpush.msrb.mxu0 %v3063_v24  ;;  %v3339_v48 = vld [vmem:[%s4772_s1 + $0x118] sm:$0xff]  ;;  %v3674_v53 = vld [vmem:[%s3492_s7 + $0x81] sm:$0xff]  ;;  %v674_v61 = vld [vmem:[%s3492_s7 + $0xa] sm:$0xff] }
  0x21   : >> { %2885 = vmatmul.msk.f32.gmra.mxu3 %vm254_vm0, %v3551_v22  ;;  %821 = vmatpush.msrb.mxu2 %v2924_v28  ;;  %v3657_v49 = vld [vmem:[%s3492_s7 + $0x79] sm:$0xff]  ;;  %v3680_v55 = vld [vmem:[%s3492_s7 + $0x111] sm:$0xff]  ;;  %v673_v58 = vld [vmem:[%s3492_s7 + $0x2] sm:$0xff] }
  0x22   : >> { %1102 = vmatpush.msrb.mxu3 %v2994_v30  ;;  %575 = vmatpush.msrb.mxu1 %v213_v31  ;;  %v224_v56 = vld [vmem:[%s3492_s7 + $0x39] sm:$0xff]  ;;  %v3693_v59 = vld [vmem:[%s3492_s7 + $0x48] sm:$0xff]  ;;  %v3704_v62 = vld [vmem:[%s3492_s7 + $0x50] sm:$0xff] }
  0x23   : >> { %2861 = vmatmul.msk.f32.gmra.mxu0 %vm254_vm0, %v218_v23  ;;  %1936 = vmatpush.msra.mxu2 %v3203_v40  ;;  %v181_v57 = vld [vmem:[%s3492_s7] sm:$0xff]  ;;  %v182_v60 = vld [vmem:[%s3492_s7 + $0x8] sm:$0xff]  ;;  %v183_v63 = vld [vmem:[%s3492_s7 + $0x10] sm:$0xff] }
  0x24   : >> { %1380 = vmatpush.msrb.mxu0 %v3062_v36  ;;  %2214 = vmatpush.msra.mxu3 %v3271_v42  ;;  %v675_v1 = vld [vmem:[%s3492_s7 + $0x12] sm:$0xff]  ;;  %v676_v4 = vld [vmem:[%s3492_s7 + $0x1a] sm:$0xff]  ;;  %v677_v9 = vld [vmem:[%s3492_s7 + $0x22] sm:$0xff] }
  0x25   : >> { %1655 = vmatpush.msra.mxu1 %v3133_v43  ;;  %v3715_v2 = vld [vmem:[%s3492_s7 + $0x58] sm:$0xff]  ;;  %v185_v7 = vld [vmem:[%s3492_s7 + $0x20] sm:$0xff]  ;;  %v3737_v10 = vld [vmem:[%s3492_s7 + $0x68] sm:$0xff] }
  0x26   : >> { %2492 = vmatpush.msra.mxu0 %v3339_v48  ;;  %v184_v3 = vld [vmem:[%s3492_s7 + $0x18] sm:$0xff]  ;;  %v3202_v11 = vld [vmem:[%s4772_s1 + $0xd0] sm:$0xff]  ;;  %v186_v14 = vld [vmem:[%s3492_s7 + $0x28] sm:$0xff] }
  0x27   : >> { %2870 = vmatmul.msk.f32.gmra.mxu1 %vm254_vm0, %v3565_v25  ;;  %2878 = vmatmul.msk.f32.gmra.mxu2 %vm254_vm0, %v3568_v26  ;;  %v3270_v12 = vld [vmem:[%s4772_s1 + $0xf0] sm:$0xff]  ;;  %v3771_v21 = vld [vmem:[%s3492_s7 + $0x78] sm:$0xff] }
  0x28   : >> { %1937 = vmatpush.msra.mxu2 %v3202_v11  ;;  %2215 = vmatpush.msra.mxu3 %v3270_v12  ;;  %v3132_v13 = vld [vmem:[%s4772_s1 + $0xb0] sm:$0xff]  ;;  %v188_v23 = vld [vmem:[%s3492_s7 + $0x38] sm:$0xff] }
  0x29   : >> { %2886 = vmatmul.msk.f32.gmra.mxu3 %vm254_vm0, %v3571_v27  ;;  %1656 = vmatpush.msra.mxu1 %v3132_v13  ;;  %v678_v15 = vld [vmem:[%s3492_s7 + $0x2a] sm:$0xff]  ;;  %v680_v24 = vld [vmem:[%s3492_s7 + $0x3a] sm:$0xff] }
  0x2a   : >> { %v3757_v16 = vld [vmem:[%s3492_s7 + $0x70] sm:$0xff]  ;;  %v3818_v40 = vld [vmem:[%s3492_s7 + $0x98] sm:$0xff] }
  0x2b   : >> { %2862 = vmatmul.msk.f32.gmra.mxu0 %vm254_vm0, %v219_v29  ;;  %v3338_v17 = vld [vmem:[%s4772_s1 + $0x110] sm:$0xff]  ;;  %v3937_v13 = vld [vmem:[%s3492_s7 + $0x7a] sm:$0xff] }
  0x2c   : >> { %2493 = vmatpush.msra.mxu0 %v3338_v17  ;;  %v187_v18 = vld [vmem:[%s3492_s7 + $0x30] sm:$0xff] }
  0x2d   : >> { %v3793_v29 = vld [vmem:[%s3492_s7 + $0x4a] sm:$0xff] }
  0x2e   : >> { %v3796_v30 = vld [vmem:[%s3492_s7 + $0x90] sm:$0xff] }
  0x2f   : >> { %2871 = vmatmul.msk.f32.gmra.mxu1 %vm254_vm0, %v3591_v32  ;;  %2879 = vmatmul.msk.f32.gmra.mxu2 %vm254_vm0, %v3594_v33 }
  0x31   : >> { %2887 = vmatmul.msk.f32.gmra.mxu3 %vm254_vm0, %v3597_v34 }
  0x33   : >> { %2863 = vmatmul.msk.f32.gmra.mxu0 %vm254_vm0, %v220_v35 }
  0x37   : >> { %2872 = vmatmul.msk.f32.gmra.mxu1 %vm254_vm0, %v3611_v37  ;;  %2880 = vmatmul.msk.f32.gmra.mxu2 %vm254_vm0, %v3614_v38 }
  0x39   : >> { %2888 = vmatmul.msk.f32.gmra.mxu3 %vm254_vm0, %v3617_v39 }
  0x3b   : >> { %2864 = vmatmul.msk.f32.gmra.mxu0 %vm254_vm0, %v221_v41 }
  0x3f   : >> { %2873 = vmatmul.msk.f32.gmra.mxu1 %vm254_vm0, %v3637_v44  ;;  %2881 = vmatmul.msk.f32.gmra.mxu2 %vm254_vm0, %v3640_v45 }
  0x41   : >> { %2889 = vmatmul.msk.f32.gmra.mxu3 %vm254_vm0, %v3643_v46 }
  0x43   : >> { %2865 = vmatmul.msk.f32.gmra.mxu0 %vm254_vm0, %v222_v47  ;;  %v3840_v47 = vld [vmem:[%s3492_s7 + $0xa0] sm:$0xff] }
  0x47   : >> { %2874 = vmatmul.msk.f32.gmra.mxu1 %vm254_vm0, %v3657_v49  ;;  %2882 = vmatmul.msk.f32.gmra.mxu2 %vm254_vm0, %v3660_v50 }
  0x49   : >> { %2890 = vmatmul.msk.f32.gmra.mxu3 %vm254_vm0, %v3663_v51 }
  0x4b   : >> { %2866 = vmatmul.msk.f32.gmra.mxu0 %vm254_vm0, %v223_v52 }
  0x4f   : >> { %2875 = vmatmul.msk.f32.gmra.mxu1 %vm254_vm0, %v3674_v53  ;;  %2883 = vmatmul.msk.f32.gmra.mxu2 %vm254_vm0, %v3677_v54 }
  0x51   : >> { %2891 = vmatmul.msk.f32.gmra.mxu3 %vm254_vm0, %v3680_v55 }
  0x53   : >> { %2867 = vmatmul.msk.f32.gmra.mxu0 %vm254_vm0, %v224_v56  ;;  %v3862_v56 = vld [vmem:[%s3492_s7 + $0xa8] sm:$0xff] }
  0x57   : >> { %2892 = vmatmul.msk.f32.vlgmr.msrb.gmra.mxu1 %vm254_vm0, %v181_v57  ;;  %2928 = vmatmul.msk.f32.vlgmr.msrb.gmra.mxu2 %vm254_vm0, %v673_v58 }
  0x59   : >> { %2998 = vmatmul.msk.f32.vlgmr.msrb.gmra.mxu3 %vm254_vm0, %v3693_v59 }
  0x5b   : >> { %3066 = vmatmul.msk.f32.vlgmr.msrb.gmra.mxu0 %vm254_vm0, %v3495_v5  ;;  %v3726_v5 = vld [vmem:[%s3492_s7 + $0x60] sm:$0xff] }
  0x5f   : >> { %2893 = vmatmul.msk.f32.gmra.mxu1 %vm254_vm0, %v182_v60  ;;  %2929 = vmatmul.msk.f32.gmra.mxu2 %vm254_vm0, %v674_v61  ;;  %v3881_v60 = vld [vmem:[%s3492_s7 + $0x6a] sm:$0xff] }
  0x60   : >> { %v3884_v61 = vld [vmem:[%s3492_s7 + $0xb0] sm:$0xff] }
  0x61   : >> { %2999 = vmatmul.msk.f32.gmra.mxu3 %vm254_vm0, %v3704_v62 }
  0x63   : >> { %3067 = vmatmul.msk.f32.gmra.mxu0 %vm254_vm0, %v3542_v19  ;;  %v679_v19 = vld [vmem:[%s3492_s7 + $0x32] sm:$0xff] }
  0x67   : >> { %2894 = vmatmul.msk.f32.gmra.mxu1 %vm254_vm0, %v183_v63  ;;  %2930 = vmatmul.msk.f32.gmra.mxu2 %vm254_vm0, %v675_v1  ;;  %v3269_v63 = vld [vmem:[%s4772_s1 + $0xe8] sm:$0xff] }
  0x68   : >> { %2216 = vmatpush.msra.mxu3 %v3269_v63 }
  0x69   : >> { %3000 = vmatmul.msk.f32.gmra.mxu3 %vm254_vm0, %v3715_v2 }
  0x6b   : >> { %3068 = vmatmul.msk.f32.gmra.mxu0 %vm254_vm0, %v3565_v25  ;;  %v3782_v25 = vld [vmem:[%s3492_s7 + $0x80] sm:$0xff] }
  0x6f   : >> { %2895 = vmatmul.msk.f32.gmra.mxu1 %vm254_vm0, %v184_v3  ;;  %2931 = vmatmul.msk.f32.gmra.mxu2 %vm254_vm0, %v676_v4 }
  0x71   : >> { %3001 = vmatmul.msk.f32.gmra.mxu3 %vm254_vm0, %v3726_v5 }
  0x73   : >> { %3069 = vmatmul.msk.f32.gmra.mxu0 %vm254_vm0, %v3591_v32 }
  0x77   : >> { %2896 = vmatmul.msk.f32.gmra.mxu1 %vm254_vm0, %v185_v7  ;;  %2932 = vmatmul.msk.f32.gmra.mxu2 %vm254_vm0, %v677_v9  ;;  %v3915_v7 = vld [vmem:[%s3492_s7 + $0xb8] sm:$0xff]  ;;  %v3337_v9 = vld [vmem:[%s4772_s1 + $0x108] sm:$0xff] }
  0x78   : >> { %2494 = vmatpush.msra.mxu0 %v3337_v9 }
  0x79   : >> { %3002 = vmatmul.msk.f32.gmra.mxu3 %vm254_vm0, %v3737_v10 }
  0x7b   : >> { %3070 = vmatmul.msk.f32.gmra.mxu0 %vm254_vm0, %v3611_v37  ;;  %v3815_v37 = vld [vmem:[%s3492_s7 + $0x52] sm:$0xff] }
  0x7f   : >> { %2897 = vmatmul.msk.f32.gmra.mxu1 %vm254_vm0, %v186_v14  ;;  %2933 = vmatmul.msk.f32.gmra.mxu2 %vm254_vm0, %v678_v15  ;;  %v3940_v14 = vld [vmem:[%s3492_s7 + $0xc0] sm:$0xff] }
  0x81   : >> { %3003 = vmatmul.msk.f32.gmra.mxu3 %vm254_vm0, %v3757_v16 }
  0x83   : >> { %3071 = vmatmul.msk.f32.gmra.mxu0 %vm254_vm0, %v3637_v44  ;;  %v3837_v44 = vld [vmem:[%s3492_s7 + $0x5a] sm:$0xff] }
  0x87   : >> { %2898 = vmatmul.msk.f32.gmra.mxu1 %vm254_vm0, %v187_v18  ;;  %2934 = vmatmul.msk.f32.gmra.mxu2 %vm254_vm0, %v679_v19  ;;  %v3959_v18 = vld [vmem:[%s3492_s7 + $0x82] sm:$0xff] }
  0x88   : >> { %v3962_v19 = vld [vmem:[%s3492_s7 + $0xc8] sm:$0xff] }
  0x89   : >> { %3004 = vmatmul.msk.f32.gmra.mxu3 %vm254_vm0, %v3771_v21 }
  0x8b   : >> { %3072 = vmatmul.msk.f32.gmra.mxu0 %vm254_vm0, %v3657_v49 }
  0x8f   : >> { %2899 = vmatmul.msk.f32.gmra.mxu1 %vm254_vm0, %v188_v23  ;;  %2935 = vmatmul.msk.f32.gmra.mxu2 %vm254_vm0, %v680_v24 }
  0x91   : >> { %3005 = vmatmul.msk.f32.gmra.mxu3 %vm254_vm0, %v3782_v25 }
  0x93   : >> { %3073 = vmatmul.msk.f32.gmra.mxu0 %vm254_vm0, %v3674_v53  ;;  %v3859_v53 = vld [vmem:[%s3492_s7 + $0x62] sm:$0xff] }
  0x94   : >> { %v3790_v28 = vpop.f32.mrf.mxu1 }
  0x97   : >> { %2900 = vmatmul.msk.f32.gmra.mxu1 %vm254_vm0, %v3693_v59  ;;  %2936 = vmatmul.msk.f32.gmra.mxu2 %vm254_vm0, %v3793_v29 }
  0x98   : >> { %v3802_v31 = vpop.f32.mrf.mxu0 }
  0x99   : >> { %3006 = vmatmul.msk.f32.gmra.mxu3 %vm254_vm0, %v3796_v30 }
  0x9a   : >> { %v3806_v32 = vpop.f32.mrf.mxu2 }
  0x9b   : >> { %3074 = vmatmul.msk.f32.gmra.mxu0 %vm254_vm0, %v3498_v6 }
  0x9c   : >> { %v3810_v35 = vpop.f32.mrf.mxu1  ;;  %v3812_v36 = vpop.f32.mrf.mxu3 }
  0x9f   : >> { %2901 = vmatmul.msk.f32.gmra.mxu1 %vm254_vm0, %v3704_v62  ;;  %2937 = vmatmul.msk.f32.gmra.mxu2 %vm254_vm0, %v3815_v37 }
  0xa0   : >> { %v3824_v41 = vpop.f32.mrf.mxu0 }
  0xa1   : >> { %3007 = vmatmul.msk.f32.gmra.mxu3 %vm254_vm0, %v3818_v40 }
  0xa2   : >> { %v3828_v6 = vpop.f32.mrf.mxu2 }
  0xa3   : >> { %3075 = vmatmul.msk.f32.gmra.mxu0 %vm254_vm0, %v3545_v20 }
  0xa4   : >> { %v3832_v42 = vpop.f32.mrf.mxu1  ;;  %v3834_v43 = vpop.f32.mrf.mxu3 }
  0xa7   : >> { %2902 = vmatmul.msk.f32.gmra.mxu1 %vm254_vm0, %v3715_v2  ;;  %2938 = vmatmul.msk.f32.gmra.mxu2 %vm254_vm0, %v3837_v44  ;;  %v3131_v2 = vld [vmem:[%s4772_s1 + $0xa8] sm:$0xff] }
  0xa8   : >> { %v3846_v48 = vpop.f32.mrf.mxu0  ;;  %1657 = vmatpush.msra.mxu1 %v3131_v2 }
  0xa9   : >> { %3008 = vmatmul.msk.f32.gmra.mxu3 %vm254_vm0, %v3840_v47 }
  0xaa   : >> { %v3850_v20 = vpop.f32.mrf.mxu2 }
  0xab   : >> { %3076 = vmatmul.msk.f32.gmra.mxu0 %vm254_vm0, %v3568_v26 }
  0xac   : >> { %v3854_v49 = vpop.f32.mrf.mxu1  ;;  %v3856_v52 = vpop.f32.mrf.mxu3 }
  0xad   : >> { %4789 = vst [vmem:[#allocation4_spill] sm:$0xff] %v3856_v52 }
  0xaf   : >> { %2903 = vmatmul.msk.f32.gmra.mxu1 %vm254_vm0, %v3726_v5  ;;  %2939 = vmatmul.msk.f32.gmra.mxu2 %vm254_vm0, %v3859_v53  ;;  %v3912_v5 = vld [vmem:[%s3492_s7 + $0x72] sm:$0xff] }
  0xb0   : >> { %v3868_v57 = vpop.f32.mrf.mxu0 }
  0xb1   : >> { %3009 = vmatmul.msk.f32.gmra.mxu3 %vm254_vm0, %v3862_v56 }
  0xb2   : >> { %v3872_v26 = vpop.f32.mrf.mxu2 }
  0xb3   : >> { %3077 = vmatmul.msk.f32.gmra.mxu0 %vm254_vm0, %v3594_v33  ;;  %v3201_v33 = vld [vmem:[%s4772_s1 + $0xc8] sm:$0xff] }
  0xb4   : >> { %v3876_v58 = vpop.f32.mrf.mxu1  ;;  %v3878_v59 = vpop.f32.mrf.mxu3  ;;  %1938 = vmatpush.msra.mxu2 %v3201_v33  ;;  %v3979_v33 = vld [vmem:[%s3492_s7 + $0x92] sm:$0xff] }
  0xb5   : >> { %4790 = vst [vmem:[#allocation5_spill] sm:$0xff] %v3878_v59 }
  0xb7   : >> { %2904 = vmatmul.msk.f32.gmra.mxu1 %vm254_vm0, %v3737_v10  ;;  %2940 = vmatmul.msk.f32.gmra.mxu2 %vm254_vm0, %v3881_v60 }
  0xb8   : >> { %v3893_v62 = vpop.f32.mrf.mxu0 }
  0xb9   : >> { %3010 = vmatmul.msk.f32.gmra.mxu3 %vm254_vm0, %v3884_v61 }
  0xba   : >> { %v3900_v1 = vpop.f32.mrf.mxu2 }
  0xbb   : >> { %3078 = vmatmul.msk.f32.gmra.mxu0 %vm254_vm0, %v3614_v38 }
  0xbc   : >> { %v3907_v3 = vpop.f32.mrf.mxu1  ;;  %v3909_v4 = vpop.f32.mrf.mxu3 }
  0xbd   : >> { %4791 = vst [vmem:[#allocation6_spill] sm:$0xff] %v3909_v4  ;;  %v3997_v4 = vld [vmem:[%s3492_s7 + $0xe0] sm:$0xff] }
  0xbf   : >> { %2905 = vmatmul.msk.f32.gmra.mxu1 %vm254_vm0, %v3757_v16  ;;  %2941 = vmatmul.msk.f32.gmra.mxu2 %vm254_vm0, %v3912_v5 }
  0xc0   : >> { %v3921_v38 = vpop.f32.mrf.mxu0 }
  0xc1   : >> { %3011 = vmatmul.msk.f32.gmra.mxu3 %vm254_vm0, %v3915_v7 }
  0xc2   : >> { %v3928_v10 = vpop.f32.mrf.mxu2 }
  0xc3   : >> { %3079 = vmatmul.msk.f32.gmra.mxu0 %vm254_vm0, %v3640_v45 }
  0xc4   : >> { %v3932_v11 = vpop.f32.mrf.mxu1  ;;  %v3934_v12 = vpop.f32.mrf.mxu3 }
  0xc5   : >> { %4792 = vst [vmem:[#allocation7_spill] sm:$0xff] %v3934_v12 }
  0xc7   : >> { %2906 = vmatmul.msk.f32.gmra.mxu1 %vm254_vm0, %v3771_v21  ;;  %2942 = vmatmul.msk.f32.gmra.mxu2 %vm254_vm0, %v3937_v13 }
  0xc8   : >> { %v3946_v15 = vpop.f32.mrf.mxu0 }
  0xc9   : >> { %3012 = vmatmul.msk.f32.gmra.mxu3 %vm254_vm0, %v3940_v14 }
  0xca   : >> { %v3950_v45 = vpop.f32.mrf.mxu2 }
  0xcb   : >> { %3080 = vmatmul.msk.f32.gmra.mxu0 %vm254_vm0, %v3660_v50 }
  0xcc   : >> { %v3954_v16 = vpop.f32.mrf.mxu1  ;;  %v3956_v17 = vpop.f32.mrf.mxu3 }
  0xcd   : >> { %4793 = vst [vmem:[#allocation8_spill] sm:$0xff] %v3956_v17  ;;  %v3994_v17 = vld [vmem:[%s3492_s7 + $0x9a] sm:$0xff] }
  0xcf   : >> { %2907 = vmatmul.msk.f32.gmra.mxu1 %vm254_vm0, %v3782_v25  ;;  %2943 = vmatmul.msk.f32.gmra.mxu2 %vm254_vm0, %v3959_v18  ;;  %v3982_v25 = vld [vmem:[%s3492_s7 + $0xd8] sm:$0xff] }
  0xd0   : >> { %v3968_v21 = vpop.f32.mrf.mxu0 }
  0xd1   : >> { %3013 = vmatmul.msk.f32.gmra.mxu3 %vm254_vm0, %v3962_v19 }
  0xd2   : >> { %v3972_v50 = vpop.f32.mrf.mxu2 }
  0xd3   : >> { %3081 = vmatmul.msk.f32.gmra.mxu0 %vm254_vm0, %v3677_v54 }
  0xd4   : >> { %v3976_v23 = vpop.f32.mrf.mxu3  ;;  %v577_v24 = vpop.f32.mrf.mxu1 }
  0xd5   : >> { %4794 = vst [vmem:[#allocation9_spill] sm:$0xff] %v3976_v23  ;;  %v578_v2 = vadd.f32 %v577_v24, %v3802_v31 }
  0xd7   : >> { %2908 = vmatmul.msk.f32.gmra.mxu1 %vm254_vm0, %v3796_v30  ;;  %2944 = vmatmul.msk.f32.gmra.mxu2 %vm254_vm0, %v3979_v33 }
  0xd8   : >> { %v1382_v63 = vpop.f32.mrf.mxu0 }
  0xd9   : >> { %3014 = vmatmul.msk.f32.gmra.mxu3 %vm254_vm0, %v3982_v25 }
  0xda   : >> { %v823_v54 = vpop.f32.mrf.mxu2 }
  0xdb   : >> { %v919_v9 = vadd.f32 %v823_v54, %v578_v2  ;;  %3082 = vmatmul.msk.f32.gmra.mxu0 %vm254_vm0, %v3504_v8 }
  0xdc   : >> { %v580_v0 = vpop.f32.mrf.mxu1  ;;  %v1104_v23 = vpop.f32.mrf.mxu3 }
  0xdd   : >> { %v1200_v12 = vadd.f32 %v1104_v23, %v919_v9  ;;  %v581_v8 = vadd.f32 %v580_v0, %v3824_v41  ;;  %v4014_v9 = vld [vmem:[%s3492_s7 + $0xe8] sm:$0xff] }
  0xdf   : >> { %v3999_v59 = vadd.f32 %v1382_v63, %v1200_v12  ;;  %2909 = vmatmul.msk.f32.gmra.mxu1 %vm254_vm0, %v3818_v40  ;;  %2945 = vmatmul.msk.f32.gmra.mxu2 %vm254_vm0, %v3994_v17  ;;  %v4011_v63 = vld [vmem:[%s3492_s7 + $0xa2] sm:$0xff] }
  0xe0   : >> { %v1385_v31 = vpop.f32.mrf.mxu0 }
  0xe1   : >> { %4795 = vst [vmem:[#allocation10_spill] sm:$0xff] %v3999_v59  ;;  %3015 = vmatmul.msk.f32.gmra.mxu3 %vm254_vm0, %v3997_v4 }
  0xe2   : >> { %v826_v24 = vpop.f32.mrf.mxu2 }
  0xe3   : >> { %v920_v2 = vadd.f32 %v826_v24, %v581_v8  ;;  %3083 = vmatmul.msk.f32.gmra.mxu0 %vm254_vm0, %v3551_v22 }
  0xe4   : >> { %v583_v23 = vpop.f32.mrf.mxu1  ;;  %v1107_v12 = vpop.f32.mrf.mxu3 }
  0xe5   : >> { %v1201_v54 = vadd.f32 %v1107_v12, %v920_v2  ;;  %v584_v22 = vadd.f32 %v583_v23, %v3846_v48  ;;  %v4028_v2 = vld [vmem:[%s3492_s7 + $0xaa] sm:$0xff] }
  0xe7   : >> { %v4016_v59 = vadd.f32 %v1385_v31, %v1201_v54  ;;  %2910 = vmatmul.msk.f32.gmra.mxu1 %vm254_vm0, %v3840_v47  ;;  %2946 = vmatmul.msk.f32.gmra.mxu2 %vm254_vm0, %v4011_v63  ;;  %v4031_v54 = vld [vmem:[%s3492_s7 + $0xf0] sm:$0xff] }
  0xe8   : >> { %v1388_v0 = vpop.f32.mrf.mxu0 }
  0xe9   : >> { %4796 = vst [vmem:[#allocation11_spill] sm:$0xff] %v4016_v59  ;;  %3016 = vmatmul.msk.f32.gmra.mxu3 %vm254_vm0, %v4014_v9 }
  0xea   : >> { %v829_v41 = vpop.f32.mrf.mxu2 }
  0xeb   : >> { %v921_v8 = vadd.f32 %v829_v41, %v584_v22  ;;  %3084 = vmatmul.msk.f32.gmra.mxu0 %vm254_vm0, %v3571_v27 }
  0xec   : >> { %v586_v24 = vpop.f32.mrf.mxu1  ;;  %v1110_v31 = vpop.f32.mrf.mxu3 }
  0xed   : >> { %v1202_v12 = vadd.f32 %v1110_v31, %v921_v8  ;;  %v587_v27 = vadd.f32 %v586_v24, %v3868_v57  ;;  %v4045_v8 = vld [vmem:[%s3492_s7 + $0xb2] sm:$0xff] }
  0xef   : >> { %v4033_v59 = vadd.f32 %v1388_v0, %v1202_v12  ;;  %2911 = vmatmul.msk.f32.gmra.mxu1 %vm254_vm0, %v3862_v56  ;;  %2947 = vmatmul.msk.f32.gmra.mxu2 %vm254_vm0, %v4028_v2  ;;  %v4048_v12 = vld [vmem:[%s3492_s7 + $0xf8] sm:$0xff] }
  0xf0   : >> { %v1391_v48 = vpop.f32.mrf.mxu0 }
  0xf1   : >> { %4797 = vst [vmem:[#allocation12_spill] sm:$0xff] %v4033_v59  ;;  %3017 = vmatmul.msk.f32.gmra.mxu3 %vm254_vm0, %v4031_v54 }
  0xf2   : >> { %v832_v23 = vpop.f32.mrf.mxu2 }
  0xf3   : >> { %v922_v22 = vadd.f32 %v832_v23, %v587_v27  ;;  %3085 = vmatmul.msk.f32.gmra.mxu0 %vm254_vm0, %v3597_v34  ;;  %v3200_v34 = vld [vmem:[%s4772_s1 + $0xc0] sm:$0xff] }
  0xf4   : >> { %v589_v41 = vpop.f32.mrf.mxu1  ;;  %v1113_v0 = vpop.f32.mrf.mxu3  ;;  %1939 = vmatpush.msra.mxu2 %v3200_v34  ;;  %v4074_v34 = vld [vmem:[%s3492_s7 + $0x100] sm:$0xff] }
  0xf5   : >> { %v1203_v31 = vadd.f32 %v1113_v0, %v922_v22  ;;  %v590_v24 = vadd.f32 %v589_v41, %v3893_v62  ;;  %v3130_v22 = vld [vmem:[%s4772_s1 + $0xa0] sm:$0xff] }
  0xf6   : >> { %v4071_v62 = vld [vmem:[%s3492_s7 + $0xba] sm:$0xff]  ;;  %1658 = vmatpush.msra.mxu1 %v3130_v22 }
  0xf7   : >> { %v4050_v59 = vadd.f32 %v1391_v48, %v1203_v31  ;;  %2912 = vmatmul.msk.f32.gmra.mxu1 %vm254_vm0, %v3884_v61  ;;  %2948 = vmatmul.msk.f32.gmra.mxu2 %vm254_vm0, %v4045_v8  ;;  %v3268_v48 = vld [vmem:[%s4772_s1 + $0xe0] sm:$0xff] }
  0xf8   : >> { %v1394_v57 = vpop.f32.mrf.mxu0  ;;  %2217 = vmatpush.msra.mxu3 %v3268_v48  ;;  %v3336_v48 = vld [vmem:[%s4772_s1 + $0x100] sm:$0xff] }
  0xf9   : >> { %4798 = vst [vmem:[#allocation13_spill] sm:$0xff] %v4050_v59  ;;  %3018 = vmatmul.msk.f32.gmra.mxu3 %vm254_vm0, %v4048_v12  ;;  %2495 = vmatpush.msra.mxu0 %v3336_v48 }
  0xfa   : >> { %v835_v27 = vpop.f32.mrf.mxu2 }
  0xfb   : >> { %v923_v23 = vadd.f32 %v835_v27, %v590_v24  ;;  %3086 = vmatmul.msk.f32.gmra.mxu0 %vm254_vm0, %v3617_v39 }
  0xfc   : >> { %v592_v0 = vpop.f32.mrf.mxu1  ;;  %v1116_v31 = vpop.f32.mrf.mxu3 }
  0xfd   : >> { %v1204_v41 = vadd.f32 %v1116_v31, %v923_v23  ;;  %v593_v24 = vadd.f32 %v592_v0, %v3921_v38  ;;  %v4091_v31 = vld [vmem:[%s3492_s7 + $0xc2] sm:$0xff] }
  0xfe   : >> { %v4094_v0 = vld [vmem:[%s3492_s7 + $0x108] sm:$0xff] }
  0xff   : >> { %v4076_v59 = vadd.f32 %v1394_v57, %v1204_v41  ;;  %2913 = vmatmul.msk.f32.gmra.mxu1 %vm254_vm0, %v3915_v7  ;;  %2949 = vmatmul.msk.f32.gmra.mxu2 %vm254_vm0, %v4071_v62 }
 0x100   : >> { %v1397_v39 = vpop.f32.mrf.mxu0 }
 0x101   : >> { %4799 = vst [vmem:[#allocation14_spill] sm:$0xff] %v4076_v59  ;;  %3019 = vmatmul.msk.f32.gmra.mxu3 %vm254_vm0, %v4074_v34 }
 0x102   : >> { %v838_v27 = vpop.f32.mrf.mxu2 }
 0x103   : >> { %v924_v57 = vadd.f32 %v838_v27, %v593_v24  ;;  %3087 = vmatmul.msk.f32.gmra.mxu0 %vm254_vm0, %v3643_v46 }
 0x104   : >> { %v595_v23 = vpop.f32.mrf.mxu1  ;;  %v1119_v22 = vpop.f32.mrf.mxu3 }
 0x105   : >> { %v1205_v38 = vadd.f32 %v1119_v22, %v924_v57  ;;  %v596_v46 = vadd.f32 %v595_v23, %v3946_v15  ;;  %v4108_v22 = vld [vmem:[%s3492_s7 + $0xca] sm:$0xff] }
 0x107   : >> { %v4096_v41 = vadd.f32 %v1397_v39, %v1205_v38  ;;  %2914 = vmatmul.msk.f32.gmra.mxu1 %vm254_vm0, %v3940_v14  ;;  %2950 = vmatmul.msk.f32.gmra.mxu2 %vm254_vm0, %v4091_v31 }
 0x108   : >> { %v1400_v24 = vpop.f32.mrf.mxu0 }
 0x109   : >> { %4800 = vst [vmem:[#allocation15_spill] sm:$0xff] %v4096_v41  ;;  %3020 = vmatmul.msk.f32.gmra.mxu3 %vm254_vm0, %v4094_v0  ;;  %v4111_v41 = vld [vmem:[%s3492_s7 + $0x110] sm:$0xff] }
 0x10a   : >> { %v841_v48 = vpop.f32.mrf.mxu2 }
 0x10b   : >> { %v925_v27 = vadd.f32 %v841_v48, %v596_v46  ;;  %3088 = vmatmul.msk.f32.gmra.mxu0 %vm254_vm0, %v3663_v51 }
 0x10c   : >> { %v598_v57 = vpop.f32.mrf.mxu1  ;;  %v1122_v39 = vpop.f32.mrf.mxu3 }
 0x10d   : >> { %v1206_v38 = vadd.f32 %v1122_v39, %v925_v27  ;;  %v599_v51 = vadd.f32 %v598_v57, %v3968_v21  ;;  %v4125_v27 = vld [vmem:[%s3492_s7 + $0xda] sm:$0xff] }
 0x10f   : >> { %v4113_v59 = vadd.f32 %v1400_v24, %v1206_v38  ;;  %2915 = vmatmul.msk.f32.gmra.mxu1 %vm254_vm0, %v3962_v19  ;;  %2951 = vmatmul.msk.f32.gmra.mxu2 %vm254_vm0, %v4108_v22  ;;  %v4128_v38 = vld [vmem:[%s3492_s7 + $0x120] sm:$0xff] }
 0x110   : >> { %v1403_v15 = vpop.f32.mrf.mxu0  ;;  %4802 = vst [vmem:[#allocation17_spill] sm:$0xff] %v4128_v38 }
 0x111   : >> { %4801 = vst [vmem:[#allocation16_spill] sm:$0xff] %v4113_v59  ;;  %3021 = vmatmul.msk.f32.gmra.mxu3 %vm254_vm0, %v4111_v41 }
 0x112   : >> { %v844_v23 = vpop.f32.mrf.mxu2 }
 0x113   : >> { %v926_v46 = vadd.f32 %v844_v23, %v599_v51  ;;  %3089 = vmatmul.msk.f32.gmra.mxu0 %vm254_vm0, %v3680_v55  ;;  %v4137_v55 = vld [vmem:[%s3492_s7 + $0x121] sm:$0xff] }
 0x114   : >> { %v601_v24 = vpop.f32.mrf.mxu1  ;;  %v1125_v48 = vpop.f32.mrf.mxu3  ;;  %4804 = vst [vmem:[#allocation19_spill] sm:$0xff] %v4137_v55 }
 0x115   : >> { %v1207_v39 = vadd.f32 %v1125_v48, %v926_v46  ;;  %v602_v57 = vadd.f32 %v601_v24, %v3790_v28  ;;  %v4145_v48 = vld [vmem:[%s3492_s7 + $0xe2] sm:$0xff] }
 0x116   : >> { %v4157_v24 = vld [vmem:[%s3492_s7 + $0x129] sm:$0xff] }
 0x117   : >> { %v4130_v59 = vadd.f32 %v1403_v15, %v1207_v39  ;;  %2916 = vmatmul.msk.f32.gmra.mxu1 %vm254_vm0, %v3982_v25  ;;  %2952 = vmatmul.msk.f32.gmra.mxu2 %vm254_vm0, %v4125_v27  ;;  %4807 = vst [vmem:[#allocation22_spill] sm:$0xff] %v4157_v24 }
 0x118   : >> { %v1406_v21 = vpop.f32.mrf.mxu0 }
 0x119   : >> { %4803 = vst [vmem:[#allocation18_spill] sm:$0xff] %v4130_v59  ;;  %3022 = vmatmul.msk.f32.gmra.mxu3 %vm254_vm0, %v4128_v38  ;;  %v4148_v59 = vld [vmem:[%s3492_s7 + $0x128] sm:$0xff] }
 0x11a   : >> { %v847_v51 = vpop.f32.mrf.mxu2  ;;  %4805 = vst [vmem:[#allocation20_spill] sm:$0xff] %v4148_v59 }
 0x11b   : >> { %v927_v23 = vadd.f32 %v847_v51, %v602_v57  ;;  %3090 = vmatmul.msk.f32.gmra.mxu0 %vm254_vm0, %v4137_v55  ;;  %v4168_v55 = vld [vmem:[%s3492_s7 + $0x130] sm:$0xff] }
 0x11c   : >> { %v604_v15 = vpop.f32.mrf.mxu1  ;;  %v1128_v46 = vpop.f32.mrf.mxu3  ;;  %4808 = vst [vmem:[#allocation23_spill] sm:$0xff] %v4168_v55 }
 0x11d   : >> { %v1208_v39 = vadd.f32 %v1128_v46, %v927_v23  ;;  %v605_v57 = vadd.f32 %v604_v15, %v3810_v35  ;;  %v4177_v15 = vld [vmem:[%s3492_s7 + $0x131] sm:$0xff] }
 0x11e   : >> { %4810 = vst [vmem:[#allocation25_spill] sm:$0xff] %v4177_v15 }
 0x11f   : >> { %v4150_v52 = vadd.f32 %v1406_v21, %v1208_v39  ;;  %2917 = vmatmul.msk.f32.gmra.mxu1 %vm254_vm0, %v3997_v4  ;;  %2953 = vmatmul.msk.f32.gmra.mxu2 %vm254_vm0, %v4145_v48  ;;  %v4165_v39 = vld [vmem:[%s3492_s7 + $0xea] sm:$0xff] }
 0x120   : >> { %v1409_v28 = vpop.f32.mrf.mxu0 }
 0x121   : >> { %4806 = vst [vmem:[#allocation21_spill] sm:$0xff] %v4150_v52  ;;  %3023 = vmatmul.msk.f32.gmra.mxu3 %vm254_vm0, %v4148_v59 }
 0x122   : >> { %v850_v51 = vpop.f32.mrf.mxu2 }
 0x123   : >> { %v928_v23 = vadd.f32 %v850_v51, %v605_v57  ;;  %3091 = vmatmul.msk.f32.gmra.mxu0 %vm254_vm0, %v4157_v24  ;;  %v4188_v24 = vld [vmem:[%s3492_s7 + $0x138] sm:$0xff] }
 0x124   : >> { %v607_v21 = vpop.f32.mrf.mxu1  ;;  %v1131_v46 = vpop.f32.mrf.mxu3  ;;  %4811 = vst [vmem:[#allocation26_spill] sm:$0xff] %v4188_v24 }
 0x125   : >> { %v1209_v52 = vadd.f32 %v1131_v46, %v928_v23  ;;  %v608_v57 = vadd.f32 %v607_v21, %v3832_v42  ;;  %v4185_v46 = vld [vmem:[%s3492_s7 + $0xf2] sm:$0xff] }
 0x126   : >> { %v4197_v21 = vld [vmem:[%s3492_s7 + $0x139] sm:$0xff] }
 0x127   : >> { %v4170_v38 = vadd.f32 %v1409_v28, %v1209_v52  ;;  %2918 = vmatmul.msk.f32.gmra.mxu1 %vm254_vm0, %v4014_v9  ;;  %2954 = vmatmul.msk.f32.gmra.mxu2 %vm254_vm0, %v4165_v39  ;;  %4813 = vst [vmem:[#allocation28_spill] sm:$0xff] %v4197_v21 }
 0x128   : >> { %v1412_v35 = vpop.f32.mrf.mxu0 }
 0x129   : >> { %4809 = vst [vmem:[#allocation24_spill] sm:$0xff] %v4170_v38  ;;  %3024 = vmatmul.msk.f32.gmra.mxu3 %vm254_vm0, %v4168_v55 }
 0x12a   : >> { %v853_v51 = vpop.f32.mrf.mxu2 }
 0x12b   : >> { %v929_v23 = vadd.f32 %v853_v51, %v608_v57  ;;  %3092 = vmatmul.msk.f32.gmra.mxu0 %vm254_vm0, %v4177_v15  ;;  %v4208_v15 = vld [vmem:[%s3492_s7 + $0x140] sm:$0xff] }
 0x12c   : >> { %v610_v52 = vpop.f32.mrf.mxu1  ;;  %v1134_v28 = vpop.f32.mrf.mxu3  ;;  %4814 = vst [vmem:[#allocation29_spill] sm:$0xff] %v4208_v15 }
 0x12d   : >> { %v1210_v38 = vadd.f32 %v1134_v28, %v929_v23  ;;  %v611_v57 = vadd.f32 %v610_v52, %v3854_v49  ;;  %v4205_v28 = vld [vmem:[%s3492_s7 + $0xfa] sm:$0xff] }
 0x12e   : >> { %v4217_v52 = vld [vmem:[%s3492_s7 + $0x141] sm:$0xff] }
 0x12f   : >> { %v4190_v59 = vadd.f32 %v1412_v35, %v1210_v38  ;;  %2919 = vmatmul.msk.f32.gmra.mxu1 %vm254_vm0, %v4031_v54  ;;  %2955 = vmatmul.msk.f32.gmra.mxu2 %vm254_vm0, %v4185_v46  ;;  %4816 = vst [vmem:[#allocation31_spill] sm:$0xff] %v4217_v52 }
 0x130   : >> { %v1415_v42 = vpop.f32.mrf.mxu0 }
 0x131   : >> { %4812 = vst [vmem:[#allocation27_spill] sm:$0xff] %v4190_v59  ;;  %3025 = vmatmul.msk.f32.gmra.mxu3 %vm254_vm0, %v4188_v24 }
 0x132   : >> { %v856_v51 = vpop.f32.mrf.mxu2 }
 0x133   : >> { %v930_v23 = vadd.f32 %v856_v51, %v611_v57  ;;  %3093 = vmatmul.msk.f32.gmra.mxu0 %vm254_vm0, %v4197_v21  ;;  %v4228_v21 = vld [vmem:[%s3492_s7 + $0x148] sm:$0xff] }
 0x134   : >> { %v613_v38 = vpop.f32.mrf.mxu1  ;;  %v1137_v35 = vpop.f32.mrf.mxu3  ;;  %4817 = vst [vmem:[#allocation32_spill] sm:$0xff] %v4228_v21 }
 0x135   : >> { %v1211_v59 = vadd.f32 %v1137_v35, %v930_v23  ;;  %v614_v57 = vadd.f32 %v613_v38, %v3876_v58  ;;  %v4225_v35 = vld [vmem:[%s3492_s7 + $0x102] sm:$0xff] }
 0x136   : >> { %v4237_v38 = vld [vmem:[%s3492_s7 + $0x149] sm:$0xff] }
 0x137   : >> { %v4210_v55 = vadd.f32 %v1415_v42, %v1211_v59  ;;  %2920 = vmatmul.msk.f32.gmra.mxu1 %vm254_vm0, %v4048_v12  ;;  %2956 = vmatmul.msk.f32.gmra.mxu2 %vm254_vm0, %v4205_v28  ;;  %4819 = vst [vmem:[#allocation34_spill] sm:$0xff] %v4237_v38 }
 0x138   : >> { %v1418_v49 = vpop.f32.mrf.mxu0 }
 0x139   : >> { %4815 = vst [vmem:[#allocation30_spill] sm:$0xff] %v4210_v55  ;;  %3026 = vmatmul.msk.f32.gmra.mxu3 %vm254_vm0, %v4208_v15 }
 0x13a   : >> { %v859_v51 = vpop.f32.mrf.mxu2 }
 0x13b   : >> { %v931_v23 = vadd.f32 %v859_v51, %v614_v57  ;;  %3094 = vmatmul.msk.f32.gmra.mxu0 %vm254_vm0, %v4217_v52  ;;  %v4248_v52 = vld [vmem:[%s3492_s7 + $0x150] sm:$0xff] }
 0x13c   : >> { %v616_v59 = vpop.f32.mrf.mxu1  ;;  %v1140_v42 = vpop.f32.mrf.mxu3 }
 0x13d   : >> { %v1212_v55 = vadd.f32 %v1140_v42, %v931_v23  ;;  %v617_v57 = vadd.f32 %v616_v59, %v3907_v3  ;;  %v4245_v42 = vld [vmem:[%s3492_s7 + $0x10a] sm:$0xff] }
 0x13e   : >> { %v4257_v59 = vld [vmem:[%s3492_s7 + $0x151] sm:$0xff] }
 0x13f   : >> { %v4230_v24 = vadd.f32 %v1418_v49, %v1212_v55  ;;  %2921 = vmatmul.msk.f32.gmra.mxu1 %vm254_vm0, %v4074_v34  ;;  %2957 = vmatmul.msk.f32.gmra.mxu2 %vm254_vm0, %v4225_v35  ;;  %4821 = vst [vmem:[#allocation36_spill] sm:$0xff] %v4257_v59 }
 0x140   : >> { %v1421_v58 = vpop.f32.mrf.mxu0 }
 0x141   : >> { %4818 = vst [vmem:[#allocation33_spill] sm:$0xff] %v4230_v24  ;;  %3027 = vmatmul.msk.f32.gmra.mxu3 %vm254_vm0, %v4228_v21 }
 0x142   : >> { %v862_v51 = vpop.f32.mrf.mxu2 }
 0x143   : >> { %v932_v23 = vadd.f32 %v862_v51, %v617_v57  ;;  %3095 = vmatmul.msk.f32.gmra.mxu0 %vm254_vm0, %v4237_v38  ;;  %v4268_v38 = vld [vmem:[%s3492_s7 + $0x158] sm:$0xff] }
 0x144   : >> { %v619_v55 = vpop.f32.mrf.mxu1  ;;  %v1143_v49 = vpop.f32.mrf.mxu3 }
 0x145   : >> { %v1213_v24 = vadd.f32 %v1143_v49, %v932_v23  ;;  %v620_v57 = vadd.f32 %v619_v55, %v3932_v11  ;;  %v4265_v49 = vld [vmem:[%s3492_s7 + $0x112] sm:$0xff] }
 0x146   : >> { %v4277_v55 = vld [vmem:[%s3492_s7 + $0x159] sm:$0xff] }
 0x147   : >> { %v4250_v15 = vadd.f32 %v1421_v58, %v1213_v24  ;;  %2922 = vmatmul.msk.f32.gmra.mxu1 %vm254_vm0, %v4094_v0  ;;  %2958 = vmatmul.msk.f32.gmra.mxu2 %vm254_vm0, %v4245_v42 }
 0x148   : >> { %v1424_v3 = vpop.f32.mrf.mxu0 }
 0x149   : >> { %4820 = vst [vmem:[#allocation35_spill] sm:$0xff] %v4250_v15  ;;  %3028 = vmatmul.msk.f32.gmra.mxu3 %vm254_vm0, %v4248_v52 }
 0x14a   : >> { %v865_v51 = vpop.f32.mrf.mxu2 }
 0x14b   : >> { %v933_v23 = vadd.f32 %v865_v51, %v620_v57  ;;  %3096 = vmatmul.msk.f32.gmra.mxu0 %vm254_vm0, %v4257_v59 }
 0x14c   : >> { %v622_v24 = vpop.f32.mrf.mxu1  ;;  %v1146_v58 = vpop.f32.mrf.mxu3 }
 0x14d   : >> { %v1214_v15 = vadd.f32 %v1146_v58, %v933_v23  ;;  %v623_v57 = vadd.f32 %v622_v24, %v3954_v16 }
 0x14f   : >> { %v4270_v21 = vadd.f32 %v1424_v3, %v1214_v15  ;;  %2923 = vmatmul.msk.f32.gmra.mxu1 %vm254_vm0, %v4111_v41  ;;  %2959 = vmatmul.msk.f32.gmra.mxu2 %vm254_vm0, %v4265_v49 }
 0x150   : >> { %v1427_v11 = vpop.f32.mrf.mxu0 }
 0x151   : >> { %4822 = vst [vmem:[#allocation37_spill] sm:$0xff] %v4270_v21  ;;  %3029 = vmatmul.msk.f32.gmra.mxu3 %vm254_vm0, %v4268_v38  ;;  %v3236_v21 = vld [vmem:[%s3492_s7 + $0x91] sm:$0xff] }
 0x152   : >> { %v868_v51 = vpop.f32.mrf.mxu2 }
 0x153   : >> { %v934_v23 = vadd.f32 %v868_v51, %v623_v57  ;;  %3097 = vmatmul.msk.f32.gmra.mxu0 %vm254_vm0, %v4277_v55 }
 0x154   : >> { %v625_v15 = vpop.f32.mrf.mxu1  ;;  %v1149_v3 = vpop.f32.mrf.mxu3 }
 0x155   : >> { %v1215_v58 = vadd.f32 %v1149_v3, %v934_v23  ;;  %v626_v24 = vadd.f32 %v625_v15, %v3806_v32 }
 0x157   : >> { %v4285_v59 = vadd.f32 %v1427_v11, %v1215_v58  ;;  %3134 = vmatmul.msk.f32.vlgmr.msra.gmra.mxu1 %vm254_vm0, %v3793_v29  ;;  %3204 = vmatmul.msk.f32.vlgmr.msra.gmra.mxu2 %vm254_vm0, %v3796_v30  ;;  %v3237_v58 = vld [vmem:[%s3492_s7 + $0x99] sm:$0xff] }
 0x158   : >> { %v1430_v16 = vpop.f32.mrf.mxu0 }
 0x159   : >> { %4823 = vst [vmem:[#allocation38_spill] sm:$0xff] %v4285_v59  ;;  %3272 = vmatmul.msk.f32.vlgmr.msra.gmra.mxu3 %vm254_vm0, %v3236_v21 }
 0x15a   : >> { %v871_v57 = vpop.f32.mrf.mxu2 }
 0x15b   : >> { %v935_v51 = vadd.f32 %v871_v57, %v626_v24  ;;  %3340 = vmatmul.msk.f32.vlgmr.msra.gmra.mxu0 %vm254_vm0, %v3979_v33  ;;  %v3238_v57 = vld [vmem:[%s3492_s7 + $0xa1] sm:$0xff] }
 0x15c   : >> { %v628_v23 = vpop.f32.mrf.mxu1  ;;  %v1152_v11 = vpop.f32.mrf.mxu3 }
 0x15d   : >> { %v1216_v3 = vadd.f32 %v1152_v11, %v935_v51  ;;  %v629_v30 = vadd.f32 %v628_v23, %v3828_v6 }
 0x15f   : >> { %v4296_v59 = vadd.f32 %v1430_v16, %v1216_v3  ;;  %3135 = vmatmul.msk.f32.gmra.mxu1 %vm254_vm0, %v3815_v37  ;;  %3205 = vmatmul.msk.f32.gmra.mxu2 %vm254_vm0, %v3818_v40 }
 0x160   : >> { %v1433_v29 = vpop.f32.mrf.mxu0 }
 0x161   : >> { %3273 = vmatmul.msk.f32.gmra.mxu3 %vm254_vm0, %v3237_v58 }
 0x162   : >> { %v874_v32 = vpop.f32.mrf.mxu2 }
 0x163   : >> { %v936_v21 = vadd.f32 %v874_v32, %v629_v30  ;;  %3341 = vmatmul.msk.f32.gmra.mxu0 %vm254_vm0, %v3994_v17 }
 0x164   : >> { %v631_v15 = vpop.f32.mrf.mxu1  ;;  %v1155_v16 = vpop.f32.mrf.mxu3 }
 0x165   : >> { %v1217_v24 = vadd.f32 %v1155_v16, %v936_v21  ;;  %v632_v40 = vadd.f32 %v631_v15, %v3850_v20 }
 0x167   : >> { %v4307_v51 = vadd.f32 %v1433_v29, %v1217_v24  ;;  %3136 = vmatmul.msk.f32.gmra.mxu1 %vm254_vm0, %v3837_v44  ;;  %3206 = vmatmul.msk.f32.gmra.mxu2 %vm254_vm0, %v3840_v47  ;;  %v3239_v29 = vld [vmem:[%s3492_s7 + $0xa9] sm:$0xff]  ;;  %v3240_v24 = vld [vmem:[%s3492_s7 + $0xb1] sm:$0xff] }
 0x168   : >> { %v1436_v37 = vpop.f32.mrf.mxu0 }
 0x169   : >> { %3274 = vmatmul.msk.f32.gmra.mxu3 %vm254_vm0, %v3238_v57 }
 0x16a   : >> { %v877_v6 = vpop.f32.mrf.mxu2 }
 0x16b   : >> { %v937_v23 = vadd.f32 %v877_v6, %v632_v40  ;;  %3342 = vmatmul.msk.f32.gmra.mxu0 %vm254_vm0, %v4011_v63 }
 0x16c   : >> { %v634_v11 = vpop.f32.mrf.mxu1  ;;  %v1158_v3 = vpop.f32.mrf.mxu3 }
 0x16d   : >> { %v1218_v58 = vadd.f32 %v1158_v3, %v937_v23  ;;  %v635_v47 = vadd.f32 %v634_v11, %v3872_v26  ;;  %v3241_v11 = vld [vmem:[%s3492_s7 + $0xb9] sm:$0xff] }
 0x16f   : >> { %v4318_v30 = vadd.f32 %v1436_v37, %v1218_v58  ;;  %3137 = vmatmul.msk.f32.gmra.mxu1 %vm254_vm0, %v3859_v53  ;;  %3207 = vmatmul.msk.f32.gmra.mxu2 %vm254_vm0, %v3862_v56 }
 0x170   : >> { %v1439_v44 = vpop.f32.mrf.mxu0 }
 0x171   : >> { %3275 = vmatmul.msk.f32.gmra.mxu3 %vm254_vm0, %v3239_v29 }
 0x172   : >> { %v880_v20 = vpop.f32.mrf.mxu2 }
 0x173   : >> { %v938_v32 = vadd.f32 %v880_v20, %v635_v47  ;;  %3343 = vmatmul.msk.f32.gmra.mxu0 %vm254_vm0, %v4028_v2  ;;  %v3242_v20 = vld [vmem:[%s3492_s7 + $0xc1] sm:$0xff] }
 0x174   : >> { %v637_v21 = vpop.f32.mrf.mxu1  ;;  %v1161_v15 = vpop.f32.mrf.mxu3 }
 0x175   : >> { %v1219_v16 = vadd.f32 %v1161_v15, %v938_v32  ;;  %v638_v56 = vadd.f32 %v637_v21, %v3900_v1 }
 0x177   : >> { %v4329_v57 = vadd.f32 %v1439_v44, %v1219_v16  ;;  %3138 = vmatmul.msk.f32.gmra.mxu1 %vm254_vm0, %v3881_v60  ;;  %3208 = vmatmul.msk.f32.gmra.mxu2 %vm254_vm0, %v3884_v61 }
 0x178   : >> { %v1442_v53 = vpop.f32.mrf.mxu0 }
 0x179   : >> { %3276 = vmatmul.msk.f32.gmra.mxu3 %vm254_vm0, %v3240_v24 }
 0x17a   : >> { %v883_v26 = vpop.f32.mrf.mxu2 }
 0x17b   : >> { %v939_v37 = vadd.f32 %v883_v26, %v638_v56  ;;  %3344 = vmatmul.msk.f32.gmra.mxu0 %vm254_vm0, %v4045_v8 }
 0x17c   : >> { %v640_v40 = vpop.f32.mrf.mxu1  ;;  %v1164_v6 = vpop.f32.mrf.mxu3 }
 0x17d   : >> { %v1220_v23 = vadd.f32 %v1164_v6, %v939_v37  ;;  %v641_v61 = vadd.f32 %v640_v40, %v3928_v10 }
 0x17f   : >> { %v4340_v3 = vadd.f32 %v1442_v53, %v1220_v23  ;;  %3139 = vmatmul.msk.f32.gmra.mxu1 %vm254_vm0, %v3912_v5  ;;  %3209 = vmatmul.msk.f32.gmra.mxu2 %vm254_vm0, %v3915_v7  ;;  %v3243_v53 = vld [vmem:[%s3492_s7 + $0xc9] sm:$0xff]  ;;  %v3244_v23 = vld [vmem:[%s3492_s7 + $0xd9] sm:$0xff] }
 0x180   : >> { %v1445_v60 = vpop.f32.mrf.mxu0 }
 0x181   : >> { %3277 = vmatmul.msk.f32.gmra.mxu3 %vm254_vm0, %v3241_v11 }
 0x182   : >> { %v886_v1 = vpop.f32.mrf.mxu2 }
 0x183   : >> { %v940_v58 = vadd.f32 %v886_v1, %v641_v61  ;;  %3345 = vmatmul.msk.f32.gmra.mxu0 %vm254_vm0, %v4071_v62 }
 0x184   : >> { %v643_v29 = vpop.f32.mrf.mxu1  ;;  %v1167_v44 = vpop.f32.mrf.mxu3 }
 0x185   : >> { %v1221_v47 = vadd.f32 %v1167_v44, %v940_v58  ;;  %v644_v7 = vadd.f32 %v643_v29, %v3950_v45  ;;  %v3245_v29 = vld [vmem:[%s3492_s7 + $0xe1] sm:$0xff] }
 0x187   : >> { %v4351_v32 = vadd.f32 %v1445_v60, %v1221_v47  ;;  %3140 = vmatmul.msk.f32.gmra.mxu1 %vm254_vm0, %v3937_v13  ;;  %3210 = vmatmul.msk.f32.gmra.mxu2 %vm254_vm0, %v3940_v14 }
 0x188   : >> { %v1448_v5 = vpop.f32.mrf.mxu0 }
 0x189   : >> { %3278 = vmatmul.msk.f32.gmra.mxu3 %vm254_vm0, %v3242_v20 }
 0x18a   : >> { %v889_v10 = vpop.f32.mrf.mxu2 }
 0x18b   : >> { %v941_v21 = vadd.f32 %v889_v10, %v644_v7  ;;  %3346 = vmatmul.msk.f32.gmra.mxu0 %vm254_vm0, %v4091_v31  ;;  %v3246_v10 = vld [vmem:[%s3492_s7 + $0xe9] sm:$0xff] }
 0x18c   : >> { %v646_v15 = vpop.f32.mrf.mxu1  ;;  %v1170_v16 = vpop.f32.mrf.mxu3 }
 0x18d   : >> { %v1222_v24 = vadd.f32 %v1170_v16, %v941_v21  ;;  %v647_v14 = vadd.f32 %v646_v15, %v3972_v50 }
 0x18f   : >> { %v4362_v56 = vadd.f32 %v1448_v5, %v1222_v24  ;;  %3141 = vmatmul.msk.f32.gmra.mxu1 %vm254_vm0, %v3959_v18  ;;  %3211 = vmatmul.msk.f32.gmra.mxu2 %vm254_vm0, %v3962_v19 }
 0x190   : >> { %v1451_v13 = vpop.f32.mrf.mxu0 }
 0x191   : >> { %3279 = vmatmul.msk.f32.gmra.mxu3 %vm254_vm0, %v3243_v53 }
 0x192   : >> { %v892_v45 = vpop.f32.mrf.mxu2 }
 0x193   : >> { %v942_v26 = vadd.f32 %v892_v45, %v647_v14  ;;  %3347 = vmatmul.msk.f32.gmra.mxu0 %vm254_vm0, %v4108_v22  ;;  %v3247_v14 = vld [vmem:[%s3492_s7 + $0xf1] sm:$0xff] }
 0x194   : >> { %v649_v37 = vpop.f32.mrf.mxu1  ;;  %v1173_v40 = vpop.f32.mrf.mxu3 }
 0x195   : >> { %v1223_v6 = vadd.f32 %v1173_v40, %v942_v26  ;;  %v650_v19 = vadd.f32 %v649_v37, %v3812_v36 }
 0x197   : >> { %v4373_v11 = vadd.f32 %v1451_v13, %v1223_v6  ;;  %3142 = vmatmul.msk.f32.gmra.mxu1 %vm254_vm0, %v3979_v33  ;;  %3212 = vmatmul.msk.f32.gmra.mxu2 %vm254_vm0, %v3982_v25 }
 0x198   : >> { %v1454_v18 = vpop.f32.mrf.mxu0 }
 0x199   : >> { %3280 = vmatmul.msk.f32.gmra.mxu3 %vm254_vm0, %v3244_v23 }
 0x19a   : >> { %v895_v50 = vpop.f32.mrf.mxu2 }
 0x19b   : >> { %v943_v60 = vadd.f32 %v895_v50, %v650_v19  ;;  %3348 = vmatmul.msk.f32.gmra.mxu0 %vm254_vm0, %v4125_v27  ;;  %v3248_v19 = vld [vmem:[%s3492_s7 + $0xf9] sm:$0xff] }
 0x19c   : >> { %v652_v61 = vpop.f32.mrf.mxu1  ;;  %v1176_v1 = vpop.f32.mrf.mxu3 }
 0x19d   : >> { %v1224_v58 = vadd.f32 %v1176_v1, %v943_v60  ;;  %v653_v33 = vadd.f32 %v652_v61, %v3834_v43 }
 0x19f   : >> { %v4384_v44 = vadd.f32 %v1454_v18, %v1224_v58  ;;  %3143 = vmatmul.msk.f32.gmra.mxu1 %vm254_vm0, %v3994_v17  ;;  %3213 = vmatmul.msk.f32.gmra.mxu2 %vm254_vm0, %v3997_v4  ;;  %v4824_v4 = vld [vmem:[#allocation4_spill] sm:$0xff] }
 0x1a0   : >> { %v1457_v36 = vpop.f32.mrf.mxu0 }
 0x1a1   : >> { %3281 = vmatmul.msk.f32.gmra.mxu3 %vm254_vm0, %v3245_v29 }
 0x1a2   : >> { %v898_v25 = vpop.f32.mrf.mxu2 }
 0x1a3   : >> { %v944_v47 = vadd.f32 %v898_v25, %v653_v33  ;;  %3349 = vmatmul.msk.f32.gmra.mxu0 %vm254_vm0, %v4145_v48  ;;  %v3249_v33 = vld [vmem:[%s3492_s7 + $0x101] sm:$0xff] }
 0x1a4   : >> { %v655_v20 = vpop.f32.mrf.mxu1  ;;  %v1179_v5 = vpop.f32.mrf.mxu3 }
 0x1a5   : >> { %v1225_v7 = vadd.f32 %v1179_v5, %v944_v47  ;;  %v656_v17 = vadd.f32 %v655_v20, %v4824_v4  ;;  %v3250_v4 = vld [vmem:[%s3492_s7 + $0x109] sm:$0xff] }
 0x1a7   : >> { %v4395_v21 = vadd.f32 %v1457_v36, %v1225_v7  ;;  %3144 = vmatmul.msk.f32.gmra.mxu1 %vm254_vm0, %v4011_v63  ;;  %3214 = vmatmul.msk.f32.gmra.mxu2 %vm254_vm0, %v4014_v9  ;;  %v4825_v9 = vld [vmem:[#allocation5_spill] sm:$0xff] }
 0x1a8   : >> { %v1460_v43 = vpop.f32.mrf.mxu0 }
 0x1a9   : >> { %3282 = vmatmul.msk.f32.gmra.mxu3 %vm254_vm0, %v3246_v10 }
 0x1aa   : >> { %v901_v15 = vpop.f32.mrf.mxu2 }
 0x1ab   : >> { %v945_v16 = vadd.f32 %v901_v15, %v656_v17  ;;  %3350 = vmatmul.msk.f32.gmra.mxu0 %vm254_vm0, %v4165_v39 }
 0x1ac   : >> { %v658_v24 = vpop.f32.mrf.mxu1  ;;  %v1182_v53 = vpop.f32.mrf.mxu3 }
 0x1ad   : >> { %v1226_v13 = vadd.f32 %v1182_v53, %v945_v16  ;;  %v659_v26 = vadd.f32 %v658_v24, %v4825_v9 }
 0x1af   : >> { %v4406_v45 = vadd.f32 %v1460_v43, %v1226_v13  ;;  %3145 = vmatmul.msk.f32.gmra.mxu1 %vm254_vm0, %v4028_v2  ;;  %3215 = vmatmul.msk.f32.gmra.mxu2 %vm254_vm0, %v4031_v54  ;;  %v4826_v54 = vld [vmem:[#allocation6_spill] sm:$0xff] }
 0x1b0   : >> { %v1463_v63 = vpop.f32.mrf.mxu0 }
 0x1b1   : >> { %3283 = vmatmul.msk.f32.gmra.mxu3 %vm254_vm0, %v3247_v14 }
 0x1b2   : >> { %v904_v37 = vpop.f32.mrf.mxu2 }
 0x1b3   : >> { %v946_v40 = vadd.f32 %v904_v37, %v659_v26  ;;  %3351 = vmatmul.msk.f32.gmra.mxu0 %vm254_vm0, %v4185_v46 }
 0x1b4   : >> { %v661_v6 = vpop.f32.mrf.mxu1  ;;  %v1185_v23 = vpop.f32.mrf.mxu3 }
 0x1b5   : >> { %v1227_v18 = vadd.f32 %v1185_v23, %v946_v40  ;;  %v662_v60 = vadd.f32 %v661_v6, %v4826_v54 }
 0x1b7   : >> { %v4417_v50 = vadd.f32 %v1463_v63, %v1227_v18  ;;  %3146 = vmatmul.msk.f32.gmra.mxu1 %vm254_vm0, %v4045_v8  ;;  %3216 = vmatmul.msk.f32.gmra.mxu2 %vm254_vm0, %v4048_v12  ;;  %v4827_v12 = vld [vmem:[#allocation7_spill] sm:$0xff]  ;;  %v3251_v63 = vld [vmem:[%s3492_s7 + $0x111] sm:$0xff] }
 0x1b8   : >> { %v1466_v2 = vpop.f32.mrf.mxu0 }
 0x1b9   : >> { %3284 = vmatmul.msk.f32.gmra.mxu3 %vm254_vm0, %v3248_v19  ;;  %v4830_v19 = vld [vmem:[#allocation10_spill] sm:$0xff] }
 0x1ba   : >> { %v907_v61 = vpop.f32.mrf.mxu2 }
 0x1bb   : >> { %v947_v1 = vadd.f32 %v907_v61, %v662_v60  ;;  %3352 = vmatmul.msk.f32.gmra.mxu0 %vm254_vm0, %v4205_v28  ;;  %v4468_v60 = vld [vmem:[%s3492_s7 + $0x122] sm:$0xff] }
 0x1bc   : >> { %v664_v58 = vpop.f32.mrf.mxu1  ;;  %v1188_v29 = vpop.f32.mrf.mxu3  ;;  %v4832_v61 = vld [vmem:[#allocation19_spill] sm:$0xff] }
 0x1bd   : >> { %v1228_v36 = vadd.f32 %v1188_v29, %v947_v1  ;;  %v665_v47 = vadd.f32 %v664_v58, %v4827_v12 }
 0x1bf   : >> { %v4428_v25 = vadd.f32 %v1466_v2, %v1228_v36  ;;  %3147 = vmatmul.msk.f32.gmra.mxu1 %vm254_vm0, %v4071_v62  ;;  %3217 = vmatmul.msk.f32.gmra.mxu2 %vm254_vm0, %v4074_v34  ;;  %v4828_v34 = vld [vmem:[#allocation8_spill] sm:$0xff] }
 0x1c0   : >> { %v1469_v8 = vpop.f32.mrf.mxu0 }
 0x1c1   : >> { %3285 = vmatmul.msk.f32.gmra.mxu3 %vm254_vm0, %v3249_v33  ;;  %v4833_v33 = vld [vmem:[#allocation11_spill] sm:$0xff] }
 0x1c2   : >> { %v910_v20 = vpop.f32.mrf.mxu2 }
 0x1c3   : >> { %v948_v5 = vadd.f32 %v910_v20, %v665_v47  ;;  %3353 = vmatmul.msk.f32.gmra.mxu0 %vm254_vm0, %v4225_v35  ;;  %v4834_v47 = vld [vmem:[#allocation20_spill] sm:$0xff] }
 0x1c4   : >> { %v667_v7 = vpop.f32.mrf.mxu1  ;;  %v1191_v10 = vpop.f32.mrf.mxu3 }
 0x1c5   : >> { %v1229_v43 = vadd.f32 %v1191_v10, %v948_v5  ;;  %v668_v15 = vadd.f32 %v667_v7, %v4828_v34  ;;  %v4482_v5 = vld [vmem:[%s3492_s7 + $0x12a] sm:$0xff]  ;;  %v4835_v7 = vld [vmem:[#allocation22_spill] sm:$0xff] }
 0x1c6   : >> { %v4836_v34 = vld [vmem:[#allocation12_spill] sm:$0xff] }
 0x1c7   : >> { %v4439_v17 = vadd.f32 %v1469_v8, %v1229_v43  ;;  %3148 = vmatmul.msk.f32.gmra.mxu1 %vm254_vm0, %v4091_v31  ;;  %3218 = vmatmul.msk.f32.gmra.mxu2 %vm254_vm0, %v4094_v0  ;;  %v4829_v0 = vld [vmem:[#allocation9_spill] sm:$0xff] }
 0x1c8   : >> { %v1472_v62 = vpop.f32.mrf.mxu0 }
 0x1c9   : >> { %3286 = vmatmul.msk.f32.gmra.mxu3 %vm254_vm0, %v3250_v4 }
 0x1ca   : >> { %v913_v16 = vpop.f32.mrf.mxu2 }
 0x1cb   : >> { %v949_v24 = vadd.f32 %v913_v16, %v668_v15  ;;  %3354 = vmatmul.msk.f32.gmra.mxu0 %vm254_vm0, %v4245_v42 }
 0x1cc   : >> { %v670_v53 = vpop.f32.mrf.mxu1  ;;  %v1194_v13 = vpop.f32.mrf.mxu3 }
 0x1cd   : >> { %v1230_v14 = vadd.f32 %v1194_v13, %v949_v24  ;;  %v671_v26 = vadd.f32 %v670_v53, %v4829_v0  ;;  %v4837_v24 = vld [vmem:[#allocation23_spill] sm:$0xff]  ;;  %v4496_v13 = vld [vmem:[%s3492_s7 + $0x132] sm:$0xff] }
 0x1cf   : >> { %v4450_v9 = vadd.f32 %v1472_v62, %v1230_v14  ;;  %3149 = vmatmul.msk.f32.gmra.mxu1 %vm254_vm0, %v4108_v22  ;;  %3219 = vmatmul.msk.f32.gmra.mxu2 %vm254_vm0, %v4111_v41  ;;  %v4831_v41 = vld [vmem:[#allocation17_spill] sm:$0xff] }
 0x1d0   : >> { %v1475_v31 = vpop.f32.mrf.mxu0  ;;  %v4838_v14 = vld [vmem:[#allocation25_spill] sm:$0xff] }
 0x1d1   : >> { %3287 = vmatmul.msk.f32.gmra.mxu3 %vm254_vm0, %v3251_v63 }
 0x1d2   : >> { %v916_v37 = vpop.f32.mrf.mxu2 }
 0x1d3   : >> { %v950_v40 = vadd.f32 %v916_v37, %v671_v26  ;;  %3355 = vmatmul.msk.f32.gmra.mxu0 %vm254_vm0, %v4265_v49  ;;  %v4839_v37 = vld [vmem:[#allocation13_spill] sm:$0xff] }
 0x1d4   : >> { %v1197_v6 = vpop.f32.mrf.mxu3  ;;  %v1660_v23 = vpop.f32.mrf.mxu1 }
 0x1d5   : >> { %v1231_v18 = vadd.f32 %v1197_v6, %v950_v40  ;;  %v1756_v2 = vadd.f32 %v1660_v23, %v4830_v19  ;;  %v4840_v23 = vld [vmem:[#allocation26_spill] sm:$0xff] }
 0x1d6   : >> { %v4510_v19 = vld [vmem:[%s3492_s7 + $0x13a] sm:$0xff] }
 0x1d7   : >> { %v4461_v22 = vadd.f32 %v1475_v31, %v1231_v18  ;;  %3150 = vmatmul.msk.f32.gmra.mxu1 %vm254_vm0, %v4125_v27  ;;  %3220 = vmatmul.msk.f32.gmra.mxu2 %vm254_vm0, %v4831_v41 }
 0x1d8   : >> { %v2497_v54 = vpop.f32.mrf.mxu0 }
 0x1d9   : >> { %3288 = vmatmul.msk.f32.gmra.mxu3 %vm254_vm0, %v4832_v61 }
 0x1da   : >> { %v1941_v1 = vpop.f32.mrf.mxu2 }
 0x1db   : >> { %v2037_v58 = vadd.f32 %v1941_v1, %v1756_v2  ;;  %3356 = vmatmul.msk.f32.gmra.mxu0 %vm254_vm0, %v4468_v60  ;;  %v4841_v2 = vld [vmem:[#allocation28_spill] sm:$0xff] }
 0x1dc   : >> { %v1663_v29 = vpop.f32.mrf.mxu1  ;;  %v2219_v36 = vpop.f32.mrf.mxu3 }
 0x1dd   : >> { %v1757_v8 = vadd.f32 %v1663_v29, %v4833_v33  ;;  %v2315_v27 = vadd.f32 %v2219_v36, %v2037_v58  ;;  %v4842_v58 = vld [vmem:[#allocation14_spill] sm:$0xff]  ;;  %v4843_v33 = vld [vmem:[#allocation29_spill] sm:$0xff] }
 0x1df   : >> { %v4475_v12 = vadd.f32 %v2497_v54, %v2315_v27  ;;  %3151 = vmatmul.msk.f32.gmra.mxu1 %vm254_vm0, %v4145_v48  ;;  %3221 = vmatmul.msk.f32.gmra.mxu2 %vm254_vm0, %v4834_v47  ;;  %v4524_v27 = vld [vmem:[%s3492_s7 + $0x142] sm:$0xff] }
 0x1e0   : >> { %v2500_v20 = vpop.f32.mrf.mxu0  ;;  %v4844_v47 = vld [vmem:[#allocation31_spill] sm:$0xff] }
 0x1e1   : >> { %3289 = vmatmul.msk.f32.gmra.mxu3 %vm254_vm0, %v4835_v7 }
 0x1e2   : >> { %v1944_v10 = vpop.f32.mrf.mxu2 }
 0x1e3   : >> { %v2038_v43 = vadd.f32 %v1944_v10, %v1757_v8  ;;  %3357 = vmatmul.msk.f32.gmra.mxu0 %vm254_vm0, %v4482_v5 }
 0x1e4   : >> { %v1666_v4 = vpop.f32.mrf.mxu1  ;;  %v2222_v62 = vpop.f32.mrf.mxu3 }
 0x1e5   : >> { %v1758_v15 = vadd.f32 %v1666_v4, %v4836_v34  ;;  %v2316_v48 = vadd.f32 %v2222_v62, %v2038_v43  ;;  %v4845_v4 = vld [vmem:[#allocation15_spill] sm:$0xff] }
 0x1e7   : >> { %v4489_v16 = vadd.f32 %v2500_v20, %v2316_v48  ;;  %3152 = vmatmul.msk.f32.gmra.mxu1 %vm254_vm0, %v4165_v39  ;;  %3222 = vmatmul.msk.f32.gmra.mxu2 %vm254_vm0, %v4837_v24  ;;  %v4538_v24 = vld [vmem:[%s3492_s7 + $0x14a] sm:$0xff] }
 0x1e8   : >> { %v2503_v53 = vpop.f32.mrf.mxu0 }
 0x1e9   : >> { %3290 = vmatmul.msk.f32.gmra.mxu3 %vm254_vm0, %v4838_v14 }
 0x1ea   : >> { %v1947_v63 = vpop.f32.mrf.mxu2 }
 0x1eb   : >> { %v2039_v31 = vadd.f32 %v1947_v63, %v1758_v15  ;;  %3358 = vmatmul.msk.f32.gmra.mxu0 %vm254_vm0, %v4496_v13  ;;  %v4846_v15 = vld [vmem:[#allocation32_spill] sm:$0xff] }
 0x1ec   : >> { %v1669_v0 = vpop.f32.mrf.mxu1  ;;  %v2225_v26 = vpop.f32.mrf.mxu3 }
 0x1ed   : >> { %v1759_v40 = vadd.f32 %v1669_v0, %v4839_v37  ;;  %v2317_v39 = vadd.f32 %v2225_v26, %v2039_v31  ;;  %v4848_v26 = vld [vmem:[#allocation16_spill] sm:$0xff] }
 0x1ef   : >> { %v4503_v6 = vadd.f32 %v2503_v53, %v2317_v39  ;;  %3153 = vmatmul.msk.f32.gmra.mxu1 %vm254_vm0, %v4185_v46  ;;  %3223 = vmatmul.msk.f32.gmra.mxu2 %vm254_vm0, %v4840_v23  ;;  %v4847_v53 = vld [vmem:[#allocation34_spill] sm:$0xff] }
 0x1f0   : >> { %v2506_v18 = vpop.f32.mrf.mxu0  ;;  %v4552_v23 = vld [vmem:[%s3492_s7 + $0x152] sm:$0xff] }
 0x1f1   : >> { %3291 = vmatmul.msk.f32.gmra.mxu3 %vm254_vm0, %v4841_v2 }
 0x1f2   : >> { %v1950_v41 = vpop.f32.mrf.mxu2 }
 0x1f3   : >> { %v2040_v54 = vadd.f32 %v1950_v41, %v1759_v40  ;;  %3359 = vmatmul.msk.f32.gmra.mxu0 %vm254_vm0, %v4510_v19 }
 0x1f4   : >> { %v1672_v61 = vpop.f32.mrf.mxu1  ;;  %v2228_v1 = vpop.f32.mrf.mxu3 }
 0x1f5   : >> { %v1760_v29 = vadd.f32 %v1672_v61, %v4842_v58  ;;  %v2318_v46 = vadd.f32 %v2228_v1, %v2040_v54  ;;  %v4850_v1 = vld [vmem:[#allocation18_spill] sm:$0xff] }
 0x1f7   : >> { %v4517_v36 = vadd.f32 %v2506_v18, %v2318_v46  ;;  %3154 = vmatmul.msk.f32.gmra.mxu1 %vm254_vm0, %v4205_v28  ;;  %3224 = vmatmul.msk.f32.gmra.mxu2 %vm254_vm0, %v4843_v33  ;;  %v4849_v18 = vld [vmem:[#allocation36_spill] sm:$0xff]  ;;  %v4566_v46 = vld [vmem:[%s3492_s7 + $0x15a] sm:$0xff] }
 0x1f8   : >> { %v2509_v8 = vpop.f32.mrf.mxu0 }
 0x1f9   : >> { %3292 = vmatmul.msk.f32.gmra.mxu3 %vm254_vm0, %v4844_v47 }
 0x1fa   : >> { %v1953_v20 = vpop.f32.mrf.mxu2 }
 0x1fb   : >> { %v2041_v7 = vadd.f32 %v1953_v20, %v1760_v29  ;;  %3360 = vmatmul.msk.f32.gmra.mxu0 %vm254_vm0, %v4524_v27 }
 0x1fc   : >> { %v1675_v10 = vpop.f32.mrf.mxu1  ;;  %v2231_v43 = vpop.f32.mrf.mxu3 }
 0x1fd   : >> { %v1761_v62 = vadd.f32 %v1675_v10, %v4845_v4  ;;  %v2319_v28 = vadd.f32 %v2231_v43, %v2041_v7  ;;  %v3192_v7 = vld [vmem:[%s3492_s7 + $0x168] sm:$0xff]  ;;  %v4851_v4 = vld [vmem:[#allocation21_spill] sm:$0xff] }
 0x1fe   : >> { %v3260_v10 = vld [vmem:[%s3492_s7 + $0x169] sm:$0xff] }
 0x1ff   : >> { %v4531_v34 = vadd.f32 %v2509_v8, %v2319_v28  ;;  %3155 = vmatmul.msk.f32.gmra.mxu1 %vm254_vm0, %v4225_v35  ;;  %3225 = vmatmul.msk.f32.gmra.mxu2 %vm254_vm0, %v4846_v15  ;;  %v3328_v43 = vld [vmem:[%s3492_s7 + $0x16a] sm:$0xff]  ;;  %v4852_v15 = vld [vmem:[#allocation3_spill] sm:$0xff] }
 0x200   : >> { %v2512_v48 = vpop.f32.mrf.mxu0 }
 0x201   : >> { %3293 = vmatmul.msk.f32.gmra.mxu3 %vm254_vm0, %v4847_v53 }
 0x202   : >> { %v1956_v14 = vpop.f32.mrf.mxu2 }
 0x203   : >> { %v2042_v63 = vadd.f32 %v1956_v14, %v1761_v62  ;;  %3361 = vmatmul.msk.f32.gmra.mxu0 %vm254_vm0, %v4538_v24 }
 0x204   : >> { %v1678_v31 = vpop.f32.mrf.mxu1  ;;  %v2234_v0 = vpop.f32.mrf.mxu3 }
 0x205   : >> { %v1762_v37 = vadd.f32 %v1678_v31, %v4848_v26  ;;  %v2320_v35 = vadd.f32 %v2234_v0, %v2042_v63  ;;  %v3193_v31 = vld [vmem:[%s3492_s7 + $0x170] sm:$0xff] }
 0x206   : >> { %v3261_v0 = vld [vmem:[%s3492_s7 + $0x171] sm:$0xff] }
 0x207   : >> { %v4545_v40 = vadd.f32 %v2512_v48, %v2320_v35  ;;  %3156 = vmatmul.msk.f32.gmra.mxu1 %vm254_vm0, %v4245_v42  ;;  %3226 = vmatmul.msk.f32.gmra.mxu2 %vm254_vm0, %v4248_v52  ;;  %v4583_v48 = vperm.slane %v4852_v15, 0 }
 0x208   : >> { %v2515_v39 = vpop.f32.mrf.mxu0 }
 0x209   : >> { %3294 = vmatmul.msk.f32.gmra.mxu3 %vm254_vm0, %v4849_v18  ;;  %v2628_v26 = vadd.f32 %v4583_v48, %v4475_v12  ;;  %v4853_v18 = vld [vmem:[#allocation24_spill] sm:$0xff] }
 0x20a   : >> { %v1959_v2 = vpop.f32.mrf.mxu2 }
 0x20b   : >> { %v2043_v41 = vadd.f32 %v1959_v2, %v1762_v37  ;;  %3362 = vmatmul.msk.f32.gmra.mxu0 %vm254_vm0, %v4552_v23 }
 0x20c   : >> { %v1681_v54 = vpop.f32.mrf.mxu1  ;;  %v2237_v61 = vpop.f32.mrf.mxu3 }
 0x20d   : >> { %v1763_v42 = vadd.f32 %v1681_v54, %v4850_v1  ;;  %v2321_v58 = vadd.f32 %v2237_v61, %v2043_v41  ;;  %v2660_v61 = vmax.f32 %v2628_v26, 0.0 }
 0x20f   : >> { %v4559_v29 = vadd.f32 %v2515_v39, %v2321_v58  ;;  %3157 = vmatmul.msk.f32.gmra.mxu1 %vm254_vm0, %v4265_v49  ;;  %3227 = vmatmul.msk.f32.gmra.mxu2 %vm254_vm0, %v4268_v38  ;;  %v3329_v39 = vld [vmem:[%s3492_s7 + $0x172] sm:$0xff] }
 0x210   : >> { %v2518_v52 = vpop.f32.mrf.mxu0  ;;  %v3194_v58 = vld [vmem:[%s3492_s7 + $0x178] sm:$0xff] }
 0x211   : >> { %3295 = vmatmul.msk.f32.gmra.mxu3 %vm254_vm0, %v4277_v55 }
 0x212   : >> { %v1962_v33 = vpop.f32.mrf.mxu2 }
 0x213   : >> { %v2044_v8 = vadd.f32 %v1962_v33, %v1763_v42  ;;  %3363 = vmatmul.msk.f32.gmra.mxu0 %vm254_vm0, %v4566_v46 }
 0x214   : >> { %v1684_v47 = vpop.f32.mrf.mxu1  ;;  %v2240_v20 = vpop.f32.mrf.mxu3 }
 0x215   : >> { %v2322_v49 = vadd.f32 %v2240_v20, %v2044_v8  ;;  %v1764_v62 = vadd.f32 %v1684_v47, %v4851_v4  ;;  %v3262_v8 = vld [vmem:[%s3492_s7 + $0x179] sm:$0xff]  ;;  %v2629_v47 = vadd.f32 %v4583_v48, %v4489_v16 }
 0x217   : >> { %v4574_v38 = vadd.f32 %v2518_v52, %v2322_v49  ;;  %3158 = vmatmul.msk.f32.gmra.mxu1 %vm254_vm0, %v4468_v60  ;;  %3228 = vmatmul.msk.f32.gmra.mxu2 %vm254_vm0, %v3192_v7  ;;  %v3330_v49 = vld [vmem:[%s3492_s7 + $0x17a] sm:$0xff]  ;;  %v2661_v16 = vmax.f32 %v2629_v47, 0.0 }
 0x218   : >> { %v2521_v55 = vpop.f32.mrf.mxu0 }
 0x219   : >> { %3296 = vmatmul.msk.f32.gmra.mxu3 %vm254_vm0, %v3260_v10  ;;  %v4854_v10 = vld [vmem:[#allocation27_spill] sm:$0xff] }
 0x21a   : >> { %v1965_v28 = vpop.f32.mrf.mxu2 }
 0x21b   : >> { %v2045_v53 = vadd.f32 %v1965_v28, %v1764_v62  ;;  %3364 = vmatmul.msk.f32.gmra.mxu0 %vm254_vm0, %v3328_v43 }
 0x21c   : >> { %v1687_v14 = vpop.f32.mrf.mxu1  ;;  %v2243_v63 = vpop.f32.mrf.mxu3 }
 0x21d   : >> { %v2323_v60 = vadd.f32 %v2243_v63, %v2045_v53  ;;  %v1765_v2 = vadd.f32 %v1687_v14, %v4853_v18  ;;  %v3195_v53 = vld [vmem:[%s3492_s7 + $0x180] sm:$0xff] }
 0x21f   : >> { %v2601_v37 = vadd.f32 %v2521_v55, %v2323_v60  ;;  %3159 = vmatmul.msk.f32.gmra.mxu1 %vm254_vm0, %v4482_v5  ;;  %3229 = vmatmul.msk.f32.gmra.mxu2 %vm254_vm0, %v3193_v31  ;;  %v3263_v31 = vld [vmem:[%s3492_s7 + $0x181] sm:$0xff]  ;;  %v2630_v60 = vadd.f32 %v4583_v48, %v4503_v6 }
 0x220   : >> { %v2524_v35 = vpop.f32.mrf.mxu0 }
 0x221   : >> { %v2636_v41 = vadd.f32 %v4583_v48, %v2601_v37  ;;  %3297 = vmatmul.msk.f32.gmra.mxu3 %vm254_vm0, %v3261_v0  ;;  %v3331_v37 = vld [vmem:[%s3492_s7 + $0x182] sm:$0xff] }
 0x222   : >> { %v1968_v54 = vpop.f32.mrf.mxu2 }
 0x223   : >> { %v2668_v1 = vmax.f32 %v2636_v41, 0.0  ;;  %v2046_v12 = vadd.f32 %v1968_v54, %v1765_v2  ;;  %3365 = vmatmul.msk.f32.gmra.mxu0 %vm254_vm0, %v3329_v39  ;;  %v2662_v2 = vmax.f32 %v2630_v60, 0.0  ;;  %v3333_v60 = vld [vmem:[%s3492_s7 + $0x192] sm:$0xff] }
 0x224   : >> { %v1690_v5 = vpop.f32.mrf.mxu1  ;;  %v2246_v42 = vpop.f32.mrf.mxu3 }
 0x225   : >> { %v2692_v52 = vmax.f32 %v2660_v61, %v2668_v1  ;;  %v2324_v33 = vadd.f32 %v2246_v42, %v2046_v12  ;;  %v1766_v55 = vadd.f32 %v1690_v5, %v4854_v10  ;;  %v3196_v1 = vld [vmem:[%s3492_s7 + $0x188] sm:$0xff] }
 0x226   : >> { %v3264_v42 = vld [vmem:[%s3492_s7 + $0x189] sm:$0xff] }
 0x227   : >> { %2701 = vst.msk [vmem:[#allocation2] sm:$0xff] %vm2700_vm1, %v2692_v52  ;;  %v2602_v20 = vadd.f32 %v2524_v35, %v2324_v33  ;;  %3160 = vmatmul.msk.f32.gmra.mxu1 %vm254_vm0, %v4496_v13  ;;  %3230 = vmatmul.msk.f32.gmra.mxu2 %vm254_vm0, %v3194_v58  ;;  %v4855_v35 = vld [vmem:[#allocation30_spill] sm:$0xff]  ;;  %v2631_v33 = vadd.f32 %v4583_v48, %v4517_v36 }
 0x228   : >> { %v2527_v7 = vpop.f32.mrf.mxu0 }
 0x229   : >> { %v2637_v43 = vadd.f32 %v4583_v48, %v2602_v20  ;;  %3298 = vmatmul.msk.f32.gmra.mxu3 %vm254_vm0, %v3262_v8 }
 0x22a   : >> { %v1971_v4 = vpop.f32.mrf.mxu2 }
 0x22b   : >> { %v2669_v62 = vmax.f32 %v2637_v43, 0.0  ;;  %v2047_v28 = vadd.f32 %v1971_v4, %v1766_v55  ;;  %3366 = vmatmul.msk.f32.gmra.mxu0 %vm254_vm0, %v3330_v49  ;;  %v4856_v49 = vld [vmem:[#allocation33_spill] sm:$0xff]  ;;  %v2663_v43 = vmax.f32 %v2631_v33, 0.0 }
 0x22c   : >> { %v1693_v15 = vpop.f32.mrf.mxu1  ;;  %v2249_v13 = vpop.f32.mrf.mxu3  ;;  %v4858_v33 = vld [vmem:[#allocation37_spill] sm:$0xff] }
 0x22d   : >> { %v2693_v14 = vmax.f32 %v2661_v16, %v2669_v62  ;;  %v2325_v63 = vadd.f32 %v2249_v13, %v2047_v28  ;;  %v1767_v39 = vadd.f32 %v1693_v15, %v4855_v35  ;;  %v3197_v28 = vld [vmem:[%s3492_s7 + $0x190] sm:$0xff] }
 0x22f   : >> { %2702 = vst.msk [vmem:[#allocation2 + $0x8] sm:$0xff] %vm2700_vm1, %v2693_v14  ;;  %v2603_v0 = vadd.f32 %v2527_v7, %v2325_v63  ;;  %3161 = vmatmul.msk.f32.gmra.mxu1 %vm254_vm0, %v4510_v19  ;;  %3231 = vmatmul.msk.f32.gmra.mxu2 %vm254_vm0, %v3195_v53  ;;  %v3332_v7 = vld [vmem:[%s3492_s7 + $0x18a] sm:$0xff]  ;;  %v2632_v14 = vadd.f32 %v4583_v48, %v4531_v34 }
 0x230   : >> { %v2530_v26 = vpop.f32.mrf.mxu0  ;;  %v3265_v53 = vld [vmem:[%s3492_s7 + $0x191] sm:$0xff] }
 0x231   : >> { %v2638_v18 = vadd.f32 %v4583_v48, %v2603_v0  ;;  %3299 = vmatmul.msk.f32.gmra.mxu3 %vm254_vm0, %v3263_v31  ;;  %v4857_v0 = vld [vmem:[#allocation35_spill] sm:$0xff]  ;;  %v2664_v34 = vmax.f32 %v2632_v14, 0.0 }
 0x232   : >> { %v1974_v6 = vpop.f32.mrf.mxu2 }
 0x233   : >> { %v2670_v41 = vmax.f32 %v2638_v18, 0.0  ;;  %v2048_v54 = vadd.f32 %v1974_v6, %v1767_v39  ;;  %3367 = vmatmul.msk.f32.gmra.mxu0 %vm254_vm0, %v3331_v37 }
 0x234   : >> { %v1696_v19 = vpop.f32.mrf.mxu1  ;;  %v2252_v61 = vpop.f32.mrf.mxu3 }
 0x235   : >> { %v2694_v12 = vmax.f32 %v2662_v2, %v2670_v41  ;;  %v2326_v5 = vadd.f32 %v2252_v61, %v2048_v54  ;;  %v1768_v10 = vadd.f32 %v1696_v19, %v4856_v49  ;;  %v3198_v2 = vld [vmem:[%s3492_s7 + $0x198] sm:$0xff] }
 0x236   : >> { %v2709_v58 = vld [vmem:[#allocation2] ss:$2 sm:$0xff]  ;;  %v2717_v52 = vld [vmem:[#allocation2 + $0x1] ss:$2 sm:$0xff] }
 0x237   : >> { %2703 = vst.msk [vmem:[#allocation2 + $0x10] sm:$0xff] %vm2700_vm1, %v2694_v12  ;;  %v2604_v8 = vadd.f32 %v2530_v26, %v2326_v5  ;;  %3162 = vmatmul.msk.f32.gmra.mxu1 %vm254_vm0, %v4524_v27  ;;  %3232 = vmatmul.msk.f32.gmra.mxu2 %vm254_vm0, %v3196_v1  ;;  %v2724_v47 = vmax.f32 %v2709_v58, %v2717_v52  ;;  %v3266_v19 = vld [vmem:[%s3492_s7 + $0x199] sm:$0xff] }
 0x238   : >> { %v2533_v20 = vpop.f32.mrf.mxu0  ;;  %v2633_v12 = vadd.f32 %v4583_v48, %v4545_v40  ;;  %v3334_v52 = vld [vmem:[%s3492_s7 + $0x19a] sm:$0xff] }
 0x239   : >> { %v2639_v55 = vadd.f32 %v4583_v48, %v2604_v8  ;;  %3300 = vmatmul.msk.f32.gmra.mxu3 %vm254_vm0, %v3264_v42  ;;  %2731 = vst.msk [vmem:[%s4628_s6] sm:$0xff] %vm2700_vm1, %v2724_v47 }
 0x23a   : >> { %v1977_v36 = vpop.f32.mrf.mxu2 }
 0x23b   : >> { %v2671_v4 = vmax.f32 %v2639_v55, 0.0  ;;  %v2049_v27 = vadd.f32 %v1977_v36, %v1768_v10  ;;  %3368 = vmatmul.msk.f32.gmra.mxu0 %vm254_vm0, %v3332_v7  ;;  %v3199_v55 = vld [vmem:[%s3492_s7 + $0x1a0] sm:$0xff] }
 0x23c   : >> { %v1699_v16 = vpop.f32.mrf.mxu1  ;;  %v2255_v62 = vpop.f32.mrf.mxu3 }
 0x23d   : >> { %v2695_v15 = vmax.f32 %v2663_v43, %v2671_v4  ;;  %v2327_v13 = vadd.f32 %v2255_v62, %v2049_v27  ;;  %v1769_v26 = vadd.f32 %v1699_v16, %v4857_v0  ;;  %v3267_v4 = vld [vmem:[%s3492_s7 + $0x1a1] sm:$0xff]  ;;  %v2634_v27 = vadd.f32 %v4583_v48, %v4559_v29 }
 0x23f   : >> { %2704 = vst.msk [vmem:[#allocation2 + $0x18] sm:$0xff] %vm2700_vm1, %v2695_v15  ;;  %v2605_v63 = vadd.f32 %v2533_v20, %v2327_v13  ;;  %3163 = vmatmul.msk.f32.gmra.mxu1 %vm254_vm0, %v4538_v24  ;;  %3233 = vmatmul.msk.f32.gmra.mxu2 %vm254_vm0, %v3197_v28  ;;  %v2665_v20 = vmax.f32 %v2633_v12, 0.0  ;;  %v3335_v28 = vld [vmem:[%s3492_s7 + $0x1a2] sm:$0xff]  ;;  %v4859_v15 = vld [vmem:[#allocation38_spill] sm:$0xff] }
 0x240   : >> { %v2536_v31 = vpop.f32.mrf.mxu0 }
 0x241   : >> { %v2640_v37 = vadd.f32 %v4583_v48, %v2605_v63  ;;  %3301 = vmatmul.msk.f32.gmra.mxu3 %vm254_vm0, %v3265_v53  ;;  %v2666_v63 = vmax.f32 %v2634_v27, 0.0 }
 0x242   : >> { %v1980_v35 = vpop.f32.mrf.mxu2 }
 0x243   : >> { %v2672_v39 = vmax.f32 %v2640_v37, 0.0  ;;  %v2050_v18 = vadd.f32 %v1980_v35, %v1769_v26  ;;  %3369 = vmatmul.msk.f32.gmra.mxu0 %vm254_vm0, %v3333_v60 }
 0x244   : >> { %v1702_v6 = vpop.f32.mrf.mxu1  ;;  %v2258_v24 = vpop.f32.mrf.mxu3 }
 0x245   : >> { %v2696_v41 = vmax.f32 %v2664_v34, %v2672_v39  ;;  %v2328_v54 = vadd.f32 %v2258_v24, %v2050_v18  ;;  %v1770_v8 = vadd.f32 %v1702_v6, %v4858_v33  ;;  %v2635_v39 = vadd.f32 %v4583_v48, %v4574_v38 }
 0x246   : >> { %v2711_v61 = vld [vmem:[#allocation2 + $0x10] ss:$2 sm:$0xff]  ;;  %v2719_v1 = vld [vmem:[#allocation2 + $0x11] ss:$2 sm:$0xff] }
 0x247   : >> { %2705 = vst.msk [vmem:[#allocation2 + $0x20] sm:$0xff] %vm2700_vm1, %v2696_v41  ;;  %v2606_v5 = vadd.f32 %v2536_v31, %v2328_v54  ;;  %3164 = vmatmul.msk.f32.gmra.mxu1 %vm254_vm0, %v4552_v23  ;;  %3234 = vmatmul.msk.f32.gmra.mxu2 %vm254_vm0, %v3198_v2  ;;  %v2725_v42 = vmax.f32 %v2711_v61, %v2719_v1  ;;  %v2667_v54 = vmax.f32 %v2635_v39, 0.0 }
 0x248   : >> { %v2539_v58 = vpop.f32.mrf.mxu0 }
 0x249   : >> { %v2641_v47 = vadd.f32 %v4583_v48, %v2606_v5  ;;  %3302 = vmatmul.msk.f32.gmra.mxu3 %vm254_vm0, %v3266_v19  ;;  %2732 = vst.msk [vmem:[%s4628_s6 + $0x8] sm:$0xff] %vm2700_vm1, %v2725_v42 }
 0x24a   : >> { %v1983_v40 = vpop.f32.mrf.mxu2 }
 0x24b   : >> { %v2673_v7 = vmax.f32 %v2641_v47, 0.0  ;;  %v2051_v23 = vadd.f32 %v1983_v40, %v1770_v8  ;;  %3370 = vmatmul.msk.f32.gmra.mxu0 %vm254_vm0, %v3334_v52 }
 0x24c   : >> { %v1705_v49 = vpop.f32.mrf.mxu1  ;;  %v2261_v10 = vpop.f32.mrf.mxu3 }
 0x24d   : >> { %v2697_v36 = vmax.f32 %v2665_v20, %v2673_v7  ;;  %v2329_v43 = vadd.f32 %v2261_v10, %v2051_v23  ;;  %v1771_v13 = vadd.f32 %v1705_v49, %v4859_v15 }
 0x24f   : >> { %2706 = vst.msk [vmem:[#allocation2 + $0x28] sm:$0xff] %vm2700_vm1, %v2697_v36  ;;  %v2607_v16 = vadd.f32 %v2539_v58, %v2329_v43  ;;  %3165 = vmatmul.msk.f32.gmra.mxu1 %vm254_vm0, %v4566_v46  ;;  %3235 = vmatmul.msk.f32.gmra.mxu2 %vm254_vm0, %v3199_v55 }
 0x250   : >> { %v2542_v62 = vpop.f32.mrf.mxu0 }
 0x251   : >> { %v2642_v53 = vadd.f32 %v4583_v48, %v2607_v16  ;;  %3303 = vmatmul.msk.f32.gmra.mxu3 %vm254_vm0, %v3267_v4 }
 0x252   : >> { %v1986_v14 = vpop.f32.mrf.mxu2 }
 0x253   : >> { %v2674_v31 = vmax.f32 %v2642_v53, 0.0  ;;  %v2052_v29 = vadd.f32 %v1986_v14, %v1771_v13  ;;  %3371 = vmatmul.msk.f32.gmra.mxu0 %vm254_vm0, %v3335_v28 }
 0x254   : >> { %v1708_v60 = vpop.f32.mrf.mxu1  ;;  %v2264_v0 = vpop.f32.mrf.mxu3 }
 0x255   : >> { %v2698_v46 = vmax.f32 %v2666_v63, %v2674_v31  ;;  %v1772_v26 = vadd.f32 %v1708_v60, %v4296_v59  ;;  %v2330_v37 = vadd.f32 %v2264_v0, %v2052_v29 }
 0x256   : >> { %v2713_v35 = vld [vmem:[#allocation2 + $0x20] ss:$2 sm:$0xff]  ;;  %v2721_v34 = vld [vmem:[#allocation2 + $0x21] ss:$2 sm:$0xff] }
 0x257   : >> { %2707 = vst.msk [vmem:[#allocation2 + $0x30] sm:$0xff] %vm2700_vm1, %v2698_v46  ;;  %v2608_v18 = vadd.f32 %v2542_v62, %v2330_v37  ;;  %v2726_v6 = vmax.f32 %v2713_v35, %v2721_v34 }
 0x258   : >> { %v2545_v24 = vpop.f32.mrf.mxu0 }
 0x259   : >> { %v2643_v2 = vadd.f32 %v4583_v48, %v2608_v18  ;;  %2733 = vst.msk [vmem:[%s4628_s6 + $0x10] sm:$0xff] %vm2700_vm1, %v2726_v6 }
 0x25a   : >> { %v1989_v41 = vpop.f32.mrf.mxu2 }
 0x25b   : >> { %v2675_v19 = vmax.f32 %v2643_v2, 0.0  ;;  %v2053_v61 = vadd.f32 %v1989_v41, %v1772_v26 }
 0x25c   : >> { %v1711_v59 = vpop.f32.mrf.mxu1  ;;  %v2267_v1 = vpop.f32.mrf.mxu3 }
 0x25d   : >> { %v2699_v12 = vmax.f32 %v2667_v54, %v2675_v19  ;;  %v1773_v5 = vadd.f32 %v1711_v59, %v4307_v51  ;;  %v2331_v38 = vadd.f32 %v2267_v1, %v2053_v61 }
 0x25f   : >> { %2708 = vst.msk [vmem:[#allocation2 + $0x38] sm:$0xff] %vm2700_vm1, %v2699_v12  ;;  %v4693_v42 = vadd.f32 %v2545_v24, %v2331_v38 }
 0x260   : >> { %v2548_v58 = vpop.f32.mrf.mxu0 }
 0x262   : >> { %v1992_v52 = vpop.f32.mrf.mxu2 }
 0x263   : >> { %v2054_v33 = vadd.f32 %v1992_v52, %v1773_v5 }
 0x264   : >> { %v1714_v8 = vpop.f32.mrf.mxu1  ;;  %v2270_v47 = vpop.f32.mrf.mxu3 }
 0x265   : >> { %v1774_v40 = vadd.f32 %v1714_v8, %v4318_v30  ;;  %v2332_v20 = vadd.f32 %v2270_v47, %v2054_v33 }
 0x266   : >> { %v2715_v7 = vld [vmem:[#allocation2 + $0x30] ss:$2 sm:$0xff]  ;;  %v2723_v23 = vld [vmem:[#allocation2 + $0x31] ss:$2 sm:$0xff] }
 0x267   : >> { %v4696_v49 = vadd.f32 %v2548_v58, %v2332_v20  ;;  %v2727_v10 = vmax.f32 %v2715_v7, %v2723_v23 }
 0x268   : >> { %v2551_v51 = vpop.f32.mrf.mxu0 }
 0x269   : >> { %2734 = vst.msk [vmem:[%s4628_s6 + $0x18] sm:$0xff] %vm2700_vm1, %v2727_v10 }
 0x26a   : >> { %v1995_v55 = vpop.f32.mrf.mxu2 }
 0x26b   : >> { %v2055_v36 = vadd.f32 %v1995_v55, %v1774_v40 }
 0x26c   : >> { %v1717_v43 = vpop.f32.mrf.mxu1  ;;  %v2273_v4 = vpop.f32.mrf.mxu3 }
 0x26d   : >> { %v1775_v27 = vadd.f32 %v1717_v43, %v4329_v57  ;;  %v2333_v16 = vadd.f32 %v2273_v4, %v2055_v36 }
 0x26f   : >> { %v4701_v62 = vadd.f32 %v2551_v51, %v2333_v16 }
 0x270   : >> { %v2554_v28 = vpop.f32.mrf.mxu0 }
 0x272   : >> { %v1998_v30 = vpop.f32.mrf.mxu2 }
 0x273   : >> { %v2056_v15 = vadd.f32 %v1998_v30, %v1775_v27 }
 0x274   : >> { %v1720_v13 = vpop.f32.mrf.mxu1  ;;  %v2276_v53 = vpop.f32.mrf.mxu3 }
 0x275   : >> { %v1776_v14 = vadd.f32 %v1720_v13, %v4340_v3  ;;  %v2334_v63 = vadd.f32 %v2276_v53, %v2056_v15 }
 0x277   : >> { %v4704_v31 = vadd.f32 %v2554_v28, %v2334_v63  ;;  %v2645_v63 = vadd.f32 %v4583_v48, %v4696_v49 }
 0x278   : >> { %v2557_v29 = vpop.f32.mrf.mxu0 }
 0x27a   : >> { %v2001_v60 = vpop.f32.mrf.mxu2 }
 0x27b   : >> { %v2057_v0 = vadd.f32 %v2001_v60, %v1776_v14 }
 0x27c   : >> { %v1723_v46 = vpop.f32.mrf.mxu1  ;;  %v2279_v26 = vpop.f32.mrf.mxu3 }
 0x27d   : >> { %v1777_v57 = vadd.f32 %v1723_v46, %v4351_v32  ;;  %v2335_v37 = vadd.f32 %v2279_v26, %v2057_v0  ;;  %v2677_v46 = vmax.f32 %v2645_v63, 0.0 }
 0x27f   : >> { %v4707_v35 = vadd.f32 %v2557_v29, %v2335_v37 }
 0x280   : >> { %v2560_v34 = vpop.f32.mrf.mxu0 }
 0x282   : >> { %v2004_v39 = vpop.f32.mrf.mxu2 }
 0x283   : >> { %v2058_v18 = vadd.f32 %v2004_v39, %v1777_v57 }
 0x284   : >> { %v1726_v6 = vpop.f32.mrf.mxu1  ;;  %v2282_v24 = vpop.f32.mrf.mxu3 }
 0x285   : >> { %v1778_v3 = vadd.f32 %v1726_v6, %v4362_v56  ;;  %v2336_v2 = vadd.f32 %v2282_v24, %v2058_v18  ;;  %v2646_v6 = vadd.f32 %v4583_v48, %v4701_v62  ;;  %v2647_v62 = vadd.f32 %v4583_v48, %v4704_v31 }
 0x286   : >> { %v2648_v31 = vadd.f32 %v4583_v48, %v4707_v35 }
 0x287   : >> { %v4710_v41 = vadd.f32 %v2560_v34, %v2336_v2 }
 0x288   : >> { %v2563_v54 = vpop.f32.mrf.mxu0 }
 0x289   : >> { %v2649_v35 = vadd.f32 %v4583_v48, %v4710_v41 }
 0x28a   : >> { %v2007_v19 = vpop.f32.mrf.mxu2 }
 0x28b   : >> { %v2059_v61 = vadd.f32 %v2007_v19, %v1778_v3 }
 0x28c   : >> { %v1729_v59 = vpop.f32.mrf.mxu1  ;;  %v2285_v1 = vpop.f32.mrf.mxu3 }
 0x28d   : >> { %v1779_v32 = vadd.f32 %v1729_v59, %v4373_v11  ;;  %v2337_v12 = vadd.f32 %v2285_v1, %v2059_v61  ;;  %v2644_v11 = vadd.f32 %v4583_v48, %v4693_v42 }
 0x28f   : >> { %v4713_v5 = vadd.f32 %v2563_v54, %v2337_v12  ;;  %v2676_v28 = vmax.f32 %v2644_v11, 0.0  ;;  %v2678_v54 = vmax.f32 %v2646_v6, 0.0 }
 0x290   : >> { %v2566_v38 = vpop.f32.mrf.mxu0 }
 0x291   : >> { %v2650_v41 = vadd.f32 %v4583_v48, %v4713_v5 }
 0x292   : >> { %v2010_v58 = vpop.f32.mrf.mxu2 }
 0x293   : >> { %v2060_v52 = vadd.f32 %v2010_v58, %v1779_v32 }
 0x294   : >> { %v1732_v33 = vpop.f32.mrf.mxu1  ;;  %v2288_v8 = vpop.f32.mrf.mxu3 }
 0x295   : >> { %v2338_v47 = vadd.f32 %v2288_v8, %v2060_v52  ;;  %v1780_v20 = vadd.f32 %v1732_v33, %v4384_v44 }
 0x297   : >> { %v4715_v56 = vadd.f32 %v2566_v38, %v2338_v47 }
 0x298   : >> { %v2569_v40 = vpop.f32.mrf.mxu0 }
 0x299   : >> { %v2651_v5 = vadd.f32 %v4583_v48, %v4715_v56 }
 0x29a   : >> { %v2013_v7 = vpop.f32.mrf.mxu2 }
 0x29b   : >> { %v2061_v23 = vadd.f32 %v2013_v7, %v1780_v20  ;;  %v2679_v20 = vmax.f32 %v2647_v62, 0.0 }
 0x29c   : >> { %v1735_v10 = vpop.f32.mrf.mxu1  ;;  %v2291_v51 = vpop.f32.mrf.mxu3 }
 0x29d   : >> { %v2339_v55 = vadd.f32 %v2291_v51, %v2061_v23  ;;  %v1781_v4 = vadd.f32 %v1735_v10, %v4395_v21 }
 0x29f   : >> { %v2617_v36 = vadd.f32 %v2569_v40, %v2339_v55 }
 0x2a0   : >> { %v2572_v43 = vpop.f32.mrf.mxu0 }
 0x2a1   : >> { %v2652_v27 = vadd.f32 %v4583_v48, %v2617_v36 }
 0x2a2   : >> { %v2016_v16 = vpop.f32.mrf.mxu2 }
 0x2a3   : >> { %v2684_v30 = vmax.f32 %v2652_v27, 0.0  ;;  %v2062_v15 = vadd.f32 %v2016_v16, %v1781_v4  ;;  %v2680_v16 = vmax.f32 %v2648_v31, 0.0 }
 0x2a4   : >> { %v1738_v13 = vpop.f32.mrf.mxu1  ;;  %v2294_v44 = vpop.f32.mrf.mxu3 }
 0x2a5   : >> { %v2735_v53 = vmax.f32 %v2676_v28, %v2684_v30  ;;  %v2340_v14 = vadd.f32 %v2294_v44, %v2062_v15  ;;  %v1782_v60 = vadd.f32 %v1738_v13, %v4406_v45 }
 0x2a7   : >> { %2743 = vst.msk [vmem:[#allocation2] sm:$0xff] %vm2700_vm1, %v2735_v53  ;;  %v2618_v42 = vadd.f32 %v2572_v43, %v2340_v14 }
 0x2a8   : >> { %v2575_v29 = vpop.f32.mrf.mxu0 }
 0x2a9   : >> { %v2653_v21 = vadd.f32 %v4583_v48, %v2618_v42 }
 0x2aa   : >> { %v2019_v0 = vpop.f32.mrf.mxu2 }
 0x2ab   : >> { %v2685_v26 = vmax.f32 %v2653_v21, 0.0  ;;  %v2063_v57 = vadd.f32 %v2019_v0, %v1782_v60 }
 0x2ac   : >> { %v1741_v37 = vpop.f32.mrf.mxu1  ;;  %v2297_v34 = vpop.f32.mrf.mxu3 }
 0x2ad   : >> { %v2736_v39 = vmax.f32 %v2677_v46, %v2685_v26  ;;  %v2341_v18 = vadd.f32 %v2297_v34, %v2063_v57  ;;  %v1783_v3 = vadd.f32 %v1741_v37, %v4417_v50  ;;  %v2681_v46 = vmax.f32 %v2649_v35, 0.0 }
 0x2af   : >> { %2744 = vst.msk [vmem:[#allocation2 + $0x8] sm:$0xff] %vm2700_vm1, %v2736_v39  ;;  %v2619_v49 = vadd.f32 %v2575_v29, %v2341_v18 }
 0x2b0   : >> { %v2578_v24 = vpop.f32.mrf.mxu0 }
 0x2b1   : >> { %v2654_v45 = vadd.f32 %v4583_v48, %v2619_v49 }
 0x2b2   : >> { %v2022_v2 = vpop.f32.mrf.mxu2 }
 0x2b3   : >> { %v2686_v19 = vmax.f32 %v2654_v45, 0.0  ;;  %v2064_v61 = vadd.f32 %v2022_v2, %v1783_v3  ;;  %v2682_v3 = vmax.f32 %v2650_v41, 0.0 }
 0x2b4   : >> { %v1744_v59 = vpop.f32.mrf.mxu1  ;;  %v2300_v1 = vpop.f32.mrf.mxu3 }
 0x2b5   : >> { %v2737_v32 = vmax.f32 %v2678_v54, %v2686_v19  ;;  %v2342_v12 = vadd.f32 %v2300_v1, %v2064_v61  ;;  %v1784_v8 = vadd.f32 %v1744_v59, %v4428_v25 }
 0x2b6   : >> { %v2751_v38 = vld [vmem:[#allocation2] ss:$2 sm:$0xff]  ;;  %v2755_v58 = vld [vmem:[#allocation2 + $0x1] ss:$2 sm:$0xff] }
 0x2b7   : >> { %v2759_v52 = vmax.f32 %v2751_v38, %v2755_v58  ;;  %2745 = vst.msk [vmem:[#allocation2 + $0x10] sm:$0xff] %vm2700_vm1, %v2737_v32  ;;  %v2620_v50 = vadd.f32 %v2578_v24, %v2342_v12  ;;  %v2683_v58 = vmax.f32 %v2651_v5, 0.0 }
 0x2b8   : >> { %v2581_v33 = vpop.f32.mrf.mxu0 }
 0x2b9   : >> { %3376 = vst.msk [vmem:[%s4628_s6 + $0x20] sm:$0xff] %vm2700_vm1, %v2759_v52  ;;  %v2655_v47 = vadd.f32 %v4583_v48, %v2620_v50 }
 0x2ba   : >> { %v2025_v40 = vpop.f32.mrf.mxu2 }
 0x2bb   : >> { %v2687_v7 = vmax.f32 %v2655_v47, 0.0  ;;  %v2065_v23 = vadd.f32 %v2025_v40, %v1784_v8 }
 0x2bc   : >> { %v1747_v10 = vpop.f32.mrf.mxu1  ;;  %v2303_v51 = vpop.f32.mrf.mxu3 }
 0x2bd   : >> { %v2738_v55 = vmax.f32 %v2679_v20, %v2687_v7  ;;  %v2343_v11 = vadd.f32 %v2303_v51, %v2065_v23  ;;  %v1785_v4 = vadd.f32 %v1747_v10, %v4439_v17 }
 0x2bf   : >> { %2746 = vst.msk [vmem:[#allocation2 + $0x18] sm:$0xff] %vm2700_vm1, %v2738_v55  ;;  %v2621_v36 = vadd.f32 %v2581_v33, %v2343_v11 }
 0x2c0   : >> { %v2584_v43 = vpop.f32.mrf.mxu0 }
 0x2c1   : >> { %v2656_v25 = vadd.f32 %v4583_v48, %v2621_v36 }
 0x2c2   : >> { %v2028_v27 = vpop.f32.mrf.mxu2 }
 0x2c3   : >> { %v2688_v28 = vmax.f32 %v2656_v25, 0.0  ;;  %v2066_v30 = vadd.f32 %v2028_v27, %v1785_v4 }
 0x2c4   : >> { %v1750_v15 = vpop.f32.mrf.mxu1  ;;  %v2306_v13 = vpop.f32.mrf.mxu3 }
 0x2c5   : >> { %v2739_v44 = vmax.f32 %v2680_v16, %v2688_v28  ;;  %v2344_v53 = vadd.f32 %v2306_v13, %v2066_v30  ;;  %v1786_v29 = vadd.f32 %v1750_v15, %v4450_v9 }
 0x2c6   : >> { %v2752_v14 = vld [vmem:[#allocation2 + $0x10] ss:$2 sm:$0xff]  ;;  %v2756_v63 = vld [vmem:[#allocation2 + $0x11] ss:$2 sm:$0xff] }
 0x2c7   : >> { %v2760_v42 = vmax.f32 %v2752_v14, %v2756_v63  ;;  %2747 = vst.msk [vmem:[#allocation2 + $0x20] sm:$0xff] %vm2700_vm1, %v2739_v44  ;;  %v2622_v17 = vadd.f32 %v2584_v43, %v2344_v53 }
 0x2c8   : >> { %v2587_v0 = vpop.f32.mrf.mxu0 }
 0x2c9   : >> { %3377 = vst.msk [vmem:[%s4628_s6 + $0x28] sm:$0xff] %vm2700_vm1, %v2760_v42  ;;  %v2657_v60 = vadd.f32 %v4583_v48, %v2622_v17 }
 0x2ca   : >> { %v2031_v21 = vpop.f32.mrf.mxu2 }
 0x2cb   : >> { %v2689_v26 = vmax.f32 %v2657_v60, 0.0  ;;  %v2067_v57 = vadd.f32 %v2031_v21, %v1786_v29 }
 0x2cc   : >> { %v2309_v37 = vpop.f32.mrf.mxu3  ;;  %v1753_v18 = vpop.f32.mrf.mxu1 }
 0x2cd   : >> { %v2740_v34 = vmax.f32 %v2681_v46, %v2689_v26  ;;  %v2345_v39 = vadd.f32 %v2309_v37, %v2067_v57  ;;  %v1787_v49 = vadd.f32 %v1753_v18, %v4461_v22 }
 0x2cf   : >> { %2748 = vst.msk [vmem:[#allocation2 + $0x28] sm:$0xff] %vm2700_vm1, %v2740_v34  ;;  %v2623_v6 = vadd.f32 %v2587_v0, %v2345_v39 }
 0x2d0   : >> { %v2590_v19 = vpop.f32.mrf.mxu0 }
 0x2d1   : >> { %v2658_v9 = vadd.f32 %v4583_v48, %v2623_v6 }
 0x2d2   : >> { %v2034_v24 = vpop.f32.mrf.mxu2 }
 0x2d3   : >> { %v2690_v45 = vmax.f32 %v2658_v9, 0.0  ;;  %v2068_v2 = vadd.f32 %v2034_v24, %v1787_v49 }
 0x2d4   : >> { %v2312_v54 = vpop.f32.mrf.mxu3 }
 0x2d5   : >> { %v2741_v61 = vmax.f32 %v2682_v3, %v2690_v45  ;;  %v2346_v59 = vadd.f32 %v2312_v54, %v2068_v2 }
 0x2d6   : >> { %v2753_v1 = vld [vmem:[#allocation2 + $0x20] ss:$2 sm:$0xff]  ;;  %v2757_v32 = vld [vmem:[#allocation2 + $0x21] ss:$2 sm:$0xff] }
 0x2d7   : >> { %v2761_v12 = vmax.f32 %v2753_v1, %v2757_v32  ;;  %2749 = vst.msk [vmem:[#allocation2 + $0x30] sm:$0xff] %vm2700_vm1, %v2741_v61  ;;  %v2624_v22 = vadd.f32 %v2590_v19, %v2346_v59 }
 0x2d9   : >> { %3378 = vst.msk [vmem:[%s4628_s6 + $0x30] sm:$0xff] %vm2700_vm1, %v2761_v12  ;;  %v2659_v38 = vadd.f32 %v4583_v48, %v2624_v22 }
 0x2db   : >> { %v2691_v62 = vmax.f32 %v2659_v38, 0.0 }
 0x2dd   : >> { %v2742_v52 = vmax.f32 %v2683_v58, %v2691_v62 }
 0x2df   : >> { %2750 = vst.msk [vmem:[#allocation2 + $0x38] sm:$0xff] %vm2700_vm1, %v2742_v52 }
 0x2e5   : > { %176 = sbr.rel (!%p174_p4) target bundleno = 15 (0xf), region = 89 }
 0x2e6   : >> { %v2754_v50 = vld [vmem:[#allocation2 + $0x30] ss:$2 sm:$0xff]  ;;  %v2758_v33 = vld [vmem:[#allocation2 + $0x31] ss:$2 sm:$0xff] }
 0x2e7   : >> { %v2762_v8 = vmax.f32 %v2754_v50, %v2758_v33 }
 0x2e9   : >> { %3379 = vst.msk [vmem:[%s4628_s6 + $0x38] sm:$0xff] %vm2700_vm1, %v2762_v8 }
 0x2ea PF: > { %s13_s12 = sadd.s32 1, %s3424_s12  }
 0x2eb   : > { %p10_p5 = scmp.ge.s32.totalorder %s13_s12, 4  }
 0x2ed   :  { %12 = sbr.rel (!%p10_p5) target bundleno = 1 (0x1), region = 100 }

// kernel: combined_nn_forward.7
= control target key start
LH: loop header
LB: loop body
LE: loop exit
PB: predicated region body
PF: predicated region fallthrough
CT: control target
= control target key end

     0   :  { %s3547_s12 = smov 0   ;;  %s4888_s0 = inlined_call_operand.vmem [shape: f32[2,34,34,64], index: 0, kind: input, shape index: {}]   ;;  %s4889_s1 = inlined_call_operand.vmem [shape: f32[9,64,128], index: 1, kind: input, shape index: {}]   ;;  %s4890_s2 = inlined_call_operand.vmem [shape: f32[1,128], index: 2, kind: input, shape index: {}]   ;;  %s4891_s3 = inlined_call_operand.vmem [shape: f32[2,16,16,128], index: 3, kind: output, shape index: {}]  }
   0x1 LB: > { %s2891_s13 = sadd.s32 4294967295, %s3521_s12   ;;  %p2895_p0 = scmp.ge.s32.totalorder %s3521_s12, 1  ;;  %s3521_s12 = sphi %s3547_s12, %s13_s12  }
   0x2   : > { %p137_p1 = scmp.lt.s32.totalorder %s3521_s12, 3 }
   0x4   : > { %p138_p2 = pnand %p2895_p0, %p137_p1 }
   0x5   : > { %p161_p3 = scmp.lt.s32.totalorder (!%p138_p2), %s2891_s13, 1  ;;  %s3570_s24 = smov (!%p138_p2), 0  }
   0x6   : > { %141 = sbr.rel (%p138_p2) target bundleno = 754 (0x2f2), region = 32 }
   0xb   : > { %v3558_v0 = vld [vmem:[%s4890_s2] sm:$0x1]  ;;  %s4995_s13 = smov (!%p161_p3, %s2891_s13), 1 }
   0xc   : > { %4912 = vst [vmem:[#allocation3_spill] sm:$0xff] %v3558_v0  ;;  %s3494_s16 = smul.u32 1360, %s4995_s13  ;;  %s3465_s17 = sshll.u32 %s4995_s13, 8 }
   0xd   : > { %s3563_s20 = scalar_lea.vmem %s4891_s3, %s3465_s17 }
   0xe   : > { %s3568_s23 = scalar_lea.vmem %s4888_s0, %s3494_s16 }
   0xf LB: >> { %v2908_v1 = vld [vmem:[%s4889_s1 + $0x78] sm:$0xff]  ;;  %v2907_v2 = vld [vmem:[%s4889_s1 + $0x70] sm:$0xff]  ;;  %v2906_v3 = vld [vmem:[%s4889_s1 + $0x68] sm:$0xff]  ;;  %s2900_s8 = smul.u32 320, %s3525_s24  ;;  %vm262_vm0 = vcmask 523264   ;;  %s3466_s11 = sshll.u32 %s3525_s24, 6  ;;  %s3525_s24 = sphi %s3570_s24, %s177_s24  }
  0x10   : >> { %3470 = vmatpush.msra.mxu1 %v2908_v1  ;;  %3471 = vmatpush.msra.mxu2 %v2908_v1  ;;  %v2905_v4 = vld [vmem:[%s4889_s1 + $0x60] sm:$0xff]  ;;  %v2904_v5 = vld [vmem:[%s4889_s1 + $0x58] sm:$0xff]  ;;  %v2903_v6 = vld [vmem:[%s4889_s1 + $0x50] sm:$0xff]  ;;  %s4739_s13 = scalar_lea.vmem %s3563_s20, %s3466_s11  ;;  %s177_s24 = sadd.s32 1, %s3525_s24  }
  0x11   : >> { %3472 = vmatpush.msra.mxu3 %v2908_v1  ;;  %367 = vmatpush.msra.mxu0 %v2908_v1  ;;  %v2902_v7 = vld [vmem:[%s4889_s1 + $0x48] sm:$0xff]  ;;  %s3598_s14 = scalar_lea.vmem %s3568_s23, %s2900_s8  ;;  %v2901_v8 = vld [vmem:[%s4889_s1 + $0x40] sm:$0xff]  ;;  %v2980_v11 = vld [vmem:[%s4889_s1 + $0xb8] sm:$0xff]  ;;  %p174_p4 = scmp.ge.s32.totalorder %s177_s24, 4  }
  0x12   : >> { %3473 = vmatpush.msra.mxu1 %v2907_v2  ;;  %3474 = vmatpush.msra.mxu2 %v2907_v2  ;;  %v3604_v9 = vld [vmem:[%s3598_s14 + $0x51] sm:$0xff]  ;;  %v3607_v10 = vld [vmem:[%s3598_s14 + $0xa1] sm:$0xff]  ;;  %v3650_v23 = vld [vmem:[%s3598_s14 + $0x59] sm:$0xff] }
  0x13   : >> { %3475 = vmatpush.msra.mxu3 %v2907_v2  ;;  %368 = vmatpush.msra.mxu0 %v2907_v2  ;;  %v3613_v12 = vld [vmem:[%s3598_s14 + $0xf1] sm:$0xff]  ;;  %v221_v17 = vld [vmem:[%s3598_s14 + $0x1] sm:$0xff]  ;;  %v3653_v24 = vld [vmem:[%s3598_s14 + $0xa9] sm:$0xff] }
  0x14   : >> { %3476 = vmatpush.msra.mxu1 %v2906_v3  ;;  %3477 = vmatpush.msra.mxu2 %v2906_v3  ;;  %v220_v13 = vld [vmem:[%s4889_s1 + $0x38] sm:$0xff]  ;;  %v2979_v15 = vld [vmem:[%s4889_s1 + $0xb0] sm:$0xff]  ;;  %v2978_v20 = vld [vmem:[%s4889_s1 + $0xa8] sm:$0xff] }
  0x15   : >> { %3478 = vmatpush.msra.mxu3 %v2906_v3  ;;  %369 = vmatpush.msra.mxu0 %v2906_v3  ;;  %v3054_v14 = vld [vmem:[%s4889_s1 + $0xf8] sm:$0xff]  ;;  %v219_v16 = vld [vmem:[%s4889_s1 + $0x30] sm:$0xff]  ;;  %v3052_v21 = vld [vmem:[%s4889_s1 + $0xe8] sm:$0xff] }
  0x16   : >> { %3479 = vmatpush.msra.mxu1 %v2905_v4  ;;  %3480 = vmatpush.msra.mxu2 %v2905_v4  ;;  %v3053_v18 = vld [vmem:[%s4889_s1 + $0xf0] sm:$0xff]  ;;  %v3126_v19 = vld [vmem:[%s4889_s1 + $0x138] sm:$0xff]  ;;  %v218_v22 = vld [vmem:[%s4889_s1 + $0x28] sm:$0xff] }
  0x17   : >> { %3481 = vmatpush.msra.mxu3 %v2905_v4  ;;  %370 = vmatpush.msra.mxu0 %v2905_v4  ;;  %v3125_v25 = vld [vmem:[%s4889_s1 + $0x130] sm:$0xff]  ;;  %v2977_v26 = vld [vmem:[%s4889_s1 + $0xa0] sm:$0xff]  ;;  %v3124_v30 = vld [vmem:[%s4889_s1 + $0x128] sm:$0xff] }
  0x18   : >> { %3482 = vmatpush.msra.mxu1 %v2904_v5  ;;  %3483 = vmatpush.msra.mxu2 %v2904_v5  ;;  %v3663_v27 = vld [vmem:[%s3598_s14 + $0xf9] sm:$0xff]  ;;  %v222_v33 = vld [vmem:[%s3598_s14 + $0x9] sm:$0xff]  ;;  %v3703_v39 = vld [vmem:[%s3598_s14 + $0x61] sm:$0xff] }
  0x19   : >> { %3484 = vmatpush.msra.mxu3 %v2904_v5  ;;  %371 = vmatpush.msra.mxu0 %v2904_v5  ;;  %v217_v28 = vld [vmem:[%s4889_s1 + $0x20] sm:$0xff]  ;;  %v2976_v31 = vld [vmem:[%s4889_s1 + $0x98] sm:$0xff]  ;;  %v2975_v36 = vld [vmem:[%s4889_s1 + $0x90] sm:$0xff] }
  0x1a   : >> { %3485 = vmatpush.msra.mxu1 %v2903_v6  ;;  %3486 = vmatpush.msra.mxu2 %v2903_v6  ;;  %v3051_v29 = vld [vmem:[%s4889_s1 + $0xe0] sm:$0xff]  ;;  %v216_v32 = vld [vmem:[%s4889_s1 + $0x18] sm:$0xff]  ;;  %v3049_v37 = vld [vmem:[%s4889_s1 + $0xd0] sm:$0xff] }
  0x1b   : >> { %3487 = vmatpush.msra.mxu3 %v2903_v6  ;;  %372 = vmatpush.msra.mxu0 %v2903_v6  ;;  %v3050_v34 = vld [vmem:[%s4889_s1 + $0xd8] sm:$0xff]  ;;  %v3123_v35 = vld [vmem:[%s4889_s1 + $0x120] sm:$0xff]  ;;  %v215_v38 = vld [vmem:[%s4889_s1 + $0x10] sm:$0xff] }
  0x1c   : >> { %3488 = vmatpush.msra.mxu1 %v2902_v7  ;;  %3489 = vmatpush.msra.mxu2 %v2902_v7  ;;  %v3706_v40 = vld [vmem:[%s3598_s14 + $0xb1] sm:$0xff]  ;;  %v3713_v42 = vld [vmem:[%s3598_s14 + $0x101] sm:$0xff]  ;;  %v3735_v48 = vld [vmem:[%s3598_s14 + $0x69] sm:$0xff] }
  0x1d   : >> { %3490 = vmatpush.msra.mxu3 %v2902_v7  ;;  %373 = vmatpush.msra.mxu0 %v2902_v7  ;;  %v3122_v41 = vld [vmem:[%s4889_s1 + $0x118] sm:$0xff]  ;;  %v2974_v43 = vld [vmem:[%s4889_s1 + $0x88] sm:$0xff]  ;;  %v3121_v46 = vld [vmem:[%s4889_s1 + $0x110] sm:$0xff] }
  0x1e   : >> { %3491 = vmatpush.msra.mxu1 %v2901_v8  ;;  %3492 = vmatpush.msra.mxu2 %v2901_v8  ;;  %v223_v44 = vld [vmem:[%s3598_s14 + $0x11] sm:$0xff]  ;;  %v3048_v45 = vld [vmem:[%s4889_s1 + $0xc8] sm:$0xff]  ;;  %v3738_v49 = vld [vmem:[%s3598_s14 + $0xb9] sm:$0xff] }
  0x1f   : >> { %2917 = vmatmul.msk.f32.vlgmr.msra.gmra.mxu1 %vm262_vm0, %v3604_v9  ;;  %2925 = vmatmul.msk.f32.vlgmr.msra.gmra.mxu2 %vm262_vm0, %v3607_v10  ;;  %v214_v47 = vld [vmem:[%s4889_s1 + $0x8] sm:$0xff]  ;;  %v2973_v51 = vld [vmem:[%s4889_s1 + $0x80] sm:$0xff]  ;;  %v3272_v59 = vld [vmem:[%s4889_s1 + $0x1b8] sm:$0xff] }
  0x20   : >> { %826 = vmatpush.msrb.mxu2 %v2980_v11  ;;  %3493 = vmatpush.msra.mxu3 %v2901_v8  ;;  %v3742_v50 = vld [vmem:[%s3598_s14 + $0x109] sm:$0xff]  ;;  %v224_v52 = vld [vmem:[%s3598_s14 + $0x19] sm:$0xff]  ;;  %v3793_v1 = vld [vmem:[%s3598_s14 + $0x81] sm:$0xff] }
  0x21   : >> { %2933 = vmatmul.msk.f32.vlgmr.msra.gmra.mxu3 %vm262_vm0, %v3613_v12  ;;  %576 = vmatpush.msrb.mxu1 %v220_v13  ;;  %v3047_v53 = vld [vmem:[%s4889_s1 + $0xc0] sm:$0xff]  ;;  %v3120_v54 = vld [vmem:[%s4889_s1 + $0x108] sm:$0xff]  ;;  %v3344_v62 = vld [vmem:[%s4889_s1 + $0x1f8] sm:$0xff] }
  0x22   : >> { %1111 = vmatpush.msrb.mxu3 %v3054_v14  ;;  %827 = vmatpush.msrb.mxu2 %v2979_v15  ;;  %v213_v55 = vld [vmem:[%s4889_s1] sm:$0xff]  ;;  %v3767_v57 = vld [vmem:[%s3598_s14 + $0xc9] sm:$0xff]  ;;  %v3198_v63 = vld [vmem:[%s4889_s1 + $0x178] sm:$0xff] }
  0x23   : >> { %374 = vmatpush.msra.mxu0 %v2901_v8  ;;  %577 = vmatpush.msrb.mxu1 %v219_v16  ;;  %v3764_v56 = vld [vmem:[%s3598_s14 + $0x79] sm:$0xff]  ;;  %v225_v60 = vld [vmem:[%s3598_s14 + $0x29] sm:$0xff]  ;;  %v3796_v2 = vld [vmem:[%s3598_s14 + $0xd1] sm:$0xff] }
  0x24   : >> { %2909 = vmatmul.msk.f32.vlgmr.msra.gmra.mxu0 %vm262_vm0, %v221_v17  ;;  %1112 = vmatpush.msrb.mxu3 %v3053_v18  ;;  %v3771_v58 = vld [vmem:[%s3598_s14 + $0x119] sm:$0xff]  ;;  %v3800_v3 = vld [vmem:[%s3598_s14 + $0x121] sm:$0xff]  ;;  %v226_v4 = vld [vmem:[%s3598_s14 + $0x31] sm:$0xff] }
  0x25   : >> { %1393 = vmatpush.msrb.mxu0 %v3126_v19  ;;  %828 = vmatpush.msrb.mxu2 %v2978_v20  ;;  %v3119_v61 = vld [vmem:[%s4889_s1 + $0x100] sm:$0xff]  ;;  %v3416_v5 = vld [vmem:[%s4889_s1 + $0x238] sm:$0xff]  ;;  %v3813_v6 = vld [vmem:[%s3598_s14 + $0x89] sm:$0xff] }
  0x26   : >> { %1113 = vmatpush.msrb.mxu3 %v3052_v21  ;;  %578 = vmatpush.msrb.mxu1 %v218_v22  ;;  %v3816_v7 = vld [vmem:[%s3598_s14 + $0xd9] sm:$0xff]  ;;  %v3820_v8 = vld [vmem:[%s3598_s14 + $0x129] sm:$0xff]  ;;  %v3830_v13 = vld [vmem:[%s3598_s14 + $0x91] sm:$0xff] }
  0x27   : >> { %2918 = vmatmul.msk.f32.gmra.mxu1 %vm262_vm0, %v3650_v23  ;;  %2926 = vmatmul.msk.f32.gmra.mxu2 %vm262_vm0, %v3653_v24  ;;  %v227_v11 = vld [vmem:[%s3598_s14 + $0x39] sm:$0xff]  ;;  %v3833_v14 = vld [vmem:[%s3598_s14 + $0xe1] sm:$0xff]  ;;  %v3837_v15 = vld [vmem:[%s3598_s14 + $0x131] sm:$0xff] }
  0x28   : >> { %1394 = vmatpush.msrb.mxu0 %v3125_v25  ;;  %829 = vmatpush.msrb.mxu2 %v2977_v26  ;;  %v228_v16 = vld [vmem:[%s3598_s14 + $0x41] sm:$0xff]  ;;  %v3271_v20 = vld [vmem:[%s4889_s1 + $0x1b0] sm:$0xff] }
  0x29   : >> { %2934 = vmatmul.msk.f32.gmra.mxu3 %vm262_vm0, %v3663_v27  ;;  %579 = vmatpush.msrb.mxu1 %v217_v28  ;;  %v181_v17 = vld [vmem:[%s3598_s14] sm:$0xff]  ;;  %v3015_v19 = vld [vmem:[%s3598_s14 + $0x28] sm:$0xff]  ;;  %v3343_v21 = vld [vmem:[%s4889_s1 + $0x1f0] sm:$0xff] }
  0x2a   : >> { %1114 = vmatpush.msrb.mxu3 %v3051_v29  ;;  %1395 = vmatpush.msrb.mxu0 %v3124_v30  ;;  %v681_v18 = vld [vmem:[%s3598_s14 + $0x2] sm:$0xff]  ;;  %v3197_v22 = vld [vmem:[%s4889_s1 + $0x170] sm:$0xff] }
  0x2b   : >> { %830 = vmatpush.msrb.mxu2 %v2976_v31  ;;  %580 = vmatpush.msrb.mxu1 %v216_v32  ;;  %v182_v25 = vld [vmem:[%s3598_s14 + $0x8] sm:$0xff]  ;;  %v3016_v28 = vld [vmem:[%s3598_s14 + $0x30] sm:$0xff]  ;;  %v3017_v32 = vld [vmem:[%s3598_s14 + $0x38] sm:$0xff] }
  0x2c   : >> { %2910 = vmatmul.msk.f32.gmra.mxu0 %vm262_vm0, %v222_v33  ;;  %1115 = vmatpush.msrb.mxu3 %v3050_v34  ;;  %v682_v26 = vld [vmem:[%s3598_s14 + $0xa] sm:$0xff]  ;;  %v683_v31 = vld [vmem:[%s3598_s14 + $0x12] sm:$0xff]  ;;  %v684_v34 = vld [vmem:[%s3598_s14 + $0x1a] sm:$0xff] }
  0x2d   : >> { %1396 = vmatpush.msrb.mxu0 %v3123_v35  ;;  %831 = vmatpush.msrb.mxu2 %v2975_v36  ;;  %v3415_v29 = vld [vmem:[%s4889_s1 + $0x230] sm:$0xff]  ;;  %v184_v33 = vld [vmem:[%s3598_s14 + $0x18] sm:$0xff]  ;;  %v3018_v35 = vld [vmem:[%s3598_s14 + $0x40] sm:$0xff] }
  0x2e   : >> { %1116 = vmatpush.msrb.mxu3 %v3049_v37  ;;  %581 = vmatpush.msrb.mxu1 %v215_v38  ;;  %v183_v30 = vld [vmem:[%s3598_s14 + $0x10] sm:$0xff]  ;;  %v3270_v38 = vld [vmem:[%s4889_s1 + $0x1a8] sm:$0xff] }
  0x2f   : >> { %2919 = vmatmul.msk.f32.gmra.mxu1 %vm262_vm0, %v3703_v39  ;;  %2927 = vmatmul.msk.f32.gmra.mxu2 %vm262_vm0, %v3706_v40  ;;  %v3887_v36 = vld [vmem:[%s3598_s14 + $0x2a] sm:$0xff] }
  0x30   : >> { %1397 = vmatpush.msrb.mxu0 %v3122_v41  ;;  %832 = vmatpush.msrb.mxu2 %v2974_v43  ;;  %v3891_v37 = vld [vmem:[%s3598_s14 + $0x50] sm:$0xff]  ;;  %v3342_v41 = vld [vmem:[%s4889_s1 + $0x1e8] sm:$0xff] }
  0x31   : >> { %2935 = vmatmul.msk.f32.gmra.mxu3 %vm262_vm0, %v3713_v42  ;;  %582 = vmatpush.msrb.mxu1 %v214_v47  ;;  %v3196_v43 = vld [vmem:[%s4889_s1 + $0x168] sm:$0xff]  ;;  %v3924_v47 = vld [vmem:[%s3598_s14 + $0x3a] sm:$0xff] }
  0x32   : >> { %1117 = vmatpush.msrb.mxu3 %v3048_v45  ;;  %1398 = vmatpush.msrb.mxu0 %v3121_v46  ;;  %v3913_v45 = vld [vmem:[%s3598_s14 + $0x58] sm:$0xff]  ;;  %v3414_v46 = vld [vmem:[%s4889_s1 + $0x228] sm:$0xff] }
  0x33   : >> { %833 = vmatpush.msrb.mxu2 %v2973_v51  ;;  %583 = vmatpush.msrb.mxu1 %v213_v55  ;;  %v3937_v51 = vld [vmem:[%s3598_s14 + $0x42] sm:$0xff] }
  0x34   : >> { %2911 = vmatmul.msk.f32.gmra.mxu0 %vm262_vm0, %v223_v44  ;;  %1118 = vmatpush.msrb.mxu3 %v3047_v53  ;;  %v3908_v44 = vld [vmem:[%s3598_s14 + $0x32] sm:$0xff] }
  0x35   : >> { %1399 = vmatpush.msrb.mxu0 %v3120_v54  ;;  %1960 = vmatpush.msra.mxu2 %v3272_v59  ;;  %v3952_v53 = vld [vmem:[%s3598_s14 + $0x52] sm:$0xff] }
  0x36   : >> { %2242 = vmatpush.msra.mxu3 %v3344_v62  ;;  %1675 = vmatpush.msra.mxu1 %v3198_v63  ;;  %v3957_v54 = vld [vmem:[%s3598_s14 + $0x78] sm:$0xff] }
  0x37   : >> { %2920 = vmatmul.msk.f32.gmra.mxu1 %vm262_vm0, %v3735_v48  ;;  %2928 = vmatmul.msk.f32.gmra.mxu2 %vm262_vm0, %v3738_v49  ;;  %v3983_v63 = vld [vmem:[%s3598_s14 + $0x5a] sm:$0xff] }
  0x38   : >> { %1400 = vmatpush.msrb.mxu0 %v3119_v61  ;;  %1961 = vmatpush.msra.mxu2 %v3271_v20 }
  0x39   : >> { %2936 = vmatmul.msk.f32.gmra.mxu3 %vm262_vm0, %v3742_v50  ;;  %1676 = vmatpush.msra.mxu1 %v3197_v22 }
  0x3a   : >> { %2524 = vmatpush.msra.mxu0 %v3416_v5  ;;  %2243 = vmatpush.msra.mxu3 %v3343_v21 }
  0x3b   : >> { %1962 = vmatpush.msra.mxu2 %v3270_v38  ;;  %1677 = vmatpush.msra.mxu1 %v3196_v43  ;;  %v3194_v38 = vld [vmem:[%s4889_s1 + $0x158] sm:$0xff] }
  0x3c   : >> { %2912 = vmatmul.msk.f32.gmra.mxu0 %vm262_vm0, %v224_v52  ;;  %2244 = vmatpush.msra.mxu3 %v3342_v41  ;;  %v3942_v52 = vld [vmem:[%s3598_s14 + $0x68] sm:$0xff] }
  0x3d   : >> { %2525 = vmatpush.msra.mxu0 %v3415_v29 }
  0x3f   : >> { %2921 = vmatmul.msk.f32.gmra.mxu1 %vm262_vm0, %v3764_v56  ;;  %2929 = vmatmul.msk.f32.gmra.mxu2 %vm262_vm0, %v3767_v57 }
  0x40   : >> { %2526 = vmatpush.msra.mxu0 %v3414_v46  ;;  %v4083_v46 = vld [vmem:[%s3598_s14 + $0x82] sm:$0xff] }
  0x41   : >> { %2937 = vmatmul.msk.f32.gmra.mxu3 %vm262_vm0, %v3771_v58  ;;  %4921 = vst [vmem:[#allocation12_spill] sm:$0xff] %v4083_v46 }
  0x44   : >> { %2913 = vmatmul.msk.f32.gmra.mxu0 %vm262_vm0, %v225_v60 }
  0x47   : >> { %2922 = vmatmul.msk.f32.gmra.mxu1 %vm262_vm0, %v3793_v1  ;;  %2930 = vmatmul.msk.f32.gmra.mxu2 %vm262_vm0, %v3796_v2 }
  0x49   : >> { %2938 = vmatmul.msk.f32.gmra.mxu3 %vm262_vm0, %v3800_v3 }
  0x4c   : >> { %2914 = vmatmul.msk.f32.gmra.mxu0 %vm262_vm0, %v226_v4 }
  0x4f   : >> { %2923 = vmatmul.msk.f32.gmra.mxu1 %vm262_vm0, %v3813_v6  ;;  %2931 = vmatmul.msk.f32.gmra.mxu2 %vm262_vm0, %v3816_v7 }
  0x51   : >> { %2939 = vmatmul.msk.f32.gmra.mxu3 %vm262_vm0, %v3820_v8 }
  0x54   : >> { %2915 = vmatmul.msk.f32.gmra.mxu0 %vm262_vm0, %v227_v11 }
  0x57   : >> { %2924 = vmatmul.msk.f32.gmra.mxu1 %vm262_vm0, %v3830_v13  ;;  %2932 = vmatmul.msk.f32.gmra.mxu2 %vm262_vm0, %v3833_v14 }
  0x59   : >> { %2940 = vmatmul.msk.f32.gmra.mxu3 %vm262_vm0, %v3837_v15 }
  0x5c   : >> { %2916 = vmatmul.msk.f32.gmra.mxu0 %vm262_vm0, %v228_v16 }
  0x5f   : >> { %2941 = vmatmul.msk.f32.vlgmr.msrb.gmra.mxu1 %vm262_vm0, %v181_v17  ;;  %2981 = vmatmul.msk.f32.vlgmr.msrb.gmra.mxu2 %vm262_vm0, %v681_v18  ;;  %v4008_v18 = vld [vmem:[%s3598_s14 + $0x62] sm:$0xff] }
  0x61   : >> { %3055 = vmatmul.msk.f32.vlgmr.msrb.gmra.mxu3 %vm262_vm0, %v3015_v19 }
  0x64   : >> { %3127 = vmatmul.msk.f32.vlgmr.msrb.gmra.mxu0 %vm262_vm0, %v225_v60  ;;  %v3195_v60 = vld [vmem:[%s4889_s1 + $0x160] sm:$0xff] }
  0x65   : >> { %1678 = vmatpush.msra.mxu1 %v3195_v60  ;;  %v3412_v60 = vld [vmem:[%s4889_s1 + $0x218] sm:$0xff] }
  0x67   : >> { %2942 = vmatmul.msk.f32.gmra.mxu1 %vm262_vm0, %v182_v25  ;;  %2982 = vmatmul.msk.f32.gmra.mxu2 %vm262_vm0, %v682_v26  ;;  %v4030_v25 = vld [vmem:[%s3598_s14 + $0x6a] sm:$0xff] }
  0x68   : >> { %v4035_v26 = vld [vmem:[%s3598_s14 + $0x90] sm:$0xff]  ;;  %1679 = vmatpush.msra.mxu1 %v3194_v38 }
  0x69   : >> { %3056 = vmatmul.msk.f32.gmra.mxu3 %vm262_vm0, %v3016_v28  ;;  %4917 = vst [vmem:[#allocation8_spill] sm:$0xff] %v4035_v26  ;;  %v4113_v38 = vld [vmem:[%s3598_s14 + $0xb0] sm:$0xff] }
  0x6c   : >> { %3128 = vmatmul.msk.f32.gmra.mxu0 %vm262_vm0, %v226_v4  ;;  %v3988_v4 = vld [vmem:[%s3598_s14 + $0x80] sm:$0xff] }
  0x6f   : >> { %2943 = vmatmul.msk.f32.gmra.mxu1 %vm262_vm0, %v183_v30  ;;  %2983 = vmatmul.msk.f32.gmra.mxu2 %vm262_vm0, %v683_v31 }
  0x71   : >> { %3057 = vmatmul.msk.f32.gmra.mxu3 %vm262_vm0, %v3017_v32 }
  0x74   : >> { %3129 = vmatmul.msk.f32.gmra.mxu0 %vm262_vm0, %v227_v11  ;;  %v3413_v11 = vld [vmem:[%s4889_s1 + $0x220] sm:$0xff] }
  0x75   : >> { %2527 = vmatpush.msra.mxu0 %v3413_v11 }
  0x77   : >> { %2944 = vmatmul.msk.f32.gmra.mxu1 %vm262_vm0, %v184_v33  ;;  %2984 = vmatmul.msk.f32.gmra.mxu2 %vm262_vm0, %v684_v34  ;;  %v3268_v33 = vld [vmem:[%s4889_s1 + $0x198] sm:$0xff] }
  0x78   : >> { %2528 = vmatpush.msra.mxu0 %v3412_v60 }
  0x79   : >> { %3058 = vmatmul.msk.f32.gmra.mxu3 %vm262_vm0, %v3018_v35 }
  0x7c   : >> { %3130 = vmatmul.msk.f32.gmra.mxu0 %vm262_vm0, %v228_v16 }
  0x7f   : >> { %2945 = vmatmul.msk.f32.gmra.mxu1 %vm262_vm0, %v3015_v19  ;;  %2985 = vmatmul.msk.f32.gmra.mxu2 %vm262_vm0, %v3887_v36  ;;  %v4013_v19 = vld [vmem:[%s3598_s14 + $0x88] sm:$0xff] }
  0x80   : >> { %4915 = vst [vmem:[#allocation6_spill] sm:$0xff] %v4013_v19 }
  0x81   : >> { %3059 = vmatmul.msk.f32.gmra.mxu3 %vm262_vm0, %v3891_v37 }
  0x84   : >> { %3131 = vmatmul.msk.f32.gmra.mxu0 %vm262_vm0, %v3604_v9  ;;  %v3929_v9 = vld [vmem:[%s3598_s14 + $0x60] sm:$0xff] }
  0x87   : >> { %2946 = vmatmul.msk.f32.gmra.mxu1 %vm262_vm0, %v3016_v28  ;;  %2986 = vmatmul.msk.f32.gmra.mxu2 %vm262_vm0, %v3908_v44 }
  0x89   : >> { %3060 = vmatmul.msk.f32.gmra.mxu3 %vm262_vm0, %v3913_v45 }
  0x8c   : >> { %3132 = vmatmul.msk.f32.gmra.mxu0 %vm262_vm0, %v3650_v23 }
  0x8f   : >> { %2947 = vmatmul.msk.f32.gmra.mxu1 %vm262_vm0, %v3017_v32  ;;  %2987 = vmatmul.msk.f32.gmra.mxu2 %vm262_vm0, %v3924_v47  ;;  %v4057_v32 = vld [vmem:[%s3598_s14 + $0xa0] sm:$0xff] }
  0x90   : >> { %4919 = vst [vmem:[#allocation10_spill] sm:$0xff] %v4057_v32 }
  0x91   : >> { %3061 = vmatmul.msk.f32.gmra.mxu3 %vm262_vm0, %v3929_v9 }
  0x94   : >> { %3133 = vmatmul.msk.f32.gmra.mxu0 %vm262_vm0, %v3703_v39  ;;  %v3269_v39 = vld [vmem:[%s4889_s1 + $0x1a0] sm:$0xff] }
  0x95   : >> { %1963 = vmatpush.msra.mxu2 %v3269_v39  ;;  %v4088_v39 = vld [vmem:[%s3598_s14 + $0xa8] sm:$0xff] }
  0x97   : >> { %2948 = vmatmul.msk.f32.gmra.mxu1 %vm262_vm0, %v3018_v35  ;;  %2988 = vmatmul.msk.f32.gmra.mxu2 %vm262_vm0, %v3937_v51 }
  0x98   : >> { %1964 = vmatpush.msra.mxu2 %v3268_v33 }
  0x99   : >> { %3062 = vmatmul.msk.f32.gmra.mxu3 %vm262_vm0, %v3942_v52 }
  0x9c   : >> { %v3949_v23 = vpop.f32.mrf.mxu1  ;;  %3134 = vmatmul.msk.f32.gmra.mxu0 %vm262_vm0, %v3735_v48  ;;  %v3341_v48 = vld [vmem:[%s4889_s1 + $0x1e0] sm:$0xff] }
  0x9d   : >> { %2245 = vmatpush.msra.mxu3 %v3341_v48 }
  0x9f   : >> { %2949 = vmatmul.msk.f32.gmra.mxu1 %vm262_vm0, %v3891_v37  ;;  %2989 = vmatmul.msk.f32.gmra.mxu2 %vm262_vm0, %v3952_v53 }
  0xa1   : >> { %3063 = vmatmul.msk.f32.gmra.mxu3 %vm262_vm0, %v3957_v54  ;;  %v3968_v55 = vpop.f32.mrf.mxu0 }
  0xa2   : >> { %v3973_v59 = vpop.f32.mrf.mxu2 }
  0xa4   : >> { %v3978_v61 = vpop.f32.mrf.mxu1  ;;  %v3980_v62 = vpop.f32.mrf.mxu3  ;;  %3135 = vmatmul.msk.f32.gmra.mxu0 %vm262_vm0, %v3764_v56 }
  0xa5   : >> { %4913 = vst [vmem:[#allocation4_spill] sm:$0xff] %v3980_v62 }
  0xa7   : >> { %2950 = vmatmul.msk.f32.gmra.mxu1 %vm262_vm0, %v3913_v45  ;;  %2990 = vmatmul.msk.f32.gmra.mxu2 %vm262_vm0, %v3983_v63 }
  0xa9   : >> { %3064 = vmatmul.msk.f32.gmra.mxu3 %vm262_vm0, %v3988_v4  ;;  %v3996_v5 = vpop.f32.mrf.mxu0 }
  0xaa   : >> { %v4001_v16 = vpop.f32.mrf.mxu2 }
  0xac   : >> { %v4003_v56 = vpop.f32.mrf.mxu1  ;;  %v4005_v17 = vpop.f32.mrf.mxu3  ;;  %3136 = vmatmul.msk.f32.gmra.mxu0 %vm262_vm0, %v3793_v1 }
  0xad   : >> { %4914 = vst [vmem:[#allocation5_spill] sm:$0xff] %v4005_v17 }
  0xaf   : >> { %2951 = vmatmul.msk.f32.gmra.mxu1 %vm262_vm0, %v3929_v9  ;;  %2991 = vmatmul.msk.f32.gmra.mxu2 %vm262_vm0, %v4008_v18 }
  0xb1   : >> { %3065 = vmatmul.msk.f32.gmra.mxu3 %vm262_vm0, %v4013_v19  ;;  %v4021_v20 = vpop.f32.mrf.mxu0 }
  0xb2   : >> { %v4023_v21 = vpop.f32.mrf.mxu2 }
  0xb4   : >> { %v4025_v22 = vpop.f32.mrf.mxu1  ;;  %v4027_v1 = vpop.f32.mrf.mxu3  ;;  %3137 = vmatmul.msk.f32.gmra.mxu0 %vm262_vm0, %v3813_v6  ;;  %v4052_v6 = vld [vmem:[%s3598_s14 + $0x7a] sm:$0xff] }
  0xb5   : >> { %4916 = vst [vmem:[#allocation7_spill] sm:$0xff] %v4027_v1 }
  0xb7   : >> { %2952 = vmatmul.msk.f32.gmra.mxu1 %vm262_vm0, %v3942_v52  ;;  %2992 = vmatmul.msk.f32.gmra.mxu2 %vm262_vm0, %v4030_v25 }
  0xb9   : >> { %3066 = vmatmul.msk.f32.gmra.mxu3 %vm262_vm0, %v4035_v26  ;;  %v4043_v28 = vpop.f32.mrf.mxu0 }
  0xba   : >> { %v4045_v29 = vpop.f32.mrf.mxu2 }
  0xbc   : >> { %v4047_v30 = vpop.f32.mrf.mxu1  ;;  %v4049_v31 = vpop.f32.mrf.mxu3  ;;  %3138 = vmatmul.msk.f32.gmra.mxu0 %vm262_vm0, %v3830_v13  ;;  %v3340_v13 = vld [vmem:[%s4889_s1 + $0x1d8] sm:$0xff] }
  0xbd   : >> { %4918 = vst [vmem:[#allocation9_spill] sm:$0xff] %v4049_v31  ;;  %2246 = vmatpush.msra.mxu3 %v3340_v13  ;;  %v4108_v13 = vld [vmem:[%s3598_s14 + $0x8a] sm:$0xff]  ;;  %v4135_v31 = vld [vmem:[%s3598_s14 + $0xb8] sm:$0xff] }
  0xbe   : >> { %4923 = vst [vmem:[#allocation14_spill] sm:$0xff] %v4108_v13 }
  0xbf   : >> { %2953 = vmatmul.msk.f32.gmra.mxu1 %vm262_vm0, %v3957_v54  ;;  %2993 = vmatmul.msk.f32.gmra.mxu2 %vm262_vm0, %v4052_v6 }
  0xc1   : >> { %3067 = vmatmul.msk.f32.gmra.mxu3 %vm262_vm0, %v4057_v32  ;;  %v4068_v34 = vpop.f32.mrf.mxu0 }
  0xc2   : >> { %v4073_v35 = vpop.f32.mrf.mxu2 }
  0xc4   : >> { %v4078_v41 = vpop.f32.mrf.mxu1  ;;  %v4080_v43 = vpop.f32.mrf.mxu3  ;;  %3139 = vmatmul.msk.f32.gmra.mxu0 %vm262_vm0, %v3607_v10 }
  0xc5   : >> { %4920 = vst [vmem:[#allocation11_spill] sm:$0xff] %v4080_v43  ;;  %v4130_v43 = vld [vmem:[%s3598_s14 + $0x92] sm:$0xff] }
  0xc6   : >> { %4926 = vst [vmem:[#allocation17_spill] sm:$0xff] %v4130_v43 }
  0xc7   : >> { %2954 = vmatmul.msk.f32.gmra.mxu1 %vm262_vm0, %v3988_v4  ;;  %2994 = vmatmul.msk.f32.gmra.mxu2 %vm262_vm0, %v4083_v46 }
  0xc9   : >> { %3068 = vmatmul.msk.f32.gmra.mxu3 %vm262_vm0, %v4088_v39  ;;  %v4096_v48 = vpop.f32.mrf.mxu0 }
  0xca   : >> { %v4101_v10 = vpop.f32.mrf.mxu2 }
  0xcc   : >> { %v4103_v11 = vpop.f32.mrf.mxu1  ;;  %v4105_v33 = vpop.f32.mrf.mxu3  ;;  %3140 = vmatmul.msk.f32.gmra.mxu0 %vm262_vm0, %v3653_v24 }
  0xcd   : >> { %4922 = vst [vmem:[#allocation13_spill] sm:$0xff] %v4105_v33 }
  0xcf   : >> { %2955 = vmatmul.msk.f32.gmra.mxu1 %vm262_vm0, %v4013_v19  ;;  %2995 = vmatmul.msk.f32.gmra.mxu2 %vm262_vm0, %v4108_v13  ;;  %v4150_v13 = vld [vmem:[%s3598_s14 + $0xa2] sm:$0xff] }
  0xd0   : >> { %4929 = vst [vmem:[#allocation20_spill] sm:$0xff] %v4150_v13 }
  0xd1   : >> { %3069 = vmatmul.msk.f32.gmra.mxu3 %vm262_vm0, %v4113_v38  ;;  %v4121_v60 = vpop.f32.mrf.mxu0 }
  0xd2   : >> { %v4123_v0 = vpop.f32.mrf.mxu2 }
  0xd3   : >> { %4924 = vst [vmem:[#allocation15_spill] sm:$0xff] %v4123_v0 }
  0xd4   : >> { %v4125_v33 = vpop.f32.mrf.mxu1  ;;  %v4127_v24 = vpop.f32.mrf.mxu3  ;;  %3141 = vmatmul.msk.f32.gmra.mxu0 %vm262_vm0, %v3706_v40  ;;  %v4155_v40 = vld [vmem:[%s3598_s14 + $0xc8] sm:$0xff] }
  0xd5   : >> { %4925 = vst [vmem:[#allocation16_spill] sm:$0xff] %v4127_v24 }
  0xd7   : >> { %2956 = vmatmul.msk.f32.gmra.mxu1 %vm262_vm0, %v4035_v26  ;;  %2996 = vmatmul.msk.f32.gmra.mxu2 %vm262_vm0, %v4130_v43  ;;  %v3267_v43 = vld [vmem:[%s4889_s1 + $0x190] sm:$0xff] }
  0xd8   : >> { %1965 = vmatpush.msra.mxu2 %v3267_v43  ;;  %v4174_v43 = vld [vmem:[%s3598_s14 + $0xaa] sm:$0xff] }
  0xd9   : >> { %3070 = vmatmul.msk.f32.gmra.mxu3 %vm262_vm0, %v4135_v31  ;;  %v4143_v1 = vpop.f32.mrf.mxu0 }
  0xda   : >> { %v4145_v17 = vpop.f32.mrf.mxu2 }
  0xdb   : >> { %4927 = vst [vmem:[#allocation18_spill] sm:$0xff] %v4145_v17  ;;  %v3339_v17 = vld [vmem:[%s4889_s1 + $0x1d0] sm:$0xff] }
  0xdc   : >> { %v4147_v24 = vpop.f32.mrf.mxu3  ;;  %v585_v62 = vpop.f32.mrf.mxu1  ;;  %3142 = vmatmul.msk.f32.gmra.mxu0 %vm262_vm0, %v3738_v49  ;;  %2247 = vmatpush.msra.mxu3 %v3339_v17 }
  0xdd   : >> { %4928 = vst [vmem:[#allocation19_spill] sm:$0xff] %v4147_v24  ;;  %v586_v24 = vadd.f32 %v585_v62, %v3968_v55  ;;  %v4179_v62 = vld [vmem:[%s3598_s14 + $0xd0] sm:$0xff] }
  0xdf   : >> { %2957 = vmatmul.msk.f32.gmra.mxu1 %vm262_vm0, %v4057_v32  ;;  %2997 = vmatmul.msk.f32.gmra.mxu2 %vm262_vm0, %v4150_v13  ;;  %v3193_v13 = vld [vmem:[%s4889_s1 + $0x150] sm:$0xff] }
  0xe0   : >> { %1680 = vmatpush.msra.mxu1 %v3193_v13 }
  0xe1   : >> { %3071 = vmatmul.msk.f32.gmra.mxu3 %vm262_vm0, %v4155_v40  ;;  %v1402_v49 = vpop.f32.mrf.mxu0 }
  0xe2   : >> { %v835_v32 = vpop.f32.mrf.mxu2 }
  0xe3   : >> { %v931_v26 = vadd.f32 %v835_v32, %v586_v24 }
  0xe4   : >> { %v588_v0 = vpop.f32.mrf.mxu1  ;;  %v1120_v19 = vpop.f32.mrf.mxu3  ;;  %3143 = vmatmul.msk.f32.gmra.mxu0 %vm262_vm0, %v3767_v57 }
  0xe5   : >> { %v1216_v55 = vadd.f32 %v1120_v19, %v931_v26  ;;  %v589_v17 = vadd.f32 %v588_v0, %v3996_v5  ;;  %v3411_v19 = vld [vmem:[%s4889_s1 + $0x210] sm:$0xff]  ;;  %v4199_v5 = vld [vmem:[%s3598_s14 + $0xd8] sm:$0xff] }
  0xe6   : >> { %2529 = vmatpush.msra.mxu0 %v3411_v19 }
  0xe7   : >> { %v4181_v46 = vadd.f32 %v1402_v49, %v1216_v55  ;;  %2958 = vmatmul.msk.f32.gmra.mxu1 %vm262_vm0, %v4088_v39  ;;  %2998 = vmatmul.msk.f32.gmra.mxu2 %vm262_vm0, %v4174_v43  ;;  %v4194_v49 = vld [vmem:[%s3598_s14 + $0xb2] sm:$0xff] }
  0xe9   : >> { %4930 = vst [vmem:[#allocation21_spill] sm:$0xff] %v4181_v46  ;;  %3072 = vmatmul.msk.f32.gmra.mxu3 %vm262_vm0, %v4179_v62  ;;  %v1405_v57 = vpop.f32.mrf.mxu0 }
  0xea   : >> { %v838_v26 = vpop.f32.mrf.mxu2 }
  0xeb   : >> { %v932_v32 = vadd.f32 %v838_v26, %v589_v17 }
  0xec   : >> { %v591_v13 = vpop.f32.mrf.mxu1  ;;  %v1123_v24 = vpop.f32.mrf.mxu3  ;;  %3144 = vmatmul.msk.f32.gmra.mxu0 %vm262_vm0, %v3796_v2 }
  0xed   : >> { %v1217_v0 = vadd.f32 %v1123_v24, %v932_v32  ;;  %v592_v17 = vadd.f32 %v591_v13, %v4021_v20  ;;  %v4211_v24 = vld [vmem:[%s3598_s14 + $0xba] sm:$0xff] }
  0xef   : >> { %v4201_v55 = vadd.f32 %v1405_v57, %v1217_v0  ;;  %2959 = vmatmul.msk.f32.gmra.mxu1 %vm262_vm0, %v4113_v38  ;;  %2999 = vmatmul.msk.f32.gmra.mxu2 %vm262_vm0, %v4194_v49  ;;  %v4216_v0 = vld [vmem:[%s3598_s14 + $0xe0] sm:$0xff] }
  0xf1   : >> { %4931 = vst [vmem:[#allocation22_spill] sm:$0xff] %v4201_v55  ;;  %3073 = vmatmul.msk.f32.gmra.mxu3 %vm262_vm0, %v4199_v5  ;;  %v1408_v19 = vpop.f32.mrf.mxu0 }
  0xf2   : >> { %v841_v26 = vpop.f32.mrf.mxu2 }
  0xf3   : >> { %v933_v2 = vadd.f32 %v841_v26, %v592_v17 }
  0xf4   : >> { %v594_v46 = vpop.f32.mrf.mxu1  ;;  %v1126_v32 = vpop.f32.mrf.mxu3  ;;  %3145 = vmatmul.msk.f32.gmra.mxu0 %vm262_vm0, %v3816_v7 }
  0xf5   : >> { %v1218_v57 = vadd.f32 %v1126_v32, %v933_v2  ;;  %v595_v20 = vadd.f32 %v594_v46, %v4043_v28  ;;  %v4228_v32 = vld [vmem:[%s3598_s14 + $0xca] sm:$0xff] }
  0xf6   : >> { %v3266_v28 = vld [vmem:[%s4889_s1 + $0x188] sm:$0xff] }
  0xf7   : >> { %v4218_v55 = vadd.f32 %v1408_v19, %v1218_v57  ;;  %2960 = vmatmul.msk.f32.gmra.mxu1 %vm262_vm0, %v4135_v31  ;;  %3000 = vmatmul.msk.f32.gmra.mxu2 %vm262_vm0, %v4211_v24  ;;  %v4233_v57 = vld [vmem:[%s3598_s14 + $0xf0] sm:$0xff] }
  0xf8   : >> { %1966 = vmatpush.msra.mxu2 %v3266_v28  ;;  %v4254_v28 = vld [vmem:[%s3598_s14 + $0xd2] sm:$0xff] }
  0xf9   : >> { %4932 = vst [vmem:[#allocation23_spill] sm:$0xff] %v4218_v55  ;;  %3074 = vmatmul.msk.f32.gmra.mxu3 %vm262_vm0, %v4216_v0  ;;  %v1411_v13 = vpop.f32.mrf.mxu0 }
  0xfa   : >> { %v844_v17 = vpop.f32.mrf.mxu2 }
  0xfb   : >> { %v934_v7 = vadd.f32 %v844_v17, %v595_v20  ;;  %v3338_v20 = vld [vmem:[%s4889_s1 + $0x1c8] sm:$0xff] }
  0xfc   : >> { %v597_v26 = vpop.f32.mrf.mxu1  ;;  %v1129_v2 = vpop.f32.mrf.mxu3  ;;  %3146 = vmatmul.msk.f32.gmra.mxu0 %vm262_vm0, %v3833_v14  ;;  %2248 = vmatpush.msra.mxu3 %v3338_v20  ;;  %v3410_v20 = vld [vmem:[%s4889_s1 + $0x208] sm:$0xff] }
  0xfd   : >> { %v1219_v19 = vadd.f32 %v1129_v2, %v934_v7  ;;  %v598_v14 = vadd.f32 %v597_v26, %v4068_v34  ;;  %v3192_v7 = vld [vmem:[%s4889_s1 + $0x148] sm:$0xff]  ;;  %v4259_v26 = vld [vmem:[%s3598_s14 + $0xf8] sm:$0xff]  ;;  %2530 = vmatpush.msra.mxu0 %v3410_v20 }
  0xfe   : >> { %1681 = vmatpush.msra.mxu1 %v3192_v7 }
  0xff   : >> { %v4235_v55 = vadd.f32 %v1411_v13, %v1219_v19  ;;  %2961 = vmatmul.msk.f32.gmra.mxu1 %vm262_vm0, %v4155_v40  ;;  %3001 = vmatmul.msk.f32.gmra.mxu2 %vm262_vm0, %v4228_v32 }
 0x101   : >> { %4933 = vst [vmem:[#allocation24_spill] sm:$0xff] %v4235_v55  ;;  %3075 = vmatmul.msk.f32.gmra.mxu3 %vm262_vm0, %v4233_v57  ;;  %v1414_v46 = vpop.f32.mrf.mxu0 }
 0x102   : >> { %v847_v13 = vpop.f32.mrf.mxu2 }
 0x103   : >> { %v935_v17 = vadd.f32 %v847_v13, %v598_v14 }
 0x104   : >> { %v600_v2 = vpop.f32.mrf.mxu1  ;;  %v1132_v19 = vpop.f32.mrf.mxu3  ;;  %3147 = vmatmul.msk.f32.gmra.mxu0 %vm262_vm0, %v3613_v12 }
 0x105   : >> { %v1220_v34 = vadd.f32 %v1132_v19, %v935_v17  ;;  %v601_v14 = vadd.f32 %v600_v2, %v4096_v48  ;;  %v4274_v19 = vld [vmem:[%s3598_s14 + $0xda] sm:$0xff] }
 0x106   : >> { %v4279_v2 = vld [vmem:[%s3598_s14 + $0x100] sm:$0xff] }
 0x107   : >> { %v4261_v55 = vadd.f32 %v1414_v46, %v1220_v34  ;;  %2962 = vmatmul.msk.f32.gmra.mxu1 %vm262_vm0, %v4179_v62  ;;  %3002 = vmatmul.msk.f32.gmra.mxu2 %vm262_vm0, %v4254_v28 }
 0x109   : >> { %4934 = vst [vmem:[#allocation25_spill] sm:$0xff] %v4261_v55  ;;  %3076 = vmatmul.msk.f32.gmra.mxu3 %vm262_vm0, %v4259_v26  ;;  %v1417_v12 = vpop.f32.mrf.mxu0 }
 0x10a   : >> { %v850_v13 = vpop.f32.mrf.mxu2 }
 0x10b   : >> { %v936_v46 = vadd.f32 %v850_v13, %v601_v14 }
 0x10c   : >> { %v603_v17 = vpop.f32.mrf.mxu1  ;;  %v1135_v7 = vpop.f32.mrf.mxu3  ;;  %3148 = vmatmul.msk.f32.gmra.mxu0 %vm262_vm0, %v3663_v27 }
 0x10d   : >> { %v1221_v48 = vadd.f32 %v1135_v7, %v936_v46  ;;  %v604_v14 = vadd.f32 %v603_v17, %v4121_v60  ;;  %v4291_v7 = vld [vmem:[%s3598_s14 + $0xe2] sm:$0xff] }
 0x10f   : >> { %v4281_v34 = vadd.f32 %v1417_v12, %v1221_v48  ;;  %2963 = vmatmul.msk.f32.gmra.mxu1 %vm262_vm0, %v4199_v5  ;;  %3003 = vmatmul.msk.f32.gmra.mxu2 %vm262_vm0, %v4274_v19  ;;  %v4296_v48 = vld [vmem:[%s3598_s14 + $0x108] sm:$0xff] }
 0x111   : >> { %4935 = vst [vmem:[#allocation26_spill] sm:$0xff] %v4281_v34  ;;  %3077 = vmatmul.msk.f32.gmra.mxu3 %vm262_vm0, %v4279_v2  ;;  %v1420_v20 = vpop.f32.mrf.mxu0 }
 0x112   : >> { %v853_v13 = vpop.f32.mrf.mxu2 }
 0x113   : >> { %v937_v27 = vadd.f32 %v853_v13, %v604_v14 }
 0x114   : >> { %v606_v55 = vpop.f32.mrf.mxu1  ;;  %v1138_v46 = vpop.f32.mrf.mxu3  ;;  %3149 = vmatmul.msk.f32.gmra.mxu0 %vm262_vm0, %v3713_v42 }
 0x115   : >> { %v1222_v12 = vadd.f32 %v1138_v46, %v937_v27  ;;  %v607_v60 = vadd.f32 %v606_v55, %v4143_v1  ;;  %v4308_v46 = vld [vmem:[%s3598_s14 + $0xf2] sm:$0xff]  ;;  %v3265_v1 = vld [vmem:[%s4889_s1 + $0x180] sm:$0xff] }
 0x116   : >> { %1967 = vmatpush.msra.mxu2 %v3265_v1  ;;  %v4334_v1 = vld [vmem:[%s3598_s14 + $0xfa] sm:$0xff] }
 0x117   : >> { %v4298_v34 = vadd.f32 %v1420_v20, %v1222_v12  ;;  %2964 = vmatmul.msk.f32.gmra.mxu1 %vm262_vm0, %v4216_v0  ;;  %3004 = vmatmul.msk.f32.gmra.mxu2 %vm262_vm0, %v4291_v7  ;;  %v4313_v12 = vld [vmem:[%s3598_s14 + $0x118] sm:$0xff] }
 0x119   : >> { %4936 = vst [vmem:[#allocation27_spill] sm:$0xff] %v4298_v34  ;;  %3078 = vmatmul.msk.f32.gmra.mxu3 %vm262_vm0, %v4296_v48  ;;  %v1423_v17 = vpop.f32.mrf.mxu0 }
 0x11a   : >> { %v856_v14 = vpop.f32.mrf.mxu2 }
 0x11b   : >> { %v938_v42 = vadd.f32 %v856_v14, %v607_v60  ;;  %v3337_v60 = vld [vmem:[%s4889_s1 + $0x1c0] sm:$0xff] }
 0x11c   : >> { %v609_v13 = vpop.f32.mrf.mxu1  ;;  %v1141_v27 = vpop.f32.mrf.mxu3  ;;  %3150 = vmatmul.msk.f32.gmra.mxu0 %vm262_vm0, %v3742_v50  ;;  %2249 = vmatpush.msra.mxu3 %v3337_v60  ;;  %v3409_v60 = vld [vmem:[%s4889_s1 + $0x200] sm:$0xff] }
 0x11d   : >> { %v1223_v20 = vadd.f32 %v1141_v27, %v938_v42  ;;  %v610_v50 = vadd.f32 %v609_v13, %v3949_v23  ;;  %v3191_v42 = vld [vmem:[%s4889_s1 + $0x140] sm:$0xff]  ;;  %2531 = vmatpush.msra.mxu0 %v3409_v60 }
 0x11e   : >> { %1682 = vmatpush.msra.mxu1 %v3191_v42  ;;  %v4339_v13 = vld [vmem:[%s3598_s14 + $0x120] sm:$0xff] }
 0x11f   : >> { %v4315_v34 = vadd.f32 %v1423_v17, %v1223_v20  ;;  %2965 = vmatmul.msk.f32.gmra.mxu1 %vm262_vm0, %v4233_v57  ;;  %3005 = vmatmul.msk.f32.gmra.mxu2 %vm262_vm0, %v4308_v46 }
 0x121   : >> { %4937 = vst [vmem:[#allocation28_spill] sm:$0xff] %v4315_v34  ;;  %3079 = vmatmul.msk.f32.gmra.mxu3 %vm262_vm0, %v4313_v12  ;;  %v1426_v55 = vpop.f32.mrf.mxu0 }
 0x122   : >> { %v859_v17 = vpop.f32.mrf.mxu2 }
 0x123   : >> { %v939_v14 = vadd.f32 %v859_v17, %v610_v50 }
 0x124   : >> { %v612_v27 = vpop.f32.mrf.mxu1  ;;  %v1144_v20 = vpop.f32.mrf.mxu3  ;;  %3151 = vmatmul.msk.f32.gmra.mxu0 %vm262_vm0, %v3771_v58 }
 0x125   : >> { %v1224_v23 = vadd.f32 %v1144_v20, %v939_v14  ;;  %v613_v50 = vadd.f32 %v612_v27, %v3978_v61  ;;  %v4354_v20 = vld [vmem:[%s3598_s14 + $0x102] sm:$0xff] }
 0x126   : >> { %v4359_v27 = vld [vmem:[%s3598_s14 + $0x128] sm:$0xff] }
 0x127   : >> { %v4341_v34 = vadd.f32 %v1426_v55, %v1224_v23  ;;  %2966 = vmatmul.msk.f32.gmra.mxu1 %vm262_vm0, %v4259_v26  ;;  %3006 = vmatmul.msk.f32.gmra.mxu2 %vm262_vm0, %v4334_v1 }
 0x129   : >> { %4938 = vst [vmem:[#allocation29_spill] sm:$0xff] %v4341_v34  ;;  %3080 = vmatmul.msk.f32.gmra.mxu3 %vm262_vm0, %v4339_v13  ;;  %v1429_v58 = vpop.f32.mrf.mxu0 }
 0x12a   : >> { %v862_v17 = vpop.f32.mrf.mxu2 }
 0x12b   : >> { %v940_v55 = vadd.f32 %v862_v17, %v613_v50 }
 0x12c   : >> { %v615_v14 = vpop.f32.mrf.mxu1  ;;  %v1147_v42 = vpop.f32.mrf.mxu3  ;;  %3152 = vmatmul.msk.f32.gmra.mxu0 %vm262_vm0, %v3800_v3 }
 0x12d   : >> { %v1225_v61 = vadd.f32 %v1147_v42, %v940_v55  ;;  %v616_v50 = vadd.f32 %v615_v14, %v4003_v56  ;;  %v4371_v42 = vld [vmem:[%s3598_s14 + $0x10a] sm:$0xff] }
 0x12f   : >> { %v4361_v23 = vadd.f32 %v1429_v58, %v1225_v61  ;;  %2967 = vmatmul.msk.f32.gmra.mxu1 %vm262_vm0, %v4279_v2  ;;  %3007 = vmatmul.msk.f32.gmra.mxu2 %vm262_vm0, %v4354_v20  ;;  %v4376_v61 = vld [vmem:[%s3598_s14 + $0x130] sm:$0xff] }
 0x131   : >> { %4939 = vst [vmem:[#allocation30_spill] sm:$0xff] %v4361_v23  ;;  %3081 = vmatmul.msk.f32.gmra.mxu3 %vm262_vm0, %v4359_v27  ;;  %v1432_v60 = vpop.f32.mrf.mxu0 }
 0x132   : >> { %v865_v17 = vpop.f32.mrf.mxu2 }
 0x133   : >> { %v941_v3 = vadd.f32 %v865_v17, %v616_v50 }
 0x134   : >> { %v618_v34 = vpop.f32.mrf.mxu1  ;;  %v1150_v55 = vpop.f32.mrf.mxu3  ;;  %3153 = vmatmul.msk.f32.gmra.mxu0 %vm262_vm0, %v3820_v8 }
 0x135   : >> { %v1226_v58 = vadd.f32 %v1150_v55, %v941_v3  ;;  %v619_v56 = vadd.f32 %v618_v34, %v4025_v22 }
 0x137   : >> { %v4378_v23 = vadd.f32 %v1432_v60, %v1226_v58  ;;  %2968 = vmatmul.msk.f32.gmra.mxu1 %vm262_vm0, %v4296_v48  ;;  %3008 = vmatmul.msk.f32.gmra.mxu2 %vm262_vm0, %v4371_v42  ;;  %v4388_v60 = vld [vmem:[%s3598_s14 + $0x11a] sm:$0xff] }
 0x138   : >> { %v4393_v58 = vld [vmem:[%s3598_s14 + $0x140] sm:$0xff] }
 0x139   : >> { %4940 = vst [vmem:[#allocation31_spill] sm:$0xff] %v4378_v23  ;;  %3082 = vmatmul.msk.f32.gmra.mxu3 %vm262_vm0, %v4376_v61  ;;  %v1435_v14 = vpop.f32.mrf.mxu0  ;;  %v4425_v23 = vld [vmem:[%s3598_s14 + $0x149] sm:$0xff] }
 0x13a   : >> { %v868_v8 = vpop.f32.mrf.mxu2  ;;  %4941 = vst [vmem:[#allocation32_spill] sm:$0xff] %v4393_v58 }
 0x13b   : >> { %v942_v50 = vadd.f32 %v868_v8, %v619_v56  ;;  %4946 = vst [vmem:[#allocation37_spill] sm:$0xff] %v4425_v23 }
 0x13c   : >> { %v621_v17 = vpop.f32.mrf.mxu1  ;;  %v1153_v3 = vpop.f32.mrf.mxu3  ;;  %3154 = vmatmul.msk.f32.gmra.mxu0 %vm262_vm0, %v3837_v15  ;;  %v4405_v15 = vld [vmem:[%s3598_s14 + $0x141] sm:$0xff] }
 0x13d   : >> { %v1227_v55 = vadd.f32 %v1153_v3, %v942_v50  ;;  %v622_v34 = vadd.f32 %v621_v17, %v4047_v30  ;;  %4943 = vst [vmem:[#allocation34_spill] sm:$0xff] %v4405_v15  ;;  %v4413_v30 = vld [vmem:[%s3598_s14 + $0x148] sm:$0xff] }
 0x13e   : >> { %4944 = vst [vmem:[#allocation35_spill] sm:$0xff] %v4413_v30 }
 0x13f   : >> { %v4395_v22 = vadd.f32 %v1435_v14, %v1227_v55  ;;  %2969 = vmatmul.msk.f32.gmra.mxu1 %vm262_vm0, %v4313_v12  ;;  %3009 = vmatmul.msk.f32.gmra.mxu2 %vm262_vm0, %v4388_v60  ;;  %v4408_v55 = vld [vmem:[%s3598_s14 + $0x122] sm:$0xff] }
 0x141   : >> { %4942 = vst [vmem:[#allocation33_spill] sm:$0xff] %v4395_v22  ;;  %3083 = vmatmul.msk.f32.gmra.mxu3 %vm262_vm0, %v4393_v58  ;;  %v1438_v56 = vpop.f32.mrf.mxu0  ;;  %v4453_v58 = vld [vmem:[%s3598_s14 + $0x158] sm:$0xff] }
 0x142   : >> { %v871_v8 = vpop.f32.mrf.mxu2  ;;  %4951 = vst [vmem:[#allocation42_spill] sm:$0xff] %v4453_v58 }
 0x143   : >> { %v943_v50 = vadd.f32 %v871_v8, %v622_v34 }
 0x144   : >> { %v624_v3 = vpop.f32.mrf.mxu1  ;;  %v1156_v14 = vpop.f32.mrf.mxu3  ;;  %3155 = vmatmul.msk.f32.gmra.mxu0 %vm262_vm0, %v4405_v15 }
 0x145   : >> { %v1228_v22 = vadd.f32 %v1156_v14, %v943_v50  ;;  %v625_v34 = vadd.f32 %v624_v3, %v4078_v41  ;;  %v4433_v41 = vld [vmem:[%s3598_s14 + $0x150] sm:$0xff] }
 0x146   : >> { %4947 = vst [vmem:[#allocation38_spill] sm:$0xff] %v4433_v41 }
 0x147   : >> { %v4415_v17 = vadd.f32 %v1438_v56, %v1228_v22  ;;  %2970 = vmatmul.msk.f32.gmra.mxu1 %vm262_vm0, %v4339_v13  ;;  %3010 = vmatmul.msk.f32.gmra.mxu2 %vm262_vm0, %v4408_v55  ;;  %v4428_v56 = vld [vmem:[%s3598_s14 + $0x12a] sm:$0xff] }
 0x149   : >> { %4945 = vst [vmem:[#allocation36_spill] sm:$0xff] %v4415_v17  ;;  %3084 = vmatmul.msk.f32.gmra.mxu3 %vm262_vm0, %v4413_v30  ;;  %v1441_v8 = vpop.f32.mrf.mxu0 }
 0x14a   : >> { %v874_v50 = vpop.f32.mrf.mxu2 }
 0x14b   : >> { %v944_v14 = vadd.f32 %v874_v50, %v625_v34 }
 0x14c   : >> { %v627_v15 = vpop.f32.mrf.mxu1  ;;  %v1159_v22 = vpop.f32.mrf.mxu3  ;;  %3156 = vmatmul.msk.f32.gmra.mxu0 %vm262_vm0, %v4425_v23  ;;  %v4445_v23 = vld [vmem:[%s3598_s14 + $0x151] sm:$0xff] }
 0x14d   : >> { %v1229_v17 = vadd.f32 %v1159_v22, %v944_v14  ;;  %v628_v34 = vadd.f32 %v627_v15, %v4103_v11  ;;  %4949 = vst [vmem:[#allocation40_spill] sm:$0xff] %v4445_v23 }
 0x14f   : >> { %v4435_v3 = vadd.f32 %v1441_v8, %v1229_v17  ;;  %2971 = vmatmul.msk.f32.gmra.mxu1 %vm262_vm0, %v4359_v27  ;;  %3011 = vmatmul.msk.f32.gmra.mxu2 %vm262_vm0, %v4428_v56  ;;  %v4448_v8 = vld [vmem:[%s3598_s14 + $0x132] sm:$0xff] }
 0x150   : >> { %4950 = vst [vmem:[#allocation41_spill] sm:$0xff] %v4448_v8 }
 0x151   : >> { %4948 = vst [vmem:[#allocation39_spill] sm:$0xff] %v4435_v3  ;;  %3085 = vmatmul.msk.f32.gmra.mxu3 %vm262_vm0, %v4433_v41  ;;  %v1444_v50 = vpop.f32.mrf.mxu0 }
 0x152   : >> { %v877_v14 = vpop.f32.mrf.mxu2 }
 0x153   : >> { %v945_v22 = vadd.f32 %v877_v14, %v628_v34  ;;  %v4465_v14 = vld [vmem:[%s3598_s14 + $0x159] sm:$0xff] }
 0x154   : >> { %v630_v30 = vpop.f32.mrf.mxu1  ;;  %v1162_v17 = vpop.f32.mrf.mxu3  ;;  %3157 = vmatmul.msk.f32.gmra.mxu0 %vm262_vm0, %v4445_v23 }
 0x155   : >> { %v1230_v3 = vadd.f32 %v1162_v17, %v945_v22  ;;  %v631_v15 = vadd.f32 %v630_v30, %v4125_v33 }
 0x157   : >> { %v4455_v11 = vadd.f32 %v1444_v50, %v1230_v3  ;;  %2972 = vmatmul.msk.f32.gmra.mxu1 %vm262_vm0, %v4376_v61  ;;  %3012 = vmatmul.msk.f32.gmra.mxu2 %vm262_vm0, %v4448_v8  ;;  %v3305_v50 = vld [vmem:[%s3598_s14 + $0x51] sm:$0xff] }
 0x159   : >> { %4952 = vst [vmem:[#allocation43_spill] sm:$0xff] %v4455_v11  ;;  %3086 = vmatmul.msk.f32.gmra.mxu3 %vm262_vm0, %v4453_v58  ;;  %v1447_v34 = vpop.f32.mrf.mxu0 }
 0x15a   : >> { %v880_v23 = vpop.f32.mrf.mxu2 }
 0x15b   : >> { %v946_v22 = vadd.f32 %v880_v23, %v631_v15 }
 0x15c   : >> { %v633_v17 = vpop.f32.mrf.mxu1  ;;  %v1165_v41 = vpop.f32.mrf.mxu3  ;;  %3158 = vmatmul.msk.f32.gmra.mxu0 %vm262_vm0, %v4465_v14 }
 0x15d   : >> { %v1231_v3 = vadd.f32 %v1165_v41, %v946_v22  ;;  %v634_v33 = vadd.f32 %v633_v17, %v3973_v59 }
 0x15f   : >> { %v4470_v11 = vadd.f32 %v1447_v34, %v1231_v3  ;;  %3199 = vmatmul.msk.f32.vlgmr.msra.gmra.mxu1 %vm262_vm0, %v3887_v36  ;;  %3273 = vmatmul.msk.f32.vlgmr.msra.gmra.mxu2 %vm262_vm0, %v3891_v37  ;;  %v3306_v34 = vld [vmem:[%s3598_s14 + $0x59] sm:$0xff] }
 0x161   : >> { %3345 = vmatmul.msk.f32.vlgmr.msra.gmra.mxu3 %vm262_vm0, %v3305_v50  ;;  %v1450_v23 = vpop.f32.mrf.mxu0 }
 0x162   : >> { %v883_v30 = vpop.f32.mrf.mxu2 }
 0x163   : >> { %v947_v15 = vadd.f32 %v883_v30, %v634_v33  ;;  %v3307_v33 = vld [vmem:[%s3598_s14 + $0x61] sm:$0xff] }
 0x164   : >> { %v636_v58 = vpop.f32.mrf.mxu1  ;;  %v1168_v8 = vpop.f32.mrf.mxu3  ;;  %3417 = vmatmul.msk.f32.vlgmr.msra.gmra.mxu0 %vm262_vm0, %v3952_v53 }
 0x165   : >> { %v1232_v41 = vadd.f32 %v1168_v8, %v947_v15  ;;  %v637_v36 = vadd.f32 %v636_v58, %v4001_v16 }
 0x167   : >> { %v4481_v22 = vadd.f32 %v1450_v23, %v1232_v41  ;;  %3200 = vmatmul.msk.f32.gmra.mxu1 %vm262_vm0, %v3908_v44  ;;  %3274 = vmatmul.msk.f32.gmra.mxu2 %vm262_vm0, %v3913_v45 }
 0x169   : >> { %3346 = vmatmul.msk.f32.gmra.mxu3 %vm262_vm0, %v3306_v34  ;;  %v1453_v37 = vpop.f32.mrf.mxu0  ;;  %v3308_v34 = vld [vmem:[%s3598_s14 + $0x69] sm:$0xff] }
 0x16a   : >> { %v886_v59 = vpop.f32.mrf.mxu2 }
 0x16b   : >> { %v948_v17 = vadd.f32 %v886_v59, %v637_v36 }
 0x16c   : >> { %v639_v3 = vpop.f32.mrf.mxu1  ;;  %v1171_v50 = vpop.f32.mrf.mxu3  ;;  %3418 = vmatmul.msk.f32.gmra.mxu0 %vm262_vm0, %v3983_v63 }
 0x16d   : >> { %v1233_v8 = vadd.f32 %v1171_v50, %v948_v17  ;;  %v640_v44 = vadd.f32 %v639_v3, %v4023_v21  ;;  %v3309_v50 = vld [vmem:[%s3598_s14 + $0x79] sm:$0xff] }
 0x16f   : >> { %v4492_v23 = vadd.f32 %v1453_v37, %v1233_v8  ;;  %3201 = vmatmul.msk.f32.gmra.mxu1 %vm262_vm0, %v3924_v47  ;;  %3275 = vmatmul.msk.f32.gmra.mxu2 %vm262_vm0, %v3929_v9 }
 0x171   : >> { %3347 = vmatmul.msk.f32.gmra.mxu3 %vm262_vm0, %v3307_v33  ;;  %v1456_v45 = vpop.f32.mrf.mxu0 }
 0x172   : >> { %v889_v16 = vpop.f32.mrf.mxu2 }
 0x173   : >> { %v949_v58 = vadd.f32 %v889_v16, %v640_v44 }
 0x174   : >> { %v642_v30 = vpop.f32.mrf.mxu1  ;;  %v1174_v15 = vpop.f32.mrf.mxu3  ;;  %3419 = vmatmul.msk.f32.gmra.mxu0 %vm262_vm0, %v4008_v18 }
 0x175   : >> { %v1234_v41 = vadd.f32 %v1174_v15, %v949_v58  ;;  %v643_v47 = vadd.f32 %v642_v30, %v4045_v29  ;;  %v3310_v58 = vld [vmem:[%s3598_s14 + $0x81] sm:$0xff] }
 0x177   : >> { %v4503_v36 = vadd.f32 %v1456_v45, %v1234_v41  ;;  %3202 = vmatmul.msk.f32.gmra.mxu1 %vm262_vm0, %v3937_v51  ;;  %3276 = vmatmul.msk.f32.gmra.mxu2 %vm262_vm0, %v3942_v52 }
 0x179   : >> { %3348 = vmatmul.msk.f32.gmra.mxu3 %vm262_vm0, %v3308_v34  ;;  %v1459_v9 = vpop.f32.mrf.mxu0 }
 0x17a   : >> { %v892_v21 = vpop.f32.mrf.mxu2 }
 0x17b   : >> { %v950_v37 = vadd.f32 %v892_v21, %v643_v47  ;;  %v4953_v47 = vld [vmem:[#allocation12_spill] sm:$0xff] }
 0x17c   : >> { %v645_v59 = vpop.f32.mrf.mxu1  ;;  %v1177_v17 = vpop.f32.mrf.mxu3  ;;  %3420 = vmatmul.msk.f32.gmra.mxu0 %vm262_vm0, %v4030_v25  ;;  %v3311_v21 = vld [vmem:[%s3598_s14 + $0x89] sm:$0xff] }
 0x17d   : >> { %v1235_v3 = vadd.f32 %v1177_v17, %v950_v37  ;;  %v646_v51 = vadd.f32 %v645_v59, %v4073_v35 }
 0x17f   : >> { %v4514_v8 = vadd.f32 %v1459_v9, %v1235_v3  ;;  %3203 = vmatmul.msk.f32.gmra.mxu1 %vm262_vm0, %v3952_v53  ;;  %3277 = vmatmul.msk.f32.gmra.mxu2 %vm262_vm0, %v3957_v54 }
 0x181   : >> { %3349 = vmatmul.msk.f32.gmra.mxu3 %vm262_vm0, %v3309_v50  ;;  %v1462_v52 = vpop.f32.mrf.mxu0 }
 0x182   : >> { %v895_v29 = vpop.f32.mrf.mxu2 }
 0x183   : >> { %v951_v33 = vadd.f32 %v895_v29, %v646_v51 }
 0x184   : >> { %v648_v44 = vpop.f32.mrf.mxu1  ;;  %v1180_v45 = vpop.f32.mrf.mxu3  ;;  %3421 = vmatmul.msk.f32.gmra.mxu0 %vm262_vm0, %v4052_v6 }
 0x185   : >> { %v1236_v16 = vadd.f32 %v1180_v45, %v951_v33  ;;  %v649_v53 = vadd.f32 %v648_v44, %v4101_v10  ;;  %v3312_v33 = vld [vmem:[%s3598_s14 + $0x91] sm:$0xff] }
 0x186   : >> { %v4958_v45 = vld [vmem:[#allocation18_spill] sm:$0xff] }
 0x187   : >> { %v4525_v30 = vadd.f32 %v1462_v52, %v1236_v16  ;;  %3204 = vmatmul.msk.f32.gmra.mxu1 %vm262_vm0, %v3983_v63  ;;  %3278 = vmatmul.msk.f32.gmra.mxu2 %vm262_vm0, %v3988_v4  ;;  %v4954_v63 = vld [vmem:[#allocation6_spill] sm:$0xff]  ;;  %v4955_v4 = vld [vmem:[#allocation15_spill] sm:$0xff] }
 0x188   : >> { %v4956_v52 = vld [vmem:[#allocation14_spill] sm:$0xff] }
 0x189   : >> { %3350 = vmatmul.msk.f32.gmra.mxu3 %vm262_vm0, %v3310_v58  ;;  %v1465_v54 = vpop.f32.mrf.mxu0 }
 0x18a   : >> { %v898_v35 = vpop.f32.mrf.mxu2 }
 0x18b   : >> { %v952_v15 = vadd.f32 %v898_v35, %v649_v53 }
 0x18c   : >> { %v651_v41 = vpop.f32.mrf.mxu1  ;;  %v1183_v34 = vpop.f32.mrf.mxu3  ;;  %3422 = vmatmul.msk.f32.gmra.mxu0 %vm262_vm0, %v4953_v47 }
 0x18d   : >> { %v1237_v9 = vadd.f32 %v1183_v34, %v952_v15  ;;  %v652_v10 = vadd.f32 %v651_v41, %v4955_v4  ;;  %v4959_v41 = vld [vmem:[#allocation17_spill] sm:$0xff] }
 0x18f   : >> { %v4536_v37 = vadd.f32 %v1465_v54, %v1237_v9  ;;  %3205 = vmatmul.msk.f32.gmra.mxu1 %vm262_vm0, %v4008_v18  ;;  %3279 = vmatmul.msk.f32.gmra.mxu2 %vm262_vm0, %v4954_v63  ;;  %v4957_v18 = vld [vmem:[#allocation8_spill] sm:$0xff] }
 0x190   : >> { %v3313_v9 = vld [vmem:[%s3598_s14 + $0xa1] sm:$0xff] }
 0x191   : >> { %3351 = vmatmul.msk.f32.gmra.mxu3 %vm262_vm0, %v3311_v21  ;;  %v1468_v59 = vpop.f32.mrf.mxu0  ;;  %v4961_v63 = vld [vmem:[#allocation4_spill] sm:$0xff] }
 0x192   : >> { %v901_v17 = vpop.f32.mrf.mxu2 }
 0x193   : >> { %v953_v3 = vadd.f32 %v901_v17, %v652_v10 }
 0x194   : >> { %v654_v50 = vpop.f32.mrf.mxu1  ;;  %v1186_v51 = vpop.f32.mrf.mxu3  ;;  %3423 = vmatmul.msk.f32.gmra.mxu0 %vm262_vm0, %v4956_v52 }
 0x195   : >> { %v1238_v29 = vadd.f32 %v1186_v51, %v953_v3  ;;  %v655_v16 = vadd.f32 %v654_v50, %v4958_v45  ;;  %v4962_v51 = vld [vmem:[#allocation20_spill] sm:$0xff] }
 0x197   : >> { %v4547_v44 = vadd.f32 %v1468_v59, %v1238_v29  ;;  %3206 = vmatmul.msk.f32.gmra.mxu1 %vm262_vm0, %v4030_v25  ;;  %3280 = vmatmul.msk.f32.gmra.mxu2 %vm262_vm0, %v4957_v18  ;;  %v4960_v25 = vld [vmem:[#allocation10_spill] sm:$0xff] }
 0x199   : >> { %3352 = vmatmul.msk.f32.gmra.mxu3 %vm262_vm0, %v3312_v33  ;;  %v1471_v58 = vpop.f32.mrf.mxu0  ;;  %v3314_v33 = vld [vmem:[%s3598_s14 + $0xa9] sm:$0xff] }
 0x19a   : >> { %v904_v53 = vpop.f32.mrf.mxu2 }
 0x19b   : >> { %v954_v54 = vadd.f32 %v904_v53, %v655_v16 }
 0x19c   : >> { %v657_v35 = vpop.f32.mrf.mxu1  ;;  %v1189_v15 = vpop.f32.mrf.mxu3  ;;  %3424 = vmatmul.msk.f32.gmra.mxu0 %vm262_vm0, %v4959_v41 }
 0x19d   : >> { %v1239_v34 = vadd.f32 %v1189_v15, %v954_v54  ;;  %v658_v4 = vadd.f32 %v657_v35, %v4961_v63 }
 0x19f   : >> { %v4558_v21 = vadd.f32 %v1471_v58, %v1239_v34  ;;  %3207 = vmatmul.msk.f32.gmra.mxu1 %vm262_vm0, %v4052_v6  ;;  %3281 = vmatmul.msk.f32.gmra.mxu2 %vm262_vm0, %v4960_v25  ;;  %v4963_v6 = vld [vmem:[#allocation5_spill] sm:$0xff] }
 0x1a0   : >> { %v3315_v34 = vld [vmem:[%s3598_s14 + $0xb1] sm:$0xff] }
 0x1a1   : >> { %3353 = vmatmul.msk.f32.gmra.mxu3 %vm262_vm0, %v3313_v9  ;;  %v1474_v10 = vpop.f32.mrf.mxu0 }
 0x1a2   : >> { %v907_v59 = vpop.f32.mrf.mxu2 }
 0x1a3   : >> { %v955_v17 = vadd.f32 %v907_v59, %v658_v4 }
 0x1a4   : >> { %v660_v3 = vpop.f32.mrf.mxu1  ;;  %v1192_v50 = vpop.f32.mrf.mxu3  ;;  %3425 = vmatmul.msk.f32.gmra.mxu0 %vm262_vm0, %v4962_v51 }
 0x1a5   : >> { %v1240_v29 = vadd.f32 %v1192_v50, %v955_v17  ;;  %v661_v45 = vadd.f32 %v660_v3, %v4963_v6  ;;  %v3316_v3 = vld [vmem:[%s3598_s14 + $0xb9] sm:$0xff] }
 0x1a7   : >> { %v4569_v18 = vadd.f32 %v1474_v10, %v1240_v29  ;;  %3208 = vmatmul.msk.f32.gmra.mxu1 %vm262_vm0, %v4953_v47  ;;  %3282 = vmatmul.msk.f32.gmra.mxu2 %vm262_vm0, %v4088_v39  ;;  %v4964_v39 = vld [vmem:[#allocation7_spill] sm:$0xff] }
 0x1a9   : >> { %3354 = vmatmul.msk.f32.gmra.mxu3 %vm262_vm0, %v3314_v33  ;;  %v1477_v16 = vpop.f32.mrf.mxu0 }
 0x1aa   : >> { %v910_v58 = vpop.f32.mrf.mxu2 }
 0x1ab   : >> { %v956_v53 = vadd.f32 %v910_v58, %v661_v45 }
 0x1ac   : >> { %v663_v54 = vpop.f32.mrf.mxu1  ;;  %v1195_v35 = vpop.f32.mrf.mxu3  ;;  %3426 = vmatmul.msk.f32.gmra.mxu0 %vm262_vm0, %v4174_v43 }
 0x1ad   : >> { %v1241_v15 = vadd.f32 %v1195_v35, %v956_v53  ;;  %v664_v47 = vadd.f32 %v663_v54, %v4964_v39  ;;  %v3317_v53 = vld [vmem:[%s3598_s14 + $0xc9] sm:$0xff] }
 0x1af   : >> { %v4580_v9 = vadd.f32 %v1477_v16, %v1241_v15  ;;  %3209 = vmatmul.msk.f32.gmra.mxu1 %vm262_vm0, %v4956_v52  ;;  %3283 = vmatmul.msk.f32.gmra.mxu2 %vm262_vm0, %v4113_v38  ;;  %v4965_v38 = vld [vmem:[#allocation9_spill] sm:$0xff] }
 0x1b1   : >> { %3355 = vmatmul.msk.f32.gmra.mxu3 %vm262_vm0, %v3315_v34  ;;  %v1480_v25 = vpop.f32.mrf.mxu0 }
 0x1b2   : >> { %v913_v63 = vpop.f32.mrf.mxu2 }
 0x1b3   : >> { %v957_v4 = vadd.f32 %v913_v63, %v664_v47  ;;  %v3318_v63 = vld [vmem:[%s3598_s14 + $0xd1] sm:$0xff] }
 0x1b4   : >> { %v666_v10 = vpop.f32.mrf.mxu1  ;;  %v1198_v59 = vpop.f32.mrf.mxu3  ;;  %3427 = vmatmul.msk.f32.gmra.mxu0 %vm262_vm0, %v4194_v49 }
 0x1b5   : >> { %v1242_v17 = vadd.f32 %v1198_v59, %v957_v4  ;;  %v667_v52 = vadd.f32 %v666_v10, %v4965_v38 }
 0x1b7   : >> { %v4591_v50 = vadd.f32 %v1480_v25, %v1242_v17  ;;  %3210 = vmatmul.msk.f32.gmra.mxu1 %vm262_vm0, %v4959_v41  ;;  %3284 = vmatmul.msk.f32.gmra.mxu2 %vm262_vm0, %v4135_v31  ;;  %v4966_v31 = vld [vmem:[#allocation11_spill] sm:$0xff] }
 0x1b9   : >> { %3356 = vmatmul.msk.f32.gmra.mxu3 %vm262_vm0, %v3316_v3  ;;  %v1483_v29 = vpop.f32.mrf.mxu0 }
 0x1ba   : >> { %v916_v33 = vpop.f32.mrf.mxu2 }
 0x1bb   : >> { %v958_v6 = vadd.f32 %v916_v33, %v667_v52 }
 0x1bc   : >> { %v669_v45 = vpop.f32.mrf.mxu1  ;;  %v1201_v16 = vpop.f32.mrf.mxu3  ;;  %3428 = vmatmul.msk.f32.gmra.mxu0 %vm262_vm0, %v4211_v24 }
 0x1bd   : >> { %v1243_v58 = vadd.f32 %v1201_v16, %v958_v6  ;;  %v670_v41 = vadd.f32 %v669_v45, %v4966_v31 }
 0x1bf   : >> { %v4602_v54 = vadd.f32 %v1483_v29, %v1243_v58  ;;  %3211 = vmatmul.msk.f32.gmra.mxu1 %vm262_vm0, %v4962_v51  ;;  %3285 = vmatmul.msk.f32.gmra.mxu2 %vm262_vm0, %v4155_v40  ;;  %v4967_v40 = vld [vmem:[#allocation13_spill] sm:$0xff]  ;;  %v3319_v29 = vld [vmem:[%s3598_s14 + $0xd9] sm:$0xff] }
 0x1c1   : >> { %3357 = vmatmul.msk.f32.gmra.mxu3 %vm262_vm0, %v3317_v53  ;;  %v1486_v35 = vpop.f32.mrf.mxu0 }
 0x1c2   : >> { %v919_v15 = vpop.f32.mrf.mxu2 }
 0x1c3   : >> { %v959_v34 = vadd.f32 %v919_v15, %v670_v41  ;;  %v3320_v41 = vld [vmem:[%s3598_s14 + $0xe1] sm:$0xff] }
 0x1c4   : >> { %v672_v39 = vpop.f32.mrf.mxu1  ;;  %v1204_v47 = vpop.f32.mrf.mxu3  ;;  %3429 = vmatmul.msk.f32.gmra.mxu0 %vm262_vm0, %v4228_v32 }
 0x1c5   : >> { %v1244_v25 = vadd.f32 %v1204_v47, %v959_v34  ;;  %v673_v51 = vadd.f32 %v672_v39, %v4967_v40  ;;  %v3321_v40 = vld [vmem:[%s3598_s14 + $0xf1] sm:$0xff] }
 0x1c7   : >> { %v4613_v4 = vadd.f32 %v1486_v35, %v1244_v25  ;;  %3212 = vmatmul.msk.f32.gmra.mxu1 %vm262_vm0, %v4174_v43  ;;  %3286 = vmatmul.msk.f32.gmra.mxu2 %vm262_vm0, %v4179_v62  ;;  %v4968_v43 = vld [vmem:[#allocation16_spill] sm:$0xff] }
 0x1c9   : >> { %3358 = vmatmul.msk.f32.gmra.mxu3 %vm262_vm0, %v3318_v63  ;;  %v1489_v10 = vpop.f32.mrf.mxu0 }
 0x1ca   : >> { %v922_v59 = vpop.f32.mrf.mxu2 }
 0x1cb   : >> { %v960_v17 = vadd.f32 %v922_v59, %v673_v51 }
 0x1cc   : >> { %v675_v3 = vpop.f32.mrf.mxu1  ;;  %v1207_v38 = vpop.f32.mrf.mxu3  ;;  %3430 = vmatmul.msk.f32.gmra.mxu0 %vm262_vm0, %v4254_v28 }
 0x1cd   : >> { %v1245_v52 = vadd.f32 %v1207_v38, %v960_v17  ;;  %v676_v62 = vadd.f32 %v675_v3, %v4968_v43  ;;  %v3322_v17 = vld [vmem:[%s3598_s14 + $0xf9] sm:$0xff] }
 0x1cf   : >> { %v4624_v33 = vadd.f32 %v1489_v10, %v1245_v52  ;;  %3213 = vmatmul.msk.f32.gmra.mxu1 %vm262_vm0, %v4194_v49  ;;  %3287 = vmatmul.msk.f32.gmra.mxu2 %vm262_vm0, %v4199_v5  ;;  %v4969_v49 = vld [vmem:[#allocation19_spill] sm:$0xff] }
 0x1d0   : >> { %v3323_v52 = vld [vmem:[%s3598_s14 + $0x101] sm:$0xff] }
 0x1d1   : >> { %3359 = vmatmul.msk.f32.gmra.mxu3 %vm262_vm0, %v3319_v29  ;;  %v1492_v6 = vpop.f32.mrf.mxu0 }
 0x1d2   : >> { %v925_v45 = vpop.f32.mrf.mxu2 }
 0x1d3   : >> { %v961_v16 = vadd.f32 %v925_v45, %v676_v62  ;;  %v3324_v62 = vld [vmem:[%s3598_s14 + $0x109] sm:$0xff] }
 0x1d4   : >> { %v678_v58 = vpop.f32.mrf.mxu1  ;;  %v1210_v53 = vpop.f32.mrf.mxu3  ;;  %3431 = vmatmul.msk.f32.gmra.mxu0 %vm262_vm0, %v4274_v19 }
 0x1d5   : >> { %v1246_v31 = vadd.f32 %v1210_v53, %v961_v16  ;;  %v679_v5 = vadd.f32 %v678_v58, %v4969_v49  ;;  %v4972_v49 = vld [vmem:[#allocation25_spill] sm:$0xff] }
 0x1d7   : >> { %v4635_v35 = vadd.f32 %v1492_v6, %v1246_v31  ;;  %3214 = vmatmul.msk.f32.gmra.mxu1 %vm262_vm0, %v4211_v24  ;;  %3288 = vmatmul.msk.f32.gmra.mxu2 %vm262_vm0, %v4216_v0  ;;  %v3325_v31 = vld [vmem:[%s3598_s14 + $0x119] sm:$0xff] }
 0x1d9   : >> { %3360 = vmatmul.msk.f32.gmra.mxu3 %vm262_vm0, %v3320_v41  ;;  %v1495_v15 = vpop.f32.mrf.mxu0 }
 0x1da   : >> { %v928_v34 = vpop.f32.mrf.mxu2 }
 0x1db   : >> { %v962_v39 = vadd.f32 %v928_v34, %v679_v5 }
 0x1dc   : >> { %v1213_v47 = vpop.f32.mrf.mxu3  ;;  %v1684_v25 = vpop.f32.mrf.mxu1  ;;  %3432 = vmatmul.msk.f32.gmra.mxu0 %vm262_vm0, %v4291_v7 }
 0x1dd   : >> { %v1247_v63 = vadd.f32 %v1213_v47, %v962_v39 }
 0x1df   : >> { %v4646_v51 = vadd.f32 %v1495_v15, %v1247_v63  ;;  %3215 = vmatmul.msk.f32.gmra.mxu1 %vm262_vm0, %v4228_v32  ;;  %3289 = vmatmul.msk.f32.gmra.mxu2 %vm262_vm0, %v4233_v57 }
 0x1e1   : >> { %3361 = vmatmul.msk.f32.gmra.mxu3 %vm262_vm0, %v3321_v40  ;;  %v2533_v24 = vpop.f32.mrf.mxu0 }
 0x1e2   : >> { %v1969_v0 = vpop.f32.mrf.mxu2 }
 0x1e4   : >> { %v1687_v10 = vpop.f32.mrf.mxu1  ;;  %v2251_v59 = vpop.f32.mrf.mxu3  ;;  %3433 = vmatmul.msk.f32.gmra.mxu0 %vm262_vm0, %v4308_v46 }
 0x1e7   : >> { %3216 = vmatmul.msk.f32.gmra.mxu1 %vm262_vm0, %v4254_v28  ;;  %3290 = vmatmul.msk.f32.gmra.mxu2 %vm262_vm0, %v4259_v26 }
 0x1e9   : >> { %3362 = vmatmul.msk.f32.gmra.mxu3 %vm262_vm0, %v3322_v17  ;;  %v2536_v32 = vpop.f32.mrf.mxu0 }
 0x1ea   : >> { %v1972_v57 = vpop.f32.mrf.mxu2 }
 0x1ec   : >> { %v1690_v3 = vpop.f32.mrf.mxu1  ;;  %v2254_v38 = vpop.f32.mrf.mxu3  ;;  %3434 = vmatmul.msk.f32.gmra.mxu0 %vm262_vm0, %v4334_v1 }
 0x1ef   : >> { %3217 = vmatmul.msk.f32.gmra.mxu1 %vm262_vm0, %v4274_v19  ;;  %3291 = vmatmul.msk.f32.gmra.mxu2 %vm262_vm0, %v4279_v2  ;;  %v4970_v19 = vld [vmem:[#allocation21_spill] sm:$0xff] }
 0x1f0   : >> { %v1780_v2 = vadd.f32 %v1684_v25, %v4970_v19  ;;  %v4973_v25 = vld [vmem:[#allocation3_spill] sm:$0xff] }
 0x1f1   : >> { %3363 = vmatmul.msk.f32.gmra.mxu3 %vm262_vm0, %v3323_v52  ;;  %v4669_v28 = vpop.f32.mrf.mxu0  ;;  %v4695_v63 = vperm.slane %v4973_v25, 0 }
 0x1f2   : >> { %v1975_v26 = vpop.f32.mrf.mxu2  ;;  %v2065_v16 = vadd.f32 %v1969_v0, %v1780_v2 }
 0x1f4   : >> { %v1693_v29 = vpop.f32.mrf.mxu1  ;;  %v2257_v43 = vpop.f32.mrf.mxu3  ;;  %3435 = vmatmul.msk.f32.gmra.mxu0 %vm262_vm0, %v4354_v20  ;;  %v2347_v41 = vadd.f32 %v2251_v59, %v2065_v16 }
 0x1f6   : >> { %v2629_v47 = vadd.f32 %v2533_v24, %v2347_v41  ;;  %v4974_v24 = vld [vmem:[#allocation23_spill] sm:$0xff] }
 0x1f7   : >> { %3218 = vmatmul.msk.f32.gmra.mxu1 %vm262_vm0, %v4291_v7  ;;  %3292 = vmatmul.msk.f32.gmra.mxu2 %vm262_vm0, %v4296_v48  ;;  %v4971_v7 = vld [vmem:[#allocation22_spill] sm:$0xff] }
 0x1f8   : >> { %v1781_v48 = vadd.f32 %v1687_v10, %v4971_v7  ;;  %v3326_v10 = vld [vmem:[%s3598_s14 + $0x121] sm:$0xff]  ;;  %v2664_v17 = vadd.f32 %v4695_v63, %v2629_v47 }
 0x1f9   : >> { %3364 = vmatmul.msk.f32.gmra.mxu3 %vm262_vm0, %v3324_v62  ;;  %v4680_v6 = vpop.f32.mrf.mxu0  ;;  %v4975_v62 = vld [vmem:[#allocation26_spill] sm:$0xff]  ;;  %v4977_v47 = vld [vmem:[#allocation27_spill] sm:$0xff] }
 0x1fa   : >> { %v1978_v45 = vpop.f32.mrf.mxu2  ;;  %v2066_v34 = vadd.f32 %v1972_v57, %v1781_v48  ;;  %v1782_v57 = vadd.f32 %v1690_v3, %v4974_v24  ;;  %v3328_v24 = vld [vmem:[%s3598_s14 + $0x131] sm:$0xff] }
 0x1fc   : >> { %v1696_v58 = vpop.f32.mrf.mxu1  ;;  %v4682_v53 = vpop.f32.mrf.mxu3  ;;  %3436 = vmatmul.msk.f32.gmra.mxu0 %vm262_vm0, %v4371_v42  ;;  %v2348_v59 = vadd.f32 %v2254_v38, %v2066_v34  ;;  %v2067_v41 = vadd.f32 %v1975_v26, %v1782_v57 }
 0x1fd   : >> { %v1784_v5 = vadd.f32 %v1696_v58, %v4972_v49 }
 0x1fe   : >> { %v2630_v16 = vadd.f32 %v2536_v32, %v2348_v59  ;;  %v2349_v34 = vadd.f32 %v2257_v43, %v2067_v41  ;;  %v4976_v32 = vld [vmem:[#allocation24_spill] sm:$0xff] }
 0x1ff   : >> { %3219 = vmatmul.msk.f32.gmra.mxu1 %vm262_vm0, %v4308_v46  ;;  %3293 = vmatmul.msk.f32.gmra.mxu2 %vm262_vm0, %v4313_v12  ;;  %v1783_v26 = vadd.f32 %v1693_v29, %v4976_v32 }
 0x201   : >> { %3365 = vmatmul.msk.f32.gmra.mxu3 %vm262_vm0, %v3325_v31  ;;  %v2545_v15 = vpop.f32.mrf.mxu0  ;;  %v2696_v31 = vmax.f32 %v2664_v17, 0.0  ;;  %v2068_v59 = vadd.f32 %v1978_v45, %v1783_v26  ;;  %v3401_v26 = vld [vmem:[%s3598_s14 + $0x142] sm:$0xff] }
 0x202   : >> { %v1981_v39 = vpop.f32.mrf.mxu2 }
 0x203   : >> { %v2069_v40 = vadd.f32 %v1981_v39, %v1784_v5  ;;  %v2665_v5 = vadd.f32 %v4695_v63, %v2630_v16 }
 0x204   : >> { %v1699_v0 = vpop.f32.mrf.mxu1  ;;  %v2263_v46 = vpop.f32.mrf.mxu3  ;;  %3437 = vmatmul.msk.f32.gmra.mxu0 %vm262_vm0, %v4388_v60 }
 0x205   : >> { %v2351_v12 = vadd.f32 %v2263_v46, %v2069_v40  ;;  %v1785_v19 = vadd.f32 %v1699_v0, %v4975_v62  ;;  %v2697_v46 = vmax.f32 %v2665_v5, 0.0  ;;  %v2350_v62 = vadd.f32 %v4682_v53, %v2068_v59  ;;  %v4980_v5 = vld [vmem:[#allocation32_spill] sm:$0xff] }
 0x207   : >> { %v2633_v52 = vadd.f32 %v2545_v15, %v2351_v12  ;;  %3220 = vmatmul.msk.f32.gmra.mxu1 %vm262_vm0, %v4334_v1  ;;  %3294 = vmatmul.msk.f32.gmra.mxu2 %vm262_vm0, %v4339_v13  ;;  %v3327_v15 = vld [vmem:[%s3598_s14 + $0x129] sm:$0xff]  ;;  %v2631_v12 = vadd.f32 %v4669_v28, %v2349_v34  ;;  %v2632_v53 = vadd.f32 %v4680_v6, %v2350_v62 }
 0x208   : >> { %v4978_v28 = vld [vmem:[#allocation28_spill] sm:$0xff] }
 0x209   : >> { %v2668_v2 = vadd.f32 %v4695_v63, %v2633_v52  ;;  %3366 = vmatmul.msk.f32.gmra.mxu3 %vm262_vm0, %v3326_v10  ;;  %v2548_v38 = vpop.f32.mrf.mxu0  ;;  %v2666_v57 = vadd.f32 %v4695_v63, %v2631_v12  ;;  %v4983_v12 = vld [vmem:[#allocation37_spill] sm:$0xff] }
 0x20a   : >> { %v1984_v58 = vpop.f32.mrf.mxu2 }
 0x20b   : >> { %v2700_v7 = vmax.f32 %v2668_v2, 0.0  ;;  %v2070_v48 = vadd.f32 %v1984_v58, %v1785_v19  ;;  %v2698_v58 = vmax.f32 %v2666_v57, 0.0  ;;  %v4985_v57 = vld [vmem:[#allocation40_spill] sm:$0xff] }
 0x20c   : >> { %v1702_v1 = vpop.f32.mrf.mxu1  ;;  %v2266_v49 = vpop.f32.mrf.mxu3  ;;  %3438 = vmatmul.msk.f32.gmra.mxu0 %vm262_vm0, %v4408_v55 }
 0x20d   : >> { %v2728_v13 = vmax.f32 %v2696_v31, %v2700_v7  ;;  %v2352_v3 = vadd.f32 %v2266_v49, %v2070_v48  ;;  %v1786_v25 = vadd.f32 %v1702_v1, %v4977_v47  ;;  %v4979_v48 = vld [vmem:[#allocation41_spill] sm:$0xff] }
 0x20f   : >> { %2732 = vst [vmem:[#allocation2] sm:$0xff] %v2728_v13  ;;  %v2634_v39 = vadd.f32 %v2548_v38, %v2352_v3  ;;  %3221 = vmatmul.msk.f32.gmra.mxu1 %vm262_vm0, %v4354_v20  ;;  %3295 = vmatmul.msk.f32.gmra.mxu2 %vm262_vm0, %v4359_v27  ;;  %v2667_v3 = vadd.f32 %v4695_v63, %v2632_v53  ;;  %v4786_v53 = vld [vmem:[%s3598_s14 + $0x15a] sm:$0xff] }
 0x211   : >> { %v2669_v40 = vadd.f32 %v4695_v63, %v2634_v39  ;;  %3367 = vmatmul.msk.f32.gmra.mxu3 %vm262_vm0, %v3327_v15  ;;  %v2551_v0 = vpop.f32.mrf.mxu0  ;;  %v4981_v39 = vld [vmem:[#allocation34_spill] sm:$0xff] }
 0x212   : >> { %v1987_v43 = vpop.f32.mrf.mxu2 }
 0x213   : >> { %v2701_v10 = vmax.f32 %v2669_v40, 0.0  ;;  %v2071_v20 = vadd.f32 %v1987_v43, %v1786_v25  ;;  %v2699_v25 = vmax.f32 %v2667_v3, 0.0  ;;  %v4982_v43 = vld [vmem:[#allocation35_spill] sm:$0xff] }
 0x214   : >> { %v1705_v17 = vpop.f32.mrf.mxu1  ;;  %v2269_v52 = vpop.f32.mrf.mxu3  ;;  %3439 = vmatmul.msk.f32.gmra.mxu0 %vm262_vm0, %v4428_v56 }
 0x215   : >> { %v2729_v27 = vmax.f32 %v2697_v46, %v2701_v10  ;;  %v2353_v29 = vadd.f32 %v2269_v52, %v2071_v20  ;;  %v1787_v45 = vadd.f32 %v1705_v17, %v4978_v28  ;;  %v3402_v10 = vld [vmem:[%s3598_s14 + $0x14a] sm:$0xff] }
 0x217   : >> { %2733 = vst [vmem:[#allocation2 + $0x8] sm:$0xff] %v2729_v27  ;;  %v2635_v19 = vadd.f32 %v2551_v0, %v2353_v29  ;;  %3222 = vmatmul.msk.f32.gmra.mxu1 %vm262_vm0, %v4371_v42  ;;  %3296 = vmatmul.msk.f32.gmra.mxu2 %vm262_vm0, %v4376_v61 }
 0x219   : >> { %v2670_v2 = vadd.f32 %v4695_v63, %v2635_v19  ;;  %3368 = vmatmul.msk.f32.gmra.mxu3 %vm262_vm0, %v3328_v24  ;;  %v2554_v38 = vpop.f32.mrf.mxu0  ;;  %v4769_v19 = vld [vmem:[%s3598_s14 + $0x152] sm:$0xff] }
 0x21a   : >> { %v1990_v16 = vpop.f32.mrf.mxu2 }
 0x21b   : >> { %v2702_v31 = vmax.f32 %v2670_v2, 0.0  ;;  %v2072_v41 = vadd.f32 %v1990_v16, %v1787_v45 }
 0x21c   : >> { %v1708_v7 = vpop.f32.mrf.mxu1  ;;  %v2272_v42 = vpop.f32.mrf.mxu3  ;;  %3440 = vmatmul.msk.f32.gmra.mxu0 %vm262_vm0, %v4979_v48 }
 0x21d   : >> { %v2730_v61 = vmax.f32 %v2698_v58, %v2702_v31  ;;  %v2354_v1 = vadd.f32 %v2272_v42, %v2072_v41 }
 0x21e   : >> { %v2736_v49 = vld [vmem:[#allocation2] ss:$2 sm:$0xff]  ;;  %v2740_v13 = vld [vmem:[#allocation2 + $0x1] ss:$2 sm:$0xff] }
 0x21f   : >> { %2734 = vst [vmem:[#allocation2 + $0x10] sm:$0xff] %v2730_v61  ;;  %v2636_v6 = vadd.f32 %v2554_v38, %v2354_v1  ;;  %3223 = vmatmul.msk.f32.gmra.mxu1 %vm262_vm0, %v4388_v60  ;;  %3297 = vmatmul.msk.f32.gmra.mxu2 %vm262_vm0, %v4980_v5  ;;  %v2743_v15 = vmax.f32 %v2736_v49, %v2740_v13  ;;  %v4987_v38 = vld [vmem:[#allocation29_spill] sm:$0xff]  ;;  %v4989_v13 = vld [vmem:[#allocation36_spill] sm:$0xff] }
 0x220   : >> { %v1788_v16 = vadd.f32 %v1708_v7, %v4987_v38  ;;  %v3333_v7 = vld [vmem:[%s3598_s14 + $0x169] sm:$0xff] }
 0x221   : >> { %v2671_v34 = vadd.f32 %v4695_v63, %v2636_v6  ;;  %3369 = vmatmul.msk.f32.gmra.mxu3 %vm262_vm0, %v4981_v39  ;;  %v2557_v32 = vpop.f32.mrf.mxu0  ;;  %2748 = vst [vmem:[%s4739_s13] sm:$0xff] %v2743_v15  ;;  %v3405_v5 = vld [vmem:[%s3598_s14 + $0x16a] sm:$0xff] }
 0x222   : >> { %v1993_v47 = vpop.f32.mrf.mxu2 }
 0x223   : >> { %v2703_v40 = vmax.f32 %v2671_v34, 0.0  ;;  %v2073_v41 = vadd.f32 %v1993_v47, %v1788_v16 }
 0x224   : >> { %v1711_v0 = vpop.f32.mrf.mxu1  ;;  %v2275_v46 = vpop.f32.mrf.mxu3  ;;  %3441 = vmatmul.msk.f32.gmra.mxu0 %vm262_vm0, %v3401_v26 }
 0x225   : >> { %v2731_v60 = vmax.f32 %v2699_v25, %v2703_v40  ;;  %v2355_v1 = vadd.f32 %v2275_v46, %v2073_v41  ;;  %v3262_v46 = vld [vmem:[%s3598_s14 + $0x170] sm:$0xff] }
 0x227   : >> { %2735 = vst [vmem:[#allocation2 + $0x18] sm:$0xff] %v2731_v60  ;;  %3224 = vmatmul.msk.f32.gmra.mxu1 %vm262_vm0, %v4408_v55  ;;  %3298 = vmatmul.msk.f32.gmra.mxu2 %vm262_vm0, %v4982_v43  ;;  %v4984_v55 = vld [vmem:[#allocation38_spill] sm:$0xff]  ;;  %v2637_v39 = vadd.f32 %v2557_v32, %v2355_v1 }
 0x228   : >> { %v3334_v43 = vld [vmem:[%s3598_s14 + $0x171] sm:$0xff] }
 0x229   : >> { %3370 = vmatmul.msk.f32.gmra.mxu3 %vm262_vm0, %v4983_v12  ;;  %v2560_v59 = vpop.f32.mrf.mxu0 }
 0x22a   : >> { %v1996_v20 = vpop.f32.mrf.mxu2 }
 0x22c   : >> { %v1714_v17 = vpop.f32.mrf.mxu1  ;;  %v2278_v52 = vpop.f32.mrf.mxu3  ;;  %3442 = vmatmul.msk.f32.gmra.mxu0 %vm262_vm0, %v3402_v10 }
 0x22e   : >> { %v2738_v27 = vld [vmem:[#allocation2 + $0x10] ss:$2 sm:$0xff]  ;;  %v2742_v29 = vld [vmem:[#allocation2 + $0x11] ss:$2 sm:$0xff] }
 0x22f   : >> { %3225 = vmatmul.msk.f32.gmra.mxu1 %vm262_vm0, %v4428_v56  ;;  %3299 = vmatmul.msk.f32.gmra.mxu2 %vm262_vm0, %v4984_v55  ;;  %v2744_v24 = vmax.f32 %v2738_v27, %v2742_v29  ;;  %v4986_v56 = vld [vmem:[#allocation42_spill] sm:$0xff]  ;;  %v4991_v27 = vld [vmem:[#allocation39_spill] sm:$0xff] }
 0x231   : >> { %3371 = vmatmul.msk.f32.gmra.mxu3 %vm262_vm0, %v4985_v57  ;;  %v4766_v62 = vpop.f32.mrf.mxu0  ;;  %2749 = vst [vmem:[%s4739_s13 + $0x8] sm:$0xff] %v2744_v24 }
 0x232   : >> { %v1999_v28 = vpop.f32.mrf.mxu2 }
 0x234   : >> { %v4772_v45 = vpop.f32.mrf.mxu1  ;;  %v2281_v2 = vpop.f32.mrf.mxu3  ;;  %3443 = vmatmul.msk.f32.gmra.mxu0 %vm262_vm0, %v4769_v19 }
 0x237   : >> { %3226 = vmatmul.msk.f32.gmra.mxu1 %vm262_vm0, %v4979_v48  ;;  %3300 = vmatmul.msk.f32.gmra.mxu2 %vm262_vm0, %v4986_v56  ;;  %v3261_v48 = vld [vmem:[%s3598_s14 + $0x168] sm:$0xff] }
 0x239   : >> { %3372 = vmatmul.msk.f32.gmra.mxu3 %vm262_vm0, %v4465_v14  ;;  %v4783_v58 = vpop.f32.mrf.mxu0  ;;  %v4988_v14 = vld [vmem:[#allocation30_spill] sm:$0xff] }
 0x23a   : >> { %v4788_v31 = vpop.f32.mrf.mxu2  ;;  %v1789_v49 = vadd.f32 %v1711_v0, %v4988_v14  ;;  %v2672_v0 = vadd.f32 %v4695_v63, %v2637_v39 }
 0x23c   : >> { %v1720_v42 = vpop.f32.mrf.mxu1  ;;  %v4790_v61 = vpop.f32.mrf.mxu3  ;;  %3444 = vmatmul.msk.f32.gmra.mxu0 %vm262_vm0, %v4786_v53  ;;  %v2074_v15 = vadd.f32 %v1996_v20, %v1789_v49  ;;  %v4990_v20 = vld [vmem:[#allocation31_spill] sm:$0xff]  ;;  %v2704_v38 = vmax.f32 %v2672_v0, 0.0 }
 0x23d   : >> { %v1792_v3 = vadd.f32 %v1720_v42, %v4989_v13  ;;  %v1790_v32 = vadd.f32 %v1714_v17, %v4990_v20  ;;  %v3335_v49 = vld [vmem:[%s3598_s14 + $0x179] sm:$0xff] }
 0x23e   : >> { %v2356_v60 = vadd.f32 %v2278_v52, %v2074_v15  ;;  %v3406_v52 = vld [vmem:[%s3598_s14 + $0x172] sm:$0xff] }
 0x23f   : >> { %3227 = vmatmul.msk.f32.gmra.mxu1 %vm262_vm0, %v3401_v26  ;;  %3301 = vmatmul.msk.f32.gmra.mxu2 %vm262_vm0, %v3261_v48  ;;  %v2075_v16 = vadd.f32 %v1999_v28, %v1790_v32 }
 0x240   : >> { %v2638_v57 = vadd.f32 %v2560_v59, %v2356_v60  ;;  %v4992_v59 = vld [vmem:[#allocation33_spill] sm:$0xff] }
 0x241   : >> { %3373 = vmatmul.msk.f32.gmra.mxu3 %vm262_vm0, %v3333_v7  ;;  %v2569_v6 = vpop.f32.mrf.mxu0  ;;  %v3263_v7 = vld [vmem:[%s3598_s14 + $0x178] sm:$0xff]  ;;  %v2357_v13 = vadd.f32 %v2281_v2, %v2075_v16  ;;  %v1791_v28 = vadd.f32 %v4772_v45, %v4992_v59  ;;  %v3264_v45 = vld [vmem:[%s3598_s14 + $0x180] sm:$0xff] }
 0x242   : >> { %v2005_v34 = vpop.f32.mrf.mxu2  ;;  %v2673_v14 = vadd.f32 %v4695_v63, %v2638_v57  ;;  %v3407_v2 = vld [vmem:[%s3598_s14 + $0x17a] sm:$0xff] }
 0x243   : >> { %v2077_v47 = vadd.f32 %v2005_v34, %v1792_v3 }
 0x244   : >> { %v1723_v25 = vpop.f32.mrf.mxu1  ;;  %v2287_v40 = vpop.f32.mrf.mxu3  ;;  %3445 = vmatmul.msk.f32.gmra.mxu0 %vm262_vm0, %v3405_v5  ;;  %v2705_v39 = vmax.f32 %v2673_v14, 0.0 }
 0x245   : >> { %v2359_v26 = vadd.f32 %v2287_v40, %v2077_v47  ;;  %v1793_v29 = vadd.f32 %v1723_v25, %v4991_v27  ;;  %v2639_v25 = vadd.f32 %v4766_v62, %v2357_v13 }
 0x247   : >> { %v2641_v12 = vadd.f32 %v2569_v6, %v2359_v26  ;;  %3228 = vmatmul.msk.f32.gmra.mxu1 %vm262_vm0, %v3402_v10  ;;  %3302 = vmatmul.msk.f32.gmra.mxu2 %vm262_vm0, %v3262_v46  ;;  %v4993_v6 = vld [vmem:[#allocation43_spill] sm:$0xff]  ;;  %v2674_v20 = vadd.f32 %v4695_v63, %v2639_v25 }
 0x249   : >> { %v2676_v55 = vadd.f32 %v4695_v63, %v2641_v12  ;;  %3374 = vmatmul.msk.f32.gmra.mxu3 %vm262_vm0, %v3334_v43  ;;  %v2572_v24 = vpop.f32.mrf.mxu0  ;;  %v3336_v12 = vld [vmem:[%s3598_s14 + $0x181] sm:$0xff] }
 0x24a   : >> { %v2008_v56 = vpop.f32.mrf.mxu2 }
 0x24b   : >> { %v2708_v41 = vmax.f32 %v2676_v55, 0.0  ;;  %v2078_v10 = vadd.f32 %v2008_v56, %v1793_v29  ;;  %v3408_v55 = vld [vmem:[%s3598_s14 + $0x182] sm:$0xff] }
 0x24c   : >> { %v1726_v42 = vpop.f32.mrf.mxu1  ;;  %v2290_v48 = vpop.f32.mrf.mxu3  ;;  %3446 = vmatmul.msk.f32.gmra.mxu0 %vm262_vm0, %v3406_v52  ;;  %v2706_v52 = vmax.f32 %v2674_v20, 0.0 }
 0x24d   : >> { %v2750_v17 = vmax.f32 %v2704_v38, %v2708_v41  ;;  %v2360_v1 = vadd.f32 %v2290_v48, %v2078_v10  ;;  %v1794_v5 = vadd.f32 %v1726_v42, %v4993_v6 }
 0x24f   : >> { %2754 = vst [vmem:[#allocation2] sm:$0xff] %v2750_v17  ;;  %v2642_v3 = vadd.f32 %v2572_v24, %v2360_v1  ;;  %3229 = vmatmul.msk.f32.gmra.mxu1 %vm262_vm0, %v4769_v19  ;;  %3303 = vmatmul.msk.f32.gmra.mxu2 %vm262_vm0, %v3263_v7  ;;  %v2076_v19 = vadd.f32 %v4788_v31, %v1791_v28 }
 0x251   : >> { %v2677_v15 = vadd.f32 %v4695_v63, %v2642_v3  ;;  %3375 = vmatmul.msk.f32.gmra.mxu3 %vm262_vm0, %v3335_v49  ;;  %v2575_v34 = vpop.f32.mrf.mxu0  ;;  %v2358_v32 = vadd.f32 %v4790_v61, %v2076_v19 }
 0x252   : >> { %v2011_v47 = vpop.f32.mrf.mxu2 }
 0x253   : >> { %v2709_v40 = vmax.f32 %v2677_v15, 0.0  ;;  %v2079_v46 = vadd.f32 %v2011_v47, %v1794_v5  ;;  %v2640_v57 = vadd.f32 %v4783_v58, %v2358_v32 }
 0x254   : >> { %v1729_v26 = vpop.f32.mrf.mxu1  ;;  %v2293_v60 = vpop.f32.mrf.mxu3  ;;  %3447 = vmatmul.msk.f32.gmra.mxu0 %vm262_vm0, %v3407_v2 }
 0x255   : >> { %v2751_v43 = vmax.f32 %v2705_v39, %v2709_v40  ;;  %v2361_v0 = vadd.f32 %v2293_v60, %v2079_v46  ;;  %v1795_v62 = vadd.f32 %v1729_v26, %v4470_v11  ;;  %v2675_v42 = vadd.f32 %v4695_v63, %v2640_v57 }
 0x257   : >> { %2755 = vst [vmem:[#allocation2 + $0x8] sm:$0xff] %v2751_v43  ;;  %v2643_v27 = vadd.f32 %v2575_v34, %v2361_v0  ;;  %3230 = vmatmul.msk.f32.gmra.mxu1 %vm262_vm0, %v4786_v53  ;;  %3304 = vmatmul.msk.f32.gmra.mxu2 %vm262_vm0, %v3264_v45  ;;  %v2707_v14 = vmax.f32 %v2675_v42, 0.0 }
 0x259   : >> { %v2678_v31 = vadd.f32 %v4695_v63, %v2643_v27  ;;  %3376 = vmatmul.msk.f32.gmra.mxu3 %vm262_vm0, %v3336_v12  ;;  %v2578_v29 = vpop.f32.mrf.mxu0 }
 0x25a   : >> { %v2014_v24 = vpop.f32.mrf.mxu2 }
 0x25b   : >> { %v2710_v61 = vmax.f32 %v2678_v31, 0.0  ;;  %v2080_v56 = vadd.f32 %v2014_v24, %v1795_v62 }
 0x25c   : >> { %v1732_v38 = vpop.f32.mrf.mxu1  ;;  %v2296_v16 = vpop.f32.mrf.mxu3  ;;  %3448 = vmatmul.msk.f32.gmra.mxu0 %vm262_vm0, %v3408_v55 }
 0x25d   : >> { %v2752_v53 = vmax.f32 %v2706_v52, %v2710_v61  ;;  %v2362_v41 = vadd.f32 %v2296_v16, %v2080_v56  ;;  %v1796_v46 = vadd.f32 %v1732_v38, %v4481_v22 }
 0x25e   : >> { %v2758_v11 = vld [vmem:[#allocation2] ss:$2 sm:$0xff]  ;;  %v2760_v10 = vld [vmem:[#allocation2 + $0x1] ss:$2 sm:$0xff] }
 0x25f   : >> { %2756 = vst [vmem:[#allocation2 + $0x10] sm:$0xff] %v2752_v53  ;;  %v2644_v48 = vadd.f32 %v2578_v29, %v2362_v41  ;;  %v2762_v7 = vmax.f32 %v2758_v11, %v2760_v10 }
 0x261   : >> { %v2679_v17 = vadd.f32 %v4695_v63, %v2644_v48  ;;  %v2581_v1 = vpop.f32.mrf.mxu0  ;;  %3453 = vst [vmem:[%s4739_s13 + $0x10] sm:$0xff] %v2762_v7 }
 0x262   : >> { %v2017_v58 = vpop.f32.mrf.mxu2 }
 0x263   : >> { %v2711_v49 = vmax.f32 %v2679_v17, 0.0  ;;  %v2081_v45 = vadd.f32 %v2017_v58, %v1796_v46 }
 0x264   : >> { %v1735_v13 = vpop.f32.mrf.mxu1  ;;  %v2299_v3 = vpop.f32.mrf.mxu3 }
 0x265   : >> { %v2753_v59 = vmax.f32 %v2707_v14, %v2711_v49  ;;  %v2363_v12 = vadd.f32 %v2299_v3, %v2081_v45  ;;  %v1797_v20 = vadd.f32 %v1735_v13, %v4492_v23 }
 0x267   : >> { %2757 = vst [vmem:[#allocation2 + $0x18] sm:$0xff] %v2753_v59  ;;  %v2645_v29 = vadd.f32 %v2581_v1, %v2363_v12 }
 0x269   : >> { %v2584_v28 = vpop.f32.mrf.mxu0  ;;  %v2680_v22 = vadd.f32 %v4695_v63, %v2645_v29 }
 0x26a   : >> { %v2020_v6 = vpop.f32.mrf.mxu2 }
 0x26b   : >> { %v2082_v62 = vadd.f32 %v2020_v6, %v1797_v20  ;;  %v2712_v11 = vmax.f32 %v2680_v22, 0.0 }
 0x26c   : >> { %v1738_v5 = vpop.f32.mrf.mxu1  ;;  %v2302_v15 = vpop.f32.mrf.mxu3 }
 0x26d   : >> { %v2364_v61 = vadd.f32 %v2302_v15, %v2082_v62  ;;  %v1798_v38 = vadd.f32 %v1738_v5, %v4503_v36 }
 0x26e   : >> { %v2759_v34 = vld [vmem:[#allocation2 + $0x10] ss:$2 sm:$0xff]  ;;  %v2761_v2 = vld [vmem:[#allocation2 + $0x11] ss:$2 sm:$0xff] }
 0x26f   : >> { %v2763_v39 = vmax.f32 %v2759_v34, %v2761_v2 }
 0x271   : >> { %v2587_v47 = vpop.f32.mrf.mxu0  ;;  %3454 = vst [vmem:[%s4739_s13 + $0x18] sm:$0xff] %v2763_v39 }
 0x272   : >> { %v2023_v25 = vpop.f32.mrf.mxu2 }
 0x273   : >> { %v2083_v10 = vadd.f32 %v2023_v25, %v1798_v38 }
 0x274   : >> { %v1741_v19 = vpop.f32.mrf.mxu1  ;;  %v2305_v40 = vpop.f32.mrf.mxu3 }
 0x275   : >> { %v2365_v49 = vadd.f32 %v2305_v40, %v2083_v10 }
 0x277   : >> { %v2647_v5 = vadd.f32 %v2587_v47, %v2365_v49 }
 0x279   : >> { %v2590_v26 = vpop.f32.mrf.mxu0  ;;  %v2682_v40 = vadd.f32 %v4695_v63, %v2647_v5 }
 0x27a   : >> { %v2026_v60 = vpop.f32.mrf.mxu2 }
 0x27c   : >> { %v1744_v43 = vpop.f32.mrf.mxu1  ;;  %v2308_v0 = vpop.f32.mrf.mxu3 }
 0x27d   : >> { %v1800_v32 = vadd.f32 %v1744_v43, %v4525_v30  ;;  %v2646_v30 = vadd.f32 %v2584_v28, %v2364_v61 }
 0x27f   : >> { %v2681_v14 = vadd.f32 %v4695_v63, %v2646_v30 }
 0x281   : >> { %v2593_v27 = vpop.f32.mrf.mxu0  ;;  %v2713_v28 = vmax.f32 %v2681_v14, 0.0 }
 0x282   : >> { %v2029_v31 = vpop.f32.mrf.mxu2 }
 0x283   : >> { %v2085_v55 = vadd.f32 %v2029_v31, %v1800_v32  ;;  %v2714_v32 = vmax.f32 %v2682_v40, 0.0 }
 0x284   : >> { %v1747_v24 = vpop.f32.mrf.mxu1  ;;  %v2311_v52 = vpop.f32.mrf.mxu3 }
 0x285   : >> { %v2367_v57 = vadd.f32 %v2311_v52, %v2085_v55  ;;  %v1801_v16 = vadd.f32 %v1747_v24, %v4536_v37  ;;  %v1799_v37 = vadd.f32 %v1741_v19, %v4514_v8 }
 0x287   : >> { %v2649_v56 = vadd.f32 %v2593_v27, %v2367_v57  ;;  %v2084_v15 = vadd.f32 %v2026_v60, %v1799_v37 }
 0x289   : >> { %v2684_v23 = vadd.f32 %v4695_v63, %v2649_v56  ;;  %v2596_v53 = vpop.f32.mrf.mxu0  ;;  %v2366_v43 = vadd.f32 %v2308_v0, %v2084_v15 }
 0x28a   : >> { %v2032_v41 = vpop.f32.mrf.mxu2 }
 0x28b   : >> { %v2716_v42 = vmax.f32 %v2684_v23, 0.0  ;;  %v2086_v48 = vadd.f32 %v2032_v41, %v1801_v16  ;;  %v2648_v47 = vadd.f32 %v2590_v26, %v2366_v43 }
 0x28c   : >> { %v1750_v7 = vpop.f32.mrf.mxu1  ;;  %v2314_v17 = vpop.f32.mrf.mxu3 }
 0x28d   : >> { %v2769_v1 = vmax.f32 %v2712_v11, %v2716_v42  ;;  %v2368_v58 = vadd.f32 %v2314_v17, %v2086_v48  ;;  %v1802_v13 = vadd.f32 %v1750_v7, %v4547_v44  ;;  %v2683_v0 = vadd.f32 %v4695_v63, %v2648_v47 }
 0x28f   : >> { %2773 = vst [vmem:[#allocation2] sm:$0xff] %v2769_v1  ;;  %v2650_v36 = vadd.f32 %v2596_v53, %v2368_v58  ;;  %v2715_v26 = vmax.f32 %v2683_v0, 0.0 }
 0x291   : >> { %v2685_v3 = vadd.f32 %v4695_v63, %v2650_v36  ;;  %v2599_v59 = vpop.f32.mrf.mxu0 }
 0x292   : >> { %v2035_v6 = vpop.f32.mrf.mxu2 }
 0x293   : >> { %v2717_v34 = vmax.f32 %v2685_v3, 0.0  ;;  %v2087_v2 = vadd.f32 %v2035_v6, %v1802_v13 }
 0x294   : >> { %v1753_v39 = vpop.f32.mrf.mxu1  ;;  %v2317_v25 = vpop.f32.mrf.mxu3 }
 0x295   : >> { %v2770_v46 = vmax.f32 %v2713_v28, %v2717_v34  ;;  %v2369_v45 = vadd.f32 %v2317_v25, %v2087_v2  ;;  %v1803_v44 = vadd.f32 %v1753_v39, %v4558_v21 }
 0x297   : >> { %2774 = vst [vmem:[#allocation2 + $0x8] sm:$0xff] %v2770_v46  ;;  %v2651_v8 = vadd.f32 %v2599_v59, %v2369_v45 }
 0x299   : >> { %v2686_v19 = vadd.f32 %v4695_v63, %v2651_v8  ;;  %v2602_v12 = vpop.f32.mrf.mxu0 }
 0x29a   : >> { %v2038_v20 = vpop.f32.mrf.mxu2 }
 0x29b   : >> { %v2718_v60 = vmax.f32 %v2686_v19, 0.0  ;;  %v2088_v27 = vadd.f32 %v2038_v20, %v1803_v44 }
 0x29c   : >> { %v1756_v62 = vpop.f32.mrf.mxu1  ;;  %v2320_v31 = vpop.f32.mrf.mxu3 }
 0x29d   : >> { %v2771_v29 = vmax.f32 %v2714_v32, %v2718_v60  ;;  %v2370_v55 = vadd.f32 %v2320_v31, %v2088_v27  ;;  %v1804_v49 = vadd.f32 %v1756_v62, %v4569_v18 }
 0x29e   : >> { %v2777_v24 = vld [vmem:[#allocation2] ss:$2 sm:$0xff]  ;;  %v2779_v52 = vld [vmem:[#allocation2 + $0x1] ss:$2 sm:$0xff] }
 0x29f   : >> { %2775 = vst [vmem:[#allocation2 + $0x10] sm:$0xff] %v2771_v29  ;;  %v2652_v57 = vadd.f32 %v2602_v12, %v2370_v55  ;;  %v2781_v21 = vmax.f32 %v2777_v24, %v2779_v52 }
 0x2a1   : >> { %v2687_v61 = vadd.f32 %v4695_v63, %v2652_v57  ;;  %v2605_v22 = vpop.f32.mrf.mxu0  ;;  %3457 = vst [vmem:[%s4739_s13 + $0x20] sm:$0xff] %v2781_v21 }
 0x2a2   : >> { %v2041_v56 = vpop.f32.mrf.mxu2 }
 0x2a3   : >> { %v2719_v38 = vmax.f32 %v2687_v61, 0.0  ;;  %v2089_v13 = vadd.f32 %v2041_v56, %v1804_v49 }
 0x2a4   : >> { %v1759_v16 = vpop.f32.mrf.mxu1  ;;  %v2323_v23 = vpop.f32.mrf.mxu3 }
 0x2a5   : >> { %v2772_v53 = vmax.f32 %v2715_v26, %v2719_v38  ;;  %v2371_v28 = vadd.f32 %v2323_v23, %v2089_v13  ;;  %v1805_v6 = vadd.f32 %v1759_v16, %v4580_v9 }
 0x2a7   : >> { %2776 = vst [vmem:[#allocation2 + $0x18] sm:$0xff] %v2772_v53  ;;  %v2653_v39 = vadd.f32 %v2605_v22, %v2371_v28 }
 0x2a9   : >> { %v2608_v30 = vpop.f32.mrf.mxu0  ;;  %v2688_v18 = vadd.f32 %v4695_v63, %v2653_v39 }
 0x2aa   : >> { %v2044_v41 = vpop.f32.mrf.mxu2 }
 0x2ab   : >> { %v2090_v34 = vadd.f32 %v2044_v41, %v1805_v6  ;;  %v2720_v32 = vmax.f32 %v2688_v18, 0.0 }
 0x2ac   : >> { %v1762_v11 = vpop.f32.mrf.mxu1  ;;  %v2326_v10 = vpop.f32.mrf.mxu3 }
 0x2ad   : >> { %v2372_v43 = vadd.f32 %v2326_v10, %v2090_v34  ;;  %v1806_v44 = vadd.f32 %v1762_v11, %v4591_v50 }
 0x2ae   : >> { %v2778_v42 = vld [vmem:[#allocation2 + $0x10] ss:$2 sm:$0xff]  ;;  %v2780_v48 = vld [vmem:[#allocation2 + $0x11] ss:$2 sm:$0xff] }
 0x2af   : >> { %v2782_v7 = vmax.f32 %v2778_v42, %v2780_v48 }
 0x2b1   : >> { %v2611_v17 = vpop.f32.mrf.mxu0  ;;  %3458 = vst [vmem:[%s4739_s13 + $0x28] sm:$0xff] %v2782_v7 }
 0x2b2   : >> { %v2047_v1 = vpop.f32.mrf.mxu2 }
 0x2b3   : >> { %v2091_v47 = vadd.f32 %v2047_v1, %v1806_v44 }
 0x2b4   : >> { %v1765_v58 = vpop.f32.mrf.mxu1  ;;  %v2329_v14 = vpop.f32.mrf.mxu3 }
 0x2b5   : >> { %v2373_v52 = vadd.f32 %v2329_v14, %v2091_v47 }
 0x2b7   : >> { %v2655_v56 = vadd.f32 %v2611_v17, %v2373_v52 }
 0x2b9   : >> { %v2614_v36 = vpop.f32.mrf.mxu0  ;;  %v2690_v11 = vadd.f32 %v4695_v63, %v2655_v56 }
 0x2ba   : >> { %v2050_v37 = vpop.f32.mrf.mxu2 }
 0x2bb   : >> { %v2722_v7 = vmax.f32 %v2690_v11, 0.0 }
 0x2bc   : >> { %v1768_v3 = vpop.f32.mrf.mxu1  ;;  %v2332_v59 = vpop.f32.mrf.mxu3 }
 0x2bd   : >> { %v1808_v5 = vadd.f32 %v1768_v3, %v4613_v4  ;;  %v2654_v4 = vadd.f32 %v2608_v30, %v2372_v43 }
 0x2bf   : >> { %v2689_v24 = vadd.f32 %v4695_v63, %v2654_v4 }
 0x2c1   : >> { %v2617_v15 = vpop.f32.mrf.mxu0  ;;  %v2721_v21 = vmax.f32 %v2689_v24, 0.0 }
 0x2c2   : >> { %v2053_v2 = vpop.f32.mrf.mxu2 }
 0x2c3   : >> { %v2093_v25 = vadd.f32 %v2053_v2, %v1808_v5 }
 0x2c4   : >> { %v1771_v46 = vpop.f32.mrf.mxu1  ;;  %v2335_v45 = vpop.f32.mrf.mxu3 }
 0x2c5   : >> { %v2375_v40 = vadd.f32 %v2335_v45, %v2093_v25  ;;  %v1809_v19 = vadd.f32 %v1771_v46, %v4624_v33  ;;  %v1807_v33 = vadd.f32 %v1765_v58, %v4602_v54 }
 0x2c7   : >> { %v2657_v8 = vadd.f32 %v2617_v15, %v2375_v40  ;;  %v2092_v26 = vadd.f32 %v2050_v37, %v1807_v33 }
 0x2c9   : >> { %v2692_v9 = vadd.f32 %v4695_v63, %v2657_v8  ;;  %v2620_v12 = vpop.f32.mrf.mxu0  ;;  %v2374_v10 = vadd.f32 %v2332_v59, %v2092_v26 }
 0x2ca   : >> { %v2056_v20 = vpop.f32.mrf.mxu2 }
 0x2cb   : >> { %v2724_v60 = vmax.f32 %v2692_v9, 0.0  ;;  %v2094_v27 = vadd.f32 %v2056_v20, %v1809_v19  ;;  %v2656_v17 = vadd.f32 %v2614_v36, %v2374_v10 }
 0x2cc   : >> { %v1774_v62 = vpop.f32.mrf.mxu1  ;;  %v2338_v31 = vpop.f32.mrf.mxu3 }
 0x2cd   : >> { %v2788_v29 = vmax.f32 %v2720_v32, %v2724_v60  ;;  %v2376_v55 = vadd.f32 %v2338_v31, %v2094_v27  ;;  %v1810_v0 = vadd.f32 %v1774_v62, %v4635_v35  ;;  %v2691_v59 = vadd.f32 %v4695_v63, %v2656_v17 }
 0x2cf   : >> { %2792 = vst [vmem:[#allocation2] sm:$0xff] %v2788_v29  ;;  %v2658_v50 = vadd.f32 %v2620_v12, %v2376_v55  ;;  %v2723_v15 = vmax.f32 %v2691_v59, 0.0 }
 0x2d1   : >> { %v2693_v57 = vadd.f32 %v4695_v63, %v2658_v50  ;;  %v2623_v22 = vpop.f32.mrf.mxu0 }
 0x2d2   : >> { %v2059_v61 = vpop.f32.mrf.mxu2 }
 0x2d3   : >> { %v2725_v38 = vmax.f32 %v2693_v57, 0.0  ;;  %v2095_v16 = vadd.f32 %v2059_v61, %v1810_v0 }
 0x2d4   : >> { %v2341_v23 = vpop.f32.mrf.mxu3  ;;  %v1777_v41 = vpop.f32.mrf.mxu1 }
 0x2d5   : >> { %v2789_v53 = vmax.f32 %v2721_v21, %v2725_v38  ;;  %v2377_v30 = vadd.f32 %v2341_v23, %v2095_v16  ;;  %v1811_v35 = vadd.f32 %v1777_v41, %v4646_v51 }
 0x2d7   : >> { %2793 = vst [vmem:[#allocation2 + $0x8] sm:$0xff] %v2789_v53  ;;  %v2659_v54 = vadd.f32 %v2623_v22, %v2377_v30 }
 0x2d9   : >> { %v2694_v42 = vadd.f32 %v4695_v63, %v2659_v54  ;;  %v2626_v49 = vpop.f32.mrf.mxu0 }
 0x2da   : >> { %v2062_v48 = vpop.f32.mrf.mxu2 }
 0x2db   : >> { %v2726_v1 = vmax.f32 %v2694_v42, 0.0  ;;  %v2096_v58 = vadd.f32 %v2062_v48, %v1811_v35 }
 0x2dc   : >> { %v2344_v14 = vpop.f32.mrf.mxu3 }
 0x2dd   : >> { %v2790_v37 = vmax.f32 %v2722_v7, %v2726_v1  ;;  %v2378_v13 = vadd.f32 %v2344_v14, %v2096_v58 }
 0x2de   : >> { %v2796_v3 = vld [vmem:[#allocation2] ss:$2 sm:$0xff]  ;;  %v2798_v28 = vld [vmem:[#allocation2 + $0x1] ss:$2 sm:$0xff] }
 0x2df   : >> { %v2800_v6 = vmax.f32 %v2796_v3, %v2798_v28  ;;  %2794 = vst [vmem:[#allocation2 + $0x10] sm:$0xff] %v2790_v37  ;;  %v2660_v51 = vadd.f32 %v2626_v49, %v2378_v13 }
 0x2e1   : >> { %3461 = vst [vmem:[%s4739_s13 + $0x30] sm:$0xff] %v2800_v6  ;;  %v2695_v5 = vadd.f32 %v4695_v63, %v2660_v51 }
 0x2e3   : >> { %v2727_v34 = vmax.f32 %v2695_v5, 0.0 }
 0x2e5   : >> { %v2791_v36 = vmax.f32 %v2723_v15, %v2727_v34 }
 0x2e7   : >> { %2795 = vst [vmem:[#allocation2 + $0x18] sm:$0xff] %v2791_v36 }
 0x2ed   : > { %176 = sbr.rel (!%p174_p4) target bundleno = 15 (0xf), region = 87 }
 0x2ee   : >> { %v2797_v2 = vld [vmem:[#allocation2 + $0x10] ss:$2 sm:$0xff]  ;;  %v2799_v39 = vld [vmem:[#allocation2 + $0x11] ss:$2 sm:$0xff] }
 0x2ef   : >> { %v2801_v25 = vmax.f32 %v2797_v2, %v2799_v39 }
 0x2f1   : >> { %3462 = vst [vmem:[%s4739_s13 + $0x38] sm:$0xff] %v2801_v25 }
 0x2f2 PF: > { %s13_s12 = sadd.s32 1, %s3521_s12  }
 0x2f3   : > { %p10_p5 = scmp.ge.s32.totalorder %s13_s12, 4  }
 0x2f5   :  { %12 = sbr.rel (!%p10_p5) target bundleno = 1 (0x1), region = 98 }

// kernel: combined_nn_forward.9
= control target key start
LH: loop header
LB: loop body
LE: loop exit
PB: predicated region body
PF: predicated region fallthrough
CT: control target
= control target key end

     0   :  { %vm102_vm0 = vcmask 1042432   ;;  %vm99_vm1 = vcmask 285696   ;;  %s1057_s0 = inlined_call_operand.vmem [shape: f32[2,256], index: 0, kind: input, shape index: {}]   ;;  %s1058_s1 = inlined_call_operand.vmem [shape: f32[2,163], index: 1, kind: input, shape index: {}]   ;;  %s1059_s2 = inlined_call_operand.vmem [shape: f32[163,256], index: 2, kind: input, shape index: {}]   ;;  %s1060_s3 = inlined_call_operand.vmem [shape: f32[1,256], index: 3, kind: input, shape index: {}]   ;;  %s1061_s4 = inlined_call_operand.vmem [shape: f32[256,128], index: 4, kind: input, shape index: {}]   ;;  %s1062_s5 = inlined_call_operand.vmem [shape: f32[1,128], index: 5, kind: input, shape index: {}]   ;;  %s1063_s6 = inlined_call_operand.vmem [shape: f32[256,128], index: 6, kind: input, shape index: {}]   ;;  %s1064_s7 = inlined_call_operand.vmem [shape: f32[128,128], index: 7, kind: input, shape index: {}]   ;;  %s1065_s8 = inlined_call_operand.vmem [shape: f32[1,128], index: 8, kind: input, shape index: {}]   ;;  %s1066_s9 = inlined_call_operand.vmem [shape: f32[128,64], index: 9, kind: input, shape index: {}]   ;;  %s1067_s10 = inlined_call_operand.vmem [shape: f32[1,64], index: 10, kind: input, shape index: {}]   ;;  %s1068_s11 = inlined_call_operand.vmem [shape: f32[64,6], index: 11, kind: input, shape index: {}]   ;;  %s1069_s12 = inlined_call_operand.vmem [shape: f32[1,6], index: 12, kind: input, shape index: {}]   ;;  %s1070_s13 = inlined_call_operand.hbm [shape: f32[2,6], index: 13, kind: output, shape index: {}]  }
   0x1   :  { %v77_v0 = vld [vmem:[%s1059_s2 + $0xf8] sm:$0xff]  ;;  %v75_v1 = vld [vmem:[%s1059_s2 + $0xe8] sm:$0xff]  ;;  %v76_v2 = vld [vmem:[%s1059_s2 + $0xf0] sm:$0xff] }
   0x2   :  { %149 = vmatpush.msra.mxu2 %v77_v0  ;;  %v73_v3 = vld [vmem:[%s1059_s2 + $0xd8] sm:$0xff]  ;;  %109 = vmatpush.msra.mxu0 %v76_v2  ;;  %v74_v4 = vld [vmem:[%s1059_s2 + $0xe0] sm:$0xff]  ;;  %v72_v5 = vld [vmem:[%s1059_s2 + $0xd0] sm:$0xff] }
   0x3   :  { %v71_v6 = vld [vmem:[%s1059_s2 + $0xc8] sm:$0xff]  ;;  %v70_v7 = vld [vmem:[%s1059_s2 + $0xc0] sm:$0xff]  ;;  %v69_v8 = vld [vmem:[%s1059_s2 + $0xb8] sm:$0xff] }
   0x4   :  { %150 = vmatpush.msra.mxu2 %v75_v1  ;;  %110 = vmatpush.msra.mxu0 %v74_v4  ;;  %v68_v9 = vld [vmem:[%s1059_s2 + $0xb0] sm:$0xff]  ;;  %v87_v10 = vld [vmem:[%s1059_s2 + $0x148] sm:$0x7]  ;;  %v85_v12 = vld [vmem:[%s1059_s2 + $0x138] sm:$0xff] }
   0x5   :  { %v67_v11 = vld [vmem:[%s1059_s2 + $0xa8] sm:$0xff]  ;;  %486 = vmatpush.msk.msra.mxu3 %vm102_vm0, %v87_v10  ;;  %v66_v13 = vld [vmem:[%s1059_s2 + $0xa0] sm:$0xff]  ;;  %v65_v15 = vld [vmem:[%s1059_s2 + $0x98] sm:$0xff] }
   0x6   :  { %151 = vmatpush.msra.mxu2 %v73_v3  ;;  %111 = vmatpush.msra.mxu0 %v72_v5  ;;  %v83_v14 = vld [vmem:[%s1059_s2 + $0x128] sm:$0xff]  ;;  %v45_v16 = vld [vmem:[%s1058_s1] sm:$0xf]  ;;  %v64_v17 = vld [vmem:[%s1059_s2 + $0x90] sm:$0xff] }
   0x7   :  { %181 = vmatpush.msra.mxu3 %v85_v12  ;;  %v81_v18 = vld [vmem:[%s1059_s2 + $0x118] sm:$0xff]  ;;  %95 = vst [vmem:[#allocation1] ss:$4 sm:$0xff] %v45_v16  ;;  %v63_v19 = vld [vmem:[%s1059_s2 + $0x88] sm:$0xff]  ;;  %v86_v20 = vld [vmem:[%s1059_s2 + $0x140] sm:$0x7] }
   0x8   :  { %152 = vmatpush.msra.mxu2 %v71_v6  ;;  %112 = vmatpush.msra.mxu0 %v70_v7  ;;  %v84_v21 = vld [vmem:[%s1059_s2 + $0x130] sm:$0xff]  ;;  %v62_v22 = vld [vmem:[%s1059_s2 + $0x80] sm:$0xff]  ;;  %v79_v23 = vld [vmem:[%s1059_s2 + $0x108] sm:$0xff] }
   0x9   :  { %182 = vmatpush.msra.mxu3 %v83_v14  ;;  %484 = vmatpush.msk.msra.mxu1 %vm102_vm0, %v86_v20  ;;  %v61_v24 = vld [vmem:[%s1059_s2 + $0x78] sm:$0xff]  ;;  %v82_v25 = vld [vmem:[%s1059_s2 + $0x120] sm:$0xff]  ;;  %v60_v26 = vld [vmem:[%s1059_s2 + $0x70] sm:$0xff] }
   0xa   :  { %153 = vmatpush.msra.mxu2 %v69_v8  ;;  %113 = vmatpush.msra.mxu0 %v68_v9  ;;  %v222_v27 = vld [vmem:[%s1061_s4 + $0xf8] sm:$0xff]  ;;  %v59_v28 = vld [vmem:[%s1059_s2 + $0x68] sm:$0xff]  ;;  %v268_v30 = vld [vmem:[%s1057_s0] sm:$0xf] }
   0xb   :  { %183 = vmatpush.msra.mxu3 %v81_v18  ;;  %141 = vmatpush.msra.mxu1 %v84_v21  ;;  %v57_v29 = vld [vmem:[%s1059_s2 + $0x58] sm:$0xff]  ;;  %v58_v31 = vld [vmem:[%s1059_s2 + $0x60] sm:$0xff]  ;;  %v80_v32 = vld [vmem:[%s1059_s2 + $0x110] sm:$0xff] }
   0xc   :  { %154 = vmatpush.msra.mxu2 %v67_v11  ;;  %114 = vmatpush.msra.mxu0 %v66_v13  ;;  %v221_v33 = vld [vmem:[%s1061_s4 + $0xf0] sm:$0xff]  ;;  %v78_v37 = vld [vmem:[%s1059_s2 + $0x100] sm:$0xff]  ;;  %v55_v38 = vld [vmem:[%s1059_s2 + $0x48] sm:$0xff] }
   0xd   :  { %184 = vmatpush.msra.mxu3 %v79_v23  ;;  %142 = vmatpush.msra.mxu1 %v82_v25  ;;  %v56_v36 = vld [vmem:[%s1059_s2 + $0x50] sm:$0xff]  ;;  %v53_v39 = vld [vmem:[%s1059_s2 + $0x38] sm:$0xff]  ;;  %v54_v40 = vld [vmem:[%s1059_s2 + $0x40] sm:$0xff] }
   0xe   :  { %155 = vmatpush.msra.mxu2 %v65_v15  ;;  %115 = vmatpush.msra.mxu0 %v64_v17  ;;  %v96_v34 = vld.sshfl [vmem:[#allocation1] sm:$0xff pattern:$0x73625140]  ;;  %v97_v35 = vld.sshfl [vmem:[#allocation1 + $0x8] sm:$0xff pattern:$0x73625140] }
   0xf   :  { %247 = vmatpush.msrb.mxu3 %v222_v27  ;;  %338 = vst [vmem:[#allocation1] ss:$4 sm:$0xff] %v268_v30  ;;  %143 = vmatpush.msra.mxu1 %v80_v32  ;;  %v206_v41 = vld [vmem:[%s1061_s4 + $0x78] sm:$0xff]  ;;  %v51_v42 = vld [vmem:[%s1059_s2 + $0x28] sm:$0xff]  ;;  %v52_v43 = vld [vmem:[%s1059_s2 + $0x30] sm:$0xff] }
  0x10   :  { %156 = vmatpush.msra.mxu2 %v63_v19  ;;  %116 = vmatpush.msra.mxu0 %v62_v22  ;;  %v220_v44 = vld [vmem:[%s1061_s4 + $0xe8] sm:$0xff]  ;;  %v205_v45 = vld [vmem:[%s1061_s4 + $0x70] sm:$0xff]  ;;  %v219_v46 = vld [vmem:[%s1061_s4 + $0xe0] sm:$0xff] }
  0x11   :  { %487 = vmatmul.msk.f32.vlgmr.msra.gmra.mxu3 %vm99_vm1, %v97_v35  ;;  %144 = vmatpush.msra.mxu1 %v78_v37  ;;  %v50_v47 = vld [vmem:[%s1059_s2 + $0x20] sm:$0xff]  ;;  %v204_v48 = vld [vmem:[%s1061_s4 + $0x68] sm:$0xff] }
  0x12   :  { %157 = vmatpush.msra.mxu2 %v61_v24  ;;  %117 = vmatpush.msra.mxu0 %v60_v26 }
  0x13   :  { %248 = vmatpush.msrb.mxu3 %v221_v33  ;;  %485 = vmatmul.msk.f32.vlgmr.msra.gmra.mxu1 %vm99_vm1, %v97_v35 }
  0x14   :  { %158 = vmatpush.msra.mxu2 %v59_v28  ;;  %118 = vmatpush.msra.mxu0 %v58_v31 }
  0x15   :  { %227 = vmatpush.msrb.mxu1 %v206_v41  ;;  %249 = vmatpush.msrb.mxu3 %v220_v44 }
  0x16   :  { %159 = vmatpush.msra.mxu2 %v57_v29  ;;  %119 = vmatpush.msra.mxu0 %v56_v36 }
  0x18   :  { %160 = vmatpush.msra.mxu2 %v55_v38  ;;  %120 = vmatpush.msra.mxu0 %v54_v40 }
  0x1a   :  { %161 = vmatpush.msra.mxu2 %v53_v39 }
  0x1b   :  { %18 = vsyncpa [#allocation3], 0  ;;  %v49_v49 = vld [vmem:[%s1059_s2 + $0x18] sm:$0xff]  ;;  %121 = vmatpush.msra.mxu0 %v52_v43  ;;  %228 = vmatpush.msrb.mxu1 %v205_v45  ;;  %v48_v51 = vld [vmem:[%s1059_s2 + $0x10] sm:$0xff]  ;;  %vm442_vm2 = vcmask 523264   ;;  %s520_s23 = smov [#allocation2]  }
  0x1c   :  { %v218_v50 = vld [vmem:[%s1061_s4 + $0xd8] sm:$0xff]  ;;  %162 = vmatpush.msra.mxu2 %v51_v42  ;;  %250 = vmatpush.msrb.mxu3 %v219_v46  ;;  %v203_v52 = vld [vmem:[%s1061_s4 + $0x60] sm:$0xff]  ;;  %v47_v53 = vld [vmem:[%s1059_s2 + $0x8] sm:$0xff]  ;;  %vm466_vm3 = vcmask 41984  }
  0x1d   :  { %122 = vmatpush.msra.mxu0 %v50_v47  ;;  %229 = vmatpush.msrb.mxu1 %v204_v48  ;;  %v217_v54 = vld [vmem:[%s1061_s4 + $0xd0] sm:$0xff]  ;;  %v46_v55 = vld [vmem:[%s1059_s2] sm:$0xff]  ;;  %v202_v56 = vld [vmem:[%s1061_s4 + $0x58] sm:$0xff] }
  0x1e   :  { %163 = vmatpush.msra.mxu2 %v49_v49  ;;  %251 = vmatpush.msrb.mxu3 %v218_v50  ;;  %v216_v57 = vld [vmem:[%s1061_s4 + $0xc8] sm:$0xff]  ;;  %v201_v58 = vld [vmem:[%s1061_s4 + $0x50] sm:$0xff]  ;;  %v215_v59 = vld [vmem:[%s1061_s4 + $0xc0] sm:$0xff] }
  0x1f   :  { %123 = vmatpush.msra.mxu0 %v48_v51  ;;  %230 = vmatpush.msrb.mxu1 %v203_v52  ;;  %v200_v60 = vld [vmem:[%s1061_s4 + $0x48] sm:$0xff]  ;;  %v214_v61 = vld [vmem:[%s1061_s4 + $0xb8] sm:$0xff]  ;;  %v199_v62 = vld [vmem:[%s1061_s4 + $0x40] sm:$0xff] }
  0x20   :  { %164 = vmatpush.msra.mxu2 %v47_v53  ;;  %252 = vmatpush.msrb.mxu3 %v217_v54  ;;  %v213_v63 = vld [vmem:[%s1061_s4 + $0xb0] sm:$0xff]  ;;  %v198_v0 = vld [vmem:[%s1061_s4 + $0x38] sm:$0xff]  ;;  %v212_v1 = vld [vmem:[%s1061_s4 + $0xa8] sm:$0xff] }
  0x21   :  { %165 = vmatmul.f32.vlgmr.msra.gmra.mxu2 %v96_v34  ;;  %124 = vmatpush.msra.mxu0 %v46_v55  ;;  %v197_v2 = vld [vmem:[%s1061_s4 + $0x30] sm:$0xff]  ;;  %v211_v3 = vld [vmem:[%s1061_s4 + $0xa0] sm:$0xff]  ;;  %v196_v4 = vld [vmem:[%s1061_s4 + $0x28] sm:$0xff] }
  0x22   :  { %125 = vmatmul.f32.vlgmr.msra.gmra.mxu0 %v96_v34  ;;  %231 = vmatpush.msrb.mxu1 %v202_v56  ;;  %v210_v5 = vld [vmem:[%s1061_s4 + $0x98] sm:$0xff]  ;;  %v195_v6 = vld [vmem:[%s1061_s4 + $0x20] sm:$0xff]  ;;  %v209_v7 = vld [vmem:[%s1061_s4 + $0x90] sm:$0xff] }
  0x23   :  { %253 = vmatpush.msrb.mxu3 %v216_v57  ;;  %v194_v8 = vld [vmem:[%s1061_s4 + $0x18] sm:$0xff]  ;;  %v208_v9 = vld [vmem:[%s1061_s4 + $0x88] sm:$0xff]  ;;  %v193_v10 = vld [vmem:[%s1061_s4 + $0x10] sm:$0xff] }
  0x24   :  { %232 = vmatpush.msrb.mxu1 %v201_v58  ;;  %v207_v11 = vld [vmem:[%s1061_s4 + $0x80] sm:$0xff]  ;;  %v192_v12 = vld [vmem:[%s1061_s4 + $0x8] sm:$0xff]  ;;  %v284_v14 = vld [vmem:[%s1063_s6 + $0x78] sm:$0xff] }
  0x25   :  { %254 = vmatpush.msrb.mxu3 %v215_v59  ;;  %v191_v13 = vld [vmem:[%s1061_s4] sm:$0xff]  ;;  %343 = vmatpush.msrb.mxu2 %v284_v14  ;;  %v283_v15 = vld [vmem:[%s1063_s6 + $0x70] sm:$0xff]  ;;  %v316_v16 = vld [vmem:[%s1064_s7 + $0x78] sm:$0xff] }
  0x26   :  { %233 = vmatpush.msrb.mxu1 %v200_v60  ;;  %v282_v17 = vld [vmem:[%s1063_s6 + $0x68] sm:$0xff]  ;;  %317 = vmatpush.msrb.mxu0 %v316_v16  ;;  %v315_v18 = vld [vmem:[%s1064_s7 + $0x70] sm:$0xff]  ;;  %v300_v19 = vld [vmem:[%s1063_s6 + $0xf8] sm:$0xff] }
  0x27   :  { %255 = vmatpush.msrb.mxu3 %v214_v61  ;;  %344 = vmatpush.msrb.mxu2 %v283_v15  ;;  %v314_v20 = vld [vmem:[%s1064_s7 + $0x68] sm:$0xff]  ;;  %v281_v21 = vld [vmem:[%s1063_s6 + $0x60] sm:$0xff]  ;;  %v299_v22 = vld [vmem:[%s1063_s6 + $0xf0] sm:$0xff] }
  0x28   :  { %234 = vmatpush.msrb.mxu1 %v199_v62  ;;  %318 = vmatpush.msrb.mxu0 %v315_v18  ;;  %v313_v23 = vld [vmem:[%s1064_s7 + $0x60] sm:$0xff]  ;;  %v298_v24 = vld [vmem:[%s1063_s6 + $0xe8] sm:$0xff]  ;;  %v280_v25 = vld [vmem:[%s1063_s6 + $0x58] sm:$0xff] }
  0x29   :  { %256 = vmatpush.msrb.mxu3 %v213_v63  ;;  %345 = vmatpush.msrb.mxu2 %v282_v17  ;;  %v312_v26 = vld [vmem:[%s1064_s7 + $0x58] sm:$0xff]  ;;  %v297_v27 = vld [vmem:[%s1063_s6 + $0xe0] sm:$0xff]  ;;  %v279_v28 = vld [vmem:[%s1063_s6 + $0x50] sm:$0xff] }
  0x2a   :  { %235 = vmatpush.msrb.mxu1 %v198_v0  ;;  %319 = vmatpush.msrb.mxu0 %v314_v20  ;;  %v311_v29 = vld [vmem:[%s1064_s7 + $0x50] sm:$0xff]  ;;  %v296_v30 = vld [vmem:[%s1063_s6 + $0xd8] sm:$0xff]  ;;  %v278_v31 = vld [vmem:[%s1063_s6 + $0x48] sm:$0xff] }
  0x2b   :  { %257 = vmatpush.msrb.mxu3 %v212_v1  ;;  %346 = vmatpush.msrb.mxu2 %v281_v21  ;;  %v310_v32 = vld [vmem:[%s1064_s7 + $0x48] sm:$0xff]  ;;  %v295_v33 = vld [vmem:[%s1063_s6 + $0xd0] sm:$0xff]  ;;  %v277_v34 = vld [vmem:[%s1063_s6 + $0x40] sm:$0xff] }
  0x2c   :  { %236 = vmatpush.msrb.mxu1 %v197_v2  ;;  %320 = vmatpush.msrb.mxu0 %v313_v23  ;;  %v309_v35 = vld [vmem:[%s1064_s7 + $0x40] sm:$0xff]  ;;  %v294_v36 = vld [vmem:[%s1063_s6 + $0xc8] sm:$0xff]  ;;  %v276_v37 = vld [vmem:[%s1063_s6 + $0x38] sm:$0xff] }
  0x2d   :  { %258 = vmatpush.msrb.mxu3 %v211_v3  ;;  %347 = vmatpush.msrb.mxu2 %v280_v25  ;;  %v308_v38 = vld [vmem:[%s1064_s7 + $0x38] sm:$0xff]  ;;  %v293_v39 = vld [vmem:[%s1063_s6 + $0xc0] sm:$0xff]  ;;  %v275_v41 = vld [vmem:[%s1063_s6 + $0x30] sm:$0xff] }
  0x2e   :  { %237 = vmatpush.msrb.mxu1 %v196_v4  ;;  %321 = vmatpush.msrb.mxu0 %v312_v26  ;;  %v88_v40 = vld [vmem:[%s1060_s3] sm:$0x3]  ;;  %v307_v43 = vld [vmem:[%s1064_s7 + $0x30] sm:$0xff]  ;;  %v292_v44 = vld [vmem:[%s1063_s6 + $0xb8] sm:$0xff] }
  0x2f   :  { %259 = vmatpush.msrb.mxu3 %v210_v5  ;;  %348 = vmatpush.msrb.mxu2 %v279_v28  ;;  %v90_v42 = vperm.slane %v88_v40, 0  ;;  %v274_v45 = vld [vmem:[%s1063_s6 + $0x28] sm:$0xff]  ;;  %v291_v47 = vld [vmem:[%s1063_s6 + $0xb0] sm:$0xff]  ;;  %v273_v50 = vld [vmem:[%s1063_s6 + $0x20] sm:$0xff]  ;;  %v91_v54 = vperm.slane %v88_v40, 1 }
  0x30   :  { %238 = vmatpush.msrb.mxu1 %v195_v6  ;;  %322 = vmatpush.msrb.mxu0 %v311_v29  ;;  %v306_v46 = vld [vmem:[%s1064_s7 + $0x28] sm:$0xff]  ;;  %v305_v52 = vld [vmem:[%s1064_s7 + $0x20] sm:$0xff]  ;;  %v272_v55 = vld [vmem:[%s1063_s6 + $0x18] sm:$0xff] }
  0x31   :  { %260 = vmatpush.msrb.mxu3 %v209_v7  ;;  %349 = vmatpush.msrb.mxu2 %v278_v31  ;;  %v290_v53 = vld [vmem:[%s1063_s6 + $0xa8] sm:$0xff]  ;;  %v271_v57 = vld [vmem:[%s1063_s6 + $0x10] sm:$0xff]  ;;  %v304_v1 = vld [vmem:[%s1064_s7 + $0x18] sm:$0xff] }
  0x32   :  { %239 = vmatpush.msrb.mxu1 %v194_v8  ;;  %323 = vmatpush.msrb.mxu0 %v310_v32  ;;  %v270_v62 = vld [vmem:[%s1063_s6 + $0x8] sm:$0xff]  ;;  %v269_v2 = vld [vmem:[%s1063_s6] sm:$0xff]  ;;  %v303_v5 = vld [vmem:[%s1064_s7 + $0x10] sm:$0xff] }
  0x33   :  { %261 = vmatpush.msrb.mxu3 %v208_v9  ;;  %350 = vmatpush.msrb.mxu2 %v277_v34  ;;  %v289_v3 = vld [vmem:[%s1063_s6 + $0xa0] sm:$0xff]  ;;  %v288_v6 = vld [vmem:[%s1063_s6 + $0x98] sm:$0xff]  ;;  %v302_v7 = vld [vmem:[%s1064_s7 + $0x8] sm:$0xff] }
  0x34   :  { %240 = vmatpush.msrb.mxu1 %v193_v10  ;;  %324 = vmatpush.msrb.mxu0 %v309_v35  ;;  %v339_v4 = vld.sshfl [vmem:[#allocation1] sm:$0xff pattern:$0x73625140]  ;;  %v287_v8 = vld [vmem:[%s1063_s6 + $0x90] sm:$0xff]  ;;  %v286_v10 = vld [vmem:[%s1063_s6 + $0x88] sm:$0xff] }
  0x35   :  { %262 = vmatpush.msrb.mxu3 %v207_v11  ;;  %351 = vmatpush.msrb.mxu2 %v276_v37  ;;  %v301_v9 = vld [vmem:[%s1064_s7] sm:$0xff]  ;;  %v403_v14 = vld [vmem:[%s1066_s9 + $0x70] sm:$0xff]  ;;  %v402_v15 = vld [vmem:[%s1066_s9 + $0x68] sm:$0xff] }
  0x36   :  { %241 = vmatpush.msrb.mxu1 %v192_v12  ;;  %325 = vmatpush.msrb.mxu0 %v308_v38  ;;  %v285_v11 = vld [vmem:[%s1063_s6 + $0x80] sm:$0xff]  ;;  %v340_v12 = vld.sshfl [vmem:[#allocation1 + $0x8] sm:$0xff pattern:$0x73625140]  ;;  %v400_v17 = vld [vmem:[%s1066_s9 + $0x58] sm:$0xff] }
  0x37   :  { %352 = vmatpush.msrb.mxu2 %v275_v41  ;;  %v401_v16 = vld [vmem:[%s1066_s9 + $0x60] sm:$0xff]  ;;  %v399_v18 = vld [vmem:[%s1066_s9 + $0x50] sm:$0xff]  ;;  %v396_v21 = vld [vmem:[%s1066_s9 + $0x38] sm:$0xff] }
  0x38   :  { %242 = vmatpush.msrb.mxu1 %v191_v13  ;;  %326 = vmatpush.msrb.mxu0 %v307_v43  ;;  %v404_v13 = vld [vmem:[%s1066_s9 + $0x78] sm:$0xff]  ;;  %v397_v20 = vld [vmem:[%s1066_s9 + $0x40] sm:$0xff]  ;;  %v394_v23 = vld [vmem:[%s1066_s9 + $0x28] sm:$0xff] }
  0x39   :  { %353 = vmatpush.msrb.mxu2 %v274_v45  ;;  %409 = vmatpush.msra.mxu3 %v404_v13  ;;  %v392_v31 = vld [vmem:[%s1066_s9 + $0x18] sm:$0xff]  ;;  %v391_v32 = vld [vmem:[%s1066_s9 + $0x10] sm:$0xff]  ;;  %v389_v34 = vld [vmem:[%s1066_s9] sm:$0xff] }
  0x3a   :  { %363 = vmatpush.msra.mxu1 %v300_v19  ;;  %327 = vmatpush.msrb.mxu0 %v306_v46  ;;  %v398_v19 = vld [vmem:[%s1066_s9 + $0x48] sm:$0xff]  ;;  %v437_v35 = vld [vmem:[%s1068_s11 + $0x38] sm:$0xff]  ;;  %v434_v38 = vld [vmem:[%s1068_s11 + $0x20] sm:$0xff] }
  0x3b   :  { %354 = vmatpush.msrb.mxu2 %v273_v50  ;;  %410 = vmatpush.msra.mxu3 %v403_v14  ;;  %v435_v37 = vld [vmem:[%s1068_s11 + $0x28] sm:$0xff]  ;;  %v430_v50 = vld [vmem:[%s1068_s11] sm:$0xff] }
  0x3c   :  { %364 = vmatpush.msra.mxu1 %v299_v22  ;;  %328 = vmatpush.msrb.mxu0 %v305_v52  ;;  %v395_v22 = vld [vmem:[%s1066_s9 + $0x30] sm:$0xff] }
  0x3d   :  { %355 = vmatpush.msrb.mxu2 %v272_v55  ;;  %411 = vmatpush.msra.mxu3 %v402_v15  ;;  %v493_v55 = vld [vmem:[%s1069_s12] ss:$0 sm:$0xff] }
  0x3e   :  { %365 = vmatpush.msra.mxu1 %v298_v24  ;;  %329 = vmatpush.msrb.mxu0 %v304_v1  ;;  %v490_v24 = vld [vmem:[%s1062_s5] ss:$0 sm:$0xff]  ;;  %s473_s5 = sshll.u32 %s520_s23, 4  ;;  %s474_s5 = int_to_ptr.vmem [resolvable:$true] %s473_s5 }
  0x3f   :  { %356 = vmatpush.msrb.mxu2 %v271_v57  ;;  %412 = vmatpush.msra.mxu3 %v401_v16 }
  0x40   :  { %366 = vmatpush.msra.mxu1 %v297_v27  ;;  %330 = vmatpush.msrb.mxu0 %v303_v5 }
  0x41   :  { %357 = vmatpush.msrb.mxu2 %v270_v62  ;;  %413 = vmatpush.msra.mxu3 %v400_v17 }
  0x42   :  { %367 = vmatpush.msra.mxu1 %v296_v30  ;;  %331 = vmatpush.msrb.mxu0 %v302_v7  ;;  %v393_v30 = vld [vmem:[%s1066_s9 + $0x20] sm:$0xff] }
  0x43   :  { %358 = vmatpush.msrb.mxu2 %v269_v2  ;;  %414 = vmatpush.msra.mxu3 %v399_v18 }
  0x44   :  { %368 = vmatpush.msra.mxu1 %v295_v33  ;;  %359 = vmatmul.f32.vlgmr.msrb.gmra.mxu2 %v339_v4  ;;  %v390_v33 = vld [vmem:[%s1066_s9 + $0x8] sm:$0xff] }
  0x45   :  { %332 = vmatpush.msrb.mxu0 %v301_v9  ;;  %415 = vmatpush.msra.mxu3 %v398_v19 }
  0x46   :  { %369 = vmatpush.msra.mxu1 %v294_v36  ;;  %v436_v36 = vld [vmem:[%s1068_s11 + $0x30] sm:$0xff] }
  0x47   :  { %416 = vmatpush.msra.mxu3 %v397_v20  ;;  %454 = vmatpush.msra.mxu0 %v437_v35 }
  0x48   :  { %370 = vmatpush.msra.mxu1 %v293_v39  ;;  %v433_v39 = vld [vmem:[%s1068_s11 + $0x18] sm:$0xff] }
  0x49   :  { %417 = vmatpush.msra.mxu3 %v396_v21  ;;  %455 = vmatpush.msra.mxu0 %v436_v36 }
  0x4a   :  { %371 = vmatpush.msra.mxu1 %v292_v44  ;;  %v491_v44 = vld [vmem:[%s1065_s8] ss:$0 sm:$0xff] }
  0x4b   :  { %418 = vmatpush.msra.mxu3 %v395_v22  ;;  %456 = vmatpush.msra.mxu0 %v435_v37 }
  0x4c   :  { %372 = vmatpush.msra.mxu1 %v291_v47 }
  0x4d   :  { %419 = vmatpush.msra.mxu3 %v394_v23  ;;  %457 = vmatpush.msra.mxu0 %v434_v38 }
  0x4e   :  { %373 = vmatpush.msra.mxu1 %v290_v53 }
  0x4f   :  { %420 = vmatpush.msra.mxu3 %v393_v30  ;;  %458 = vmatpush.msra.mxu0 %v433_v39 }
  0x50   :  { %374 = vmatpush.msra.mxu1 %v289_v3 }
  0x51   :  { %421 = vmatpush.msra.mxu3 %v392_v31 }
  0x52   :  { %375 = vmatpush.msra.mxu1 %v288_v6 }
  0x53   :  { %422 = vmatpush.msra.mxu3 %v391_v32 }
  0x54   :  { %376 = vmatpush.msra.mxu1 %v287_v8 }
  0x55   :  { %423 = vmatpush.msra.mxu3 %v390_v33 }
  0x56   :  { %377 = vmatpush.msra.mxu1 %v286_v10 }
  0x57   :  { %424 = vmatpush.msra.mxu3 %v389_v34 }
  0x58   :  { %378 = vmatpush.msra.mxu1 %v285_v11 }
  0x90   :  { %v146_v49 = vpop.f32.mrf.mxu1 }
  0x94   :  { %v186_v59 = vpop.f32.mrf.mxu3 }
  0x9f   :  { %v126_v48 = vpop.f32.mrf.mxu0 }
  0xa0   :  { %v127_v51 = vadd.f32 %v126_v48, %v90_v42  ;;  %v432_v48 = vld [vmem:[%s1068_s11 + $0x10] sm:$0xff] }
  0xa1   :  { %459 = vmatpush.msra.mxu0 %v432_v48 }
  0xa2   :  { %v147_v56 = vadd.f32 %v146_v49, %v127_v51  ;;  %v431_v49 = vld [vmem:[%s1068_s11 + $0x8] sm:$0xff]  ;;  %v492_v51 = vld [vmem:[%s1067_s10] ss:$0 sm:$0xff]  ;;  %s475_s11 = sshll.u32 %s1070_s13, 4  ;;  %s476_s11 = int_to_ptr.hbm [resolvable:$true] %s475_s11 }
  0xa3   :  { %460 = vmatpush.msra.mxu0 %v431_v49 }
  0xa4   :  { %v166_v58 = vpop.f32.mrf.mxu2  ;;  %v189_v60 = vmax.f32 %v147_v56, 0.0 }
  0xa5   :  { %v167_v61 = vadd.f32 %v166_v58, %v91_v54  ;;  %461 = vmatpush.msra.mxu0 %v430_v50 }
  0xa6   :  { %243 = vmatmul.f32.vlgmr.msrb.gmra.mxu1 %v189_v60 }
  0xa7   :  { %v187_v63 = vadd.f32 %v186_v59, %v167_v61 }
  0xa9   :  { %v190_v0 = vmax.f32 %v187_v63, 0.0 }
  0xab   :  { %263 = vmatmul.f32.vlgmr.msrb.gmra.mxu3 %v190_v0 }
  0xae   :  { %379 = vmatmul.f32.vlgmr.msra.gmra.mxu1 %v340_v12 }
  0xc7   :  { %v360_v40 = vpop.f32.mrf.mxu2 }
 0x123   :  { %v244_v25 = vpop.f32.mrf.mxu1 }
 0x124   :  { %v245_v26 = vadd.f32 %v490_v24, %v244_v25 }
 0x12b   :  { %v380_v42 = vpop.f32.mrf.mxu1 }
 0x12e   :  { %v264_v27 = vpop.f32.mrf.mxu3 }
 0x12f   :  { %v265_v28 = vadd.f32 %v264_v27, %v245_v26 }
 0x131   :  { %v267_v29 = vmax.f32 %v265_v28, 0.0 }
 0x133   :  { %333 = vmatmul.f32.vlgmr.msrb.gmra.mxu0 %v267_v29 }
 0x1b0   :  { %v334_v41 = vpop.f32.mrf.mxu0 }
 0x1b1   :  { %v361_v43 = vadd.f32 %v360_v40, %v334_v41 }
 0x1b3   :  { %v381_v45 = vadd.f32 %v380_v42, %v361_v43 }
 0x1b5   :  { %v387_v46 = vadd.f32 %v491_v44, %v381_v45 }
 0x1b7   :  { %v388_v47 = vmax.f32 %v387_v46, 0.0 }
 0x1b9   :  { %425 = vmatmul.f32.vlgmr.msra.gmra.mxu3 %v388_v47 }
 0x23c   :  { %v426_v52 = vpop.f32.mrf.mxu3 }
 0x23d   :  { %v427_v53 = vadd.f32 %v492_v51, %v426_v52 }
 0x23f   :  { %v429_v54 = vmax.f32 %v427_v53, 0.0 }
 0x241   :  { %488 = vmatmul.msk.f32.vlgmr.msra.gmra.mxu0 %vm442_vm2, %v429_v54 }
 0x2be   :  { %v463_v56 = vpop.f32.mrf.mxu0 }
 0x2bf   :  { %v464_v57 = vadd.f32 %v493_v55, %v463_v56 }
 0x2c1   :  { %467 = vst.msk [vmem:[#allocation2] sm:$0x3] %vm466_vm3, %v464_v57 }
 0x2c2   :  { %478 = dma.vmem_to_hbm [thread:$0]  %s474_s5, 32, %s476_s11, [#allocation3]  }
 0x2c3   :  { %518 = dma.done.wait [#allocation3], 32  }
 0x2c4   :  { %519 = vsyncadd [#allocation3], 4294967264 }
 0x2c5   :  { %483 = vsyncpa [#allocation3], 1 }

// kernel: combined_nn_forward.8
= control target key start
LH: loop header
LB: loop body
LE: loop exit
PB: predicated region body
PF: predicated region fallthrough
CT: control target
= control target key end

     0   :  { %s8523_s12 = smov 0   ;;  %s8525_s13 = smov 0   ;;  %s9983_s0 = inlined_call_operand.vmem [shape: f32[2,32768], index: 0, kind: input, shape index: {}]   ;;  %s9984_s1 = inlined_call_operand.vmem [shape: bf16[32768,256], index: 1, kind: input, shape index: {}]   ;;  %s9985_s2 = inlined_call_operand.vmem [shape: f32[1,256], index: 2, kind: input, shape index: {}]   ;;  %s9986_s3 = inlined_call_operand.vmem [shape: f32[2,256], index: 3, kind: output, shape index: {}]  }
   0x1   :  { %s8527_s14 = smov 0   ;;  %s8529_s15 = smov 0  }
   0x2   :  { %s8531_s16 = smov 0   ;;  %s8533_s17 = smov 0  }
   0x3   :  { %s8535_s18 = smov 0  }
   0x4 LB: > { %s22_s19 = sadd.s32 1, %s8492_s16  ;;  %s25_s20 = sadd.s32 1, %s8496_s17  ;;  %s8500_s18 = sphi %s8535_s18, %s13_s18   ;;  %s8496_s17 = sphi %s8533_s17, %s9992_s17   ;;  %s8492_s16 = sphi %s8531_s16, %s9991_s16   ;;  %s8488_s15 = sphi %s8529_s15, %s9990_s15   ;;  %s8484_s14 = sphi %s8527_s14, %s9989_s14   ;;  %s8480_s13 = sphi %s8525_s13, %s9988_s13   ;;  %s8476_s12 = sphi %s8523_s12, %s9987_s12  }
   0x5   : > { %p23_p0 = scmp.ge.s32.totalorder %s22_s19, 8  ;;  %p67_p1 = scmp.ne.s32.totalorder %s8480_s13, %s8476_s12 }
   0x6   : > { %p68_p2 = scmp.eq.s32.totalorder %s8500_s18, 0  ;;  %s60_s24 = sadd.s32 1, %s8480_s13 }
   0x7   : > { %s9994_s19 = smov (%p23_p0, %s22_s19), 0  ;;  %s9996_s20 = smov (!%p23_p0, %s25_s20), %s8496_s17 }
   0x8   : > { %p69_p3 = por %p68_p2, %p67_p1  ;;  %p27_p4 = scmp.ge.s32.totalorder %s9996_s20, 2 }
   0x9   : > { %s55_s21 = ssub.s32 %s8492_s16, %s9994_s19  ;;  %p7093_p6 = scmp.ge.s32.totalorder %s8500_s18, 16 }
   0xa   : > { %s9998_s20 = smov (%p27_p4, %s9996_s20), 0 }
   0xb   : > { %s56_s22 = ssub.s32 %s8496_s17, %s9998_s20  ;;  %145 = sbr.rel (%p7093_p6) target bundleno = 534 (0x216), region = 16 }
   0xc   : > { %s57_s23 = sor.u32 %s56_s22, %s55_s21 }
   0xd   : > { %p58_p5 = scmp.eq.s32.totalorder %s57_s23, 0 }
   0xf   : > { %s8574_s25 = scalar_select %p58_p5, %s8480_s13, %s60_s24  }
  0x10   : > { %157 = sbr.rel (!%p69_p3) target bundleno = 534 (0x216), region = 24  ;;  %s159_s26 = sand.u32 (%p69_p3), 1, %s8480_s13  }
  0x11   : > { %s8131_s27 = sshll.u32 (%p69_p3), %s8492_s16, 10  ;;  %s7094_s28 = sshll.u32 (%p69_p3), %s159_s26, 11 }
  0x12   : > { %s164_s29 = sadd.s32 (%p69_p3), %s8496_s17, %s8131_s27  ;;  %s8588_s7 = scalar_lea.vmem (%p69_p3), [#allocation3], %s7094_s28 }
  0x13   : > { %s7097_s30 = sshll.u32 (%p69_p3), %s164_s29, 2 }
  0x14   : > { %s8583_s6 = scalar_lea.vmem (%p69_p3), %s9984_s1, %s7097_s30 }
  0x15   : > { %v183_v0 = vld [vmem:[%s8583_s6] sm:$0xf]  ;;  %v185_v1 = vld [vmem:[%s8583_s6 + $0x8] sm:$0xf]  ;;  %v187_v2 = vld [vmem:[%s8583_s6 + $0x10] sm:$0xf] }
  0x16   : > { %184 = vst [vmem:[%s8588_s7] sm:$0xf] %v183_v0  ;;  %v189_v3 = vld [vmem:[%s8583_s6 + $0x18] sm:$0xf]  ;;  %v191_v4 = vld [vmem:[%s8583_s6 + $0x20] sm:$0xf] }
  0x17   : > { %186 = vst [vmem:[%s8588_s7 + $0x4] sm:$0xf] %v185_v1  ;;  %v193_v5 = vld [vmem:[%s8583_s6 + $0x28] sm:$0xf]  ;;  %v195_v6 = vld [vmem:[%s8583_s6 + $0x30] sm:$0xf] }
  0x18   : > { %188 = vst [vmem:[%s8588_s7 + $0x8] sm:$0xf] %v187_v2  ;;  %v197_v7 = vld [vmem:[%s8583_s6 + $0x38] sm:$0xf]  ;;  %v199_v8 = vld [vmem:[%s8583_s6 + $0x40] sm:$0xf] }
  0x19   : > { %190 = vst [vmem:[%s8588_s7 + $0xc] sm:$0xf] %v189_v3  ;;  %v201_v9 = vld [vmem:[%s8583_s6 + $0x48] sm:$0xf]  ;;  %v203_v10 = vld [vmem:[%s8583_s6 + $0x50] sm:$0xf] }
  0x1a   : > { %192 = vst [vmem:[%s8588_s7 + $0x10] sm:$0xf] %v191_v4  ;;  %v205_v11 = vld [vmem:[%s8583_s6 + $0x58] sm:$0xf]  ;;  %v207_v12 = vld [vmem:[%s8583_s6 + $0x60] sm:$0xf] }
  0x1b   : > { %194 = vst [vmem:[%s8588_s7 + $0x14] sm:$0xf] %v193_v5  ;;  %v209_v13 = vld [vmem:[%s8583_s6 + $0x68] sm:$0xf]  ;;  %v211_v14 = vld [vmem:[%s8583_s6 + $0x70] sm:$0xf] }
  0x1c   : > { %196 = vst [vmem:[%s8588_s7 + $0x18] sm:$0xf] %v195_v6  ;;  %v213_v15 = vld [vmem:[%s8583_s6 + $0x78] sm:$0xf]  ;;  %v215_v16 = vld [vmem:[%s8583_s6 + $0x80] sm:$0xf] }
  0x1d   : > { %198 = vst [vmem:[%s8588_s7 + $0x1c] sm:$0xf] %v197_v7  ;;  %v217_v17 = vld [vmem:[%s8583_s6 + $0x88] sm:$0xf]  ;;  %v219_v18 = vld [vmem:[%s8583_s6 + $0x90] sm:$0xf] }
  0x1e   : > { %200 = vst [vmem:[%s8588_s7 + $0x20] sm:$0xf] %v199_v8  ;;  %v221_v19 = vld [vmem:[%s8583_s6 + $0x98] sm:$0xf]  ;;  %v223_v20 = vld [vmem:[%s8583_s6 + $0xa0] sm:$0xf] }
  0x1f   : > { %202 = vst [vmem:[%s8588_s7 + $0x24] sm:$0xf] %v201_v9  ;;  %v225_v21 = vld [vmem:[%s8583_s6 + $0xa8] sm:$0xf]  ;;  %v227_v22 = vld [vmem:[%s8583_s6 + $0xb0] sm:$0xf] }
  0x20   : > { %204 = vst [vmem:[%s8588_s7 + $0x28] sm:$0xf] %v203_v10  ;;  %v229_v23 = vld [vmem:[%s8583_s6 + $0xb8] sm:$0xf]  ;;  %v231_v24 = vld [vmem:[%s8583_s6 + $0xc0] sm:$0xf] }
  0x21   : > { %206 = vst [vmem:[%s8588_s7 + $0x2c] sm:$0xf] %v205_v11  ;;  %v233_v25 = vld [vmem:[%s8583_s6 + $0xc8] sm:$0xf]  ;;  %v235_v26 = vld [vmem:[%s8583_s6 + $0xd0] sm:$0xf] }
  0x22   : > { %208 = vst [vmem:[%s8588_s7 + $0x30] sm:$0xf] %v207_v12  ;;  %v237_v27 = vld [vmem:[%s8583_s6 + $0xd8] sm:$0xf]  ;;  %v239_v28 = vld [vmem:[%s8583_s6 + $0xe0] sm:$0xf] }
  0x23   : > { %210 = vst [vmem:[%s8588_s7 + $0x34] sm:$0xf] %v209_v13  ;;  %v241_v29 = vld [vmem:[%s8583_s6 + $0xe8] sm:$0xf]  ;;  %v243_v30 = vld [vmem:[%s8583_s6 + $0xf0] sm:$0xf] }
  0x24   : > { %212 = vst [vmem:[%s8588_s7 + $0x38] sm:$0xf] %v211_v14  ;;  %v245_v31 = vld [vmem:[%s8583_s6 + $0xf8] sm:$0xf]  ;;  %v247_v32 = vld [vmem:[%s8583_s6 + $0x100] sm:$0xf] }
  0x25   : > { %214 = vst [vmem:[%s8588_s7 + $0x3c] sm:$0xf] %v213_v15  ;;  %v249_v33 = vld [vmem:[%s8583_s6 + $0x108] sm:$0xf]  ;;  %v251_v34 = vld [vmem:[%s8583_s6 + $0x110] sm:$0xf] }
  0x26   : > { %216 = vst [vmem:[%s8588_s7 + $0x40] sm:$0xf] %v215_v16  ;;  %v253_v35 = vld [vmem:[%s8583_s6 + $0x118] sm:$0xf]  ;;  %v255_v36 = vld [vmem:[%s8583_s6 + $0x120] sm:$0xf] }
  0x27   : > { %218 = vst [vmem:[%s8588_s7 + $0x44] sm:$0xf] %v217_v17  ;;  %v257_v37 = vld [vmem:[%s8583_s6 + $0x128] sm:$0xf]  ;;  %v259_v38 = vld [vmem:[%s8583_s6 + $0x130] sm:$0xf] }
  0x28   : > { %220 = vst [vmem:[%s8588_s7 + $0x48] sm:$0xf] %v219_v18  ;;  %v261_v39 = vld [vmem:[%s8583_s6 + $0x138] sm:$0xf]  ;;  %v263_v40 = vld [vmem:[%s8583_s6 + $0x140] sm:$0xf] }
  0x29   : > { %222 = vst [vmem:[%s8588_s7 + $0x4c] sm:$0xf] %v221_v19  ;;  %v265_v41 = vld [vmem:[%s8583_s6 + $0x148] sm:$0xf]  ;;  %v267_v42 = vld [vmem:[%s8583_s6 + $0x150] sm:$0xf] }
  0x2a   : > { %224 = vst [vmem:[%s8588_s7 + $0x50] sm:$0xf] %v223_v20  ;;  %v269_v43 = vld [vmem:[%s8583_s6 + $0x158] sm:$0xf]  ;;  %v271_v44 = vld [vmem:[%s8583_s6 + $0x160] sm:$0xf] }
  0x2b   : > { %226 = vst [vmem:[%s8588_s7 + $0x54] sm:$0xf] %v225_v21  ;;  %v273_v45 = vld [vmem:[%s8583_s6 + $0x168] sm:$0xf]  ;;  %v275_v46 = vld [vmem:[%s8583_s6 + $0x170] sm:$0xf] }
  0x2c   : > { %228 = vst [vmem:[%s8588_s7 + $0x58] sm:$0xf] %v227_v22  ;;  %v277_v47 = vld [vmem:[%s8583_s6 + $0x178] sm:$0xf]  ;;  %v279_v48 = vld [vmem:[%s8583_s6 + $0x180] sm:$0xf] }
  0x2d   : > { %230 = vst [vmem:[%s8588_s7 + $0x5c] sm:$0xf] %v229_v23  ;;  %v281_v49 = vld [vmem:[%s8583_s6 + $0x188] sm:$0xf]  ;;  %v283_v50 = vld [vmem:[%s8583_s6 + $0x190] sm:$0xf] }
  0x2e   : > { %232 = vst [vmem:[%s8588_s7 + $0x60] sm:$0xf] %v231_v24  ;;  %v285_v51 = vld [vmem:[%s8583_s6 + $0x198] sm:$0xf]  ;;  %v287_v52 = vld [vmem:[%s8583_s6 + $0x1a0] sm:$0xf] }
  0x2f   : > { %234 = vst [vmem:[%s8588_s7 + $0x64] sm:$0xf] %v233_v25  ;;  %v289_v53 = vld [vmem:[%s8583_s6 + $0x1a8] sm:$0xf]  ;;  %v291_v54 = vld [vmem:[%s8583_s6 + $0x1b0] sm:$0xf] }
  0x30   : > { %236 = vst [vmem:[%s8588_s7 + $0x68] sm:$0xf] %v235_v26  ;;  %v293_v55 = vld [vmem:[%s8583_s6 + $0x1b8] sm:$0xf]  ;;  %v295_v56 = vld [vmem:[%s8583_s6 + $0x1c0] sm:$0xf] }
  0x31   : > { %238 = vst [vmem:[%s8588_s7 + $0x6c] sm:$0xf] %v237_v27  ;;  %v297_v57 = vld [vmem:[%s8583_s6 + $0x1c8] sm:$0xf]  ;;  %v299_v58 = vld [vmem:[%s8583_s6 + $0x1d0] sm:$0xf] }
  0x32   : > { %240 = vst [vmem:[%s8588_s7 + $0x70] sm:$0xf] %v239_v28  ;;  %v301_v59 = vld [vmem:[%s8583_s6 + $0x1d8] sm:$0xf]  ;;  %v303_v60 = vld [vmem:[%s8583_s6 + $0x1e0] sm:$0xf] }
  0x33   : > { %242 = vst [vmem:[%s8588_s7 + $0x74] sm:$0xf] %v241_v29  ;;  %v305_v61 = vld [vmem:[%s8583_s6 + $0x1e8] sm:$0xf]  ;;  %v307_v62 = vld [vmem:[%s8583_s6 + $0x1f0] sm:$0xf] }
  0x34   : > { %244 = vst [vmem:[%s8588_s7 + $0x78] sm:$0xf] %v243_v30  ;;  %v309_v63 = vld [vmem:[%s8583_s6 + $0x1f8] sm:$0xf]  ;;  %v311_v0 = vld [vmem:[%s8583_s6 + $0x200] sm:$0xf] }
  0x35   : > { %246 = vst [vmem:[%s8588_s7 + $0x7c] sm:$0xf] %v245_v31  ;;  %v313_v1 = vld [vmem:[%s8583_s6 + $0x208] sm:$0xf]  ;;  %v315_v2 = vld [vmem:[%s8583_s6 + $0x210] sm:$0xf] }
  0x36   : > { %248 = vst [vmem:[%s8588_s7 + $0x80] sm:$0xf] %v247_v32  ;;  %v317_v3 = vld [vmem:[%s8583_s6 + $0x218] sm:$0xf]  ;;  %v319_v4 = vld [vmem:[%s8583_s6 + $0x220] sm:$0xf] }
  0x37   : > { %250 = vst [vmem:[%s8588_s7 + $0x84] sm:$0xf] %v249_v33  ;;  %v321_v5 = vld [vmem:[%s8583_s6 + $0x228] sm:$0xf]  ;;  %v323_v6 = vld [vmem:[%s8583_s6 + $0x230] sm:$0xf] }
  0x38   : > { %252 = vst [vmem:[%s8588_s7 + $0x88] sm:$0xf] %v251_v34  ;;  %v325_v7 = vld [vmem:[%s8583_s6 + $0x238] sm:$0xf]  ;;  %v327_v8 = vld [vmem:[%s8583_s6 + $0x240] sm:$0xf] }
  0x39   : > { %254 = vst [vmem:[%s8588_s7 + $0x8c] sm:$0xf] %v253_v35  ;;  %v329_v9 = vld [vmem:[%s8583_s6 + $0x248] sm:$0xf]  ;;  %v331_v10 = vld [vmem:[%s8583_s6 + $0x250] sm:$0xf] }
  0x3a   : > { %256 = vst [vmem:[%s8588_s7 + $0x90] sm:$0xf] %v255_v36  ;;  %v333_v11 = vld [vmem:[%s8583_s6 + $0x258] sm:$0xf]  ;;  %v335_v12 = vld [vmem:[%s8583_s6 + $0x260] sm:$0xf] }
  0x3b   : > { %258 = vst [vmem:[%s8588_s7 + $0x94] sm:$0xf] %v257_v37  ;;  %v337_v13 = vld [vmem:[%s8583_s6 + $0x268] sm:$0xf]  ;;  %v339_v14 = vld [vmem:[%s8583_s6 + $0x270] sm:$0xf] }
  0x3c   : > { %260 = vst [vmem:[%s8588_s7 + $0x98] sm:$0xf] %v259_v38  ;;  %v341_v15 = vld [vmem:[%s8583_s6 + $0x278] sm:$0xf]  ;;  %v343_v16 = vld [vmem:[%s8583_s6 + $0x280] sm:$0xf] }
  0x3d   : > { %262 = vst [vmem:[%s8588_s7 + $0x9c] sm:$0xf] %v261_v39  ;;  %v345_v17 = vld [vmem:[%s8583_s6 + $0x288] sm:$0xf]  ;;  %v347_v18 = vld [vmem:[%s8583_s6 + $0x290] sm:$0xf] }
  0x3e   : > { %264 = vst [vmem:[%s8588_s7 + $0xa0] sm:$0xf] %v263_v40  ;;  %v349_v19 = vld [vmem:[%s8583_s6 + $0x298] sm:$0xf]  ;;  %v351_v20 = vld [vmem:[%s8583_s6 + $0x2a0] sm:$0xf] }
  0x3f   : > { %266 = vst [vmem:[%s8588_s7 + $0xa4] sm:$0xf] %v265_v41  ;;  %v353_v21 = vld [vmem:[%s8583_s6 + $0x2a8] sm:$0xf]  ;;  %v355_v22 = vld [vmem:[%s8583_s6 + $0x2b0] sm:$0xf] }
  0x40   : > { %268 = vst [vmem:[%s8588_s7 + $0xa8] sm:$0xf] %v267_v42  ;;  %v357_v23 = vld [vmem:[%s8583_s6 + $0x2b8] sm:$0xf]  ;;  %v359_v24 = vld [vmem:[%s8583_s6 + $0x2c0] sm:$0xf] }
  0x41   : > { %270 = vst [vmem:[%s8588_s7 + $0xac] sm:$0xf] %v269_v43  ;;  %v361_v25 = vld [vmem:[%s8583_s6 + $0x2c8] sm:$0xf]  ;;  %v363_v26 = vld [vmem:[%s8583_s6 + $0x2d0] sm:$0xf] }
  0x42   : > { %272 = vst [vmem:[%s8588_s7 + $0xb0] sm:$0xf] %v271_v44  ;;  %v365_v27 = vld [vmem:[%s8583_s6 + $0x2d8] sm:$0xf]  ;;  %v367_v28 = vld [vmem:[%s8583_s6 + $0x2e0] sm:$0xf] }
  0x43   : > { %274 = vst [vmem:[%s8588_s7 + $0xb4] sm:$0xf] %v273_v45  ;;  %v369_v29 = vld [vmem:[%s8583_s6 + $0x2e8] sm:$0xf]  ;;  %v371_v30 = vld [vmem:[%s8583_s6 + $0x2f0] sm:$0xf] }
  0x44   : > { %276 = vst [vmem:[%s8588_s7 + $0xb8] sm:$0xf] %v275_v46  ;;  %v373_v31 = vld [vmem:[%s8583_s6 + $0x2f8] sm:$0xf]  ;;  %v375_v32 = vld [vmem:[%s8583_s6 + $0x300] sm:$0xf] }
  0x45   : > { %278 = vst [vmem:[%s8588_s7 + $0xbc] sm:$0xf] %v277_v47  ;;  %v377_v33 = vld [vmem:[%s8583_s6 + $0x308] sm:$0xf]  ;;  %v379_v34 = vld [vmem:[%s8583_s6 + $0x310] sm:$0xf] }
  0x46   : > { %280 = vst [vmem:[%s8588_s7 + $0xc0] sm:$0xf] %v279_v48  ;;  %v381_v35 = vld [vmem:[%s8583_s6 + $0x318] sm:$0xf]  ;;  %v383_v36 = vld [vmem:[%s8583_s6 + $0x320] sm:$0xf] }
  0x47   : > { %282 = vst [vmem:[%s8588_s7 + $0xc4] sm:$0xf] %v281_v49  ;;  %v385_v37 = vld [vmem:[%s8583_s6 + $0x328] sm:$0xf]  ;;  %v387_v38 = vld [vmem:[%s8583_s6 + $0x330] sm:$0xf] }
  0x48   : > { %284 = vst [vmem:[%s8588_s7 + $0xc8] sm:$0xf] %v283_v50  ;;  %v389_v39 = vld [vmem:[%s8583_s6 + $0x338] sm:$0xf]  ;;  %v391_v40 = vld [vmem:[%s8583_s6 + $0x340] sm:$0xf] }
  0x49   : > { %286 = vst [vmem:[%s8588_s7 + $0xcc] sm:$0xf] %v285_v51  ;;  %v393_v41 = vld [vmem:[%s8583_s6 + $0x348] sm:$0xf]  ;;  %v395_v42 = vld [vmem:[%s8583_s6 + $0x350] sm:$0xf] }
  0x4a   : > { %288 = vst [vmem:[%s8588_s7 + $0xd0] sm:$0xf] %v287_v52  ;;  %v397_v43 = vld [vmem:[%s8583_s6 + $0x358] sm:$0xf]  ;;  %v399_v44 = vld [vmem:[%s8583_s6 + $0x360] sm:$0xf] }
  0x4b   : > { %290 = vst [vmem:[%s8588_s7 + $0xd4] sm:$0xf] %v289_v53  ;;  %v401_v45 = vld [vmem:[%s8583_s6 + $0x368] sm:$0xf]  ;;  %v403_v46 = vld [vmem:[%s8583_s6 + $0x370] sm:$0xf] }
  0x4c   : > { %292 = vst [vmem:[%s8588_s7 + $0xd8] sm:$0xf] %v291_v54  ;;  %v405_v47 = vld [vmem:[%s8583_s6 + $0x378] sm:$0xf]  ;;  %v407_v48 = vld [vmem:[%s8583_s6 + $0x380] sm:$0xf] }
  0x4d   : > { %294 = vst [vmem:[%s8588_s7 + $0xdc] sm:$0xf] %v293_v55  ;;  %v409_v49 = vld [vmem:[%s8583_s6 + $0x388] sm:$0xf]  ;;  %v411_v50 = vld [vmem:[%s8583_s6 + $0x390] sm:$0xf] }
  0x4e   : > { %296 = vst [vmem:[%s8588_s7 + $0xe0] sm:$0xf] %v295_v56  ;;  %v413_v51 = vld [vmem:[%s8583_s6 + $0x398] sm:$0xf]  ;;  %v415_v52 = vld [vmem:[%s8583_s6 + $0x3a0] sm:$0xf] }
  0x4f   : > { %298 = vst [vmem:[%s8588_s7 + $0xe4] sm:$0xf] %v297_v57  ;;  %v417_v53 = vld [vmem:[%s8583_s6 + $0x3a8] sm:$0xf]  ;;  %v419_v54 = vld [vmem:[%s8583_s6 + $0x3b0] sm:$0xf] }
  0x50   : > { %300 = vst [vmem:[%s8588_s7 + $0xe8] sm:$0xf] %v299_v58  ;;  %v421_v55 = vld [vmem:[%s8583_s6 + $0x3b8] sm:$0xf]  ;;  %v423_v56 = vld [vmem:[%s8583_s6 + $0x3c0] sm:$0xf] }
  0x51   : > { %302 = vst [vmem:[%s8588_s7 + $0xec] sm:$0xf] %v301_v59  ;;  %v425_v57 = vld [vmem:[%s8583_s6 + $0x3c8] sm:$0xf]  ;;  %v427_v58 = vld [vmem:[%s8583_s6 + $0x3d0] sm:$0xf] }
  0x52   : > { %304 = vst [vmem:[%s8588_s7 + $0xf0] sm:$0xf] %v303_v60  ;;  %v429_v59 = vld [vmem:[%s8583_s6 + $0x3d8] sm:$0xf]  ;;  %v431_v60 = vld [vmem:[%s8583_s6 + $0x3e0] sm:$0xf] }
  0x53   : > { %306 = vst [vmem:[%s8588_s7 + $0xf4] sm:$0xf] %v305_v61  ;;  %v433_v61 = vld [vmem:[%s8583_s6 + $0x3e8] sm:$0xf] }
  0x54   : > { %308 = vst [vmem:[%s8588_s7 + $0xf8] sm:$0xf] %v307_v62  ;;  %v435_v62 = vld [vmem:[%s8583_s6 + $0x3f0] sm:$0xf] }
  0x55   : > { %310 = vst [vmem:[%s8588_s7 + $0xfc] sm:$0xf] %v309_v63  ;;  %v437_v63 = vld [vmem:[%s8583_s6 + $0x3f8] sm:$0xf] }
  0x56   : > { %312 = vst [vmem:[%s8588_s7 + $0x100] sm:$0xf] %v311_v0  ;;  %v439_v0 = vld [vmem:[%s8583_s6 + $0x400] sm:$0xf] }
  0x57   : > { %314 = vst [vmem:[%s8588_s7 + $0x104] sm:$0xf] %v313_v1  ;;  %v441_v1 = vld [vmem:[%s8583_s6 + $0x408] sm:$0xf] }
  0x58   : > { %316 = vst [vmem:[%s8588_s7 + $0x108] sm:$0xf] %v315_v2  ;;  %v443_v2 = vld [vmem:[%s8583_s6 + $0x410] sm:$0xf] }
  0x59   : > { %318 = vst [vmem:[%s8588_s7 + $0x10c] sm:$0xf] %v317_v3  ;;  %v445_v3 = vld [vmem:[%s8583_s6 + $0x418] sm:$0xf] }
  0x5a   : > { %320 = vst [vmem:[%s8588_s7 + $0x110] sm:$0xf] %v319_v4  ;;  %v447_v4 = vld [vmem:[%s8583_s6 + $0x420] sm:$0xf] }
  0x5b   : > { %322 = vst [vmem:[%s8588_s7 + $0x114] sm:$0xf] %v321_v5  ;;  %v449_v5 = vld [vmem:[%s8583_s6 + $0x428] sm:$0xf] }
  0x5c   : > { %324 = vst [vmem:[%s8588_s7 + $0x118] sm:$0xf] %v323_v6  ;;  %v451_v6 = vld [vmem:[%s8583_s6 + $0x430] sm:$0xf] }
  0x5d   : > { %326 = vst [vmem:[%s8588_s7 + $0x11c] sm:$0xf] %v325_v7  ;;  %v453_v7 = vld [vmem:[%s8583_s6 + $0x438] sm:$0xf] }
  0x5e   : > { %328 = vst [vmem:[%s8588_s7 + $0x120] sm:$0xf] %v327_v8  ;;  %v455_v8 = vld [vmem:[%s8583_s6 + $0x440] sm:$0xf] }
  0x5f   : > { %330 = vst [vmem:[%s8588_s7 + $0x124] sm:$0xf] %v329_v9  ;;  %v457_v9 = vld [vmem:[%s8583_s6 + $0x448] sm:$0xf] }
  0x60   : > { %332 = vst [vmem:[%s8588_s7 + $0x128] sm:$0xf] %v331_v10  ;;  %v459_v10 = vld [vmem:[%s8583_s6 + $0x450] sm:$0xf] }
  0x61   : > { %334 = vst [vmem:[%s8588_s7 + $0x12c] sm:$0xf] %v333_v11  ;;  %v461_v11 = vld [vmem:[%s8583_s6 + $0x458] sm:$0xf] }
  0x62   : > { %336 = vst [vmem:[%s8588_s7 + $0x130] sm:$0xf] %v335_v12  ;;  %v463_v12 = vld [vmem:[%s8583_s6 + $0x460] sm:$0xf] }
  0x63   : > { %338 = vst [vmem:[%s8588_s7 + $0x134] sm:$0xf] %v337_v13  ;;  %v465_v13 = vld [vmem:[%s8583_s6 + $0x468] sm:$0xf] }
  0x64   : > { %340 = vst [vmem:[%s8588_s7 + $0x138] sm:$0xf] %v339_v14  ;;  %v467_v14 = vld [vmem:[%s8583_s6 + $0x470] sm:$0xf] }
  0x65   : > { %342 = vst [vmem:[%s8588_s7 + $0x13c] sm:$0xf] %v341_v15  ;;  %v469_v15 = vld [vmem:[%s8583_s6 + $0x478] sm:$0xf] }
  0x66   : > { %344 = vst [vmem:[%s8588_s7 + $0x140] sm:$0xf] %v343_v16  ;;  %v471_v16 = vld [vmem:[%s8583_s6 + $0x480] sm:$0xf] }
  0x67   : > { %346 = vst [vmem:[%s8588_s7 + $0x144] sm:$0xf] %v345_v17  ;;  %v473_v17 = vld [vmem:[%s8583_s6 + $0x488] sm:$0xf] }
  0x68   : > { %348 = vst [vmem:[%s8588_s7 + $0x148] sm:$0xf] %v347_v18  ;;  %v475_v18 = vld [vmem:[%s8583_s6 + $0x490] sm:$0xf] }
  0x69   : > { %350 = vst [vmem:[%s8588_s7 + $0x14c] sm:$0xf] %v349_v19  ;;  %v477_v19 = vld [vmem:[%s8583_s6 + $0x498] sm:$0xf] }
  0x6a   : > { %352 = vst [vmem:[%s8588_s7 + $0x150] sm:$0xf] %v351_v20  ;;  %v479_v20 = vld [vmem:[%s8583_s6 + $0x4a0] sm:$0xf] }
  0x6b   : > { %354 = vst [vmem:[%s8588_s7 + $0x154] sm:$0xf] %v353_v21  ;;  %v481_v21 = vld [vmem:[%s8583_s6 + $0x4a8] sm:$0xf] }
  0x6c   : > { %356 = vst [vmem:[%s8588_s7 + $0x158] sm:$0xf] %v355_v22  ;;  %v483_v22 = vld [vmem:[%s8583_s6 + $0x4b0] sm:$0xf] }
  0x6d   : > { %358 = vst [vmem:[%s8588_s7 + $0x15c] sm:$0xf] %v357_v23  ;;  %v485_v23 = vld [vmem:[%s8583_s6 + $0x4b8] sm:$0xf] }
  0x6e   : > { %360 = vst [vmem:[%s8588_s7 + $0x160] sm:$0xf] %v359_v24  ;;  %v487_v24 = vld [vmem:[%s8583_s6 + $0x4c0] sm:$0xf] }
  0x6f   : > { %362 = vst [vmem:[%s8588_s7 + $0x164] sm:$0xf] %v361_v25  ;;  %v489_v25 = vld [vmem:[%s8583_s6 + $0x4c8] sm:$0xf] }
  0x70   : > { %364 = vst [vmem:[%s8588_s7 + $0x168] sm:$0xf] %v363_v26  ;;  %v491_v26 = vld [vmem:[%s8583_s6 + $0x4d0] sm:$0xf] }
  0x71   : > { %366 = vst [vmem:[%s8588_s7 + $0x16c] sm:$0xf] %v365_v27  ;;  %v493_v27 = vld [vmem:[%s8583_s6 + $0x4d8] sm:$0xf] }
  0x72   : > { %368 = vst [vmem:[%s8588_s7 + $0x170] sm:$0xf] %v367_v28  ;;  %v495_v28 = vld [vmem:[%s8583_s6 + $0x4e0] sm:$0xf] }
  0x73   : > { %370 = vst [vmem:[%s8588_s7 + $0x174] sm:$0xf] %v369_v29  ;;  %v497_v29 = vld [vmem:[%s8583_s6 + $0x4e8] sm:$0xf] }
  0x74   : > { %372 = vst [vmem:[%s8588_s7 + $0x178] sm:$0xf] %v371_v30  ;;  %v499_v30 = vld [vmem:[%s8583_s6 + $0x4f0] sm:$0xf] }
  0x75   : > { %374 = vst [vmem:[%s8588_s7 + $0x17c] sm:$0xf] %v373_v31  ;;  %v501_v31 = vld [vmem:[%s8583_s6 + $0x4f8] sm:$0xf] }
  0x76   : > { %376 = vst [vmem:[%s8588_s7 + $0x180] sm:$0xf] %v375_v32  ;;  %v503_v32 = vld [vmem:[%s8583_s6 + $0x500] sm:$0xf] }
  0x77   : > { %378 = vst [vmem:[%s8588_s7 + $0x184] sm:$0xf] %v377_v33  ;;  %v505_v33 = vld [vmem:[%s8583_s6 + $0x508] sm:$0xf] }
  0x78   : > { %380 = vst [vmem:[%s8588_s7 + $0x188] sm:$0xf] %v379_v34  ;;  %v507_v34 = vld [vmem:[%s8583_s6 + $0x510] sm:$0xf] }
  0x79   : > { %382 = vst [vmem:[%s8588_s7 + $0x18c] sm:$0xf] %v381_v35  ;;  %v509_v35 = vld [vmem:[%s8583_s6 + $0x518] sm:$0xf] }
  0x7a   : > { %384 = vst [vmem:[%s8588_s7 + $0x190] sm:$0xf] %v383_v36  ;;  %v511_v36 = vld [vmem:[%s8583_s6 + $0x520] sm:$0xf] }
  0x7b   : > { %386 = vst [vmem:[%s8588_s7 + $0x194] sm:$0xf] %v385_v37  ;;  %v513_v37 = vld [vmem:[%s8583_s6 + $0x528] sm:$0xf] }
  0x7c   : > { %388 = vst [vmem:[%s8588_s7 + $0x198] sm:$0xf] %v387_v38  ;;  %v515_v38 = vld [vmem:[%s8583_s6 + $0x530] sm:$0xf] }
  0x7d   : > { %390 = vst [vmem:[%s8588_s7 + $0x19c] sm:$0xf] %v389_v39  ;;  %v517_v39 = vld [vmem:[%s8583_s6 + $0x538] sm:$0xf] }
  0x7e   : > { %392 = vst [vmem:[%s8588_s7 + $0x1a0] sm:$0xf] %v391_v40  ;;  %v519_v40 = vld [vmem:[%s8583_s6 + $0x540] sm:$0xf] }
  0x7f   : > { %394 = vst [vmem:[%s8588_s7 + $0x1a4] sm:$0xf] %v393_v41  ;;  %v521_v41 = vld [vmem:[%s8583_s6 + $0x548] sm:$0xf] }
  0x80   : > { %396 = vst [vmem:[%s8588_s7 + $0x1a8] sm:$0xf] %v395_v42  ;;  %v523_v42 = vld [vmem:[%s8583_s6 + $0x550] sm:$0xf] }
  0x81   : > { %398 = vst [vmem:[%s8588_s7 + $0x1ac] sm:$0xf] %v397_v43  ;;  %v525_v43 = vld [vmem:[%s8583_s6 + $0x558] sm:$0xf] }
  0x82   : > { %400 = vst [vmem:[%s8588_s7 + $0x1b0] sm:$0xf] %v399_v44  ;;  %v527_v44 = vld [vmem:[%s8583_s6 + $0x560] sm:$0xf] }
  0x83   : > { %402 = vst [vmem:[%s8588_s7 + $0x1b4] sm:$0xf] %v401_v45  ;;  %v529_v45 = vld [vmem:[%s8583_s6 + $0x568] sm:$0xf] }
  0x84   : > { %404 = vst [vmem:[%s8588_s7 + $0x1b8] sm:$0xf] %v403_v46  ;;  %v531_v46 = vld [vmem:[%s8583_s6 + $0x570] sm:$0xf] }
  0x85   : > { %406 = vst [vmem:[%s8588_s7 + $0x1bc] sm:$0xf] %v405_v47  ;;  %v533_v47 = vld [vmem:[%s8583_s6 + $0x578] sm:$0xf] }
  0x86   : > { %408 = vst [vmem:[%s8588_s7 + $0x1c0] sm:$0xf] %v407_v48  ;;  %v535_v48 = vld [vmem:[%s8583_s6 + $0x580] sm:$0xf] }
  0x87   : > { %410 = vst [vmem:[%s8588_s7 + $0x1c4] sm:$0xf] %v409_v49  ;;  %v537_v49 = vld [vmem:[%s8583_s6 + $0x588] sm:$0xf] }
  0x88   : > { %412 = vst [vmem:[%s8588_s7 + $0x1c8] sm:$0xf] %v411_v50  ;;  %v539_v50 = vld [vmem:[%s8583_s6 + $0x590] sm:$0xf] }
  0x89   : > { %414 = vst [vmem:[%s8588_s7 + $0x1cc] sm:$0xf] %v413_v51  ;;  %v541_v51 = vld [vmem:[%s8583_s6 + $0x598] sm:$0xf] }
  0x8a   : > { %416 = vst [vmem:[%s8588_s7 + $0x1d0] sm:$0xf] %v415_v52  ;;  %v543_v52 = vld [vmem:[%s8583_s6 + $0x5a0] sm:$0xf] }
  0x8b   : > { %418 = vst [vmem:[%s8588_s7 + $0x1d4] sm:$0xf] %v417_v53  ;;  %v545_v53 = vld [vmem:[%s8583_s6 + $0x5a8] sm:$0xf] }
  0x8c   : > { %420 = vst [vmem:[%s8588_s7 + $0x1d8] sm:$0xf] %v419_v54  ;;  %v547_v54 = vld [vmem:[%s8583_s6 + $0x5b0] sm:$0xf] }
  0x8d   : > { %422 = vst [vmem:[%s8588_s7 + $0x1dc] sm:$0xf] %v421_v55  ;;  %v549_v55 = vld [vmem:[%s8583_s6 + $0x5b8] sm:$0xf] }
  0x8e   : > { %424 = vst [vmem:[%s8588_s7 + $0x1e0] sm:$0xf] %v423_v56  ;;  %v551_v56 = vld [vmem:[%s8583_s6 + $0x5c0] sm:$0xf] }
  0x8f   : > { %426 = vst [vmem:[%s8588_s7 + $0x1e4] sm:$0xf] %v425_v57  ;;  %v553_v57 = vld [vmem:[%s8583_s6 + $0x5c8] sm:$0xf] }
  0x90   : > { %428 = vst [vmem:[%s8588_s7 + $0x1e8] sm:$0xf] %v427_v58  ;;  %v555_v58 = vld [vmem:[%s8583_s6 + $0x5d0] sm:$0xf] }
  0x91   : > { %430 = vst [vmem:[%s8588_s7 + $0x1ec] sm:$0xf] %v429_v59  ;;  %v557_v59 = vld [vmem:[%s8583_s6 + $0x5d8] sm:$0xf] }
  0x92   : > { %432 = vst [vmem:[%s8588_s7 + $0x1f0] sm:$0xf] %v431_v60  ;;  %v559_v60 = vld [vmem:[%s8583_s6 + $0x5e0] sm:$0xf] }
  0x93   : > { %434 = vst [vmem:[%s8588_s7 + $0x1f4] sm:$0xf] %v433_v61  ;;  %v561_v61 = vld [vmem:[%s8583_s6 + $0x5e8] sm:$0xf] }
  0x94   : > { %436 = vst [vmem:[%s8588_s7 + $0x1f8] sm:$0xf] %v435_v62  ;;  %v563_v62 = vld [vmem:[%s8583_s6 + $0x5f0] sm:$0xf] }
  0x95   : > { %438 = vst [vmem:[%s8588_s7 + $0x1fc] sm:$0xf] %v437_v63  ;;  %v565_v63 = vld [vmem:[%s8583_s6 + $0x5f8] sm:$0xf] }
  0x96   : > { %440 = vst [vmem:[%s8588_s7 + $0x200] sm:$0xf] %v439_v0  ;;  %v567_v0 = vld [vmem:[%s8583_s6 + $0x600] sm:$0xf] }
  0x97   : > { %442 = vst [vmem:[%s8588_s7 + $0x204] sm:$0xf] %v441_v1  ;;  %v569_v1 = vld [vmem:[%s8583_s6 + $0x608] sm:$0xf] }
  0x98   : > { %444 = vst [vmem:[%s8588_s7 + $0x208] sm:$0xf] %v443_v2  ;;  %v571_v2 = vld [vmem:[%s8583_s6 + $0x610] sm:$0xf] }
  0x99   : > { %446 = vst [vmem:[%s8588_s7 + $0x20c] sm:$0xf] %v445_v3  ;;  %v573_v3 = vld [vmem:[%s8583_s6 + $0x618] sm:$0xf] }
  0x9a   : > { %448 = vst [vmem:[%s8588_s7 + $0x210] sm:$0xf] %v447_v4  ;;  %v575_v4 = vld [vmem:[%s8583_s6 + $0x620] sm:$0xf] }
  0x9b   : > { %450 = vst [vmem:[%s8588_s7 + $0x214] sm:$0xf] %v449_v5  ;;  %v577_v5 = vld [vmem:[%s8583_s6 + $0x628] sm:$0xf] }
  0x9c   : > { %452 = vst [vmem:[%s8588_s7 + $0x218] sm:$0xf] %v451_v6  ;;  %v579_v6 = vld [vmem:[%s8583_s6 + $0x630] sm:$0xf] }
  0x9d   : > { %454 = vst [vmem:[%s8588_s7 + $0x21c] sm:$0xf] %v453_v7  ;;  %v581_v7 = vld [vmem:[%s8583_s6 + $0x638] sm:$0xf] }
  0x9e   : > { %456 = vst [vmem:[%s8588_s7 + $0x220] sm:$0xf] %v455_v8  ;;  %v583_v8 = vld [vmem:[%s8583_s6 + $0x640] sm:$0xf] }
  0x9f   : > { %458 = vst [vmem:[%s8588_s7 + $0x224] sm:$0xf] %v457_v9  ;;  %v585_v9 = vld [vmem:[%s8583_s6 + $0x648] sm:$0xf] }
  0xa0   : > { %460 = vst [vmem:[%s8588_s7 + $0x228] sm:$0xf] %v459_v10  ;;  %v587_v10 = vld [vmem:[%s8583_s6 + $0x650] sm:$0xf] }
  0xa1   : > { %462 = vst [vmem:[%s8588_s7 + $0x22c] sm:$0xf] %v461_v11  ;;  %v589_v11 = vld [vmem:[%s8583_s6 + $0x658] sm:$0xf] }
  0xa2   : > { %464 = vst [vmem:[%s8588_s7 + $0x230] sm:$0xf] %v463_v12  ;;  %v591_v12 = vld [vmem:[%s8583_s6 + $0x660] sm:$0xf] }
  0xa3   : > { %466 = vst [vmem:[%s8588_s7 + $0x234] sm:$0xf] %v465_v13  ;;  %v593_v13 = vld [vmem:[%s8583_s6 + $0x668] sm:$0xf] }
  0xa4   : > { %468 = vst [vmem:[%s8588_s7 + $0x238] sm:$0xf] %v467_v14  ;;  %v595_v14 = vld [vmem:[%s8583_s6 + $0x670] sm:$0xf] }
  0xa5   : > { %470 = vst [vmem:[%s8588_s7 + $0x23c] sm:$0xf] %v469_v15  ;;  %v597_v15 = vld [vmem:[%s8583_s6 + $0x678] sm:$0xf] }
  0xa6   : > { %472 = vst [vmem:[%s8588_s7 + $0x240] sm:$0xf] %v471_v16  ;;  %v599_v16 = vld [vmem:[%s8583_s6 + $0x680] sm:$0xf] }
  0xa7   : > { %474 = vst [vmem:[%s8588_s7 + $0x244] sm:$0xf] %v473_v17  ;;  %v601_v17 = vld [vmem:[%s8583_s6 + $0x688] sm:$0xf] }
  0xa8   : > { %476 = vst [vmem:[%s8588_s7 + $0x248] sm:$0xf] %v475_v18  ;;  %v603_v18 = vld [vmem:[%s8583_s6 + $0x690] sm:$0xf] }
  0xa9   : > { %478 = vst [vmem:[%s8588_s7 + $0x24c] sm:$0xf] %v477_v19  ;;  %v605_v19 = vld [vmem:[%s8583_s6 + $0x698] sm:$0xf] }
  0xaa   : > { %480 = vst [vmem:[%s8588_s7 + $0x250] sm:$0xf] %v479_v20  ;;  %v607_v20 = vld [vmem:[%s8583_s6 + $0x6a0] sm:$0xf] }
  0xab   : > { %482 = vst [vmem:[%s8588_s7 + $0x254] sm:$0xf] %v481_v21  ;;  %v609_v21 = vld [vmem:[%s8583_s6 + $0x6a8] sm:$0xf] }
  0xac   : > { %484 = vst [vmem:[%s8588_s7 + $0x258] sm:$0xf] %v483_v22  ;;  %v611_v22 = vld [vmem:[%s8583_s6 + $0x6b0] sm:$0xf] }
  0xad   : > { %486 = vst [vmem:[%s8588_s7 + $0x25c] sm:$0xf] %v485_v23  ;;  %v613_v23 = vld [vmem:[%s8583_s6 + $0x6b8] sm:$0xf] }
  0xae   : > { %488 = vst [vmem:[%s8588_s7 + $0x260] sm:$0xf] %v487_v24  ;;  %v615_v24 = vld [vmem:[%s8583_s6 + $0x6c0] sm:$0xf] }
  0xaf   : > { %490 = vst [vmem:[%s8588_s7 + $0x264] sm:$0xf] %v489_v25  ;;  %v617_v25 = vld [vmem:[%s8583_s6 + $0x6c8] sm:$0xf] }
  0xb0   : > { %492 = vst [vmem:[%s8588_s7 + $0x268] sm:$0xf] %v491_v26  ;;  %v619_v26 = vld [vmem:[%s8583_s6 + $0x6d0] sm:$0xf] }
  0xb1   : > { %494 = vst [vmem:[%s8588_s7 + $0x26c] sm:$0xf] %v493_v27  ;;  %v621_v27 = vld [vmem:[%s8583_s6 + $0x6d8] sm:$0xf] }
  0xb2   : > { %496 = vst [vmem:[%s8588_s7 + $0x270] sm:$0xf] %v495_v28  ;;  %v623_v28 = vld [vmem:[%s8583_s6 + $0x6e0] sm:$0xf] }
  0xb3   : > { %498 = vst [vmem:[%s8588_s7 + $0x274] sm:$0xf] %v497_v29  ;;  %v625_v29 = vld [vmem:[%s8583_s6 + $0x6e8] sm:$0xf] }
  0xb4   : > { %500 = vst [vmem:[%s8588_s7 + $0x278] sm:$0xf] %v499_v30  ;;  %v627_v30 = vld [vmem:[%s8583_s6 + $0x6f0] sm:$0xf] }
  0xb5   : > { %502 = vst [vmem:[%s8588_s7 + $0x27c] sm:$0xf] %v501_v31  ;;  %v629_v31 = vld [vmem:[%s8583_s6 + $0x6f8] sm:$0xf] }
  0xb6   : > { %504 = vst [vmem:[%s8588_s7 + $0x280] sm:$0xf] %v503_v32  ;;  %v631_v32 = vld [vmem:[%s8583_s6 + $0x700] sm:$0xf] }
  0xb7   : > { %506 = vst [vmem:[%s8588_s7 + $0x284] sm:$0xf] %v505_v33  ;;  %v633_v33 = vld [vmem:[%s8583_s6 + $0x708] sm:$0xf] }
  0xb8   : > { %508 = vst [vmem:[%s8588_s7 + $0x288] sm:$0xf] %v507_v34  ;;  %v635_v34 = vld [vmem:[%s8583_s6 + $0x710] sm:$0xf] }
  0xb9   : > { %510 = vst [vmem:[%s8588_s7 + $0x28c] sm:$0xf] %v509_v35  ;;  %v637_v35 = vld [vmem:[%s8583_s6 + $0x718] sm:$0xf] }
  0xba   : > { %512 = vst [vmem:[%s8588_s7 + $0x290] sm:$0xf] %v511_v36  ;;  %v639_v36 = vld [vmem:[%s8583_s6 + $0x720] sm:$0xf] }
  0xbb   : > { %514 = vst [vmem:[%s8588_s7 + $0x294] sm:$0xf] %v513_v37  ;;  %v641_v37 = vld [vmem:[%s8583_s6 + $0x728] sm:$0xf] }
  0xbc   : > { %516 = vst [vmem:[%s8588_s7 + $0x298] sm:$0xf] %v515_v38  ;;  %v643_v38 = vld [vmem:[%s8583_s6 + $0x730] sm:$0xf] }
  0xbd   : > { %518 = vst [vmem:[%s8588_s7 + $0x29c] sm:$0xf] %v517_v39  ;;  %v645_v39 = vld [vmem:[%s8583_s6 + $0x738] sm:$0xf] }
  0xbe   : > { %520 = vst [vmem:[%s8588_s7 + $0x2a0] sm:$0xf] %v519_v40  ;;  %v647_v40 = vld [vmem:[%s8583_s6 + $0x740] sm:$0xf] }
  0xbf   : > { %522 = vst [vmem:[%s8588_s7 + $0x2a4] sm:$0xf] %v521_v41  ;;  %v649_v41 = vld [vmem:[%s8583_s6 + $0x748] sm:$0xf] }
  0xc0   : > { %524 = vst [vmem:[%s8588_s7 + $0x2a8] sm:$0xf] %v523_v42  ;;  %v651_v42 = vld [vmem:[%s8583_s6 + $0x750] sm:$0xf] }
  0xc1   : > { %526 = vst [vmem:[%s8588_s7 + $0x2ac] sm:$0xf] %v525_v43  ;;  %v653_v43 = vld [vmem:[%s8583_s6 + $0x758] sm:$0xf] }
  0xc2   : > { %528 = vst [vmem:[%s8588_s7 + $0x2b0] sm:$0xf] %v527_v44  ;;  %v655_v44 = vld [vmem:[%s8583_s6 + $0x760] sm:$0xf] }
  0xc3   : > { %530 = vst [vmem:[%s8588_s7 + $0x2b4] sm:$0xf] %v529_v45  ;;  %v657_v45 = vld [vmem:[%s8583_s6 + $0x768] sm:$0xf] }
  0xc4   : > { %532 = vst [vmem:[%s8588_s7 + $0x2b8] sm:$0xf] %v531_v46  ;;  %v659_v46 = vld [vmem:[%s8583_s6 + $0x770] sm:$0xf] }
  0xc5   : > { %534 = vst [vmem:[%s8588_s7 + $0x2bc] sm:$0xf] %v533_v47  ;;  %v661_v47 = vld [vmem:[%s8583_s6 + $0x778] sm:$0xf] }
  0xc6   : > { %536 = vst [vmem:[%s8588_s7 + $0x2c0] sm:$0xf] %v535_v48  ;;  %v663_v48 = vld [vmem:[%s8583_s6 + $0x780] sm:$0xf] }
  0xc7   : > { %538 = vst [vmem:[%s8588_s7 + $0x2c4] sm:$0xf] %v537_v49  ;;  %v665_v49 = vld [vmem:[%s8583_s6 + $0x788] sm:$0xf] }
  0xc8   : > { %540 = vst [vmem:[%s8588_s7 + $0x2c8] sm:$0xf] %v539_v50  ;;  %v667_v50 = vld [vmem:[%s8583_s6 + $0x790] sm:$0xf] }
  0xc9   : > { %542 = vst [vmem:[%s8588_s7 + $0x2cc] sm:$0xf] %v541_v51  ;;  %v669_v51 = vld [vmem:[%s8583_s6 + $0x798] sm:$0xf] }
  0xca   : > { %544 = vst [vmem:[%s8588_s7 + $0x2d0] sm:$0xf] %v543_v52  ;;  %v671_v52 = vld [vmem:[%s8583_s6 + $0x7a0] sm:$0xf] }
  0xcb   : > { %546 = vst [vmem:[%s8588_s7 + $0x2d4] sm:$0xf] %v545_v53  ;;  %v673_v53 = vld [vmem:[%s8583_s6 + $0x7a8] sm:$0xf] }
  0xcc   : > { %548 = vst [vmem:[%s8588_s7 + $0x2d8] sm:$0xf] %v547_v54  ;;  %v675_v54 = vld [vmem:[%s8583_s6 + $0x7b0] sm:$0xf] }
  0xcd   : > { %550 = vst [vmem:[%s8588_s7 + $0x2dc] sm:$0xf] %v549_v55  ;;  %v677_v55 = vld [vmem:[%s8583_s6 + $0x7b8] sm:$0xf] }
  0xce   : > { %552 = vst [vmem:[%s8588_s7 + $0x2e0] sm:$0xf] %v551_v56  ;;  %v679_v56 = vld [vmem:[%s8583_s6 + $0x7c0] sm:$0xf] }
  0xcf   : > { %554 = vst [vmem:[%s8588_s7 + $0x2e4] sm:$0xf] %v553_v57  ;;  %v681_v57 = vld [vmem:[%s8583_s6 + $0x7c8] sm:$0xf] }
  0xd0   : > { %556 = vst [vmem:[%s8588_s7 + $0x2e8] sm:$0xf] %v555_v58  ;;  %v683_v58 = vld [vmem:[%s8583_s6 + $0x7d0] sm:$0xf] }
  0xd1   : > { %558 = vst [vmem:[%s8588_s7 + $0x2ec] sm:$0xf] %v557_v59  ;;  %v685_v59 = vld [vmem:[%s8583_s6 + $0x7d8] sm:$0xf] }
  0xd2   : > { %560 = vst [vmem:[%s8588_s7 + $0x2f0] sm:$0xf] %v559_v60  ;;  %v687_v60 = vld [vmem:[%s8583_s6 + $0x7e0] sm:$0xf] }
  0xd3   : > { %562 = vst [vmem:[%s8588_s7 + $0x2f4] sm:$0xf] %v561_v61  ;;  %v689_v61 = vld [vmem:[%s8583_s6 + $0x7e8] sm:$0xf] }
  0xd4   : > { %564 = vst [vmem:[%s8588_s7 + $0x2f8] sm:$0xf] %v563_v62  ;;  %v691_v62 = vld [vmem:[%s8583_s6 + $0x7f0] sm:$0xf] }
  0xd5   : > { %566 = vst [vmem:[%s8588_s7 + $0x2fc] sm:$0xf] %v565_v63  ;;  %v693_v63 = vld [vmem:[%s8583_s6 + $0x7f8] sm:$0xf] }
  0xd6   : > { %568 = vst [vmem:[%s8588_s7 + $0x300] sm:$0xf] %v567_v0  ;;  %v695_v0 = vld [vmem:[%s8583_s6 + $0x800] sm:$0xf] }
  0xd7   : > { %570 = vst [vmem:[%s8588_s7 + $0x304] sm:$0xf] %v569_v1  ;;  %v697_v1 = vld [vmem:[%s8583_s6 + $0x808] sm:$0xf] }
  0xd8   : > { %572 = vst [vmem:[%s8588_s7 + $0x308] sm:$0xf] %v571_v2  ;;  %v699_v2 = vld [vmem:[%s8583_s6 + $0x810] sm:$0xf] }
  0xd9   : > { %574 = vst [vmem:[%s8588_s7 + $0x30c] sm:$0xf] %v573_v3  ;;  %v701_v3 = vld [vmem:[%s8583_s6 + $0x818] sm:$0xf] }
  0xda   : > { %576 = vst [vmem:[%s8588_s7 + $0x310] sm:$0xf] %v575_v4  ;;  %v703_v4 = vld [vmem:[%s8583_s6 + $0x820] sm:$0xf] }
  0xdb   : > { %578 = vst [vmem:[%s8588_s7 + $0x314] sm:$0xf] %v577_v5  ;;  %v705_v5 = vld [vmem:[%s8583_s6 + $0x828] sm:$0xf] }
  0xdc   : > { %580 = vst [vmem:[%s8588_s7 + $0x318] sm:$0xf] %v579_v6  ;;  %v707_v6 = vld [vmem:[%s8583_s6 + $0x830] sm:$0xf] }
  0xdd   : > { %582 = vst [vmem:[%s8588_s7 + $0x31c] sm:$0xf] %v581_v7  ;;  %v709_v7 = vld [vmem:[%s8583_s6 + $0x838] sm:$0xf] }
  0xde   : > { %584 = vst [vmem:[%s8588_s7 + $0x320] sm:$0xf] %v583_v8  ;;  %v711_v8 = vld [vmem:[%s8583_s6 + $0x840] sm:$0xf] }
  0xdf   : > { %586 = vst [vmem:[%s8588_s7 + $0x324] sm:$0xf] %v585_v9  ;;  %v713_v9 = vld [vmem:[%s8583_s6 + $0x848] sm:$0xf] }
  0xe0   : > { %588 = vst [vmem:[%s8588_s7 + $0x328] sm:$0xf] %v587_v10  ;;  %v715_v10 = vld [vmem:[%s8583_s6 + $0x850] sm:$0xf] }
  0xe1   : > { %590 = vst [vmem:[%s8588_s7 + $0x32c] sm:$0xf] %v589_v11  ;;  %v717_v11 = vld [vmem:[%s8583_s6 + $0x858] sm:$0xf] }
  0xe2   : > { %592 = vst [vmem:[%s8588_s7 + $0x330] sm:$0xf] %v591_v12  ;;  %v719_v12 = vld [vmem:[%s8583_s6 + $0x860] sm:$0xf] }
  0xe3   : > { %594 = vst [vmem:[%s8588_s7 + $0x334] sm:$0xf] %v593_v13  ;;  %v721_v13 = vld [vmem:[%s8583_s6 + $0x868] sm:$0xf] }
  0xe4   : > { %596 = vst [vmem:[%s8588_s7 + $0x338] sm:$0xf] %v595_v14  ;;  %v723_v14 = vld [vmem:[%s8583_s6 + $0x870] sm:$0xf] }
  0xe5   : > { %598 = vst [vmem:[%s8588_s7 + $0x33c] sm:$0xf] %v597_v15  ;;  %v725_v15 = vld [vmem:[%s8583_s6 + $0x878] sm:$0xf] }
  0xe6   : > { %600 = vst [vmem:[%s8588_s7 + $0x340] sm:$0xf] %v599_v16  ;;  %v727_v16 = vld [vmem:[%s8583_s6 + $0x880] sm:$0xf] }
  0xe7   : > { %602 = vst [vmem:[%s8588_s7 + $0x344] sm:$0xf] %v601_v17  ;;  %v729_v17 = vld [vmem:[%s8583_s6 + $0x888] sm:$0xf] }
  0xe8   : > { %604 = vst [vmem:[%s8588_s7 + $0x348] sm:$0xf] %v603_v18  ;;  %v731_v18 = vld [vmem:[%s8583_s6 + $0x890] sm:$0xf] }
  0xe9   : > { %606 = vst [vmem:[%s8588_s7 + $0x34c] sm:$0xf] %v605_v19  ;;  %v733_v19 = vld [vmem:[%s8583_s6 + $0x898] sm:$0xf] }
  0xea   : > { %608 = vst [vmem:[%s8588_s7 + $0x350] sm:$0xf] %v607_v20  ;;  %v735_v20 = vld [vmem:[%s8583_s6 + $0x8a0] sm:$0xf] }
  0xeb   : > { %610 = vst [vmem:[%s8588_s7 + $0x354] sm:$0xf] %v609_v21  ;;  %v737_v21 = vld [vmem:[%s8583_s6 + $0x8a8] sm:$0xf] }
  0xec   : > { %612 = vst [vmem:[%s8588_s7 + $0x358] sm:$0xf] %v611_v22  ;;  %v739_v22 = vld [vmem:[%s8583_s6 + $0x8b0] sm:$0xf] }
  0xed   : > { %614 = vst [vmem:[%s8588_s7 + $0x35c] sm:$0xf] %v613_v23  ;;  %v741_v23 = vld [vmem:[%s8583_s6 + $0x8b8] sm:$0xf] }
  0xee   : > { %616 = vst [vmem:[%s8588_s7 + $0x360] sm:$0xf] %v615_v24  ;;  %v743_v24 = vld [vmem:[%s8583_s6 + $0x8c0] sm:$0xf] }
  0xef   : > { %618 = vst [vmem:[%s8588_s7 + $0x364] sm:$0xf] %v617_v25  ;;  %v745_v25 = vld [vmem:[%s8583_s6 + $0x8c8] sm:$0xf] }
  0xf0   : > { %620 = vst [vmem:[%s8588_s7 + $0x368] sm:$0xf] %v619_v26  ;;  %v747_v26 = vld [vmem:[%s8583_s6 + $0x8d0] sm:$0xf] }
  0xf1   : > { %622 = vst [vmem:[%s8588_s7 + $0x36c] sm:$0xf] %v621_v27  ;;  %v749_v27 = vld [vmem:[%s8583_s6 + $0x8d8] sm:$0xf] }
  0xf2   : > { %624 = vst [vmem:[%s8588_s7 + $0x370] sm:$0xf] %v623_v28  ;;  %v751_v28 = vld [vmem:[%s8583_s6 + $0x8e0] sm:$0xf] }
  0xf3   : > { %626 = vst [vmem:[%s8588_s7 + $0x374] sm:$0xf] %v625_v29  ;;  %v753_v29 = vld [vmem:[%s8583_s6 + $0x8e8] sm:$0xf] }
  0xf4   : > { %628 = vst [vmem:[%s8588_s7 + $0x378] sm:$0xf] %v627_v30  ;;  %v755_v30 = vld [vmem:[%s8583_s6 + $0x8f0] sm:$0xf] }
  0xf5   : > { %630 = vst [vmem:[%s8588_s7 + $0x37c] sm:$0xf] %v629_v31  ;;  %v757_v31 = vld [vmem:[%s8583_s6 + $0x8f8] sm:$0xf] }
  0xf6   : > { %632 = vst [vmem:[%s8588_s7 + $0x380] sm:$0xf] %v631_v32  ;;  %v759_v32 = vld [vmem:[%s8583_s6 + $0x900] sm:$0xf] }
  0xf7   : > { %634 = vst [vmem:[%s8588_s7 + $0x384] sm:$0xf] %v633_v33  ;;  %v761_v33 = vld [vmem:[%s8583_s6 + $0x908] sm:$0xf] }
  0xf8   : > { %636 = vst [vmem:[%s8588_s7 + $0x388] sm:$0xf] %v635_v34  ;;  %v763_v34 = vld [vmem:[%s8583_s6 + $0x910] sm:$0xf] }
  0xf9   : > { %638 = vst [vmem:[%s8588_s7 + $0x38c] sm:$0xf] %v637_v35  ;;  %v765_v35 = vld [vmem:[%s8583_s6 + $0x918] sm:$0xf] }
  0xfa   : > { %640 = vst [vmem:[%s8588_s7 + $0x390] sm:$0xf] %v639_v36  ;;  %v767_v36 = vld [vmem:[%s8583_s6 + $0x920] sm:$0xf] }
  0xfb   : > { %642 = vst [vmem:[%s8588_s7 + $0x394] sm:$0xf] %v641_v37  ;;  %v769_v37 = vld [vmem:[%s8583_s6 + $0x928] sm:$0xf] }
  0xfc   : > { %644 = vst [vmem:[%s8588_s7 + $0x398] sm:$0xf] %v643_v38  ;;  %v771_v38 = vld [vmem:[%s8583_s6 + $0x930] sm:$0xf] }
  0xfd   : > { %646 = vst [vmem:[%s8588_s7 + $0x39c] sm:$0xf] %v645_v39  ;;  %v773_v39 = vld [vmem:[%s8583_s6 + $0x938] sm:$0xf] }
  0xfe   : > { %648 = vst [vmem:[%s8588_s7 + $0x3a0] sm:$0xf] %v647_v40  ;;  %v775_v40 = vld [vmem:[%s8583_s6 + $0x940] sm:$0xf] }
  0xff   : > { %650 = vst [vmem:[%s8588_s7 + $0x3a4] sm:$0xf] %v649_v41  ;;  %v777_v41 = vld [vmem:[%s8583_s6 + $0x948] sm:$0xf] }
 0x100   : > { %652 = vst [vmem:[%s8588_s7 + $0x3a8] sm:$0xf] %v651_v42  ;;  %v779_v42 = vld [vmem:[%s8583_s6 + $0x950] sm:$0xf] }
 0x101   : > { %654 = vst [vmem:[%s8588_s7 + $0x3ac] sm:$0xf] %v653_v43  ;;  %v781_v43 = vld [vmem:[%s8583_s6 + $0x958] sm:$0xf] }
 0x102   : > { %656 = vst [vmem:[%s8588_s7 + $0x3b0] sm:$0xf] %v655_v44  ;;  %v783_v44 = vld [vmem:[%s8583_s6 + $0x960] sm:$0xf] }
 0x103   : > { %658 = vst [vmem:[%s8588_s7 + $0x3b4] sm:$0xf] %v657_v45  ;;  %v785_v45 = vld [vmem:[%s8583_s6 + $0x968] sm:$0xf] }
 0x104   : > { %660 = vst [vmem:[%s8588_s7 + $0x3b8] sm:$0xf] %v659_v46  ;;  %v787_v46 = vld [vmem:[%s8583_s6 + $0x970] sm:$0xf] }
 0x105   : > { %662 = vst [vmem:[%s8588_s7 + $0x3bc] sm:$0xf] %v661_v47  ;;  %v789_v47 = vld [vmem:[%s8583_s6 + $0x978] sm:$0xf] }
 0x106   : > { %664 = vst [vmem:[%s8588_s7 + $0x3c0] sm:$0xf] %v663_v48  ;;  %v791_v48 = vld [vmem:[%s8583_s6 + $0x980] sm:$0xf] }
 0x107   : > { %666 = vst [vmem:[%s8588_s7 + $0x3c4] sm:$0xf] %v665_v49  ;;  %v793_v49 = vld [vmem:[%s8583_s6 + $0x988] sm:$0xf] }
 0x108   : > { %668 = vst [vmem:[%s8588_s7 + $0x3c8] sm:$0xf] %v667_v50  ;;  %v795_v50 = vld [vmem:[%s8583_s6 + $0x990] sm:$0xf] }
 0x109   : > { %670 = vst [vmem:[%s8588_s7 + $0x3cc] sm:$0xf] %v669_v51  ;;  %v797_v51 = vld [vmem:[%s8583_s6 + $0x998] sm:$0xf] }
 0x10a   : > { %672 = vst [vmem:[%s8588_s7 + $0x3d0] sm:$0xf] %v671_v52  ;;  %v799_v52 = vld [vmem:[%s8583_s6 + $0x9a0] sm:$0xf] }
 0x10b   : > { %674 = vst [vmem:[%s8588_s7 + $0x3d4] sm:$0xf] %v673_v53  ;;  %v801_v53 = vld [vmem:[%s8583_s6 + $0x9a8] sm:$0xf] }
 0x10c   : > { %676 = vst [vmem:[%s8588_s7 + $0x3d8] sm:$0xf] %v675_v54  ;;  %v803_v54 = vld [vmem:[%s8583_s6 + $0x9b0] sm:$0xf] }
 0x10d   : > { %678 = vst [vmem:[%s8588_s7 + $0x3dc] sm:$0xf] %v677_v55  ;;  %v805_v55 = vld [vmem:[%s8583_s6 + $0x9b8] sm:$0xf] }
 0x10e   : > { %680 = vst [vmem:[%s8588_s7 + $0x3e0] sm:$0xf] %v679_v56  ;;  %v807_v56 = vld [vmem:[%s8583_s6 + $0x9c0] sm:$0xf] }
 0x10f   : > { %682 = vst [vmem:[%s8588_s7 + $0x3e4] sm:$0xf] %v681_v57  ;;  %v809_v57 = vld [vmem:[%s8583_s6 + $0x9c8] sm:$0xf] }
 0x110   : > { %684 = vst [vmem:[%s8588_s7 + $0x3e8] sm:$0xf] %v683_v58  ;;  %v811_v58 = vld [vmem:[%s8583_s6 + $0x9d0] sm:$0xf] }
 0x111   : > { %686 = vst [vmem:[%s8588_s7 + $0x3ec] sm:$0xf] %v685_v59  ;;  %v813_v59 = vld [vmem:[%s8583_s6 + $0x9d8] sm:$0xf] }
 0x112   : > { %688 = vst [vmem:[%s8588_s7 + $0x3f0] sm:$0xf] %v687_v60  ;;  %v815_v60 = vld [vmem:[%s8583_s6 + $0x9e0] sm:$0xf] }
 0x113   : > { %690 = vst [vmem:[%s8588_s7 + $0x3f4] sm:$0xf] %v689_v61  ;;  %v817_v61 = vld [vmem:[%s8583_s6 + $0x9e8] sm:$0xf] }
 0x114   : > { %692 = vst [vmem:[%s8588_s7 + $0x3f8] sm:$0xf] %v691_v62  ;;  %v819_v62 = vld [vmem:[%s8583_s6 + $0x9f0] sm:$0xf] }
 0x115   : > { %694 = vst [vmem:[%s8588_s7 + $0x3fc] sm:$0xf] %v693_v63  ;;  %v821_v63 = vld [vmem:[%s8583_s6 + $0x9f8] sm:$0xf] }
 0x116   : > { %696 = vst [vmem:[%s8588_s7 + $0x400] sm:$0xf] %v695_v0  ;;  %v823_v0 = vld [vmem:[%s8583_s6 + $0xa00] sm:$0xf] }
 0x117   : > { %698 = vst [vmem:[%s8588_s7 + $0x404] sm:$0xf] %v697_v1  ;;  %v825_v1 = vld [vmem:[%s8583_s6 + $0xa08] sm:$0xf] }
 0x118   : > { %700 = vst [vmem:[%s8588_s7 + $0x408] sm:$0xf] %v699_v2  ;;  %v827_v2 = vld [vmem:[%s8583_s6 + $0xa10] sm:$0xf] }
 0x119   : > { %702 = vst [vmem:[%s8588_s7 + $0x40c] sm:$0xf] %v701_v3  ;;  %v829_v3 = vld [vmem:[%s8583_s6 + $0xa18] sm:$0xf] }
 0x11a   : > { %704 = vst [vmem:[%s8588_s7 + $0x410] sm:$0xf] %v703_v4  ;;  %v831_v4 = vld [vmem:[%s8583_s6 + $0xa20] sm:$0xf] }
 0x11b   : > { %706 = vst [vmem:[%s8588_s7 + $0x414] sm:$0xf] %v705_v5  ;;  %v833_v5 = vld [vmem:[%s8583_s6 + $0xa28] sm:$0xf] }
 0x11c   : > { %708 = vst [vmem:[%s8588_s7 + $0x418] sm:$0xf] %v707_v6  ;;  %v835_v6 = vld [vmem:[%s8583_s6 + $0xa30] sm:$0xf] }
 0x11d   : > { %710 = vst [vmem:[%s8588_s7 + $0x41c] sm:$0xf] %v709_v7  ;;  %v837_v7 = vld [vmem:[%s8583_s6 + $0xa38] sm:$0xf] }
 0x11e   : > { %712 = vst [vmem:[%s8588_s7 + $0x420] sm:$0xf] %v711_v8  ;;  %v839_v8 = vld [vmem:[%s8583_s6 + $0xa40] sm:$0xf] }
 0x11f   : > { %714 = vst [vmem:[%s8588_s7 + $0x424] sm:$0xf] %v713_v9  ;;  %v841_v9 = vld [vmem:[%s8583_s6 + $0xa48] sm:$0xf] }
 0x120   : > { %716 = vst [vmem:[%s8588_s7 + $0x428] sm:$0xf] %v715_v10  ;;  %v843_v10 = vld [vmem:[%s8583_s6 + $0xa50] sm:$0xf] }
 0x121   : > { %718 = vst [vmem:[%s8588_s7 + $0x42c] sm:$0xf] %v717_v11  ;;  %v845_v11 = vld [vmem:[%s8583_s6 + $0xa58] sm:$0xf] }
 0x122   : > { %720 = vst [vmem:[%s8588_s7 + $0x430] sm:$0xf] %v719_v12  ;;  %v847_v12 = vld [vmem:[%s8583_s6 + $0xa60] sm:$0xf] }
 0x123   : > { %722 = vst [vmem:[%s8588_s7 + $0x434] sm:$0xf] %v721_v13  ;;  %v849_v13 = vld [vmem:[%s8583_s6 + $0xa68] sm:$0xf] }
 0x124   : > { %724 = vst [vmem:[%s8588_s7 + $0x438] sm:$0xf] %v723_v14  ;;  %v851_v14 = vld [vmem:[%s8583_s6 + $0xa70] sm:$0xf] }
 0x125   : > { %726 = vst [vmem:[%s8588_s7 + $0x43c] sm:$0xf] %v725_v15  ;;  %v853_v15 = vld [vmem:[%s8583_s6 + $0xa78] sm:$0xf] }
 0x126   : > { %728 = vst [vmem:[%s8588_s7 + $0x440] sm:$0xf] %v727_v16  ;;  %v855_v16 = vld [vmem:[%s8583_s6 + $0xa80] sm:$0xf] }
 0x127   : > { %730 = vst [vmem:[%s8588_s7 + $0x444] sm:$0xf] %v729_v17  ;;  %v857_v17 = vld [vmem:[%s8583_s6 + $0xa88] sm:$0xf] }
 0x128   : > { %732 = vst [vmem:[%s8588_s7 + $0x448] sm:$0xf] %v731_v18  ;;  %v859_v18 = vld [vmem:[%s8583_s6 + $0xa90] sm:$0xf] }
 0x129   : > { %734 = vst [vmem:[%s8588_s7 + $0x44c] sm:$0xf] %v733_v19  ;;  %v861_v19 = vld [vmem:[%s8583_s6 + $0xa98] sm:$0xf] }
 0x12a   : > { %736 = vst [vmem:[%s8588_s7 + $0x450] sm:$0xf] %v735_v20  ;;  %v863_v20 = vld [vmem:[%s8583_s6 + $0xaa0] sm:$0xf] }
 0x12b   : > { %738 = vst [vmem:[%s8588_s7 + $0x454] sm:$0xf] %v737_v21  ;;  %v865_v21 = vld [vmem:[%s8583_s6 + $0xaa8] sm:$0xf] }
 0x12c   : > { %740 = vst [vmem:[%s8588_s7 + $0x458] sm:$0xf] %v739_v22  ;;  %v867_v22 = vld [vmem:[%s8583_s6 + $0xab0] sm:$0xf] }
 0x12d   : > { %742 = vst [vmem:[%s8588_s7 + $0x45c] sm:$0xf] %v741_v23  ;;  %v869_v23 = vld [vmem:[%s8583_s6 + $0xab8] sm:$0xf] }
 0x12e   : > { %744 = vst [vmem:[%s8588_s7 + $0x460] sm:$0xf] %v743_v24  ;;  %v871_v24 = vld [vmem:[%s8583_s6 + $0xac0] sm:$0xf] }
 0x12f   : > { %746 = vst [vmem:[%s8588_s7 + $0x464] sm:$0xf] %v745_v25  ;;  %v873_v25 = vld [vmem:[%s8583_s6 + $0xac8] sm:$0xf] }
 0x130   : > { %748 = vst [vmem:[%s8588_s7 + $0x468] sm:$0xf] %v747_v26  ;;  %v875_v26 = vld [vmem:[%s8583_s6 + $0xad0] sm:$0xf] }
 0x131   : > { %750 = vst [vmem:[%s8588_s7 + $0x46c] sm:$0xf] %v749_v27  ;;  %v877_v27 = vld [vmem:[%s8583_s6 + $0xad8] sm:$0xf] }
 0x132   : > { %752 = vst [vmem:[%s8588_s7 + $0x470] sm:$0xf] %v751_v28  ;;  %v879_v28 = vld [vmem:[%s8583_s6 + $0xae0] sm:$0xf] }
 0x133   : > { %754 = vst [vmem:[%s8588_s7 + $0x474] sm:$0xf] %v753_v29  ;;  %v881_v29 = vld [vmem:[%s8583_s6 + $0xae8] sm:$0xf] }
 0x134   : > { %756 = vst [vmem:[%s8588_s7 + $0x478] sm:$0xf] %v755_v30  ;;  %v883_v30 = vld [vmem:[%s8583_s6 + $0xaf0] sm:$0xf] }
 0x135   : > { %758 = vst [vmem:[%s8588_s7 + $0x47c] sm:$0xf] %v757_v31  ;;  %v885_v31 = vld [vmem:[%s8583_s6 + $0xaf8] sm:$0xf] }
 0x136   : > { %760 = vst [vmem:[%s8588_s7 + $0x480] sm:$0xf] %v759_v32  ;;  %v887_v32 = vld [vmem:[%s8583_s6 + $0xb00] sm:$0xf] }
 0x137   : > { %762 = vst [vmem:[%s8588_s7 + $0x484] sm:$0xf] %v761_v33  ;;  %v889_v33 = vld [vmem:[%s8583_s6 + $0xb08] sm:$0xf] }
 0x138   : > { %764 = vst [vmem:[%s8588_s7 + $0x488] sm:$0xf] %v763_v34  ;;  %v891_v34 = vld [vmem:[%s8583_s6 + $0xb10] sm:$0xf] }
 0x139   : > { %766 = vst [vmem:[%s8588_s7 + $0x48c] sm:$0xf] %v765_v35  ;;  %v893_v35 = vld [vmem:[%s8583_s6 + $0xb18] sm:$0xf] }
 0x13a   : > { %768 = vst [vmem:[%s8588_s7 + $0x490] sm:$0xf] %v767_v36  ;;  %v895_v36 = vld [vmem:[%s8583_s6 + $0xb20] sm:$0xf] }
 0x13b   : > { %770 = vst [vmem:[%s8588_s7 + $0x494] sm:$0xf] %v769_v37  ;;  %v897_v37 = vld [vmem:[%s8583_s6 + $0xb28] sm:$0xf] }
 0x13c   : > { %772 = vst [vmem:[%s8588_s7 + $0x498] sm:$0xf] %v771_v38  ;;  %v899_v38 = vld [vmem:[%s8583_s6 + $0xb30] sm:$0xf] }
 0x13d   : > { %774 = vst [vmem:[%s8588_s7 + $0x49c] sm:$0xf] %v773_v39  ;;  %v901_v39 = vld [vmem:[%s8583_s6 + $0xb38] sm:$0xf] }
 0x13e   : > { %776 = vst [vmem:[%s8588_s7 + $0x4a0] sm:$0xf] %v775_v40  ;;  %v903_v40 = vld [vmem:[%s8583_s6 + $0xb40] sm:$0xf] }
 0x13f   : > { %778 = vst [vmem:[%s8588_s7 + $0x4a4] sm:$0xf] %v777_v41  ;;  %v905_v41 = vld [vmem:[%s8583_s6 + $0xb48] sm:$0xf] }
 0x140   : > { %780 = vst [vmem:[%s8588_s7 + $0x4a8] sm:$0xf] %v779_v42  ;;  %v907_v42 = vld [vmem:[%s8583_s6 + $0xb50] sm:$0xf] }
 0x141   : > { %782 = vst [vmem:[%s8588_s7 + $0x4ac] sm:$0xf] %v781_v43  ;;  %v909_v43 = vld [vmem:[%s8583_s6 + $0xb58] sm:$0xf] }
 0x142   : > { %784 = vst [vmem:[%s8588_s7 + $0x4b0] sm:$0xf] %v783_v44  ;;  %v911_v44 = vld [vmem:[%s8583_s6 + $0xb60] sm:$0xf] }
 0x143   : > { %786 = vst [vmem:[%s8588_s7 + $0x4b4] sm:$0xf] %v785_v45  ;;  %v913_v45 = vld [vmem:[%s8583_s6 + $0xb68] sm:$0xf] }
 0x144   : > { %788 = vst [vmem:[%s8588_s7 + $0x4b8] sm:$0xf] %v787_v46  ;;  %v915_v46 = vld [vmem:[%s8583_s6 + $0xb70] sm:$0xf] }
 0x145   : > { %790 = vst [vmem:[%s8588_s7 + $0x4bc] sm:$0xf] %v789_v47  ;;  %v917_v47 = vld [vmem:[%s8583_s6 + $0xb78] sm:$0xf] }
 0x146   : > { %792 = vst [vmem:[%s8588_s7 + $0x4c0] sm:$0xf] %v791_v48  ;;  %v919_v48 = vld [vmem:[%s8583_s6 + $0xb80] sm:$0xf] }
 0x147   : > { %794 = vst [vmem:[%s8588_s7 + $0x4c4] sm:$0xf] %v793_v49  ;;  %v921_v49 = vld [vmem:[%s8583_s6 + $0xb88] sm:$0xf] }
 0x148   : > { %796 = vst [vmem:[%s8588_s7 + $0x4c8] sm:$0xf] %v795_v50  ;;  %v923_v50 = vld [vmem:[%s8583_s6 + $0xb90] sm:$0xf] }
 0x149   : > { %798 = vst [vmem:[%s8588_s7 + $0x4cc] sm:$0xf] %v797_v51  ;;  %v925_v51 = vld [vmem:[%s8583_s6 + $0xb98] sm:$0xf] }
 0x14a   : > { %800 = vst [vmem:[%s8588_s7 + $0x4d0] sm:$0xf] %v799_v52  ;;  %v927_v52 = vld [vmem:[%s8583_s6 + $0xba0] sm:$0xf] }
 0x14b   : > { %802 = vst [vmem:[%s8588_s7 + $0x4d4] sm:$0xf] %v801_v53  ;;  %v929_v53 = vld [vmem:[%s8583_s6 + $0xba8] sm:$0xf] }
 0x14c   : > { %804 = vst [vmem:[%s8588_s7 + $0x4d8] sm:$0xf] %v803_v54  ;;  %v931_v54 = vld [vmem:[%s8583_s6 + $0xbb0] sm:$0xf] }
 0x14d   : > { %806 = vst [vmem:[%s8588_s7 + $0x4dc] sm:$0xf] %v805_v55  ;;  %v933_v55 = vld [vmem:[%s8583_s6 + $0xbb8] sm:$0xf] }
 0x14e   : > { %808 = vst [vmem:[%s8588_s7 + $0x4e0] sm:$0xf] %v807_v56  ;;  %v935_v56 = vld [vmem:[%s8583_s6 + $0xbc0] sm:$0xf] }
 0x14f   : > { %810 = vst [vmem:[%s8588_s7 + $0x4e4] sm:$0xf] %v809_v57  ;;  %v937_v57 = vld [vmem:[%s8583_s6 + $0xbc8] sm:$0xf] }
 0x150   : > { %812 = vst [vmem:[%s8588_s7 + $0x4e8] sm:$0xf] %v811_v58  ;;  %v939_v58 = vld [vmem:[%s8583_s6 + $0xbd0] sm:$0xf] }
 0x151   : > { %814 = vst [vmem:[%s8588_s7 + $0x4ec] sm:$0xf] %v813_v59  ;;  %v941_v59 = vld [vmem:[%s8583_s6 + $0xbd8] sm:$0xf] }
 0x152   : > { %816 = vst [vmem:[%s8588_s7 + $0x4f0] sm:$0xf] %v815_v60  ;;  %v943_v60 = vld [vmem:[%s8583_s6 + $0xbe0] sm:$0xf] }
 0x153   : > { %818 = vst [vmem:[%s8588_s7 + $0x4f4] sm:$0xf] %v817_v61  ;;  %v945_v61 = vld [vmem:[%s8583_s6 + $0xbe8] sm:$0xf] }
 0x154   : > { %820 = vst [vmem:[%s8588_s7 + $0x4f8] sm:$0xf] %v819_v62  ;;  %v947_v62 = vld [vmem:[%s8583_s6 + $0xbf0] sm:$0xf] }
 0x155   : > { %822 = vst [vmem:[%s8588_s7 + $0x4fc] sm:$0xf] %v821_v63  ;;  %v949_v63 = vld [vmem:[%s8583_s6 + $0xbf8] sm:$0xf] }
 0x156   : > { %824 = vst [vmem:[%s8588_s7 + $0x500] sm:$0xf] %v823_v0  ;;  %v951_v0 = vld [vmem:[%s8583_s6 + $0xc00] sm:$0xf] }
 0x157   : > { %826 = vst [vmem:[%s8588_s7 + $0x504] sm:$0xf] %v825_v1  ;;  %v953_v1 = vld [vmem:[%s8583_s6 + $0xc08] sm:$0xf] }
 0x158   : > { %828 = vst [vmem:[%s8588_s7 + $0x508] sm:$0xf] %v827_v2  ;;  %v955_v2 = vld [vmem:[%s8583_s6 + $0xc10] sm:$0xf] }
 0x159   : > { %830 = vst [vmem:[%s8588_s7 + $0x50c] sm:$0xf] %v829_v3  ;;  %v957_v3 = vld [vmem:[%s8583_s6 + $0xc18] sm:$0xf] }
 0x15a   : > { %832 = vst [vmem:[%s8588_s7 + $0x510] sm:$0xf] %v831_v4  ;;  %v959_v4 = vld [vmem:[%s8583_s6 + $0xc20] sm:$0xf] }
 0x15b   : > { %834 = vst [vmem:[%s8588_s7 + $0x514] sm:$0xf] %v833_v5  ;;  %v961_v5 = vld [vmem:[%s8583_s6 + $0xc28] sm:$0xf] }
 0x15c   : > { %836 = vst [vmem:[%s8588_s7 + $0x518] sm:$0xf] %v835_v6  ;;  %v963_v6 = vld [vmem:[%s8583_s6 + $0xc30] sm:$0xf] }
 0x15d   : > { %838 = vst [vmem:[%s8588_s7 + $0x51c] sm:$0xf] %v837_v7  ;;  %v965_v7 = vld [vmem:[%s8583_s6 + $0xc38] sm:$0xf] }
 0x15e   : > { %840 = vst [vmem:[%s8588_s7 + $0x520] sm:$0xf] %v839_v8  ;;  %v967_v8 = vld [vmem:[%s8583_s6 + $0xc40] sm:$0xf] }
 0x15f   : > { %842 = vst [vmem:[%s8588_s7 + $0x524] sm:$0xf] %v841_v9  ;;  %v969_v9 = vld [vmem:[%s8583_s6 + $0xc48] sm:$0xf] }
 0x160   : > { %844 = vst [vmem:[%s8588_s7 + $0x528] sm:$0xf] %v843_v10  ;;  %v971_v10 = vld [vmem:[%s8583_s6 + $0xc50] sm:$0xf] }
 0x161   : > { %846 = vst [vmem:[%s8588_s7 + $0x52c] sm:$0xf] %v845_v11  ;;  %v973_v11 = vld [vmem:[%s8583_s6 + $0xc58] sm:$0xf] }
 0x162   : > { %848 = vst [vmem:[%s8588_s7 + $0x530] sm:$0xf] %v847_v12  ;;  %v975_v12 = vld [vmem:[%s8583_s6 + $0xc60] sm:$0xf] }
 0x163   : > { %850 = vst [vmem:[%s8588_s7 + $0x534] sm:$0xf] %v849_v13  ;;  %v977_v13 = vld [vmem:[%s8583_s6 + $0xc68] sm:$0xf] }
 0x164   : > { %852 = vst [vmem:[%s8588_s7 + $0x538] sm:$0xf] %v851_v14  ;;  %v979_v14 = vld [vmem:[%s8583_s6 + $0xc70] sm:$0xf] }
 0x165   : > { %854 = vst [vmem:[%s8588_s7 + $0x53c] sm:$0xf] %v853_v15  ;;  %v981_v15 = vld [vmem:[%s8583_s6 + $0xc78] sm:$0xf] }
 0x166   : > { %856 = vst [vmem:[%s8588_s7 + $0x540] sm:$0xf] %v855_v16  ;;  %v983_v16 = vld [vmem:[%s8583_s6 + $0xc80] sm:$0xf] }
 0x167   : > { %858 = vst [vmem:[%s8588_s7 + $0x544] sm:$0xf] %v857_v17  ;;  %v985_v17 = vld [vmem:[%s8583_s6 + $0xc88] sm:$0xf] }
 0x168   : > { %860 = vst [vmem:[%s8588_s7 + $0x548] sm:$0xf] %v859_v18  ;;  %v987_v18 = vld [vmem:[%s8583_s6 + $0xc90] sm:$0xf] }
 0x169   : > { %862 = vst [vmem:[%s8588_s7 + $0x54c] sm:$0xf] %v861_v19  ;;  %v989_v19 = vld [vmem:[%s8583_s6 + $0xc98] sm:$0xf] }
 0x16a   : > { %864 = vst [vmem:[%s8588_s7 + $0x550] sm:$0xf] %v863_v20  ;;  %v991_v20 = vld [vmem:[%s8583_s6 + $0xca0] sm:$0xf] }
 0x16b   : > { %866 = vst [vmem:[%s8588_s7 + $0x554] sm:$0xf] %v865_v21  ;;  %v993_v21 = vld [vmem:[%s8583_s6 + $0xca8] sm:$0xf] }
 0x16c   : > { %868 = vst [vmem:[%s8588_s7 + $0x558] sm:$0xf] %v867_v22  ;;  %v995_v22 = vld [vmem:[%s8583_s6 + $0xcb0] sm:$0xf] }
 0x16d   : > { %870 = vst [vmem:[%s8588_s7 + $0x55c] sm:$0xf] %v869_v23  ;;  %v997_v23 = vld [vmem:[%s8583_s6 + $0xcb8] sm:$0xf] }
 0x16e   : > { %872 = vst [vmem:[%s8588_s7 + $0x560] sm:$0xf] %v871_v24  ;;  %v999_v24 = vld [vmem:[%s8583_s6 + $0xcc0] sm:$0xf] }
 0x16f   : > { %874 = vst [vmem:[%s8588_s7 + $0x564] sm:$0xf] %v873_v25  ;;  %v1001_v25 = vld [vmem:[%s8583_s6 + $0xcc8] sm:$0xf] }
 0x170   : > { %876 = vst [vmem:[%s8588_s7 + $0x568] sm:$0xf] %v875_v26  ;;  %v1003_v26 = vld [vmem:[%s8583_s6 + $0xcd0] sm:$0xf] }
 0x171   : > { %878 = vst [vmem:[%s8588_s7 + $0x56c] sm:$0xf] %v877_v27  ;;  %v1005_v27 = vld [vmem:[%s8583_s6 + $0xcd8] sm:$0xf] }
 0x172   : > { %880 = vst [vmem:[%s8588_s7 + $0x570] sm:$0xf] %v879_v28  ;;  %v1007_v28 = vld [vmem:[%s8583_s6 + $0xce0] sm:$0xf] }
 0x173   : > { %882 = vst [vmem:[%s8588_s7 + $0x574] sm:$0xf] %v881_v29  ;;  %v1009_v29 = vld [vmem:[%s8583_s6 + $0xce8] sm:$0xf] }
 0x174   : > { %884 = vst [vmem:[%s8588_s7 + $0x578] sm:$0xf] %v883_v30  ;;  %v1011_v30 = vld [vmem:[%s8583_s6 + $0xcf0] sm:$0xf] }
 0x175   : > { %886 = vst [vmem:[%s8588_s7 + $0x57c] sm:$0xf] %v885_v31  ;;  %v1013_v31 = vld [vmem:[%s8583_s6 + $0xcf8] sm:$0xf] }
 0x176   : > { %888 = vst [vmem:[%s8588_s7 + $0x580] sm:$0xf] %v887_v32  ;;  %v1015_v32 = vld [vmem:[%s8583_s6 + $0xd00] sm:$0xf] }
 0x177   : > { %890 = vst [vmem:[%s8588_s7 + $0x584] sm:$0xf] %v889_v33  ;;  %v1017_v33 = vld [vmem:[%s8583_s6 + $0xd08] sm:$0xf] }
 0x178   : > { %892 = vst [vmem:[%s8588_s7 + $0x588] sm:$0xf] %v891_v34  ;;  %v1019_v34 = vld [vmem:[%s8583_s6 + $0xd10] sm:$0xf] }
 0x179   : > { %894 = vst [vmem:[%s8588_s7 + $0x58c] sm:$0xf] %v893_v35  ;;  %v1021_v35 = vld [vmem:[%s8583_s6 + $0xd18] sm:$0xf] }
 0x17a   : > { %896 = vst [vmem:[%s8588_s7 + $0x590] sm:$0xf] %v895_v36  ;;  %v1023_v36 = vld [vmem:[%s8583_s6 + $0xd20] sm:$0xf] }
 0x17b   : > { %898 = vst [vmem:[%s8588_s7 + $0x594] sm:$0xf] %v897_v37  ;;  %v1025_v37 = vld [vmem:[%s8583_s6 + $0xd28] sm:$0xf] }
 0x17c   : > { %900 = vst [vmem:[%s8588_s7 + $0x598] sm:$0xf] %v899_v38  ;;  %v1027_v38 = vld [vmem:[%s8583_s6 + $0xd30] sm:$0xf] }
 0x17d   : > { %902 = vst [vmem:[%s8588_s7 + $0x59c] sm:$0xf] %v901_v39  ;;  %v1029_v39 = vld [vmem:[%s8583_s6 + $0xd38] sm:$0xf] }
 0x17e   : > { %904 = vst [vmem:[%s8588_s7 + $0x5a0] sm:$0xf] %v903_v40  ;;  %v1031_v40 = vld [vmem:[%s8583_s6 + $0xd40] sm:$0xf] }
 0x17f   : > { %906 = vst [vmem:[%s8588_s7 + $0x5a4] sm:$0xf] %v905_v41  ;;  %v1033_v41 = vld [vmem:[%s8583_s6 + $0xd48] sm:$0xf] }
 0x180   : > { %908 = vst [vmem:[%s8588_s7 + $0x5a8] sm:$0xf] %v907_v42  ;;  %v1035_v42 = vld [vmem:[%s8583_s6 + $0xd50] sm:$0xf] }
 0x181   : > { %910 = vst [vmem:[%s8588_s7 + $0x5ac] sm:$0xf] %v909_v43  ;;  %v1037_v43 = vld [vmem:[%s8583_s6 + $0xd58] sm:$0xf] }
 0x182   : > { %912 = vst [vmem:[%s8588_s7 + $0x5b0] sm:$0xf] %v911_v44  ;;  %v1039_v44 = vld [vmem:[%s8583_s6 + $0xd60] sm:$0xf] }
 0x183   : > { %914 = vst [vmem:[%s8588_s7 + $0x5b4] sm:$0xf] %v913_v45  ;;  %v1041_v45 = vld [vmem:[%s8583_s6 + $0xd68] sm:$0xf] }
 0x184   : > { %916 = vst [vmem:[%s8588_s7 + $0x5b8] sm:$0xf] %v915_v46  ;;  %v1043_v46 = vld [vmem:[%s8583_s6 + $0xd70] sm:$0xf] }
 0x185   : > { %918 = vst [vmem:[%s8588_s7 + $0x5bc] sm:$0xf] %v917_v47  ;;  %v1045_v47 = vld [vmem:[%s8583_s6 + $0xd78] sm:$0xf] }
 0x186   : > { %920 = vst [vmem:[%s8588_s7 + $0x5c0] sm:$0xf] %v919_v48  ;;  %v1047_v48 = vld [vmem:[%s8583_s6 + $0xd80] sm:$0xf] }
 0x187   : > { %922 = vst [vmem:[%s8588_s7 + $0x5c4] sm:$0xf] %v921_v49  ;;  %v1049_v49 = vld [vmem:[%s8583_s6 + $0xd88] sm:$0xf] }
 0x188   : > { %924 = vst [vmem:[%s8588_s7 + $0x5c8] sm:$0xf] %v923_v50  ;;  %v1051_v50 = vld [vmem:[%s8583_s6 + $0xd90] sm:$0xf] }
 0x189   : > { %926 = vst [vmem:[%s8588_s7 + $0x5cc] sm:$0xf] %v925_v51  ;;  %v1053_v51 = vld [vmem:[%s8583_s6 + $0xd98] sm:$0xf] }
 0x18a   : > { %928 = vst [vmem:[%s8588_s7 + $0x5d0] sm:$0xf] %v927_v52  ;;  %v1055_v52 = vld [vmem:[%s8583_s6 + $0xda0] sm:$0xf] }
 0x18b   : > { %930 = vst [vmem:[%s8588_s7 + $0x5d4] sm:$0xf] %v929_v53  ;;  %v1057_v53 = vld [vmem:[%s8583_s6 + $0xda8] sm:$0xf] }
 0x18c   : > { %932 = vst [vmem:[%s8588_s7 + $0x5d8] sm:$0xf] %v931_v54  ;;  %v1059_v54 = vld [vmem:[%s8583_s6 + $0xdb0] sm:$0xf] }
 0x18d   : > { %934 = vst [vmem:[%s8588_s7 + $0x5dc] sm:$0xf] %v933_v55  ;;  %v1061_v55 = vld [vmem:[%s8583_s6 + $0xdb8] sm:$0xf] }
 0x18e   : > { %936 = vst [vmem:[%s8588_s7 + $0x5e0] sm:$0xf] %v935_v56  ;;  %v1063_v56 = vld [vmem:[%s8583_s6 + $0xdc0] sm:$0xf] }
 0x18f   : > { %938 = vst [vmem:[%s8588_s7 + $0x5e4] sm:$0xf] %v937_v57  ;;  %v1065_v57 = vld [vmem:[%s8583_s6 + $0xdc8] sm:$0xf] }
 0x190   : > { %940 = vst [vmem:[%s8588_s7 + $0x5e8] sm:$0xf] %v939_v58  ;;  %v1067_v58 = vld [vmem:[%s8583_s6 + $0xdd0] sm:$0xf] }
 0x191   : > { %942 = vst [vmem:[%s8588_s7 + $0x5ec] sm:$0xf] %v941_v59  ;;  %v1069_v59 = vld [vmem:[%s8583_s6 + $0xdd8] sm:$0xf] }
 0x192   : > { %944 = vst [vmem:[%s8588_s7 + $0x5f0] sm:$0xf] %v943_v60  ;;  %v1071_v60 = vld [vmem:[%s8583_s6 + $0xde0] sm:$0xf] }
 0x193   : > { %946 = vst [vmem:[%s8588_s7 + $0x5f4] sm:$0xf] %v945_v61  ;;  %v1073_v61 = vld [vmem:[%s8583_s6 + $0xde8] sm:$0xf] }
 0x194   : > { %948 = vst [vmem:[%s8588_s7 + $0x5f8] sm:$0xf] %v947_v62  ;;  %v1075_v62 = vld [vmem:[%s8583_s6 + $0xdf0] sm:$0xf] }
 0x195   : > { %950 = vst [vmem:[%s8588_s7 + $0x5fc] sm:$0xf] %v949_v63  ;;  %v1077_v63 = vld [vmem:[%s8583_s6 + $0xdf8] sm:$0xf] }
 0x196   : > { %952 = vst [vmem:[%s8588_s7 + $0x600] sm:$0xf] %v951_v0  ;;  %v1079_v0 = vld [vmem:[%s8583_s6 + $0xe00] sm:$0xf] }
 0x197   : > { %954 = vst [vmem:[%s8588_s7 + $0x604] sm:$0xf] %v953_v1  ;;  %v1081_v1 = vld [vmem:[%s8583_s6 + $0xe08] sm:$0xf] }
 0x198   : > { %956 = vst [vmem:[%s8588_s7 + $0x608] sm:$0xf] %v955_v2  ;;  %v1083_v2 = vld [vmem:[%s8583_s6 + $0xe10] sm:$0xf] }
 0x199   : > { %958 = vst [vmem:[%s8588_s7 + $0x60c] sm:$0xf] %v957_v3  ;;  %v1085_v3 = vld [vmem:[%s8583_s6 + $0xe18] sm:$0xf] }
 0x19a   : > { %960 = vst [vmem:[%s8588_s7 + $0x610] sm:$0xf] %v959_v4  ;;  %v1087_v4 = vld [vmem:[%s8583_s6 + $0xe20] sm:$0xf] }
 0x19b   : > { %962 = vst [vmem:[%s8588_s7 + $0x614] sm:$0xf] %v961_v5  ;;  %v1089_v5 = vld [vmem:[%s8583_s6 + $0xe28] sm:$0xf] }
 0x19c   : > { %964 = vst [vmem:[%s8588_s7 + $0x618] sm:$0xf] %v963_v6  ;;  %v1091_v6 = vld [vmem:[%s8583_s6 + $0xe30] sm:$0xf] }
 0x19d   : > { %966 = vst [vmem:[%s8588_s7 + $0x61c] sm:$0xf] %v965_v7  ;;  %v1093_v7 = vld [vmem:[%s8583_s6 + $0xe38] sm:$0xf] }
 0x19e   : > { %968 = vst [vmem:[%s8588_s7 + $0x620] sm:$0xf] %v967_v8  ;;  %v1095_v8 = vld [vmem:[%s8583_s6 + $0xe40] sm:$0xf] }
 0x19f   : > { %970 = vst [vmem:[%s8588_s7 + $0x624] sm:$0xf] %v969_v9  ;;  %v1097_v9 = vld [vmem:[%s8583_s6 + $0xe48] sm:$0xf] }
 0x1a0   : > { %972 = vst [vmem:[%s8588_s7 + $0x628] sm:$0xf] %v971_v10  ;;  %v1099_v10 = vld [vmem:[%s8583_s6 + $0xe50] sm:$0xf] }
 0x1a1   : > { %974 = vst [vmem:[%s8588_s7 + $0x62c] sm:$0xf] %v973_v11  ;;  %v1101_v11 = vld [vmem:[%s8583_s6 + $0xe58] sm:$0xf] }
 0x1a2   : > { %976 = vst [vmem:[%s8588_s7 + $0x630] sm:$0xf] %v975_v12  ;;  %v1103_v12 = vld [vmem:[%s8583_s6 + $0xe60] sm:$0xf] }
 0x1a3   : > { %978 = vst [vmem:[%s8588_s7 + $0x634] sm:$0xf] %v977_v13  ;;  %v1105_v13 = vld [vmem:[%s8583_s6 + $0xe68] sm:$0xf] }
 0x1a4   : > { %980 = vst [vmem:[%s8588_s7 + $0x638] sm:$0xf] %v979_v14  ;;  %v1107_v14 = vld [vmem:[%s8583_s6 + $0xe70] sm:$0xf] }
 0x1a5   : > { %982 = vst [vmem:[%s8588_s7 + $0x63c] sm:$0xf] %v981_v15  ;;  %v1109_v15 = vld [vmem:[%s8583_s6 + $0xe78] sm:$0xf] }
 0x1a6   : > { %984 = vst [vmem:[%s8588_s7 + $0x640] sm:$0xf] %v983_v16  ;;  %v1111_v16 = vld [vmem:[%s8583_s6 + $0xe80] sm:$0xf] }
 0x1a7   : > { %986 = vst [vmem:[%s8588_s7 + $0x644] sm:$0xf] %v985_v17  ;;  %v1113_v17 = vld [vmem:[%s8583_s6 + $0xe88] sm:$0xf] }
 0x1a8   : > { %988 = vst [vmem:[%s8588_s7 + $0x648] sm:$0xf] %v987_v18  ;;  %v1115_v18 = vld [vmem:[%s8583_s6 + $0xe90] sm:$0xf] }
 0x1a9   : > { %990 = vst [vmem:[%s8588_s7 + $0x64c] sm:$0xf] %v989_v19  ;;  %v1117_v19 = vld [vmem:[%s8583_s6 + $0xe98] sm:$0xf] }
 0x1aa   : > { %992 = vst [vmem:[%s8588_s7 + $0x650] sm:$0xf] %v991_v20  ;;  %v1119_v20 = vld [vmem:[%s8583_s6 + $0xea0] sm:$0xf] }
 0x1ab   : > { %994 = vst [vmem:[%s8588_s7 + $0x654] sm:$0xf] %v993_v21  ;;  %v1121_v21 = vld [vmem:[%s8583_s6 + $0xea8] sm:$0xf] }
 0x1ac   : > { %996 = vst [vmem:[%s8588_s7 + $0x658] sm:$0xf] %v995_v22  ;;  %v1123_v22 = vld [vmem:[%s8583_s6 + $0xeb0] sm:$0xf] }
 0x1ad   : > { %998 = vst [vmem:[%s8588_s7 + $0x65c] sm:$0xf] %v997_v23  ;;  %v1125_v23 = vld [vmem:[%s8583_s6 + $0xeb8] sm:$0xf] }
 0x1ae   : > { %1000 = vst [vmem:[%s8588_s7 + $0x660] sm:$0xf] %v999_v24  ;;  %v1127_v24 = vld [vmem:[%s8583_s6 + $0xec0] sm:$0xf] }
 0x1af   : > { %1002 = vst [vmem:[%s8588_s7 + $0x664] sm:$0xf] %v1001_v25  ;;  %v1129_v25 = vld [vmem:[%s8583_s6 + $0xec8] sm:$0xf] }
 0x1b0   : > { %1004 = vst [vmem:[%s8588_s7 + $0x668] sm:$0xf] %v1003_v26  ;;  %v1131_v26 = vld [vmem:[%s8583_s6 + $0xed0] sm:$0xf] }
 0x1b1   : > { %1006 = vst [vmem:[%s8588_s7 + $0x66c] sm:$0xf] %v1005_v27  ;;  %v1133_v27 = vld [vmem:[%s8583_s6 + $0xed8] sm:$0xf] }
 0x1b2   : > { %1008 = vst [vmem:[%s8588_s7 + $0x670] sm:$0xf] %v1007_v28  ;;  %v1135_v28 = vld [vmem:[%s8583_s6 + $0xee0] sm:$0xf] }
 0x1b3   : > { %1010 = vst [vmem:[%s8588_s7 + $0x674] sm:$0xf] %v1009_v29  ;;  %v1137_v29 = vld [vmem:[%s8583_s6 + $0xee8] sm:$0xf] }
 0x1b4   : > { %1012 = vst [vmem:[%s8588_s7 + $0x678] sm:$0xf] %v1011_v30  ;;  %v1139_v30 = vld [vmem:[%s8583_s6 + $0xef0] sm:$0xf] }
 0x1b5   : > { %1014 = vst [vmem:[%s8588_s7 + $0x67c] sm:$0xf] %v1013_v31  ;;  %v1141_v31 = vld [vmem:[%s8583_s6 + $0xef8] sm:$0xf] }
 0x1b6   : > { %1016 = vst [vmem:[%s8588_s7 + $0x680] sm:$0xf] %v1015_v32  ;;  %v1143_v32 = vld [vmem:[%s8583_s6 + $0xf00] sm:$0xf] }
 0x1b7   : > { %1018 = vst [vmem:[%s8588_s7 + $0x684] sm:$0xf] %v1017_v33  ;;  %v1145_v33 = vld [vmem:[%s8583_s6 + $0xf08] sm:$0xf] }
 0x1b8   : > { %1020 = vst [vmem:[%s8588_s7 + $0x688] sm:$0xf] %v1019_v34  ;;  %v1147_v34 = vld [vmem:[%s8583_s6 + $0xf10] sm:$0xf] }
 0x1b9   : > { %1022 = vst [vmem:[%s8588_s7 + $0x68c] sm:$0xf] %v1021_v35  ;;  %v1149_v35 = vld [vmem:[%s8583_s6 + $0xf18] sm:$0xf] }
 0x1ba   : > { %1024 = vst [vmem:[%s8588_s7 + $0x690] sm:$0xf] %v1023_v36  ;;  %v1151_v36 = vld [vmem:[%s8583_s6 + $0xf20] sm:$0xf] }
 0x1bb   : > { %1026 = vst [vmem:[%s8588_s7 + $0x694] sm:$0xf] %v1025_v37  ;;  %v1153_v37 = vld [vmem:[%s8583_s6 + $0xf28] sm:$0xf] }
 0x1bc   : > { %1028 = vst [vmem:[%s8588_s7 + $0x698] sm:$0xf] %v1027_v38  ;;  %v1155_v38 = vld [vmem:[%s8583_s6 + $0xf30] sm:$0xf] }
 0x1bd   : > { %1030 = vst [vmem:[%s8588_s7 + $0x69c] sm:$0xf] %v1029_v39  ;;  %v1157_v39 = vld [vmem:[%s8583_s6 + $0xf38] sm:$0xf] }
 0x1be   : > { %1032 = vst [vmem:[%s8588_s7 + $0x6a0] sm:$0xf] %v1031_v40  ;;  %v1159_v40 = vld [vmem:[%s8583_s6 + $0xf40] sm:$0xf] }
 0x1bf   : > { %1034 = vst [vmem:[%s8588_s7 + $0x6a4] sm:$0xf] %v1033_v41  ;;  %v1161_v41 = vld [vmem:[%s8583_s6 + $0xf48] sm:$0xf] }
 0x1c0   : > { %1036 = vst [vmem:[%s8588_s7 + $0x6a8] sm:$0xf] %v1035_v42  ;;  %v1163_v42 = vld [vmem:[%s8583_s6 + $0xf50] sm:$0xf] }
 0x1c1   : > { %1038 = vst [vmem:[%s8588_s7 + $0x6ac] sm:$0xf] %v1037_v43  ;;  %v1165_v43 = vld [vmem:[%s8583_s6 + $0xf58] sm:$0xf] }
 0x1c2   : > { %1040 = vst [vmem:[%s8588_s7 + $0x6b0] sm:$0xf] %v1039_v44  ;;  %v1167_v44 = vld [vmem:[%s8583_s6 + $0xf60] sm:$0xf] }
 0x1c3   : > { %1042 = vst [vmem:[%s8588_s7 + $0x6b4] sm:$0xf] %v1041_v45  ;;  %v1169_v45 = vld [vmem:[%s8583_s6 + $0xf68] sm:$0xf] }
 0x1c4   : > { %1044 = vst [vmem:[%s8588_s7 + $0x6b8] sm:$0xf] %v1043_v46  ;;  %v1171_v46 = vld [vmem:[%s8583_s6 + $0xf70] sm:$0xf] }
 0x1c5   : > { %1046 = vst [vmem:[%s8588_s7 + $0x6bc] sm:$0xf] %v1045_v47  ;;  %v1173_v47 = vld [vmem:[%s8583_s6 + $0xf78] sm:$0xf] }
 0x1c6   : > { %1048 = vst [vmem:[%s8588_s7 + $0x6c0] sm:$0xf] %v1047_v48  ;;  %v1175_v48 = vld [vmem:[%s8583_s6 + $0xf80] sm:$0xf] }
 0x1c7   : > { %1050 = vst [vmem:[%s8588_s7 + $0x6c4] sm:$0xf] %v1049_v49  ;;  %v1177_v49 = vld [vmem:[%s8583_s6 + $0xf88] sm:$0xf] }
 0x1c8   : > { %1052 = vst [vmem:[%s8588_s7 + $0x6c8] sm:$0xf] %v1051_v50  ;;  %v1179_v50 = vld [vmem:[%s8583_s6 + $0xf90] sm:$0xf] }
 0x1c9   : > { %1054 = vst [vmem:[%s8588_s7 + $0x6cc] sm:$0xf] %v1053_v51  ;;  %v1181_v51 = vld [vmem:[%s8583_s6 + $0xf98] sm:$0xf] }
 0x1ca   : > { %1056 = vst [vmem:[%s8588_s7 + $0x6d0] sm:$0xf] %v1055_v52  ;;  %v1183_v52 = vld [vmem:[%s8583_s6 + $0xfa0] sm:$0xf] }
 0x1cb   : > { %1058 = vst [vmem:[%s8588_s7 + $0x6d4] sm:$0xf] %v1057_v53  ;;  %v1185_v53 = vld [vmem:[%s8583_s6 + $0xfa8] sm:$0xf] }
 0x1cc   : > { %1060 = vst [vmem:[%s8588_s7 + $0x6d8] sm:$0xf] %v1059_v54  ;;  %v1187_v54 = vld [vmem:[%s8583_s6 + $0xfb0] sm:$0xf] }
 0x1cd   : > { %1062 = vst [vmem:[%s8588_s7 + $0x6dc] sm:$0xf] %v1061_v55  ;;  %v1189_v55 = vld [vmem:[%s8583_s6 + $0xfb8] sm:$0xf] }
 0x1ce   : > { %1064 = vst [vmem:[%s8588_s7 + $0x6e0] sm:$0xf] %v1063_v56  ;;  %v1191_v56 = vld [vmem:[%s8583_s6 + $0xfc0] sm:$0xf] }
 0x1cf   : > { %1066 = vst [vmem:[%s8588_s7 + $0x6e4] sm:$0xf] %v1065_v57  ;;  %v1193_v57 = vld [vmem:[%s8583_s6 + $0xfc8] sm:$0xf] }
 0x1d0   : > { %1068 = vst [vmem:[%s8588_s7 + $0x6e8] sm:$0xf] %v1067_v58  ;;  %v1195_v58 = vld [vmem:[%s8583_s6 + $0xfd0] sm:$0xf] }
 0x1d1   : > { %1070 = vst [vmem:[%s8588_s7 + $0x6ec] sm:$0xf] %v1069_v59  ;;  %v1197_v59 = vld [vmem:[%s8583_s6 + $0xfd8] sm:$0xf] }
 0x1d2   : > { %1072 = vst [vmem:[%s8588_s7 + $0x6f0] sm:$0xf] %v1071_v60  ;;  %v1199_v60 = vld [vmem:[%s8583_s6 + $0xfe0] sm:$0xf] }
 0x1d3   : > { %1074 = vst [vmem:[%s8588_s7 + $0x6f4] sm:$0xf] %v1073_v61  ;;  %v1201_v61 = vld [vmem:[%s8583_s6 + $0xfe8] sm:$0xf] }
 0x1d4   : > { %1076 = vst [vmem:[%s8588_s7 + $0x6f8] sm:$0xf] %v1075_v62  ;;  %v1203_v62 = vld [vmem:[%s8583_s6 + $0xff0] sm:$0xf] }
 0x1d5   : > { %1078 = vst [vmem:[%s8588_s7 + $0x6fc] sm:$0xf] %v1077_v63  ;;  %v1205_v63 = vld [vmem:[%s8583_s6 + $0xff8] sm:$0xf] }
 0x1d6   : > { %1080 = vst [vmem:[%s8588_s7 + $0x700] sm:$0xf] %v1079_v0 }
 0x1d7   : > { %1082 = vst [vmem:[%s8588_s7 + $0x704] sm:$0xf] %v1081_v1 }
 0x1d8   : > { %1084 = vst [vmem:[%s8588_s7 + $0x708] sm:$0xf] %v1083_v2 }
 0x1d9   : > { %1086 = vst [vmem:[%s8588_s7 + $0x70c] sm:$0xf] %v1085_v3 }
 0x1da   : > { %1088 = vst [vmem:[%s8588_s7 + $0x710] sm:$0xf] %v1087_v4 }
 0x1db   : > { %1090 = vst [vmem:[%s8588_s7 + $0x714] sm:$0xf] %v1089_v5 }
 0x1dc   : > { %1092 = vst [vmem:[%s8588_s7 + $0x718] sm:$0xf] %v1091_v6 }
 0x1dd   : > { %1094 = vst [vmem:[%s8588_s7 + $0x71c] sm:$0xf] %v1093_v7 }
 0x1de   : > { %1096 = vst [vmem:[%s8588_s7 + $0x720] sm:$0xf] %v1095_v8 }
 0x1df   : > { %1098 = vst [vmem:[%s8588_s7 + $0x724] sm:$0xf] %v1097_v9 }
 0x1e0   : > { %1100 = vst [vmem:[%s8588_s7 + $0x728] sm:$0xf] %v1099_v10 }
 0x1e1   : > { %1102 = vst [vmem:[%s8588_s7 + $0x72c] sm:$0xf] %v1101_v11 }
 0x1e2   : > { %1104 = vst [vmem:[%s8588_s7 + $0x730] sm:$0xf] %v1103_v12 }
 0x1e3   : > { %1106 = vst [vmem:[%s8588_s7 + $0x734] sm:$0xf] %v1105_v13 }
 0x1e4   : > { %1108 = vst [vmem:[%s8588_s7 + $0x738] sm:$0xf] %v1107_v14 }
 0x1e5   : > { %1110 = vst [vmem:[%s8588_s7 + $0x73c] sm:$0xf] %v1109_v15 }
 0x1e6   : > { %1112 = vst [vmem:[%s8588_s7 + $0x740] sm:$0xf] %v1111_v16 }
 0x1e7   : > { %1114 = vst [vmem:[%s8588_s7 + $0x744] sm:$0xf] %v1113_v17 }
 0x1e8   : > { %1116 = vst [vmem:[%s8588_s7 + $0x748] sm:$0xf] %v1115_v18 }
 0x1e9   : > { %1118 = vst [vmem:[%s8588_s7 + $0x74c] sm:$0xf] %v1117_v19 }
 0x1ea   : > { %1120 = vst [vmem:[%s8588_s7 + $0x750] sm:$0xf] %v1119_v20 }
 0x1eb   : > { %1122 = vst [vmem:[%s8588_s7 + $0x754] sm:$0xf] %v1121_v21 }
 0x1ec   : > { %1124 = vst [vmem:[%s8588_s7 + $0x758] sm:$0xf] %v1123_v22 }
 0x1ed   : > { %1126 = vst [vmem:[%s8588_s7 + $0x75c] sm:$0xf] %v1125_v23 }
 0x1ee   : > { %1128 = vst [vmem:[%s8588_s7 + $0x760] sm:$0xf] %v1127_v24 }
 0x1ef   : > { %1130 = vst [vmem:[%s8588_s7 + $0x764] sm:$0xf] %v1129_v25 }
 0x1f0   : > { %1132 = vst [vmem:[%s8588_s7 + $0x768] sm:$0xf] %v1131_v26 }
 0x1f1   : > { %1134 = vst [vmem:[%s8588_s7 + $0x76c] sm:$0xf] %v1133_v27 }
 0x1f2   : > { %1136 = vst [vmem:[%s8588_s7 + $0x770] sm:$0xf] %v1135_v28 }
 0x1f3   : > { %1138 = vst [vmem:[%s8588_s7 + $0x774] sm:$0xf] %v1137_v29 }
 0x1f4   : > { %1140 = vst [vmem:[%s8588_s7 + $0x778] sm:$0xf] %v1139_v30 }
 0x1f5   : > { %1142 = vst [vmem:[%s8588_s7 + $0x77c] sm:$0xf] %v1141_v31 }
 0x1f6   : > { %1144 = vst [vmem:[%s8588_s7 + $0x780] sm:$0xf] %v1143_v32 }
 0x1f7   : > { %1146 = vst [vmem:[%s8588_s7 + $0x784] sm:$0xf] %v1145_v33 }
 0x1f8   : > { %1148 = vst [vmem:[%s8588_s7 + $0x788] sm:$0xf] %v1147_v34 }
 0x1f9   : > { %1150 = vst [vmem:[%s8588_s7 + $0x78c] sm:$0xf] %v1149_v35 }
 0x1fa   : > { %1152 = vst [vmem:[%s8588_s7 + $0x790] sm:$0xf] %v1151_v36 }
 0x1fb   : > { %1154 = vst [vmem:[%s8588_s7 + $0x794] sm:$0xf] %v1153_v37 }
 0x1fc   : > { %1156 = vst [vmem:[%s8588_s7 + $0x798] sm:$0xf] %v1155_v38 }
 0x1fd   : > { %1158 = vst [vmem:[%s8588_s7 + $0x79c] sm:$0xf] %v1157_v39 }
 0x1fe   : > { %1160 = vst [vmem:[%s8588_s7 + $0x7a0] sm:$0xf] %v1159_v40 }
 0x1ff   : > { %1162 = vst [vmem:[%s8588_s7 + $0x7a4] sm:$0xf] %v1161_v41 }
 0x200   : > { %1164 = vst [vmem:[%s8588_s7 + $0x7a8] sm:$0xf] %v1163_v42 }
 0x201   : > { %1166 = vst [vmem:[%s8588_s7 + $0x7ac] sm:$0xf] %v1165_v43 }
 0x202   : > { %1168 = vst [vmem:[%s8588_s7 + $0x7b0] sm:$0xf] %v1167_v44 }
 0x203   : > { %1170 = vst [vmem:[%s8588_s7 + $0x7b4] sm:$0xf] %v1169_v45 }
 0x204   : > { %1172 = vst [vmem:[%s8588_s7 + $0x7b8] sm:$0xf] %v1171_v46 }
 0x205   : > { %1174 = vst [vmem:[%s8588_s7 + $0x7bc] sm:$0xf] %v1173_v47 }
 0x206   : > { %1176 = vst [vmem:[%s8588_s7 + $0x7c0] sm:$0xf] %v1175_v48 }
 0x207   : > { %1178 = vst [vmem:[%s8588_s7 + $0x7c4] sm:$0xf] %v1177_v49 }
 0x208   : > { %1180 = vst [vmem:[%s8588_s7 + $0x7c8] sm:$0xf] %v1179_v50 }
 0x209   : > { %1182 = vst [vmem:[%s8588_s7 + $0x7cc] sm:$0xf] %v1181_v51 }
 0x20a   : > { %1184 = vst [vmem:[%s8588_s7 + $0x7d0] sm:$0xf] %v1183_v52 }
 0x20b   : > { %1186 = vst [vmem:[%s8588_s7 + $0x7d4] sm:$0xf] %v1185_v53 }
 0x20c   : > { %1188 = vst [vmem:[%s8588_s7 + $0x7d8] sm:$0xf] %v1187_v54 }
 0x20d   : > { %1190 = vst [vmem:[%s8588_s7 + $0x7dc] sm:$0xf] %v1189_v55 }
 0x20e   : > { %1192 = vst [vmem:[%s8588_s7 + $0x7e0] sm:$0xf] %v1191_v56 }
 0x20f   : > { %1194 = vst [vmem:[%s8588_s7 + $0x7e4] sm:$0xf] %v1193_v57 }
 0x210   : > { %1196 = vst [vmem:[%s8588_s7 + $0x7e8] sm:$0xf] %v1195_v58 }
 0x211   : > { %1198 = vst [vmem:[%s8588_s7 + $0x7ec] sm:$0xf] %v1197_v59 }
 0x212   : > { %1200 = vst [vmem:[%s8588_s7 + $0x7f0] sm:$0xf] %v1199_v60 }
 0x213   : > { %1202 = vst [vmem:[%s8588_s7 + $0x7f4] sm:$0xf] %v1201_v61 }
 0x214   : > { %1204 = vst [vmem:[%s8588_s7 + $0x7f8] sm:$0xf] %v1203_v62 }
 0x215   : > { %1206 = vst [vmem:[%s8588_s7 + $0x7fc] sm:$0xf] %v1205_v63 }
 0x216 PF: > { %p7098_p7 = scmp.ge.s32.totalorder %s8500_s18, 1  ;;  %p4333_p8 = scmp.lt.s32.totalorder %s8500_s18, 17 }
 0x218   : > { %p4334_p9 = pnand %p7098_p7, %p4333_p8 }
 0x219   : > { %s4340_s8 = sand.u32 (!%p4334_p9), 1, %s8476_s12   ;;  %s7100_s9 = sshll.u32 (!%p4334_p9), %s8484_s14, 5 }
 0x21a   : > { %4337 = sbr.rel (%p4334_p9) target bundleno = 962 (0x3c2), region = 80  ;;  %s7099_s10 = sshll.u32 (!%p4334_p9), %s4340_s8, 11 }
 0x21b   : > { %p4371_p10 = scmp.lt.s32.totalorder (!%p4334_p9), %s7100_s9, 255  ;;  %p4377_p11 = scmp.lt.s32.totalorder (!%p4334_p9), %s8488_s15, 1 }
 0x21c   : > { %s9634_s4 = scalar_lea.vmem (!%p4334_p9), [#allocation3], %s7099_s10  ;;  %p7103_p12 = scmp.ne.s32.totalorder (!%p4334_p9), %s8484_s14, 0 }
 0x21f   : > { %s10000_s9 = smov (!%p4371_p10, %s7100_s9), 255  ;;  %s10002_s15 = smov (!%p4377_p11, %s8488_s15), 1 }
 0x220   : > { %s7101_s11 = sshll.u32 %s10000_s9, 1  ;;  %s4379_s27 = scalar_lea.vmem %s9985_s2, %s10002_s15 }
 0x221   : > { %s9622_s23 = scalar_lea.vmem %s9983_s0, %s7101_s11  ;;  %s7102_s12 = sshll.u32 %s10002_s15, 1 }
 0x222   : > { %s9632_s30 = scalar_lea.vmem %s9986_s3, %s7102_s12  ;;  %4387 = sbr.rel (%p7103_p12) target bundleno = 553 (0x229), region = 88 }
 0x227   : > { %v8502_v0 = vmov 0.0  }
 0x228   : > { %4388 = vst [vmem:[#allocation2] sm:$0x3] %v8502_v0 }
 0x229 PF: > { %v8139_v1 = vld [vmem:[%s9634_s4 + $0x38] sm:$0xff]  ;;  %v8138_v5 = vld [vmem:[%s9634_s4 + $0x30] sm:$0xff]  ;;  %v8137_v9 = vld [vmem:[%s9634_s4 + $0x28] sm:$0xff]  ;;  %p8128_p13 = scmp.ne.s32.totalorder %s8484_s14, 7 }
 0x22a   : > { %v8147_v2 = vld [vmem:[%s9634_s4 + $0x78] sm:$0xff]  ;;  %6559 = vmatpush.bf16.msra.mxu0 %v8139_v1  ;;  %v8146_v6 = vld [vmem:[%s9634_s4 + $0x70] sm:$0xff]  ;;  %v8145_v10 = vld [vmem:[%s9634_s4 + $0x68] sm:$0xff] }
 0x22b   : > { %v8155_v3 = vld [vmem:[%s9634_s4 + $0xb8] sm:$0xff]  ;;  %6572 = vmatpush.bf16.msra.mxu1 %v8147_v2  ;;  %v8154_v7 = vld [vmem:[%s9634_s4 + $0xb0] sm:$0xff]  ;;  %v8153_v11 = vld [vmem:[%s9634_s4 + $0xa8] sm:$0xff] }
 0x22c   : > { %v8163_v4 = vld [vmem:[%s9634_s4 + $0xf8] sm:$0xff]  ;;  %6585 = vmatpush.bf16.msra.mxu2 %v8155_v3  ;;  %v8162_v8 = vld [vmem:[%s9634_s4 + $0xf0] sm:$0xff]  ;;  %v8161_v12 = vld [vmem:[%s9634_s4 + $0xe8] sm:$0xff] }
 0x22d   : > { %6598 = vmatpush.bf16.msra.mxu3 %v8163_v4  ;;  %v8136_v13 = vld [vmem:[%s9634_s4 + $0x20] sm:$0xff]  ;;  %v8135_v17 = vld [vmem:[%s9634_s4 + $0x18] sm:$0xff]  ;;  %v8134_v22 = vld [vmem:[%s9634_s4 + $0x10] sm:$0xff] }
 0x22e   : > { %6560 = vmatpush.bf16.msra.mxu0 %v8138_v5  ;;  %v8144_v14 = vld [vmem:[%s9634_s4 + $0x60] sm:$0xff]  ;;  %v8143_v18 = vld [vmem:[%s9634_s4 + $0x58] sm:$0xff]  ;;  %v8142_v23 = vld [vmem:[%s9634_s4 + $0x50] sm:$0xff] }
 0x22f   : > { %6573 = vmatpush.bf16.msra.mxu1 %v8146_v6  ;;  %v8152_v15 = vld [vmem:[%s9634_s4 + $0xa0] sm:$0xff]  ;;  %v8151_v19 = vld [vmem:[%s9634_s4 + $0x98] sm:$0xff]  ;;  %v8150_v24 = vld [vmem:[%s9634_s4 + $0x90] sm:$0xff] }
 0x230   : > { %6586 = vmatpush.bf16.msra.mxu2 %v8154_v7  ;;  %v8160_v16 = vld [vmem:[%s9634_s4 + $0xe0] sm:$0xff]  ;;  %v8159_v20 = vld [vmem:[%s9634_s4 + $0xd8] sm:$0xff]  ;;  %v8158_v25 = vld [vmem:[%s9634_s4 + $0xd0] sm:$0xff] }
 0x231   : > { %6599 = vmatpush.bf16.msra.mxu3 %v8162_v8  ;;  %v4390_v21 = vld [vmem:[%s9622_s23] sm:$0xff]  ;;  %v8133_v26 = vld [vmem:[%s9634_s4 + $0x8] sm:$0xff]  ;;  %v8132_v30 = vld [vmem:[%s9634_s4] sm:$0xff] }
 0x232   : > { %6561 = vmatpush.bf16.msra.mxu0 %v8137_v9  ;;  %4406 = vst [vmem:[#allocation1] ss:$4 sm:$0xff] %v4390_v21  ;;  %v8141_v27 = vld [vmem:[%s9634_s4 + $0x48] sm:$0xff]  ;;  %v8140_v31 = vld [vmem:[%s9634_s4 + $0x40] sm:$0xff]  ;;  %v8171_v39 = vld [vmem:[%s9634_s4 + $0x138] sm:$0xff] }
 0x233   : > { %6574 = vmatpush.bf16.msra.mxu1 %v8145_v10  ;;  %v8149_v28 = vld [vmem:[%s9634_s4 + $0x88] sm:$0xff]  ;;  %v8148_v37 = vld [vmem:[%s9634_s4 + $0x80] sm:$0xff]  ;;  %v8179_v40 = vld [vmem:[%s9634_s4 + $0x178] sm:$0xff] }
 0x234   : > { %6587 = vmatpush.bf16.msra.mxu2 %v8153_v11  ;;  %v8157_v29 = vld [vmem:[%s9634_s4 + $0xc8] sm:$0xff]  ;;  %v8156_v38 = vld [vmem:[%s9634_s4 + $0xc0] sm:$0xff]  ;;  %v8187_v41 = vld [vmem:[%s9634_s4 + $0x1b8] sm:$0xff] }
 0x235   : > { %6600 = vmatpush.bf16.msra.mxu3 %v8161_v12  ;;  %v4392_v32 = vld [vmem:[%s9622_s23 + $0x10] sm:$0xff]  ;;  %v8195_v42 = vld [vmem:[%s9634_s4 + $0x1f8] sm:$0xff]  ;;  %v8170_v48 = vld [vmem:[%s9634_s4 + $0x130] sm:$0xff] }
 0x236   : > { %6562 = vmatpush.bf16.msra.mxu0 %v8136_v13  ;;  %v4391_v43 = vld [vmem:[%s9622_s23 + $0x8] sm:$0xff]  ;;  %v8178_v49 = vld [vmem:[%s9634_s4 + $0x170] sm:$0xff]  ;;  %v8169_v52 = vld [vmem:[%s9634_s4 + $0x128] sm:$0xff] }
 0x237   : > { %6575 = vmatpush.bf16.msra.mxu1 %v8144_v14  ;;  %4408 = vst [vmem:[#allocation1 + $0x20] ss:$4 sm:$0xff] %v4391_v43  ;;  %v8186_v50 = vld [vmem:[%s9634_s4 + $0x1b0] sm:$0xff]  ;;  %v8177_v53 = vld [vmem:[%s9634_s4 + $0x168] sm:$0xff]  ;;  %v8168_v61 = vld [vmem:[%s9634_s4 + $0x120] sm:$0xff] }
 0x238   : > { %6588 = vmatpush.bf16.msra.mxu2 %v8152_v15  ;;  %v8194_v51 = vld [vmem:[%s9634_s4 + $0x1f0] sm:$0xff]  ;;  %v8185_v54 = vld [vmem:[%s9634_s4 + $0x1a8] sm:$0xff]  ;;  %v8176_v62 = vld [vmem:[%s9634_s4 + $0x160] sm:$0xff] }
 0x239   : > { %6601 = vmatpush.bf16.msra.mxu3 %v8160_v16  ;;  %v4411_v33 = vld.sshfl [vmem:[#allocation1 + $0x10] sm:$0xff pattern:$0x73625140]  ;;  %v4409_v34 = vld.sshfl [vmem:[#allocation1] sm:$0xff pattern:$0x73625140] }
 0x23a   : > { %6563 = vmatpush.bf16.msra.mxu0 %v8135_v17  ;;  %v4412_v35 = vld.sshfl [vmem:[#allocation1 + $0x18] sm:$0xff pattern:$0x73625140]  ;;  %v4410_v36 = vld.sshfl [vmem:[#allocation1 + $0x8] sm:$0xff pattern:$0x73625140]  ;;  %v4481_v44 = vpack.c.bf16 %v4411_v33, %v4411_v33  ;;  %v4479_v45 = vpack.c.bf16 %v4409_v34, %v4409_v34 }
 0x23b   : > { %6576 = vmatpush.bf16.msra.mxu1 %v8143_v18  ;;  %4417 = vst [vmem:[#allocation1] ss:$4 sm:$0xff] %v4392_v32  ;;  %v4482_v46 = vpack.c.bf16 %v4412_v35, %v4412_v35  ;;  %v4480_v47 = vpack.c.bf16 %v4410_v36, %v4410_v36  ;;  %v8193_v55 = vld [vmem:[%s9634_s4 + $0x1e8] sm:$0xff]  ;;  %v8184_v63 = vld [vmem:[%s9634_s4 + $0x1a0] sm:$0xff]  ;;  %v8167_v1 = vld [vmem:[%s9634_s4 + $0x118] sm:$0xff] }
 0x23c   : > { %6589 = vmatpush.bf16.msra.mxu2 %v8151_v19  ;;  %v4393_v59 = vld [vmem:[%s9622_s23 + $0x18] sm:$0xff]  ;;  %v8192_v0 = vld [vmem:[%s9634_s4 + $0x1e0] sm:$0xff]  ;;  %v8175_v2 = vld [vmem:[%s9634_s4 + $0x158] sm:$0xff] }
 0x23d   : > { %6602 = vmatpush.bf16.msra.mxu3 %v8159_v20  ;;  %v8183_v3 = vld [vmem:[%s9634_s4 + $0x198] sm:$0xff]  ;;  %v8166_v5 = vld [vmem:[%s9634_s4 + $0x110] sm:$0xff]  ;;  %v8165_v9 = vld [vmem:[%s9634_s4 + $0x108] sm:$0xff] }
 0x23e   : > { %6564 = vmatpush.bf16.msra.mxu0 %v8134_v22  ;;  %v9684_v56 = vld.sshfl [vmem:[#allocation1 + $0x30] sm:$0xff pattern:$0x73625140]  ;;  %v9686_v57 = vld.sshfl [vmem:[#allocation1 + $0x20] sm:$0xff pattern:$0x73625140] }
 0x23f   : > { %6577 = vmatpush.bf16.msra.mxu1 %v8142_v23  ;;  %v9688_v58 = vld.sshfl [vmem:[#allocation1 + $0x38] sm:$0xff pattern:$0x73625140]  ;;  %v9691_v60 = vld.sshfl [vmem:[#allocation1 + $0x28] sm:$0xff pattern:$0x73625140]  ;;  %v4485_v22 = vpack.c.bf16 %v9684_v56, %v9684_v56  ;;  %v4483_v23 = vpack.c.bf16 %v9686_v57, %v9686_v57 }
 0x240   : > { %6590 = vmatpush.bf16.msra.mxu2 %v8150_v24  ;;  %4418 = vst [vmem:[#allocation1 + $0x20] ss:$4 sm:$0xff] %v4393_v59  ;;  %v8191_v4 = vld [vmem:[%s9634_s4 + $0x1d8] sm:$0xff]  ;;  %v8174_v6 = vld [vmem:[%s9634_s4 + $0x150] sm:$0xff]  ;;  %v8173_v10 = vld [vmem:[%s9634_s4 + $0x148] sm:$0xff] }
 0x241   : > { %6603 = vmatpush.bf16.msra.mxu3 %v8158_v25  ;;  %v8182_v7 = vld [vmem:[%s9634_s4 + $0x190] sm:$0xff]  ;;  %v8181_v11 = vld [vmem:[%s9634_s4 + $0x188] sm:$0xff]  ;;  %v8164_v13 = vld [vmem:[%s9634_s4 + $0x100] sm:$0xff] }
 0x242   : > { %6565 = vmatpush.bf16.msra.mxu0 %v8133_v26  ;;  %v8190_v8 = vld [vmem:[%s9634_s4 + $0x1d0] sm:$0xff]  ;;  %v8189_v12 = vld [vmem:[%s9634_s4 + $0x1c8] sm:$0xff]  ;;  %v8172_v14 = vld [vmem:[%s9634_s4 + $0x140] sm:$0xff]  ;;  %v4486_v26 = vpack.c.bf16 %v9688_v58, %v9688_v58 }
 0x243   : > { %6578 = vmatpush.bf16.msra.mxu1 %v8141_v27  ;;  %v8180_v15 = vld [vmem:[%s9634_s4 + $0x180] sm:$0xff]  ;;  %v8203_v17 = vld [vmem:[%s9634_s4 + $0x238] sm:$0xff]  ;;  %v8202_v21 = vld [vmem:[%s9634_s4 + $0x230] sm:$0xff]  ;;  %v4484_v27 = vpack.c.bf16 %v9691_v60, %v9691_v60 }
 0x244   : > { %6591 = vmatpush.bf16.msra.mxu2 %v8149_v28  ;;  %v8188_v16 = vld [vmem:[%s9634_s4 + $0x1c0] sm:$0xff]  ;;  %v8211_v18 = vld [vmem:[%s9634_s4 + $0x278] sm:$0xff]  ;;  %v8210_v24 = vld [vmem:[%s9634_s4 + $0x270] sm:$0xff] }
 0x245   : > { %6604 = vmatpush.bf16.msra.mxu3 %v8157_v29  ;;  %v8219_v19 = vld [vmem:[%s9634_s4 + $0x2b8] sm:$0xff]  ;;  %v8218_v25 = vld [vmem:[%s9634_s4 + $0x2b0] sm:$0xff]  ;;  %v9730_v29 = vld.sshfl [vmem:[#allocation1 + $0x10] sm:$0xff pattern:$0x73625140] }
 0x246   : > { %6566 = vmatpush.bf16.msra.mxu0 %v8132_v30  ;;  %v8227_v20 = vld [vmem:[%s9634_s4 + $0x2f8] sm:$0xff]  ;;  %v9736_v33 = vld.sshfl [vmem:[#allocation1 + $0x18] sm:$0xff pattern:$0x73625140]  ;;  %v8212_v56 = vld [vmem:[%s9634_s4 + $0x280] sm:$0xff] }
 0x247   : > { %6579 = vmatpush.bf16.msra.mxu1 %v8140_v31  ;;  %v9728_v28 = vld.sshfl [vmem:[#allocation1] sm:$0xff pattern:$0x73625140]  ;;  %v9732_v30 = vld.sshfl [vmem:[#allocation1 + $0x8] sm:$0xff pattern:$0x73625140] }
 0x248   : > { %6592 = vmatpush.bf16.msra.mxu2 %v8148_v37  ;;  %v8226_v31 = vld [vmem:[%s9634_s4 + $0x2f0] sm:$0xff]  ;;  %v8201_v34 = vld [vmem:[%s9634_s4 + $0x228] sm:$0xff]  ;;  %v8207_v43 = vld [vmem:[%s9634_s4 + $0x258] sm:$0xff] }
 0x249   : > { %6605 = vmatpush.bf16.msra.mxu3 %v8156_v38  ;;  %6567 = vmatmul.bf16.vlgmr.msra.gmra.mxu0 %v4479_v45  ;;  %v4394_v32 = vld [vmem:[%s9622_s23 + $0x20] sm:$0xff]  ;;  %v8209_v35 = vld [vmem:[%s9634_s4 + $0x268] sm:$0xff]  ;;  %v8200_v38 = vld [vmem:[%s9634_s4 + $0x220] sm:$0xff] }
 0x24a   : > { %6611 = vmatpush.bf16.msrb.mxu0 %v8171_v39  ;;  %6580 = vmatmul.bf16.vlgmr.msra.gmra.mxu1 %v4480_v47  ;;  %4427 = vst [vmem:[#allocation1] ss:$4 sm:$0xff] %v4394_v32  ;;  %v8217_v36 = vld [vmem:[%s9634_s4 + $0x2a8] sm:$0xff]  ;;  %v8208_v39 = vld [vmem:[%s9634_s4 + $0x260] sm:$0xff]  ;;  %v8223_v45 = vld [vmem:[%s9634_s4 + $0x2d8] sm:$0xff] }
 0x24b   : > { %6624 = vmatpush.bf16.msrb.mxu1 %v8179_v40  ;;  %6593 = vmatmul.bf16.vlgmr.msra.gmra.mxu2 %v4481_v44  ;;  %v8225_v37 = vld [vmem:[%s9634_s4 + $0x2e8] sm:$0xff]  ;;  %v8216_v40 = vld [vmem:[%s9634_s4 + $0x2a0] sm:$0xff]  ;;  %v8215_v44 = vld [vmem:[%s9634_s4 + $0x298] sm:$0xff] }
 0x24c   : > { %6637 = vmatpush.bf16.msrb.mxu2 %v8187_v41  ;;  %6606 = vmatmul.bf16.vlgmr.msra.gmra.mxu3 %v4482_v46  ;;  %v8224_v41 = vld [vmem:[%s9634_s4 + $0x2e0] sm:$0xff]  ;;  %v8198_v46 = vld [vmem:[%s9634_s4 + $0x210] sm:$0xff]  ;;  %v8235_v58 = vld [vmem:[%s9634_s4 + $0x338] sm:$0xff] }
 0x24d   : > { %6650 = vmatpush.bf16.msrb.mxu3 %v8195_v42  ;;  %v8199_v42 = vld [vmem:[%s9634_s4 + $0x218] sm:$0xff]  ;;  %v8206_v47 = vld [vmem:[%s9634_s4 + $0x250] sm:$0xff]  ;;  %v8220_v57 = vld [vmem:[%s9634_s4 + $0x2c0] sm:$0xff] }
 0x24e   : > { %6612 = vmatpush.bf16.msrb.mxu0 %v8170_v48  ;;  %v8214_v48 = vld [vmem:[%s9634_s4 + $0x290] sm:$0xff]  ;;  %v8243_v59 = vld [vmem:[%s9634_s4 + $0x378] sm:$0xff]  ;;  %v8236_v32 = vld [vmem:[%s9634_s4 + $0x340] sm:$0xff] }
 0x24f   : > { %6625 = vmatpush.bf16.msrb.mxu1 %v8178_v49  ;;  %v8222_v49 = vld [vmem:[%s9634_s4 + $0x2d0] sm:$0xff]  ;;  %v8251_v60 = vld [vmem:[%s9634_s4 + $0x3b8] sm:$0xff] }
 0x250   : > { %6638 = vmatpush.bf16.msrb.mxu2 %v8186_v50  ;;  %v8197_v50 = vld [vmem:[%s9634_s4 + $0x208] sm:$0xff] }
 0x251   : > { %6651 = vmatpush.bf16.msrb.mxu3 %v8194_v51  ;;  %v8205_v51 = vld [vmem:[%s9634_s4 + $0x248] sm:$0xff] }
 0x252   : > { %6613 = vmatpush.bf16.msrb.mxu0 %v8169_v52  ;;  %v8213_v52 = vld [vmem:[%s9634_s4 + $0x288] sm:$0xff] }
 0x253   : > { %6626 = vmatpush.bf16.msrb.mxu1 %v8177_v53  ;;  %v8221_v53 = vld [vmem:[%s9634_s4 + $0x2c8] sm:$0xff] }
 0x254   : > { %6639 = vmatpush.bf16.msrb.mxu2 %v8185_v54  ;;  %v8196_v54 = vld [vmem:[%s9634_s4 + $0x200] sm:$0xff] }
 0x255   : > { %6652 = vmatpush.bf16.msrb.mxu3 %v8193_v55  ;;  %v8204_v55 = vld [vmem:[%s9634_s4 + $0x240] sm:$0xff] }
 0x256   : > { %6614 = vmatpush.bf16.msrb.mxu0 %v8168_v61  ;;  %v8259_v61 = vld [vmem:[%s9634_s4 + $0x3f8] sm:$0xff] }
 0x257   : > { %6627 = vmatpush.bf16.msrb.mxu1 %v8176_v62  ;;  %v4487_v62 = vpack.c.bf16 %v9728_v28, %v9728_v28  ;;  %v8237_v28 = vld [vmem:[%s9634_s4 + $0x348] sm:$0xff] }
 0x258   : > { %6640 = vmatpush.bf16.msrb.mxu2 %v8184_v63  ;;  %v4489_v63 = vpack.c.bf16 %v9730_v29, %v9730_v29  ;;  %v8245_v29 = vld [vmem:[%s9634_s4 + $0x388] sm:$0xff] }
 0x259   : > { %6653 = vmatpush.bf16.msrb.mxu3 %v8192_v0  ;;  %v8234_v0 = vld [vmem:[%s9634_s4 + $0x330] sm:$0xff] }
 0x25a   : > { %6615 = vmatpush.bf16.msrb.mxu0 %v8167_v1  ;;  %v4488_v1 = vpack.c.bf16 %v9732_v30, %v9732_v30  ;;  %v8253_v30 = vld [vmem:[%s9634_s4 + $0x3c8] sm:$0xff] }
 0x25b   : > { %6628 = vmatpush.bf16.msrb.mxu1 %v8175_v2  ;;  %v4490_v2 = vpack.c.bf16 %v9736_v33, %v9736_v33  ;;  %v8244_v33 = vld [vmem:[%s9634_s4 + $0x380] sm:$0xff] }
 0x25c   : > { %6641 = vmatpush.bf16.msrb.mxu2 %v8183_v3  ;;  %v8242_v3 = vld [vmem:[%s9634_s4 + $0x370] sm:$0xff] }
 0x25d   : > { %6654 = vmatpush.bf16.msrb.mxu3 %v8191_v4  ;;  %v8250_v4 = vld [vmem:[%s9634_s4 + $0x3b0] sm:$0xff] }
 0x25e   : > { %6616 = vmatpush.bf16.msrb.mxu0 %v8166_v5  ;;  %v9777_v5 = vld.sshfl [vmem:[#allocation1 + $0x20] sm:$0xff pattern:$0x73625140] }
 0x25f   : > { %6629 = vmatpush.bf16.msrb.mxu1 %v8174_v6  ;;  %v9779_v6 = vld.sshfl [vmem:[#allocation1 + $0x30] sm:$0xff pattern:$0x73625140] }
 0x260   : > { %6642 = vmatpush.bf16.msrb.mxu2 %v8182_v7  ;;  %v9781_v7 = vld.sshfl [vmem:[#allocation1 + $0x28] sm:$0xff pattern:$0x73625140] }
 0x261   : > { %6655 = vmatpush.bf16.msrb.mxu3 %v8190_v8  ;;  %v8258_v8 = vld [vmem:[%s9634_s4 + $0x3f0] sm:$0xff] }
 0x262   : > { %6617 = vmatpush.bf16.msrb.mxu0 %v8165_v9  ;;  %v4395_v9 = vld [vmem:[%s9622_s23 + $0x28] sm:$0xff] }
 0x263   : > { %6630 = vmatpush.bf16.msrb.mxu1 %v8173_v10  ;;  %v9785_v10 = vld.sshfl [vmem:[#allocation1 + $0x38] sm:$0xff pattern:$0x73625140] }
 0x264   : > { %6643 = vmatpush.bf16.msrb.mxu2 %v8181_v11  ;;  %4428 = vst [vmem:[#allocation1 + $0x20] ss:$4 sm:$0xff] %v4395_v9  ;;  %v8233_v11 = vld [vmem:[%s9634_s4 + $0x328] sm:$0xff]  ;;  %v4429_v9 = vld.sshfl [vmem:[#allocation1] sm:$0xff pattern:$0x73625140] }
 0x265   : > { %6656 = vmatpush.bf16.msrb.mxu3 %v8189_v12  ;;  %v8241_v12 = vld [vmem:[%s9634_s4 + $0x368] sm:$0xff] }
 0x266   : > { %6618 = vmatpush.bf16.msrb.mxu0 %v8164_v13  ;;  %v8249_v13 = vld [vmem:[%s9634_s4 + $0x3a8] sm:$0xff] }
 0x267   : > { %6631 = vmatpush.bf16.msrb.mxu1 %v8172_v14  ;;  %v8257_v14 = vld [vmem:[%s9634_s4 + $0x3e8] sm:$0xff] }
 0x268   : > { %6644 = vmatpush.bf16.msrb.mxu2 %v8180_v15  ;;  %v8232_v15 = vld [vmem:[%s9634_s4 + $0x320] sm:$0xff] }
 0x269   : > { %6657 = vmatpush.bf16.msrb.mxu3 %v8188_v16  ;;  %6619 = vmatmul.bf16.vlgmr.msrb.gmra.mxu0 %v4483_v23  ;;  %v8240_v16 = vld [vmem:[%s9634_s4 + $0x360] sm:$0xff]  ;;  %v8230_v23 = vld [vmem:[%s9634_s4 + $0x310] sm:$0xff] }
 0x26a   : > { %6663 = vmatpush.bf16.msra.mxu0 %v8203_v17  ;;  %6632 = vmatmul.bf16.vlgmr.msrb.gmra.mxu1 %v4484_v27  ;;  %v8248_v17 = vld [vmem:[%s9634_s4 + $0x3a0] sm:$0xff]  ;;  %v8229_v27 = vld [vmem:[%s9634_s4 + $0x308] sm:$0xff] }
 0x26b   : > { %6676 = vmatpush.bf16.msra.mxu1 %v8211_v18  ;;  %6645 = vmatmul.bf16.vlgmr.msrb.gmra.mxu2 %v4485_v22  ;;  %v8256_v18 = vld [vmem:[%s9634_s4 + $0x3e0] sm:$0xff]  ;;  %v8255_v22 = vld [vmem:[%s9634_s4 + $0x3d8] sm:$0xff] }
 0x26c   : > { %6689 = vmatpush.bf16.msra.mxu2 %v8219_v19  ;;  %6658 = vmatmul.bf16.vlgmr.msrb.gmra.mxu3 %v4486_v26  ;;  %v8231_v19 = vld [vmem:[%s9634_s4 + $0x318] sm:$0xff]  ;;  %v8254_v26 = vld [vmem:[%s9634_s4 + $0x3d0] sm:$0xff] }
 0x26d   : > { %6702 = vmatpush.bf16.msra.mxu3 %v8227_v20  ;;  %v8239_v20 = vld [vmem:[%s9634_s4 + $0x358] sm:$0xff] }
 0x26e   : > { %6664 = vmatpush.bf16.msra.mxu0 %v8202_v21  ;;  %v8247_v21 = vld [vmem:[%s9634_s4 + $0x398] sm:$0xff] }
 0x26f   : > { %6677 = vmatpush.bf16.msra.mxu1 %v8210_v24  ;;  %v8238_v24 = vld [vmem:[%s9634_s4 + $0x350] sm:$0xff] }
 0x270   : > { %6690 = vmatpush.bf16.msra.mxu2 %v8218_v25  ;;  %v8246_v25 = vld [vmem:[%s9634_s4 + $0x390] sm:$0xff] }
 0x271   : > { %6703 = vmatpush.bf16.msra.mxu3 %v8226_v31  ;;  %v8228_v31 = vld [vmem:[%s9634_s4 + $0x300] sm:$0xff] }
 0x272   : > { %6665 = vmatpush.bf16.msra.mxu0 %v8201_v34  ;;  %v8252_v34 = vld [vmem:[%s9634_s4 + $0x3c0] sm:$0xff] }
 0x273   : > { %6678 = vmatpush.bf16.msra.mxu1 %v8209_v35  ;;  %v8267_v35 = vld [vmem:[%s9634_s4 + $0x438] sm:$0xff] }
 0x274   : > { %6691 = vmatpush.bf16.msra.mxu2 %v8217_v36  ;;  %v8275_v36 = vld [vmem:[%s9634_s4 + $0x478] sm:$0xff] }
 0x275   : > { %6704 = vmatpush.bf16.msra.mxu3 %v8225_v37  ;;  %v8283_v37 = vld [vmem:[%s9634_s4 + $0x4b8] sm:$0xff] }
 0x276   : > { %6666 = vmatpush.bf16.msra.mxu0 %v8200_v38  ;;  %v8291_v38 = vld [vmem:[%s9634_s4 + $0x4f8] sm:$0xff] }
 0x277   : > { %6679 = vmatpush.bf16.msra.mxu1 %v8208_v39  ;;  %v4491_v39 = vpack.c.bf16 %v9777_v5, %v9777_v5  ;;  %v8276_v5 = vld [vmem:[%s9634_s4 + $0x480] sm:$0xff] }
 0x278   : > { %6692 = vmatpush.bf16.msra.mxu2 %v8216_v40  ;;  %v4493_v40 = vpack.c.bf16 %v9779_v6, %v9779_v6  ;;  %v8284_v6 = vld [vmem:[%s9634_s4 + $0x4c0] sm:$0xff] }
 0x279   : > { %6705 = vmatpush.bf16.msra.mxu3 %v8224_v41  ;;  %v4492_v41 = vpack.c.bf16 %v9781_v7, %v9781_v7  ;;  %v8299_v7 = vld [vmem:[%s9634_s4 + $0x538] sm:$0xff] }
 0x27a   : > { %6667 = vmatpush.bf16.msra.mxu0 %v8199_v42  ;;  %v4494_v42 = vpack.c.bf16 %v9785_v10, %v9785_v10  ;;  %v4431_v10 = vld.sshfl [vmem:[#allocation1 + $0x10] sm:$0xff pattern:$0x73625140] }
 0x27b   : > { %6680 = vmatpush.bf16.msra.mxu1 %v8207_v43  ;;  %v8266_v43 = vld [vmem:[%s9634_s4 + $0x430] sm:$0xff] }
 0x27c   : > { %6693 = vmatpush.bf16.msra.mxu2 %v8215_v44  ;;  %v8274_v44 = vld [vmem:[%s9634_s4 + $0x470] sm:$0xff] }
 0x27d   : > { %6706 = vmatpush.bf16.msra.mxu3 %v8223_v45  ;;  %v8282_v45 = vld [vmem:[%s9634_s4 + $0x4b0] sm:$0xff] }
 0x27e   : > { %6668 = vmatpush.bf16.msra.mxu0 %v8198_v46  ;;  %v8290_v46 = vld [vmem:[%s9634_s4 + $0x4f0] sm:$0xff] }
 0x27f   : > { %6681 = vmatpush.bf16.msra.mxu1 %v8206_v47  ;;  %v8265_v47 = vld [vmem:[%s9634_s4 + $0x428] sm:$0xff] }
 0x280   : > { %6694 = vmatpush.bf16.msra.mxu2 %v8214_v48  ;;  %v8273_v48 = vld [vmem:[%s9634_s4 + $0x468] sm:$0xff] }
 0x281   : > { %6707 = vmatpush.bf16.msra.mxu3 %v8222_v49  ;;  %v8281_v49 = vld [vmem:[%s9634_s4 + $0x4a8] sm:$0xff] }
 0x282   : > { %6669 = vmatpush.bf16.msra.mxu0 %v8197_v50  ;;  %v8289_v50 = vld [vmem:[%s9634_s4 + $0x4e8] sm:$0xff] }
 0x283   : > { %6682 = vmatpush.bf16.msra.mxu1 %v8205_v51  ;;  %v8264_v51 = vld [vmem:[%s9634_s4 + $0x420] sm:$0xff] }
 0x284   : > { %6695 = vmatpush.bf16.msra.mxu2 %v8213_v52  ;;  %v8272_v52 = vld [vmem:[%s9634_s4 + $0x460] sm:$0xff] }
 0x285   : > { %6708 = vmatpush.bf16.msra.mxu3 %v8221_v53  ;;  %v8280_v53 = vld [vmem:[%s9634_s4 + $0x4a0] sm:$0xff] }
 0x286   : > { %6670 = vmatpush.bf16.msra.mxu0 %v8196_v54  ;;  %v8288_v54 = vld [vmem:[%s9634_s4 + $0x4e0] sm:$0xff] }
 0x287   : > { %6683 = vmatpush.bf16.msra.mxu1 %v8204_v55  ;;  %v8263_v55 = vld [vmem:[%s9634_s4 + $0x418] sm:$0xff] }
 0x288   : > { %6696 = vmatpush.bf16.msra.mxu2 %v8212_v56  ;;  %v8271_v56 = vld [vmem:[%s9634_s4 + $0x458] sm:$0xff] }
 0x289   : > { %6709 = vmatpush.bf16.msra.mxu3 %v8220_v57  ;;  %6671 = vmatmul.bf16.vlgmr.msra.gmra.mxu0 %v4487_v62  ;;  %v8279_v57 = vld [vmem:[%s9634_s4 + $0x498] sm:$0xff]  ;;  %v8286_v62 = vld [vmem:[%s9634_s4 + $0x4d0] sm:$0xff] }
 0x28a   : > { %6715 = vmatpush.bf16.msrb.mxu0 %v8235_v58  ;;  %6684 = vmatmul.bf16.vlgmr.msra.gmra.mxu1 %v4488_v1  ;;  %v8287_v58 = vld [vmem:[%s9634_s4 + $0x4d8] sm:$0xff]  ;;  %v8277_v1 = vld [vmem:[%s9634_s4 + $0x488] sm:$0xff] }
 0x28b   : > { %6728 = vmatpush.bf16.msrb.mxu1 %v8243_v59  ;;  %6697 = vmatmul.bf16.vlgmr.msra.gmra.mxu2 %v4489_v63  ;;  %v8262_v59 = vld [vmem:[%s9634_s4 + $0x410] sm:$0xff]  ;;  %v8261_v63 = vld [vmem:[%s9634_s4 + $0x408] sm:$0xff] }
 0x28c   : > { %6741 = vmatpush.bf16.msrb.mxu2 %v8251_v60  ;;  %6710 = vmatmul.bf16.vlgmr.msra.gmra.mxu3 %v4490_v2  ;;  %v8270_v60 = vld [vmem:[%s9634_s4 + $0x450] sm:$0xff]  ;;  %v8285_v2 = vld [vmem:[%s9634_s4 + $0x4c8] sm:$0xff] }
 0x28d   : > { %6754 = vmatpush.bf16.msrb.mxu3 %v8259_v61  ;;  %v8278_v61 = vld [vmem:[%s9634_s4 + $0x490] sm:$0xff] }
 0x28e   : > { %6716 = vmatpush.bf16.msrb.mxu0 %v8234_v0  ;;  %v8269_v0 = vld [vmem:[%s9634_s4 + $0x448] sm:$0xff] }
 0x28f   : > { %6729 = vmatpush.bf16.msrb.mxu1 %v8242_v3  ;;  %v8260_v3 = vld [vmem:[%s9634_s4 + $0x400] sm:$0xff] }
 0x290   : > { %6742 = vmatpush.bf16.msrb.mxu2 %v8250_v4  ;;  %v8268_v4 = vld [vmem:[%s9634_s4 + $0x440] sm:$0xff] }
 0x291   : > { %6755 = vmatpush.bf16.msrb.mxu3 %v8258_v8  ;;  %v8307_v8 = vld [vmem:[%s9634_s4 + $0x578] sm:$0xff] }
 0x292   : > { %6717 = vmatpush.bf16.msrb.mxu0 %v8233_v11  ;;  %v4430_v11 = vld.sshfl [vmem:[#allocation1 + $0x8] sm:$0xff pattern:$0x73625140] }
 0x293   : > { %6730 = vmatpush.bf16.msrb.mxu1 %v8241_v12  ;;  %v4432_v12 = vld.sshfl [vmem:[#allocation1 + $0x18] sm:$0xff pattern:$0x73625140] }
 0x294   : > { %6743 = vmatpush.bf16.msrb.mxu2 %v8249_v13  ;;  %v8315_v13 = vld [vmem:[%s9634_s4 + $0x5b8] sm:$0xff] }
 0x295   : > { %6756 = vmatpush.bf16.msrb.mxu3 %v8257_v14  ;;  %v8323_v14 = vld [vmem:[%s9634_s4 + $0x5f8] sm:$0xff] }
 0x296   : > { %6718 = vmatpush.bf16.msrb.mxu0 %v8232_v15  ;;  %v4495_v15 = vpack.c.bf16 %v4429_v9, %v4429_v9  ;;  %v8346_v9 = vld [vmem:[%s9634_s4 + $0x6b0] sm:$0xff] }
 0x297   : > { %6731 = vmatpush.bf16.msrb.mxu1 %v8240_v16  ;;  %v4497_v16 = vpack.c.bf16 %v4431_v10, %v4431_v10  ;;  %v8354_v10 = vld [vmem:[%s9634_s4 + $0x6f0] sm:$0xff] }
 0x298   : > { %6744 = vmatpush.bf16.msrb.mxu2 %v8248_v17  ;;  %v4496_v17 = vpack.c.bf16 %v4430_v11, %v4430_v11  ;;  %v8329_v11 = vld [vmem:[%s9634_s4 + $0x628] sm:$0xff] }
 0x299   : > { %6757 = vmatpush.bf16.msrb.mxu3 %v8256_v18  ;;  %v4498_v18 = vpack.c.bf16 %v4432_v12, %v4432_v12  ;;  %v8337_v12 = vld [vmem:[%s9634_s4 + $0x668] sm:$0xff] }
 0x29a   : > { %6719 = vmatpush.bf16.msrb.mxu0 %v8231_v19  ;;  %v8298_v19 = vld [vmem:[%s9634_s4 + $0x530] sm:$0xff] }
 0x29b   : > { %6732 = vmatpush.bf16.msrb.mxu1 %v8239_v20  ;;  %v8306_v20 = vld [vmem:[%s9634_s4 + $0x570] sm:$0xff] }
 0x29c   : > { %6745 = vmatpush.bf16.msrb.mxu2 %v8247_v21  ;;  %v8314_v21 = vld [vmem:[%s9634_s4 + $0x5b0] sm:$0xff] }
 0x29d   : > { %6758 = vmatpush.bf16.msrb.mxu3 %v8255_v22  ;;  %v8322_v22 = vld [vmem:[%s9634_s4 + $0x5f0] sm:$0xff] }
 0x29e   : > { %6720 = vmatpush.bf16.msrb.mxu0 %v8230_v23  ;;  %v8297_v23 = vld [vmem:[%s9634_s4 + $0x528] sm:$0xff] }
 0x29f   : > { %6733 = vmatpush.bf16.msrb.mxu1 %v8238_v24  ;;  %v8305_v24 = vld [vmem:[%s9634_s4 + $0x568] sm:$0xff] }
 0x2a0   : > { %6746 = vmatpush.bf16.msrb.mxu2 %v8246_v25  ;;  %v8313_v25 = vld [vmem:[%s9634_s4 + $0x5a8] sm:$0xff] }
 0x2a1   : > { %6759 = vmatpush.bf16.msrb.mxu3 %v8254_v26  ;;  %v8321_v26 = vld [vmem:[%s9634_s4 + $0x5e8] sm:$0xff] }
 0x2a2   : > { %6721 = vmatpush.bf16.msrb.mxu0 %v8229_v27 }
 0x2a3   : > { %6734 = vmatpush.bf16.msrb.mxu1 %v8237_v28  ;;  %v8296_v28 = vld [vmem:[%s9634_s4 + $0x520] sm:$0xff] }
 0x2a4   : > { %6747 = vmatpush.bf16.msrb.mxu2 %v8245_v29  ;;  %v8304_v29 = vld [vmem:[%s9634_s4 + $0x560] sm:$0xff] }
 0x2a5   : > { %6760 = vmatpush.bf16.msrb.mxu3 %v8253_v30 }
 0x2a6   : > { %6722 = vmatpush.bf16.msrb.mxu0 %v8228_v31  ;;  %v8312_v31 = vld [vmem:[%s9634_s4 + $0x5a0] sm:$0xff] }
 0x2a7   : > { %6735 = vmatpush.bf16.msrb.mxu1 %v8236_v32  ;;  %v8320_v32 = vld [vmem:[%s9634_s4 + $0x5e0] sm:$0xff] }
 0x2a8   : > { %6748 = vmatpush.bf16.msrb.mxu2 %v8244_v33 }
 0x2a9   : > { %6761 = vmatpush.bf16.msrb.mxu3 %v8252_v34  ;;  %6723 = vmatmul.bf16.vlgmr.msrb.gmra.mxu0 %v4491_v39  ;;  %v8295_v34 = vld [vmem:[%s9634_s4 + $0x518] sm:$0xff] }
 0x2aa   : > { %6767 = vmatpush.bf16.msra.mxu0 %v8267_v35  ;;  %6736 = vmatmul.bf16.vlgmr.msrb.gmra.mxu1 %v4492_v41  ;;  %v8303_v35 = vld [vmem:[%s9634_s4 + $0x558] sm:$0xff] }
 0x2ab   : > { %6780 = vmatpush.bf16.msra.mxu1 %v8275_v36  ;;  %6749 = vmatmul.bf16.vlgmr.msrb.gmra.mxu2 %v4493_v40  ;;  %v8311_v36 = vld [vmem:[%s9634_s4 + $0x598] sm:$0xff] }
 0x2ac   : > { %6793 = vmatpush.bf16.msra.mxu2 %v8283_v37  ;;  %6762 = vmatmul.bf16.vlgmr.msrb.gmra.mxu3 %v4494_v42  ;;  %v8319_v37 = vld [vmem:[%s9634_s4 + $0x5d8] sm:$0xff]  ;;  %v8294_v42 = vld [vmem:[%s9634_s4 + $0x510] sm:$0xff] }
 0x2ad   : > { %6806 = vmatpush.bf16.msra.mxu3 %v8291_v38 }
 0x2ae   : > { %6768 = vmatpush.bf16.msra.mxu0 %v8266_v43  ;;  %v8302_v43 = vld [vmem:[%s9634_s4 + $0x550] sm:$0xff] }
 0x2af   : > { %6781 = vmatpush.bf16.msra.mxu1 %v8274_v44 }
 0x2b0   : > { %6794 = vmatpush.bf16.msra.mxu2 %v8282_v45 }
 0x2b1   : > { %6807 = vmatpush.bf16.msra.mxu3 %v8290_v46  ;;  %v8310_v46 = vld [vmem:[%s9634_s4 + $0x590] sm:$0xff] }
 0x2b2   : > { %6769 = vmatpush.bf16.msra.mxu0 %v8265_v47  ;;  %v8318_v47 = vld [vmem:[%s9634_s4 + $0x5d0] sm:$0xff] }
 0x2b3   : > { %6782 = vmatpush.bf16.msra.mxu1 %v8273_v48  ;;  %v8293_v48 = vld [vmem:[%s9634_s4 + $0x508] sm:$0xff] }
 0x2b4   : > { %6795 = vmatpush.bf16.msra.mxu2 %v8281_v49  ;;  %v8301_v49 = vld [vmem:[%s9634_s4 + $0x548] sm:$0xff] }
 0x2b5   : > { %6808 = vmatpush.bf16.msra.mxu3 %v8289_v50  ;;  %v4396_v50 = vld [vmem:[%s9622_s23 + $0x30] sm:$0xff] }
 0x2b6   : > { %6770 = vmatpush.bf16.msra.mxu0 %v8264_v51  ;;  %v8309_v51 = vld [vmem:[%s9634_s4 + $0x588] sm:$0xff]  ;;  %4437 = vst [vmem:[#allocation1] ss:$4 sm:$0xff] %v4396_v50 }
 0x2b7   : > { %6783 = vmatpush.bf16.msra.mxu1 %v8272_v52  ;;  %v8317_v52 = vld [vmem:[%s9634_s4 + $0x5c8] sm:$0xff] }
 0x2b8   : > { %6796 = vmatpush.bf16.msra.mxu2 %v8280_v53 }
 0x2b9   : > { %6809 = vmatpush.bf16.msra.mxu3 %v8288_v54 }
 0x2ba   : > { %6771 = vmatpush.bf16.msra.mxu0 %v8263_v55  ;;  %v8292_v55 = vld [vmem:[%s9634_s4 + $0x500] sm:$0xff] }
 0x2bb   : > { %6784 = vmatpush.bf16.msra.mxu1 %v8271_v56  ;;  %v8300_v56 = vld [vmem:[%s9634_s4 + $0x540] sm:$0xff] }
 0x2bc   : > { %6797 = vmatpush.bf16.msra.mxu2 %v8279_v57  ;;  %v8308_v57 = vld [vmem:[%s9634_s4 + $0x580] sm:$0xff] }
 0x2bd   : > { %6810 = vmatpush.bf16.msra.mxu3 %v8287_v58  ;;  %v8316_v58 = vld [vmem:[%s9634_s4 + $0x5c0] sm:$0xff]  ;;  %v4439_v50 = vld.sshfl [vmem:[#allocation1] sm:$0xff pattern:$0x73625140] }
 0x2be   : > { %6772 = vmatpush.bf16.msra.mxu0 %v8262_v59  ;;  %v8331_v59 = vld [vmem:[%s9634_s4 + $0x638] sm:$0xff] }
 0x2bf   : > { %6785 = vmatpush.bf16.msra.mxu1 %v8270_v60  ;;  %v8339_v60 = vld [vmem:[%s9634_s4 + $0x678] sm:$0xff] }
 0x2c0   : > { %6798 = vmatpush.bf16.msra.mxu2 %v8278_v61  ;;  %v4433_v61 = vld.sshfl [vmem:[#allocation1 + $0x20] sm:$0xff pattern:$0x73625140] }
 0x2c1   : > { %6811 = vmatpush.bf16.msra.mxu3 %v8286_v62  ;;  %v4435_v62 = vld.sshfl [vmem:[#allocation1 + $0x30] sm:$0xff pattern:$0x73625140] }
 0x2c2   : > { %6773 = vmatpush.bf16.msra.mxu0 %v8261_v63  ;;  %v4434_v63 = vld.sshfl [vmem:[#allocation1 + $0x28] sm:$0xff pattern:$0x73625140] }
 0x2c3   : > { %6786 = vmatpush.bf16.msra.mxu1 %v8269_v0  ;;  %v4436_v0 = vld.sshfl [vmem:[#allocation1 + $0x38] sm:$0xff pattern:$0x73625140] }
 0x2c4   : > { %6799 = vmatpush.bf16.msra.mxu2 %v8277_v1  ;;  %v8347_v1 = vld [vmem:[%s9634_s4 + $0x6b8] sm:$0xff] }
 0x2c5   : > { %6812 = vmatpush.bf16.msra.mxu3 %v8285_v2  ;;  %v8355_v2 = vld [vmem:[%s9634_s4 + $0x6f8] sm:$0xff] }
 0x2c6   : > { %6774 = vmatpush.bf16.msra.mxu0 %v8260_v3  ;;  %v6568_v27 = vpop.f32.mrf.mxu0  ;;  %v4499_v3 = vpack.c.bf16 %v4433_v61, %v4433_v61  ;;  %v8370_v61 = vld [vmem:[%s9634_s4 + $0x770] sm:$0xff] }
 0x2c7   : > { %6787 = vmatpush.bf16.msra.mxu1 %v8268_v4  ;;  %v6581_v30 = vpop.f32.mrf.mxu1  ;;  %v4501_v4 = vpack.c.bf16 %v4435_v62, %v4435_v62  ;;  %v8378_v62 = vld [vmem:[%s9634_s4 + $0x7b0] sm:$0xff] }
 0x2c8   : > { %6800 = vmatpush.bf16.msra.mxu2 %v8276_v5  ;;  %v6582_v33 = vadd.f32 %v6581_v30, %v6568_v27  ;;  %v4500_v5 = vpack.c.bf16 %v4434_v63, %v4434_v63  ;;  %v8386_v63 = vld [vmem:[%s9634_s4 + $0x7f0] sm:$0xff] }
 0x2c9   : > { %6813 = vmatpush.bf16.msra.mxu3 %v8284_v6  ;;  %6775 = vmatmul.bf16.vlgmr.msra.gmra.mxu0 %v4495_v15  ;;  %v4502_v6 = vpack.c.bf16 %v4436_v0, %v4436_v0  ;;  %v8361_v0 = vld [vmem:[%s9634_s4 + $0x728] sm:$0xff] }
 0x2ca   : > { %6819 = vmatpush.bf16.msrb.mxu0 %v8299_v7  ;;  %6788 = vmatmul.bf16.vlgmr.msra.gmra.mxu1 %v4496_v17  ;;  %v8330_v7 = vld [vmem:[%s9634_s4 + $0x630] sm:$0xff]  ;;  %v8336_v17 = vld [vmem:[%s9634_s4 + $0x660] sm:$0xff] }
 0x2cb   : > { %6832 = vmatpush.bf16.msrb.mxu1 %v8307_v8  ;;  %6801 = vmatmul.bf16.vlgmr.msra.gmra.mxu2 %v4497_v16  ;;  %v8338_v8 = vld [vmem:[%s9634_s4 + $0x670] sm:$0xff]  ;;  %v8328_v16 = vld [vmem:[%s9634_s4 + $0x620] sm:$0xff] }
 0x2cc   : > { %6845 = vmatpush.bf16.msrb.mxu2 %v8315_v13  ;;  %6814 = vmatmul.bf16.vlgmr.msra.gmra.mxu3 %v4498_v18  ;;  %v8345_v13 = vld [vmem:[%s9634_s4 + $0x6a8] sm:$0xff] }
 0x2cd   : > { %6858 = vmatpush.bf16.msrb.mxu3 %v8323_v14  ;;  %v8353_v14 = vld [vmem:[%s9634_s4 + $0x6e8] sm:$0xff] }
 0x2ce   : > { %6820 = vmatpush.bf16.msrb.mxu0 %v8298_v19  ;;  %v6594_v38 = vpop.f32.mrf.mxu2  ;;  %v6570_v41 = vpop.f32.mrf.mxu0 }
 0x2cf   : > { %6833 = vmatpush.bf16.msrb.mxu1 %v8306_v20  ;;  %v6595_v39 = vadd.f32 %v6594_v38, %v6582_v33  ;;  %v6607_v40 = vpop.f32.mrf.mxu3  ;;  %v6583_v45 = vpop.f32.mrf.mxu1  ;;  %v8344_v20 = vld [vmem:[%s9634_s4 + $0x6a0] sm:$0xff]  ;;  %v8325_v38 = vld [vmem:[%s9634_s4 + $0x608] sm:$0xff] }
 0x2d0   : > { %6846 = vmatpush.bf16.msrb.mxu2 %v8314_v21  ;;  %v8352_v21 = vld [vmem:[%s9634_s4 + $0x6e0] sm:$0xff]  ;;  %v8349_v41 = vld [vmem:[%s9634_s4 + $0x6c8] sm:$0xff] }
 0x2d1   : > { %6859 = vmatpush.bf16.msrb.mxu3 %v8322_v22  ;;  %v9873_v44 = vadd.f32 %v6607_v40, %v6595_v39  ;;  %v8333_v39 = vld [vmem:[%s9634_s4 + $0x648] sm:$0xff]  ;;  %v8332_v45 = vld [vmem:[%s9634_s4 + $0x640] sm:$0xff] }
 0x2d2   : > { %6821 = vmatpush.bf16.msrb.mxu0 %v8297_v23  ;;  %v8327_v23 = vld [vmem:[%s9634_s4 + $0x618] sm:$0xff]  ;;  %v8341_v40 = vld [vmem:[%s9634_s4 + $0x688] sm:$0xff] }
 0x2d3   : > { %6834 = vmatpush.bf16.msrb.mxu1 %v8305_v24  ;;  %v8335_v24 = vld [vmem:[%s9634_s4 + $0x658] sm:$0xff] }
 0x2d4   : > { %6847 = vmatpush.bf16.msrb.mxu2 %v8313_v25  ;;  %v8343_v25 = vld [vmem:[%s9634_s4 + $0x698] sm:$0xff] }
 0x2d5   : > { %6860 = vmatpush.bf16.msrb.mxu3 %v8321_v26  ;;  %v8351_v26 = vld [vmem:[%s9634_s4 + $0x6d8] sm:$0xff] }
 0x2d6   : > { %6822 = vmatpush.bf16.msrb.mxu0 %v8296_v28  ;;  %v6596_v53 = vpop.f32.mrf.mxu2 }
 0x2d7   : > { %6835 = vmatpush.bf16.msrb.mxu1 %v8304_v29  ;;  %v6609_v54 = vpop.f32.mrf.mxu3  ;;  %v4442_v53 = vld.sshfl [vmem:[#allocation1 + $0x18] sm:$0xff pattern:$0x73625140] }
 0x2d8   : > { %6848 = vmatpush.bf16.msrb.mxu2 %v8312_v31  ;;  %v8326_v31 = vld [vmem:[%s9634_s4 + $0x610] sm:$0xff]  ;;  %v8379_v54 = vld [vmem:[%s9634_s4 + $0x7b8] sm:$0xff] }
 0x2d9   : > { %6861 = vmatpush.bf16.msrb.mxu3 %v8320_v32  ;;  %v8334_v32 = vld [vmem:[%s9634_s4 + $0x650] sm:$0xff] }
 0x2da   : > { %6823 = vmatpush.bf16.msrb.mxu0 %v8295_v34 }
 0x2db   : > { %6836 = vmatpush.bf16.msrb.mxu1 %v8303_v35  ;;  %v8342_v35 = vld [vmem:[%s9634_s4 + $0x690] sm:$0xff] }
 0x2dc   : > { %6849 = vmatpush.bf16.msrb.mxu2 %v8311_v36  ;;  %v8350_v36 = vld [vmem:[%s9634_s4 + $0x6d0] sm:$0xff] }
 0x2dd   : > { %6862 = vmatpush.bf16.msrb.mxu3 %v8319_v37  ;;  %v4397_v37 = vld [vmem:[%s9622_s23 + $0x38] sm:$0xff] }
 0x2de   : > { %6824 = vmatpush.bf16.msrb.mxu0 %v8294_v42  ;;  %4438 = vst [vmem:[#allocation1 + $0x20] ss:$4 sm:$0xff] %v4397_v37 }
 0x2df   : > { %6837 = vmatpush.bf16.msrb.mxu1 %v8302_v43 }
 0x2e0   : > { %6850 = vmatpush.bf16.msrb.mxu2 %v8310_v46  ;;  %v8340_v46 = vld [vmem:[%s9634_s4 + $0x680] sm:$0xff] }
 0x2e1   : > { %6863 = vmatpush.bf16.msrb.mxu3 %v8318_v47  ;;  %v8348_v47 = vld [vmem:[%s9634_s4 + $0x6c0] sm:$0xff] }
 0x2e2   : > { %6825 = vmatpush.bf16.msrb.mxu0 %v8293_v48  ;;  %v8363_v48 = vld [vmem:[%s9634_s4 + $0x738] sm:$0xff] }
 0x2e3   : > { %6838 = vmatpush.bf16.msrb.mxu1 %v8301_v49  ;;  %v8371_v49 = vld [vmem:[%s9634_s4 + $0x778] sm:$0xff] }
 0x2e4   : > { %6851 = vmatpush.bf16.msrb.mxu2 %v8309_v51  ;;  %v4441_v51 = vld.sshfl [vmem:[#allocation1 + $0x10] sm:$0xff pattern:$0x73625140] }
 0x2e5   : > { %6864 = vmatpush.bf16.msrb.mxu3 %v8317_v52  ;;  %v4440_v52 = vld.sshfl [vmem:[#allocation1 + $0x8] sm:$0xff pattern:$0x73625140] }
 0x2e6   : > { %6826 = vmatpush.bf16.msrb.mxu0 %v8292_v55  ;;  %v6620_v15 = vpop.f32.mrf.mxu0  ;;  %v8387_v55 = vld [vmem:[%s9634_s4 + $0x7f8] sm:$0xff] }
 0x2e7   : > { %6839 = vmatpush.bf16.msrb.mxu1 %v8300_v56  ;;  %v6621_v18 = vadd.f32 %v6620_v15, %v9873_v44  ;;  %v6633_v19 = vpop.f32.mrf.mxu1  ;;  %v8324_v44 = vld [vmem:[%s9634_s4 + $0x600] sm:$0xff]  ;;  %v4503_v56 = vpack.c.bf16 %v4439_v50, %v4439_v50  ;;  %v8383_v15 = vld [vmem:[%s9634_s4 + $0x7d8] sm:$0xff] }
 0x2e8   : > { %6852 = vmatpush.bf16.msrb.mxu2 %v8308_v57  ;;  %v4505_v57 = vpack.c.bf16 %v4441_v51, %v4441_v51  ;;  %v4444_v37 = vld.sshfl [vmem:[#allocation1 + $0x28] sm:$0xff pattern:$0x73625140] }
 0x2e9   : > { %6865 = vmatpush.bf16.msrb.mxu3 %v8316_v58  ;;  %6827 = vmatmul.bf16.vlgmr.msrb.gmra.mxu0 %v4499_v3  ;;  %v6634_v22 = vadd.f32 %v6633_v19, %v6621_v18  ;;  %v4504_v58 = vpack.c.bf16 %v4440_v52, %v4440_v52  ;;  %v8385_v3 = vld [vmem:[%s9634_s4 + $0x7e8] sm:$0xff] }
 0x2ea   : > { %6871 = vmatpush.bf16.msra.mxu0 %v8331_v59  ;;  %6840 = vmatmul.bf16.vlgmr.msrb.gmra.mxu1 %v4500_v5  ;;  %v4506_v59 = vpack.c.bf16 %v4442_v53, %v4442_v53 }
 0x2eb   : > { %6884 = vmatpush.bf16.msra.mxu1 %v8339_v60  ;;  %6853 = vmatmul.bf16.vlgmr.msrb.gmra.mxu2 %v4501_v4  ;;  %v8362_v60 = vld [vmem:[%s9634_s4 + $0x730] sm:$0xff] }
 0x2ec   : > { %6897 = vmatpush.bf16.msra.mxu2 %v8347_v1  ;;  %6866 = vmatmul.bf16.vlgmr.msrb.gmra.mxu3 %v4502_v6  ;;  %v8369_v1 = vld [vmem:[%s9634_s4 + $0x768] sm:$0xff]  ;;  %v8360_v6 = vld [vmem:[%s9634_s4 + $0x720] sm:$0xff] }
 0x2ed   : > { %6910 = vmatpush.bf16.msra.mxu3 %v8355_v2  ;;  %v8377_v2 = vld [vmem:[%s9634_s4 + $0x7a8] sm:$0xff] }
 0x2ee   : > { %6872 = vmatpush.bf16.msra.mxu0 %v8330_v7  ;;  %v6646_v27 = vpop.f32.mrf.mxu2  ;;  %v6622_v30 = vpop.f32.mrf.mxu0  ;;  %v8368_v7 = vld [vmem:[%s9634_s4 + $0x760] sm:$0xff] }
 0x2ef   : > { %6885 = vmatpush.bf16.msra.mxu1 %v8338_v8  ;;  %v6647_v28 = vadd.f32 %v6646_v27, %v6634_v22  ;;  %v6659_v29 = vpop.f32.mrf.mxu3  ;;  %v6635_v34 = vpop.f32.mrf.mxu1  ;;  %v8366_v22 = vld [vmem:[%s9634_s4 + $0x750] sm:$0xff]  ;;  %v8365_v27 = vld [vmem:[%s9634_s4 + $0x748] sm:$0xff] }
 0x2f0   : > { %6898 = vmatpush.bf16.msra.mxu2 %v8346_v9  ;;  %v8376_v9 = vld [vmem:[%s9634_s4 + $0x7a0] sm:$0xff] }
 0x2f1   : > { %6911 = vmatpush.bf16.msra.mxu3 %v8354_v10  ;;  %v9909_v33 = vadd.f32 %v6659_v29, %v6647_v28  ;;  %v8384_v10 = vld [vmem:[%s9634_s4 + $0x7e0] sm:$0xff]  ;;  %v8373_v28 = vld [vmem:[%s9634_s4 + $0x788] sm:$0xff] }
 0x2f2   : > { %6873 = vmatpush.bf16.msra.mxu0 %v8329_v11  ;;  %v8381_v29 = vld [vmem:[%s9634_s4 + $0x7c8] sm:$0xff]  ;;  %v8372_v34 = vld [vmem:[%s9634_s4 + $0x780] sm:$0xff] }
 0x2f3   : > { %6886 = vmatpush.bf16.msra.mxu1 %v8337_v12  ;;  %v8359_v12 = vld [vmem:[%s9634_s4 + $0x718] sm:$0xff] }
 0x2f4   : > { %6899 = vmatpush.bf16.msra.mxu2 %v8345_v13  ;;  %v8367_v13 = vld [vmem:[%s9634_s4 + $0x758] sm:$0xff] }
 0x2f5   : > { %6912 = vmatpush.bf16.msra.mxu3 %v8353_v14  ;;  %v8375_v14 = vld [vmem:[%s9634_s4 + $0x798] sm:$0xff] }
 0x2f6   : > { %6874 = vmatpush.bf16.msra.mxu0 %v8328_v16  ;;  %v6648_v42 = vpop.f32.mrf.mxu2 }
 0x2f7   : > { %6887 = vmatpush.bf16.msra.mxu1 %v8336_v17  ;;  %v6661_v43 = vpop.f32.mrf.mxu3 }
 0x2f8   : > { %6900 = vmatpush.bf16.msra.mxu2 %v8344_v20 }
 0x2f9   : > { %6913 = vmatpush.bf16.msra.mxu3 %v8352_v21  ;;  %v8358_v21 = vld [vmem:[%s9634_s4 + $0x710] sm:$0xff] }
 0x2fa   : > { %6875 = vmatpush.bf16.msra.mxu0 %v8327_v23 }
 0x2fb   : > { %6888 = vmatpush.bf16.msra.mxu1 %v8335_v24  ;;  %v8374_v24 = vld [vmem:[%s9634_s4 + $0x790] sm:$0xff] }
 0x2fc   : > { %6901 = vmatpush.bf16.msra.mxu2 %v8343_v25  ;;  %v8382_v25 = vld [vmem:[%s9634_s4 + $0x7d0] sm:$0xff] }
 0x2fd   : > { %6914 = vmatpush.bf16.msra.mxu3 %v8351_v26  ;;  %v8357_v26 = vld [vmem:[%s9634_s4 + $0x708] sm:$0xff] }
 0x2fe   : > { %6876 = vmatpush.bf16.msra.mxu0 %v8326_v31  ;;  %v8356_v31 = vld [vmem:[%s9634_s4 + $0x700] sm:$0xff] }
 0x2ff   : > { %6889 = vmatpush.bf16.msra.mxu1 %v8334_v32 }
 0x300   : > { %6902 = vmatpush.bf16.msra.mxu2 %v8342_v35  ;;  %v8380_v35 = vld [vmem:[%s9634_s4 + $0x7c0] sm:$0xff] }
 0x301   : > { %6915 = vmatpush.bf16.msra.mxu3 %v8350_v36  ;;  %v4443_v36 = vld.sshfl [vmem:[#allocation1 + $0x20] sm:$0xff pattern:$0x73625140] }
 0x302   : > { %6877 = vmatpush.bf16.msra.mxu0 %v8325_v38  ;;  %v4445_v38 = vld.sshfl [vmem:[#allocation1 + $0x30] sm:$0xff pattern:$0x73625140] }
 0x303   : > { %6890 = vmatpush.bf16.msra.mxu1 %v8333_v39  ;;  %v4446_v39 = vld.sshfl [vmem:[#allocation1 + $0x38] sm:$0xff pattern:$0x73625140]  ;;  %v4509_v42 = vpack.c.bf16 %v4445_v38, %v4445_v38 }
 0x304   : > { %6903 = vmatpush.bf16.msra.mxu2 %v8341_v40  ;;  %v4507_v40 = vpack.c.bf16 %v4443_v36, %v4443_v36  ;;  %v4510_v43 = vpack.c.bf16 %v4446_v39, %v4446_v39 }
 0x305   : > { %6916 = vmatpush.bf16.msra.mxu3 %v8349_v41  ;;  %v4508_v41 = vpack.c.bf16 %v4444_v37, %v4444_v37  ;;  %v4389_v37 = vld [vmem:[#allocation2] sm:$0x3] }
 0x306   : > { %6878 = vmatpush.bf16.msra.mxu0 %v8324_v44  ;;  %v6672_v4 = vpop.f32.mrf.mxu0 }
 0x307   : > { %6891 = vmatpush.bf16.msra.mxu1 %v8332_v45  ;;  %v6673_v5 = vadd.f32 %v6672_v4, %v9909_v33  ;;  %v6685_v8 = vpop.f32.mrf.mxu1  ;;  %v8364_v33 = vld [vmem:[%s9634_s4 + $0x740] sm:$0xff] }
 0x308   : > { %6904 = vmatpush.bf16.msra.mxu2 %v8340_v46 }
 0x309   : > { %6917 = vmatpush.bf16.msra.mxu3 %v8348_v47  ;;  %6879 = vmatmul.bf16.vlgmr.msra.gmra.mxu0 %v4503_v56  ;;  %v6686_v11 = vadd.f32 %v6685_v8, %v6673_v5 }
 0x30a   : > { %6923 = vmatpush.bf16.msrb.mxu0 %v8363_v48  ;;  %6892 = vmatmul.bf16.vlgmr.msra.gmra.mxu1 %v4504_v58 }
 0x30b   : > { %6936 = vmatpush.bf16.msrb.mxu1 %v8371_v49  ;;  %6905 = vmatmul.bf16.vlgmr.msra.gmra.mxu2 %v4505_v57 }
 0x30c   : > { %6949 = vmatpush.bf16.msrb.mxu2 %v8379_v54  ;;  %6918 = vmatmul.bf16.vlgmr.msra.gmra.mxu3 %v4506_v59 }
 0x30d   : > { %6962 = vmatpush.bf16.msrb.mxu3 %v8387_v55 }
 0x30e   : > { %6924 = vmatpush.bf16.msrb.mxu0 %v8362_v60  ;;  %v6698_v16 = vpop.f32.mrf.mxu2  ;;  %v6674_v19 = vpop.f32.mrf.mxu0 }
 0x30f   : > { %6937 = vmatpush.bf16.msrb.mxu1 %v8370_v61  ;;  %v6699_v17 = vadd.f32 %v6698_v16, %v6686_v11  ;;  %v6711_v18 = vpop.f32.mrf.mxu3  ;;  %v6687_v23 = vpop.f32.mrf.mxu1 }
 0x310   : > { %6950 = vmatpush.bf16.msrb.mxu2 %v8378_v62 }
 0x311   : > { %6963 = vmatpush.bf16.msrb.mxu3 %v8386_v63  ;;  %v6712_v20 = vadd.f32 %v6711_v18, %v6699_v17 }
 0x312   : > { %6925 = vmatpush.bf16.msrb.mxu0 %v8361_v0 }
 0x313   : > { %6938 = vmatpush.bf16.msrb.mxu1 %v8369_v1 }
 0x314   : > { %6951 = vmatpush.bf16.msrb.mxu2 %v8377_v2 }
 0x315   : > { %6964 = vmatpush.bf16.msrb.mxu3 %v8385_v3 }
 0x316   : > { %6926 = vmatpush.bf16.msrb.mxu0 %v8360_v6  ;;  %v6700_v30 = vpop.f32.mrf.mxu2 }
 0x317   : > { %6939 = vmatpush.bf16.msrb.mxu1 %v8368_v7  ;;  %v6713_v32 = vpop.f32.mrf.mxu3 }
 0x318   : > { %6952 = vmatpush.bf16.msrb.mxu2 %v8376_v9 }
 0x319   : > { %6965 = vmatpush.bf16.msrb.mxu3 %v8384_v10 }
 0x31a   : > { %6927 = vmatpush.bf16.msrb.mxu0 %v8359_v12 }
 0x31b   : > { %6940 = vmatpush.bf16.msrb.mxu1 %v8367_v13 }
 0x31c   : > { %6953 = vmatpush.bf16.msrb.mxu2 %v8375_v14 }
 0x31d   : > { %6966 = vmatpush.bf16.msrb.mxu3 %v8383_v15 }
 0x31e   : > { %6928 = vmatpush.bf16.msrb.mxu0 %v8358_v21 }
 0x31f   : > { %6941 = vmatpush.bf16.msrb.mxu1 %v8366_v22 }
 0x320   : > { %6954 = vmatpush.bf16.msrb.mxu2 %v8374_v24 }
 0x321   : > { %6967 = vmatpush.bf16.msrb.mxu3 %v8382_v25 }
 0x322   : > { %6929 = vmatpush.bf16.msrb.mxu0 %v8357_v26 }
 0x323   : > { %6942 = vmatpush.bf16.msrb.mxu1 %v8365_v27 }
 0x324   : > { %6955 = vmatpush.bf16.msrb.mxu2 %v8373_v28 }
 0x325   : > { %6968 = vmatpush.bf16.msrb.mxu3 %v8381_v29 }
 0x326   : > { %6930 = vmatpush.bf16.msrb.mxu0 %v8356_v31  ;;  %v6724_v44 = vpop.f32.mrf.mxu0 }
 0x327   : > { %6943 = vmatpush.bf16.msrb.mxu1 %v8364_v33  ;;  %v6725_v45 = vadd.f32 %v6724_v44, %v6712_v20  ;;  %v6737_v46 = vpop.f32.mrf.mxu1 }
 0x328   : > { %6956 = vmatpush.bf16.msrb.mxu2 %v8372_v34 }
 0x329   : > { %6969 = vmatpush.bf16.msrb.mxu3 %v8380_v35  ;;  %6931 = vmatmul.bf16.vlgmr.msrb.gmra.mxu0 %v4507_v40  ;;  %v6738_v47 = vadd.f32 %v6737_v46, %v6725_v45 }
 0x32a   : > { %6944 = vmatmul.bf16.vlgmr.msrb.gmra.mxu1 %v4508_v41 }
 0x32b   : > { %6957 = vmatmul.bf16.vlgmr.msrb.gmra.mxu2 %v4509_v42 }
 0x32c   : > { %6970 = vmatmul.bf16.vlgmr.msrb.gmra.mxu3 %v4510_v43 }
 0x32e   : > { %v6750_v48 = vpop.f32.mrf.mxu2  ;;  %v6726_v51 = vpop.f32.mrf.mxu0 }
 0x32f   : > { %v6751_v49 = vadd.f32 %v6750_v48, %v6738_v47  ;;  %v6763_v50 = vpop.f32.mrf.mxu3  ;;  %v6739_v53 = vpop.f32.mrf.mxu1 }
 0x331   : > { %v6764_v52 = vadd.f32 %v6763_v50, %v6751_v49 }
 0x336   : > { %v6752_v54 = vpop.f32.mrf.mxu2 }
 0x337   : > { %v6765_v55 = vpop.f32.mrf.mxu3 }
 0x346   : > { %v6776_v56 = vpop.f32.mrf.mxu0 }
 0x347   : > { %v6777_v57 = vadd.f32 %v6776_v56, %v6764_v52  ;;  %v6789_v58 = vpop.f32.mrf.mxu1 }
 0x349   : > { %v6790_v59 = vadd.f32 %v6789_v58, %v6777_v57 }
 0x34e   : > { %v6802_v60 = vpop.f32.mrf.mxu2  ;;  %v6778_v63 = vpop.f32.mrf.mxu0 }
 0x34f   : > { %v6803_v61 = vadd.f32 %v6802_v60, %v6790_v59  ;;  %v6815_v62 = vpop.f32.mrf.mxu3  ;;  %v6791_v1 = vpop.f32.mrf.mxu1 }
 0x351   : > { %v6816_v0 = vadd.f32 %v6815_v62, %v6803_v61 }
 0x356   : > { %v6804_v2 = vpop.f32.mrf.mxu2 }
 0x357   : > { %v6817_v3 = vpop.f32.mrf.mxu3 }
 0x366   : > { %v6828_v4 = vpop.f32.mrf.mxu0 }
 0x367   : > { %v6841_v5 = vpop.f32.mrf.mxu1  ;;  %v6829_v15 = vadd.f32 %v6828_v4, %v6816_v0 }
 0x369   : > { %v6842_v19 = vadd.f32 %v6841_v5, %v6829_v15 }
 0x36e   : > { %v6854_v6 = vpop.f32.mrf.mxu2  ;;  %v6830_v8 = vpop.f32.mrf.mxu0 }
 0x36f   : > { %v6867_v7 = vpop.f32.mrf.mxu3  ;;  %v6843_v9 = vpop.f32.mrf.mxu1  ;;  %v6855_v20 = vadd.f32 %v6854_v6, %v6842_v19 }
 0x371   : > { %v6868_v23 = vadd.f32 %v6867_v7, %v6855_v20 }
 0x376   : > { %v6856_v10 = vpop.f32.mrf.mxu2 }
 0x377   : > { %v6869_v11 = vpop.f32.mrf.mxu3 }
 0x386   : > { %v6880_v12 = vpop.f32.mrf.mxu0 }
 0x387   : > { %v6893_v13 = vpop.f32.mrf.mxu1  ;;  %v6881_v24 = vadd.f32 %v6880_v12, %v6868_v23 }
 0x389   : > { %v6894_v25 = vadd.f32 %v6893_v13, %v6881_v24 }
 0x38e   : > { %v6906_v14 = vpop.f32.mrf.mxu2  ;;  %v6882_v17 = vpop.f32.mrf.mxu0 }
 0x38f   : > { %v6919_v16 = vpop.f32.mrf.mxu3  ;;  %v6895_v18 = vpop.f32.mrf.mxu1  ;;  %v6907_v26 = vadd.f32 %v6906_v14, %v6894_v25 }
 0x391   : > { %v6920_v27 = vadd.f32 %v6919_v16, %v6907_v26 }
 0x396   : > { %v6908_v21 = vpop.f32.mrf.mxu2 }
 0x397   : > { %v6921_v22 = vpop.f32.mrf.mxu3 }
 0x3a6   : > { %v6932_v28 = vpop.f32.mrf.mxu0 }
 0x3a7   : > { %v6945_v29 = vpop.f32.mrf.mxu1  ;;  %v6933_v30 = vadd.f32 %v6932_v28, %v6920_v27 }
 0x3a9   : > { %v6946_v31 = vadd.f32 %v6945_v29, %v6933_v30 }
 0x3ae   : > { %v6958_v32 = vpop.f32.mrf.mxu2  ;;  %v6934_v35 = vpop.f32.mrf.mxu0 }
 0x3af   : > { %v6971_v33 = vpop.f32.mrf.mxu3  ;;  %v6959_v34 = vadd.f32 %v6958_v32, %v6946_v31  ;;  %v6947_v36 = vpop.f32.mrf.mxu1 }
 0x3b1   : > { %v6972_v38 = vadd.f32 %v6971_v33, %v6959_v34 }
 0x3b3   : > { %v6975_v39 = vadd.f32 %v6972_v38, %v4389_v37  ;;  %6980 = sbr.rel (%p8128_p13) target bundleno = 962 (0x3c2), region = 92 }
 0x3b5   : > { %6976 = vst [vmem:[#allocation2] sm:$0x3] %v6975_v39 }
 0x3b6   : > { %v6960_v40 = vpop.f32.mrf.mxu2 }
 0x3b7   : > { %v6973_v41 = vpop.f32.mrf.mxu3 }
 0x3b8   : > { %v8445_v43 = vld [vmem:[%s4379_s27] ss:$0 sm:$0xff] }
 0x3bc   : > { %v6981_v42 = vld [vmem:[#allocation2] sm:$0x3] }
 0x3bd   : > { %v6986_v44 = vadd.f32 %v8445_v43, %v6981_v42 }
 0x3bf   : > { %v6987_v45 = vmax.f32 %v6986_v44, 0.0 }
 0x3c1   : > { %6988 = vst [vmem:[%s9632_s30] sm:$0x3] %v6987_v45 }
 0x3c2 PF: > { %s13_s18 = sadd.s32 1, %s8500_s18   ;;  %s9987_s12 = smov %s8480_s13 }
 0x3c3   : > { %p10_p0 = scmp.ge.s32.totalorder %s13_s18, 18   ;;  %s9988_s13 = smov %s8574_s25 }
 0x3c4   : > { %s9989_s14 = smov %s8492_s16  ;;  %s9990_s15 = smov %s8496_s17 }
 0x3c5   : > { %s9991_s16 = smov %s9994_s19  ;;  %s9992_s17 = smov %s9998_s20 }
 0x3c6   :  { %12 = sbr.rel (!%p10_p0) target bundleno = 4 (0x4), region = 138 }

</bundles_post_ra>
